<compile_context>
chip_gen: v7x
topology: tpu7x:2x2x1
jax: 0.10.0
libtpu: 0.0.40
codegen_flags: <defaults>
</compile_context>

<pallas_src>
import numpy as np
import jax
import jax.numpy as jnp
from jax import lax
from jax.experimental import pallas as pl
from jax.experimental.pallas import tpu as pltpu


def _ceil_to(a, m):
    return ((a + m - 1) // m) * m


# ---------------------------------------------------------------------------
# In-kernel helpers (pure value functions, traced inside the Pallas kernel)
# ---------------------------------------------------------------------------
def _fit_hw(v, hp, wp):
    """Zero-pad (bottom/right) or crop v:(H, W, C) to spatial size (hp, wp)."""
    h, w, c = v.shape
    if w > wp:
        v = v[:, :wp, :]
    elif w < wp:
        v = jnp.concatenate([v, jnp.zeros((h, wp - w, c), v.dtype)], axis=1)
    if h > hp:
        v = v[:hp]
    elif h < hp:
        v = jnp.concatenate([v, jnp.zeros((hp - h, wp, c), v.dtype)], axis=0)
    return v


def _split_cols_even_odd(u):
    """Even / odd column decimation (axis=1) using only static slices + concat."""
    n = u.shape[1]
    ev = jnp.concatenate([u[:, k:k + 1, :] for k in range(0, n, 2)], axis=1)
    od = jnp.concatenate([u[:, k:k + 1, :] for k in range(1, n, 2)], axis=1)
    return ev, od


def _stride2_taps(v, hop, wop):
    """Nine stride-2 3x3 taps: taps[dy*3+dx][i, j, :] == v_pad[2i+dy, 2j+dx, :].

    Output grid is (hop, wop) (multiples of 8 so downstream reshapes stay
    sublane-tile aligned); positions touching the zero padding are discarded /
    excluded by the caller.  Row decimation is a free leading-dim reshape;
    column decimation is a polyphase slice+concat.
    """
    hp, wp = 2 * hop + 2, 2 * wop + 1          # even row count -> free reshape split
    v = _fit_hw(v, hp, wp)
    c = v.shape[-1]
    v4 = v.reshape(hp // 2, 2, wp, c)          # leading-dims-only reshape (free)
    row_e, row_o = v4[:, 0], v4[:, 1]          # even / odd rows, each (hop+1, wp, c)
    phase = {}
    phase[(0, 0)], phase[(0, 1)] = _split_cols_even_odd(row_e)
    phase[(1, 0)], phase[(1, 1)] = _split_cols_even_odd(row_o)
    taps = []
    for dy in range(3):
        for dx in range(3):
            p = phase[(dy % 2, dx % 2)]
            taps.append(p[dy // 2: dy // 2 + hop, dx // 2: dx // 2 + wop, :])
    return taps


def _conv3x3_s2(v, w_flat, scale, bias, hop, wop):
    """3x3 / stride-2 / VALID conv + folded-BN + ReLU as one im2col matmul."""
    c = v.shape[-1]
    patches = jnp.concatenate(_stride2_taps(v, hop, wop), axis=-1)
    patches = patches.reshape(hop * wop, 9 * c)
    y = jnp.dot(patches, w_flat, preferred_element_type=jnp.float32)
    y = jnp.maximum(y * scale + bias, 0.0)
    return y.reshape(hop, wop, w_flat.shape[1])


def _conv3x3_same(v, w_flat, scale, bias):
    """3x3 / stride-1 / pad-1 conv + folded-BN + ReLU as one im2col matmul."""
    h, w, c = v.shape
    zc = jnp.zeros((h, 1, c), v.dtype)
    vp = jnp.concatenate([zc, v, zc], axis=1)                  # (h, w+2, c)
    zr = jnp.zeros((1, w + 2, c), v.dtype)
    vp = jnp.concatenate([zr, vp, zr], axis=0)                 # (h+2, w+2, c)
    taps = [vp[dy:dy + h, dx:dx + w, :] for dy in range(3) for dx in range(3)]
    patches = jnp.concatenate(taps, axis=-1).reshape(h * w, 9 * c)
    y = jnp.dot(patches, w_flat, preferred_element_type=jnp.float32)
    y = jnp.maximum(y * scale + bias, 0.0)
    return y.reshape(h, w, w_flat.shape[1])


def _maxpool3x3_s2(v, hop, wop):
    taps = _stride2_taps(v, hop, wop)
    m = taps[0]
    for t in taps[1:]:
        m = jnp.maximum(m, t)
    return m


# ---------------------------------------------------------------------------
# Fused kernel: one grid step = one batch element, everything stays in VMEM
# ---------------------------------------------------------------------------
def _inception_v3d_kernel(x_ref, w1_ref, s1_ref, b1_ref,
                          wb1_ref, sb1_ref, bb1_ref,
                          wb2a_ref, sb2a_ref, bb2a_ref,
                          wb2b_ref, sb2b_ref, bb2b_ref,
                          sew1_ref, sew2_ref, o_ref):
    _, H, W, Cin = x_ref.shape
    _, Ho, Wo, Ctot = o_ref.shape
    Hop, Wop = _ceil_to(Ho, 8), _ceil_to(Wo, 8)

    x = x_ref[0]                                                # (H, W, Cin) f32

    # -- merged heads: both 1x1 convs (+ folded BN + ReLU) as one matmul ----
    Ct = w1_ref.shape[1]                                        # ch3x3red + ch3x3redX2
    t = jnp.dot(x.reshape(H * W, Cin), w1_ref[...],
                preferred_element_type=jnp.float32)
    t = jnp.maximum(t * s1_ref[...] + b1_ref[...], 0.0).reshape(H, W, Ct)

    # -- branch1: 3x3 stride-2 conv (weights zero-extended over t's channels)
    br1 = _conv3x3_s2(t, wb1_ref[...], sb1_ref[...], bb1_ref[...], Hop, Wop)

    # -- branch2: 3x3 "same" conv, then 3x3 stride-2 conv -------------------
    mid = _conv3x3_same(t, wb2a_ref[...], sb2a_ref[...], bb2a_ref[...])
    br2 = _conv3x3_s2(mid, wb2b_ref[...], sb2b_ref[...], bb2b_ref[...], Hop, Wop)

    # -- branch3: 3x3 stride-2 max pool on the raw input --------------------
    br3 = _maxpool3x3_s2(x, Hop, Wop)

    # -- concat (lane-dense C = Ctot) + SE, all in registers ----------------
    out = jnp.concatenate([br1, br2, br3], axis=-1)             # (Hop, Wop, Ctot)
    valid = out[:Ho, :Wo, :]                                    # drop padded rows/cols

    gap = jnp.sum(valid, axis=(0, 1), keepdims=True) * (1.0 / float(Ho * Wo))
    gap = gap.reshape(1, Ctot)
    se_h = jnp.maximum(
        jnp.dot(gap, sew1_ref[...], preferred_element_type=jnp.float32), 0.0)
    z = jnp.dot(se_h, sew2_ref[...], preferred_element_type=jnp.float32)
    gate = 1.0 / (1.0 + jnp.exp(-z))                            # sigmoid, (1, Ctot)

    o_ref[0] = (valid * gate.reshape(1, 1, Ctot)).astype(o_ref.dtype)


# ---------------------------------------------------------------------------
# Trace-time weight fusion (tiny arrays; done once in the jitted wrapper)
# ---------------------------------------------------------------------------
def _fold_weights(params):
    w11, s11, b11 = params["b1c1"]          # (1,1,Cin,C1)
    w21, s21, b21 = params["b2c1"]          # (1,1,Cin,C2)
    C1, C2 = w11.shape[3], w21.shape[3]
    w1 = jnp.concatenate([w11[0, 0], w21[0, 0]], axis=1)        # (Cin, C1+C2)
    s1 = jnp.concatenate([s11, s21], axis=1)
    b1 = jnp.concatenate([b11, b21], axis=1)

    w12, s12, b12 = params["b1c2"]          # (3,3,C1,C1o) -- consumes t[..., :C1]
    C1o = w12.shape[3]
    wb1 = jnp.concatenate(
        [w12, jnp.zeros((3, 3, C2, C1o), w12.dtype)], axis=2).reshape(9 * (C1 + C2), C1o)

    w22, s22, b22 = params["b2c2"]          # (3,3,C2,C2o) -- consumes t[..., C1:]
    C2o = w22.shape[3]
    wb2a = jnp.concatenate(
        [jnp.zeros((3, 3, C1, C2o), w22.dtype), w22], axis=2).reshape(9 * (C1 + C2), C2o)

    w23, s23, b23 = params["b2c3"]          # (3,3,C2o,C2o)
    wb2b = w23.reshape(9 * C2o, C2o)

    return (w1, s1, b1, wb1, s12, b12, wb2a, s22, b22, wb2b, s23, b23)


@jax.jit
def inception_v3d_forward(x_nchw, params):
    x = jnp.transpose(x_nchw, (0, 2, 3, 1)).astype(jnp.float32)    # NCHW -> NHWC
    N, H, W, Cin = x.shape
    Ho, Wo = (H - 3) // 2 + 1, (W - 3) // 2 + 1

    (w1, s1, b1, wb1, sb1, bb1,
     wb2a, sb2a, bb2a, wb2b, sb2b, bb2b) = _fold_weights(params)
    sew1, sew2 = params["se_w1"], params["se_w2"]
    Ctot = wb1.shape[1] + wb2b.shape[1] + Cin

    consts = (w1, s1, b1, wb1, sb1, bb1, wb2a, sb2a, bb2a,
              wb2b, sb2b, bb2b, sew1, sew2)

    x_spec = pl.BlockSpec((1, H, W, Cin), lambda n: (n, 0, 0, 0))
    o_spec = pl.BlockSpec((1, Ho, Wo, Ctot), lambda n: (n, 0, 0, 0))
    const_specs = [pl.BlockSpec(a.shape, lambda n: (0, 0)) for a in consts]

    out = pl.pallas_call(
        _inception_v3d_kernel,
        out_shape=jax.ShapeDtypeStruct((N, Ho, Wo, Ctot), jnp.float32),
        grid=(N,),
        in_specs=[x_spec] + const_specs,
        out_specs=o_spec,
        compiler_params=pltpu.CompilerParams(
            dimension_semantics=("parallel",),
            vmem_limit_bytes=32 * 1024 * 1024),
    )(x, *consts)

    return jnp.transpose(out, (0, 3, 1, 2))                        # NHWC -> NCHW


# ---------------------------------------------------------------------------
# Deterministic synthetic parameters (Conv bias + eval-mode BN folded)
# ---------------------------------------------------------------------------
def _make_basic_conv_params(key, cin, cout, k):
    ks = jax.random.split(key, 6)
    w = jax.random.normal(ks[0], (k, k, cin, cout), jnp.float32) / np.sqrt(cin * k * k)
    conv_b = 0.1 * jax.random.normal(ks[1], (cout,), jnp.float32)
    gamma = 1.0 + 0.1 * jax.random.normal(ks[2], (cout,), jnp.float32)
    beta = 0.1 * jax.random.normal(ks[3], (cout,), jnp.float32)
    run_mean = 0.1 * jax.random.normal(ks[4], (cout,), jnp.float32)
    run_var = 1.0 + 0.1 * jnp.abs(jax.random.normal(ks[5], (cout,), jnp.float32))
    eps = 1e-5
    scale = gamma / jnp.sqrt(run_var + eps)
    bias = beta + scale * (conv_b - run_mean)
    return w, scale.reshape(1, cout), bias.reshape(1, cout)


def init_params(key, in_channels, ch3x3red, ch3x3, ch3x3redX2, ch3x3X2,
                total_channels, ratio=16):
    ks = jax.random.split(key, 7)
    hidden = total_channels // ratio
    return {
        "b1c1": _make_basic_conv_params(ks[0], in_channels, ch3x3red, 1),
        "b1c2": _make_basic_conv_params(ks[1], ch3x3red, ch3x3, 3),
        "b2c1": _make_basic_conv_params(ks[2], in_channels, ch3x3redX2, 1),
        "b2c2": _make_basic_conv_params(ks[3], ch3x3redX2, ch3x3X2, 3),
        "b2c3": _make_basic_conv_params(ks[4], ch3x3X2, ch3x3X2, 3),
        "se_w1": jax.random.normal(ks[5], (total_channels, hidden), jnp.float32)
                 / np.sqrt(total_channels),
        "se_w2": jax.random.normal(ks[6], (hidden, total_channels), jnp.float32)
                 / np.sqrt(hidden),
    }


# ---------------------------------------------------------------------------
# Pure-JAX reference (same folded params) for a sanity check
# ---------------------------------------------------------------------------
def reference_forward(x_nchw, p):
    x = jnp.transpose(x_nchw, (0, 2, 3, 1)).astype(jnp.float32)

    def conv_bn_relu(z, w, scale, bias, stride, padding):
        y = jax.lax.conv_general_dilated(
            z, w, (stride, stride), padding,
            dimension_numbers=("NHWC", "HWIO", "NHWC"),
            precision=jax.lax.Precision.HIGHEST)
        return jnp.maximum(y * scale.reshape(1, 1, 1, -1)
                           + bias.reshape(1, 1, 1, -1), 0.0)

    w, s, b = p["b1c1"]; y1 = conv_bn_relu(x, w, s, b, 1, "VALID")
    w, s, b = p["b1c2"]; y1 = conv_bn_relu(y1, w, s, b, 2, "VALID")
    w, s, b = p["b2c1"]; y2 = conv_bn_relu(x, w, s, b, 1, "VALID")
    w, s, b = p["b2c2"]; y2 = conv_bn_relu(y2, w, s, b, 1, [(1, 1), (1, 1)])
    w, s, b = p["b2c3"]; y2 = conv_bn_relu(y2, w, s, b, 2, "VALID")
    y3 = jax.lax.reduce_window(x, -jnp.inf, jax.lax.max,
                               (1, 3, 3, 1), (1, 2, 2, 1), "VALID")
    out = jnp.concatenate([y1, y2, y3], axis=-1)
    gap = jnp.mean(out, axis=(1, 2))
    h = jnp.maximum(gap @ p["se_w1"], 0.0)
    sgate = jax.nn.sigmoid(h @ p["se_w2"])
    out = out * sgate[:, None, None, :]
    return jnp.transpose(out, (0, 3, 1, 2))


if __name__ == "__main__":
    key = jax.random.PRNGKey(0)
    kp, kx = jax.random.split(key)

    # Small config: total_channels = ch3x3 + ch3x3X2 + in_channels = 32 (ratio 16 -> hidden 2)
    in_channels, ch1x1, ch3x3red, ch3x3 = 8, 8, 8, 16
    ch3x3redX2, ch3x3X2, pool_proj = 8, 8, 8          # ch1x1 / pool_proj unused by the module
    total_channels = ch3x3 + ch3x3X2 + in_channels    # 32

    params = init_params(kp, in_channels, ch3x3red, ch3x3,
                         ch3x3redX2, ch3x3X2, total_channels)
    x = jax.random.normal(kx, (2, in_channels, 16, 16), jnp.float32)   # NCHW

    out = jax.block_until_ready(inception_v3d_forward(x, params))
    assert out.shape == (2, total_channels, 7, 7), out.shape

    ref = reference_forward(x, params)
    err = float(jnp.max(jnp.abs(out - ref)))
    # Tolerance allows for MXU multi-pass rounding of the f32 matmuls.
    if not np.isfinite(err) or err > 2e-2:
        raise RuntimeError(f"kernel/reference mismatch, max abs err = {err}")

    print("KERNEL_OK")
</pallas_src>

<mosaic_0001>
module attributes {stable_mosaic.version = 11 : i64} {
  func.func @_inception_v3d_kernel(%arg0: i32, %arg1: memref<1x16x16x8xf32, #tpu.memory_space<vmem>>, %arg2: memref<8x16xf32, #tpu.memory_space<vmem>>, %arg3: memref<1x16xf32, #tpu.memory_space<vmem>>, %arg4: memref<1x16xf32, #tpu.memory_space<vmem>>, %arg5: memref<144x16xf32, #tpu.memory_space<vmem>>, %arg6: memref<1x16xf32, #tpu.memory_space<vmem>>, %arg7: memref<1x16xf32, #tpu.memory_space<vmem>>, %arg8: memref<144x8xf32, #tpu.memory_space<vmem>>, %arg9: memref<1x8xf32, #tpu.memory_space<vmem>>, %arg10: memref<1x8xf32, #tpu.memory_space<vmem>>, %arg11: memref<72x8xf32, #tpu.memory_space<vmem>>, %arg12: memref<1x8xf32, #tpu.memory_space<vmem>>, %arg13: memref<1x8xf32, #tpu.memory_space<vmem>>, %arg14: memref<32x2xf32, #tpu.memory_space<vmem>>, %arg15: memref<2x32xf32, #tpu.memory_space<vmem>>, %arg16: memref<1x7x7x32xf32, #tpu.memory_space<vmem>>) attributes {dimension_semantics = [#tpu.dimension_semantics<parallel>], iteration_bounds = array<i64: 2>, scalar_prefetch = 0 : i64, scratch_operands = 0 : i64, tpu.core_type = #tpu.core_type<tc>, window_params = [{transform_indices = @transform_0, window_bounds = array<i64: 1, 16, 16, 8>}, {pipeline_mode = #tpu.pipeline_mode<synchronous>, transform_indices = @transform_1, window_bounds = array<i64: 8, 16>}, {pipeline_mode = #tpu.pipeline_mode<synchronous>, transform_indices = @transform_2, window_bounds = array<i64: 1, 16>}, {pipeline_mode = #tpu.pipeline_mode<synchronous>, transform_indices = @transform_3, window_bounds = array<i64: 1, 16>}, {pipeline_mode = #tpu.pipeline_mode<synchronous>, transform_indices = @transform_4, window_bounds = array<i64: 144, 16>}, {pipeline_mode = #tpu.pipeline_mode<synchronous>, transform_indices = @transform_5, window_bounds = array<i64: 1, 16>}, {pipeline_mode = #tpu.pipeline_mode<synchronous>, transform_indices = @transform_6, window_bounds = array<i64: 1, 16>}, {pipeline_mode = #tpu.pipeline_mode<synchronous>, transform_indices = @transform_7, window_bounds = array<i64: 144, 8>}, {pipeline_mode = #tpu.pipeline_mode<synchronous>, transform_indices = @transform_8, window_bounds = array<i64: 1, 8>}, {pipeline_mode = #tpu.pipeline_mode<synchronous>, transform_indices = @transform_9, window_bounds = array<i64: 1, 8>}, {pipeline_mode = #tpu.pipeline_mode<synchronous>, transform_indices = @transform_10, window_bounds = array<i64: 72, 8>}, {pipeline_mode = #tpu.pipeline_mode<synchronous>, transform_indices = @transform_11, window_bounds = array<i64: 1, 8>}, {pipeline_mode = #tpu.pipeline_mode<synchronous>, transform_indices = @transform_12, window_bounds = array<i64: 1, 8>}, {pipeline_mode = #tpu.pipeline_mode<synchronous>, transform_indices = @transform_13, window_bounds = array<i64: 32, 2>}, {pipeline_mode = #tpu.pipeline_mode<synchronous>, transform_indices = @transform_14, window_bounds = array<i64: 2, 32>}, {transform_indices = @transform_15, window_bounds = array<i64: 1, 7, 7, 32>}]} {
    %c0 = arith.constant 0 : index
    %c0_0 = arith.constant 0 : index
    %c0_1 = arith.constant 0 : index
    %c0_2 = arith.constant 0 : index
    %0 = vector.load %arg1[%c0, %c0_0, %c0_1, %c0_2] : memref<1x16x16x8xf32, #tpu.memory_space<vmem>>, vector<1x16x16x8xf32>
    %1 = vector.shape_cast %0 : vector<1x16x16x8xf32> to vector<16x16x8xf32>
    %2 = vector.shape_cast %1 : vector<16x16x8xf32> to vector<256x8xf32>
    %c0_3 = arith.constant 0 : index
    %c0_4 = arith.constant 0 : index
    %3 = vector.load %arg2[%c0_3, %c0_4] : memref<8x16xf32, #tpu.memory_space<vmem>>, vector<8x16xf32>
    %cst = arith.constant dense<0.000000e+00> : vector<256x16xf32>
    %4 = tpu.matmul %2, %3, %cst {dimension_numbers = #tpu.dot_dimension_numbers<[1], [0], [0], [1], [0, 0, 1, 1], [], []>} : vector<256x8xf32>, vector<8x16xf32>, vector<256x16xf32> -> vector<256x16xf32>
    %c0_5 = arith.constant 0 : index
    %c0_6 = arith.constant 0 : index
    %5 = vector.load %arg3[%c0_5, %c0_6] : memref<1x16xf32, #tpu.memory_space<vmem>>, vector<1x16xf32>
    %6 = vector.broadcast %5 : vector<1x16xf32> to vector<256x16xf32>
    %7 = arith.mulf %4, %6 : vector<256x16xf32>
    %c0_7 = arith.constant 0 : index
    %c0_8 = arith.constant 0 : index
    %8 = vector.load %arg4[%c0_7, %c0_8] : memref<1x16xf32, #tpu.memory_space<vmem>>, vector<1x16xf32>
    %9 = vector.broadcast %8 : vector<1x16xf32> to vector<256x16xf32>
    %10 = arith.addf %7, %9 : vector<256x16xf32>
    %cst_9 = arith.constant 0.000000e+00 : f32
    %11 = vector.broadcast %cst_9 : f32 to vector<256x16xf32>
    %12 = arith.maximumf %10, %11 : vector<256x16xf32>
    %13 = vector.shape_cast %12 : vector<256x16xf32> to vector<16x16x16xf32>
    %c0_10 = arith.constant 0 : index
    %c0_11 = arith.constant 0 : index
    %14 = vector.load %arg5[%c0_10, %c0_11] : memref<144x16xf32, #tpu.memory_space<vmem>>, vector<144x16xf32>
    %c0_12 = arith.constant 0 : index
    %c0_13 = arith.constant 0 : index
    %15 = vector.load %arg6[%c0_12, %c0_13] : memref<1x16xf32, #tpu.memory_space<vmem>>, vector<1x16xf32>
    %c0_14 = arith.constant 0 : index
    %c0_15 = arith.constant 0 : index
    %16 = vector.load %arg7[%c0_14, %c0_15] : memref<1x16xf32, #tpu.memory_space<vmem>>, vector<1x16xf32>
    %cst_16 = arith.constant 0.000000e+00 : f32
    %17 = vector.broadcast %cst_16 : f32 to vector<16x1x16xf32>
    %18 = tpu.concatenate %13, %17 in 1 : vector<16x16x16xf32>, vector<16x1x16xf32> -> vector<16x17x16xf32>
    %cst_17 = arith.constant 0.000000e+00 : f32
    %19 = vector.broadcast %cst_17 : f32 to vector<2x17x16xf32>
    %20 = tpu.concatenate %18, %19 in 0 : vector<16x17x16xf32>, vector<2x17x16xf32> -> vector<18x17x16xf32>
    %21 = vector.shape_cast %20 : vector<18x17x16xf32> to vector<9x2x17x16xf32>
    %22 = vector.extract_strided_slice %21 {offsets = [0, 0, 0, 0], sizes = [9, 1, 17, 16], strides = [1, 1, 1, 1]} : vector<9x2x17x16xf32> to vector<9x1x17x16xf32>
    %23 = vector.shape_cast %22 : vector<9x1x17x16xf32> to vector<9x17x16xf32>
    %24 = vector.extract_strided_slice %21 {offsets = [0, 1, 0, 0], sizes = [9, 1, 17, 16], strides = [1, 1, 1, 1]} : vector<9x2x17x16xf32> to vector<9x1x17x16xf32>
    %25 = vector.shape_cast %24 : vector<9x1x17x16xf32> to vector<9x17x16xf32>
    %26 = vector.extract_strided_slice %23 {offsets = [0, 0, 0], sizes = [9, 1, 16], strides = [1, 1, 1]} : vector<9x17x16xf32> to vector<9x1x16xf32>
    %27 = vector.extract_strided_slice %23 {offsets = [0, 2, 0], sizes = [9, 1, 16], strides = [1, 1, 1]} : vector<9x17x16xf32> to vector<9x1x16xf32>
    %28 = vector.extract_strided_slice %23 {offsets = [0, 4, 0], sizes = [9, 1, 16], strides = [1, 1, 1]} : vector<9x17x16xf32> to vector<9x1x16xf32>
    %29 = vector.extract_strided_slice %23 {offsets = [0, 6, 0], sizes = [9, 1, 16], strides = [1, 1, 1]} : vector<9x17x16xf32> to vector<9x1x16xf32>
    %30 = vector.extract_strided_slice %23 {offsets = [0, 8, 0], sizes = [9, 1, 16], strides = [1, 1, 1]} : vector<9x17x16xf32> to vector<9x1x16xf32>
    %31 = vector.extract_strided_slice %23 {offsets = [0, 10, 0], sizes = [9, 1, 16], strides = [1, 1, 1]} : vector<9x17x16xf32> to vector<9x1x16xf32>
    %32 = vector.extract_strided_slice %23 {offsets = [0, 12, 0], sizes = [9, 1, 16], strides = [1, 1, 1]} : vector<9x17x16xf32> to vector<9x1x16xf32>
    %33 = vector.extract_strided_slice %23 {offsets = [0, 14, 0], sizes = [9, 1, 16], strides = [1, 1, 1]} : vector<9x17x16xf32> to vector<9x1x16xf32>
    %34 = vector.extract_strided_slice %23 {offsets = [0, 16, 0], sizes = [9, 1, 16], strides = [1, 1, 1]} : vector<9x17x16xf32> to vector<9x1x16xf32>
    %35 = tpu.concatenate %26, %27, %28, %29, %30, %31, %32, %33, %34 in 1 : vector<9x1x16xf32>, vector<9x1x16xf32>, vector<9x1x16xf32>, vector<9x1x16xf32>, vector<9x1x16xf32>, vector<9x1x16xf32>, vector<9x1x16xf32>, vector<9x1x16xf32>, vector<9x1x16xf32> -> vector<9x9x16xf32>
    %36 = vector.extract_strided_slice %23 {offsets = [0, 1, 0], sizes = [9, 1, 16], strides = [1, 1, 1]} : vector<9x17x16xf32> to vector<9x1x16xf32>
    %37 = vector.extract_strided_slice %23 {offsets = [0, 3, 0], sizes = [9, 1, 16], strides = [1, 1, 1]} : vector<9x17x16xf32> to vector<9x1x16xf32>
    %38 = vector.extract_strided_slice %23 {offsets = [0, 5, 0], sizes = [9, 1, 16], strides = [1, 1, 1]} : vector<9x17x16xf32> to vector<9x1x16xf32>
    %39 = vector.extract_strided_slice %23 {offsets = [0, 7, 0], sizes = [9, 1, 16], strides = [1, 1, 1]} : vector<9x17x16xf32> to vector<9x1x16xf32>
    %40 = vector.extract_strided_slice %23 {offsets = [0, 9, 0], sizes = [9, 1, 16], strides = [1, 1, 1]} : vector<9x17x16xf32> to vector<9x1x16xf32>
    %41 = vector.extract_strided_slice %23 {offsets = [0, 11, 0], sizes = [9, 1, 16], strides = [1, 1, 1]} : vector<9x17x16xf32> to vector<9x1x16xf32>
    %42 = vector.extract_strided_slice %23 {offsets = [0, 13, 0], sizes = [9, 1, 16], strides = [1, 1, 1]} : vector<9x17x16xf32> to vector<9x1x16xf32>
    %43 = vector.extract_strided_slice %23 {offsets = [0, 15, 0], sizes = [9, 1, 16], strides = [1, 1, 1]} : vector<9x17x16xf32> to vector<9x1x16xf32>
    %44 = tpu.concatenate %36, %37, %38, %39, %40, %41, %42, %43 in 1 : vector<9x1x16xf32>, vector<9x1x16xf32>, vector<9x1x16xf32>, vector<9x1x16xf32>, vector<9x1x16xf32>, vector<9x1x16xf32>, vector<9x1x16xf32>, vector<9x1x16xf32> -> vector<9x8x16xf32>
    %45 = vector.extract_strided_slice %25 {offsets = [0, 0, 0], sizes = [9, 1, 16], strides = [1, 1, 1]} : vector<9x17x16xf32> to vector<9x1x16xf32>
    %46 = vector.extract_strided_slice %25 {offsets = [0, 2, 0], sizes = [9, 1, 16], strides = [1, 1, 1]} : vector<9x17x16xf32> to vector<9x1x16xf32>
    %47 = vector.extract_strided_slice %25 {offsets = [0, 4, 0], sizes = [9, 1, 16], strides = [1, 1, 1]} : vector<9x17x16xf32> to vector<9x1x16xf32>
    %48 = vector.extract_strided_slice %25 {offsets = [0, 6, 0], sizes = [9, 1, 16], strides = [1, 1, 1]} : vector<9x17x16xf32> to vector<9x1x16xf32>
    %49 = vector.extract_strided_slice %25 {offsets = [0, 8, 0], sizes = [9, 1, 16], strides = [1, 1, 1]} : vector<9x17x16xf32> to vector<9x1x16xf32>
    %50 = vector.extract_strided_slice %25 {offsets = [0, 10, 0], sizes = [9, 1, 16], strides = [1, 1, 1]} : vector<9x17x16xf32> to vector<9x1x16xf32>
    %51 = vector.extract_strided_slice %25 {offsets = [0, 12, 0], sizes = [9, 1, 16], strides = [1, 1, 1]} : vector<9x17x16xf32> to vector<9x1x16xf32>
    %52 = vector.extract_strided_slice %25 {offsets = [0, 14, 0], sizes = [9, 1, 16], strides = [1, 1, 1]} : vector<9x17x16xf32> to vector<9x1x16xf32>
    %53 = vector.extract_strided_slice %25 {offsets = [0, 16, 0], sizes = [9, 1, 16], strides = [1, 1, 1]} : vector<9x17x16xf32> to vector<9x1x16xf32>
    %54 = tpu.concatenate %45, %46, %47, %48, %49, %50, %51, %52, %53 in 1 : vector<9x1x16xf32>, vector<9x1x16xf32>, vector<9x1x16xf32>, vector<9x1x16xf32>, vector<9x1x16xf32>, vector<9x1x16xf32>, vector<9x1x16xf32>, vector<9x1x16xf32>, vector<9x1x16xf32> -> vector<9x9x16xf32>
    %55 = vector.extract_strided_slice %25 {offsets = [0, 1, 0], sizes = [9, 1, 16], strides = [1, 1, 1]} : vector<9x17x16xf32> to vector<9x1x16xf32>
    %56 = vector.extract_strided_slice %25 {offsets = [0, 3, 0], sizes = [9, 1, 16], strides = [1, 1, 1]} : vector<9x17x16xf32> to vector<9x1x16xf32>
    %57 = vector.extract_strided_slice %25 {offsets = [0, 5, 0], sizes = [9, 1, 16], strides = [1, 1, 1]} : vector<9x17x16xf32> to vector<9x1x16xf32>
    %58 = vector.extract_strided_slice %25 {offsets = [0, 7, 0], sizes = [9, 1, 16], strides = [1, 1, 1]} : vector<9x17x16xf32> to vector<9x1x16xf32>
    %59 = vector.extract_strided_slice %25 {offsets = [0, 9, 0], sizes = [9, 1, 16], strides = [1, 1, 1]} : vector<9x17x16xf32> to vector<9x1x16xf32>
    %60 = vector.extract_strided_slice %25 {offsets = [0, 11, 0], sizes = [9, 1, 16], strides = [1, 1, 1]} : vector<9x17x16xf32> to vector<9x1x16xf32>
    %61 = vector.extract_strided_slice %25 {offsets = [0, 13, 0], sizes = [9, 1, 16], strides = [1, 1, 1]} : vector<9x17x16xf32> to vector<9x1x16xf32>
    %62 = vector.extract_strided_slice %25 {offsets = [0, 15, 0], sizes = [9, 1, 16], strides = [1, 1, 1]} : vector<9x17x16xf32> to vector<9x1x16xf32>
    %63 = tpu.concatenate %55, %56, %57, %58, %59, %60, %61, %62 in 1 : vector<9x1x16xf32>, vector<9x1x16xf32>, vector<9x1x16xf32>, vector<9x1x16xf32>, vector<9x1x16xf32>, vector<9x1x16xf32>, vector<9x1x16xf32>, vector<9x1x16xf32> -> vector<9x8x16xf32>
    %64 = vector.extract_strided_slice %35 {offsets = [0, 0, 0], sizes = [8, 8, 16], strides = [1, 1, 1]} : vector<9x9x16xf32> to vector<8x8x16xf32>
    %65 = vector.extract_strided_slice %44 {offsets = [0, 0, 0], sizes = [8, 8, 16], strides = [1, 1, 1]} : vector<9x8x16xf32> to vector<8x8x16xf32>
    %66 = vector.extract_strided_slice %35 {offsets = [0, 1, 0], sizes = [8, 8, 16], strides = [1, 1, 1]} : vector<9x9x16xf32> to vector<8x8x16xf32>
    %67 = vector.extract_strided_slice %54 {offsets = [0, 0, 0], sizes = [8, 8, 16], strides = [1, 1, 1]} : vector<9x9x16xf32> to vector<8x8x16xf32>
    %68 = vector.extract_strided_slice %63 {offsets = [0, 0, 0], sizes = [8, 8, 16], strides = [1, 1, 1]} : vector<9x8x16xf32> to vector<8x8x16xf32>
    %69 = vector.extract_strided_slice %54 {offsets = [0, 1, 0], sizes = [8, 8, 16], strides = [1, 1, 1]} : vector<9x9x16xf32> to vector<8x8x16xf32>
    %70 = vector.extract_strided_slice %35 {offsets = [1, 0, 0], sizes = [8, 8, 16], strides = [1, 1, 1]} : vector<9x9x16xf32> to vector<8x8x16xf32>
    %71 = vector.extract_strided_slice %44 {offsets = [1, 0, 0], sizes = [8, 8, 16], strides = [1, 1, 1]} : vector<9x8x16xf32> to vector<8x8x16xf32>
    %72 = vector.extract_strided_slice %35 {offsets = [1, 1, 0], sizes = [8, 8, 16], strides = [1, 1, 1]} : vector<9x9x16xf32> to vector<8x8x16xf32>
    %73 = tpu.concatenate %64, %65, %66, %67, %68, %69, %70, %71, %72 in 2 : vector<8x8x16xf32>, vector<8x8x16xf32>, vector<8x8x16xf32>, vector<8x8x16xf32>, vector<8x8x16xf32>, vector<8x8x16xf32>, vector<8x8x16xf32>, vector<8x8x16xf32>, vector<8x8x16xf32> -> vector<8x8x144xf32>
    %74 = vector.shape_cast %73 : vector<8x8x144xf32> to vector<64x144xf32>
    %cst_18 = arith.constant dense<0.000000e+00> : vector<64x16xf32>
    %75 = tpu.matmul %74, %14, %cst_18 {dimension_numbers = #tpu.dot_dimension_numbers<[1], [0], [0], [1], [0, 0, 1, 1], [], []>} : vector<64x144xf32>, vector<144x16xf32>, vector<64x16xf32> -> vector<64x16xf32>
    %76 = vector.broadcast %15 : vector<1x16xf32> to vector<64x16xf32>
    %77 = arith.mulf %75, %76 : vector<64x16xf32>
    %78 = vector.broadcast %16 : vector<1x16xf32> to vector<64x16xf32>
    %79 = arith.addf %77, %78 : vector<64x16xf32>
    %cst_19 = arith.constant 0.000000e+00 : f32
    %80 = vector.broadcast %cst_19 : f32 to vector<64x16xf32>
    %81 = arith.maximumf %79, %80 : vector<64x16xf32>
    %82 = vector.shape_cast %81 : vector<64x16xf32> to vector<8x8x16xf32>
    %c0_20 = arith.constant 0 : index
    %c0_21 = arith.constant 0 : index
    %83 = vector.load %arg8[%c0_20, %c0_21] : memref<144x8xf32, #tpu.memory_space<vmem>>, vector<144x8xf32>
    %c0_22 = arith.constant 0 : index
    %c0_23 = arith.constant 0 : index
    %84 = vector.load %arg9[%c0_22, %c0_23] : memref<1x8xf32, #tpu.memory_space<vmem>>, vector<1x8xf32>
    %c0_24 = arith.constant 0 : index
    %c0_25 = arith.constant 0 : index
    %85 = vector.load %arg10[%c0_24, %c0_25] : memref<1x8xf32, #tpu.memory_space<vmem>>, vector<1x8xf32>
    %cst_26 = arith.constant 0.000000e+00 : f32
    %86 = vector.broadcast %cst_26 : f32 to vector<16x1x16xf32>
    %87 = tpu.concatenate %86, %13, %86 in 1 : vector<16x1x16xf32>, vector<16x16x16xf32>, vector<16x1x16xf32> -> vector<16x18x16xf32>
    %cst_27 = arith.constant 0.000000e+00 : f32
    %88 = vector.broadcast %cst_27 : f32 to vector<1x18x16xf32>
    %89 = tpu.concatenate %88, %87, %88 in 0 : vector<1x18x16xf32>, vector<16x18x16xf32>, vector<1x18x16xf32> -> vector<18x18x16xf32>
    %90 = vector.extract_strided_slice %89 {offsets = [0, 0, 0], sizes = [16, 16, 16], strides = [1, 1, 1]} : vector<18x18x16xf32> to vector<16x16x16xf32>
    %91 = vector.extract_strided_slice %89 {offsets = [0, 1, 0], sizes = [16, 16, 16], strides = [1, 1, 1]} : vector<18x18x16xf32> to vector<16x16x16xf32>
    %92 = vector.extract_strided_slice %89 {offsets = [0, 2, 0], sizes = [16, 16, 16], strides = [1, 1, 1]} : vector<18x18x16xf32> to vector<16x16x16xf32>
    %93 = vector.extract_strided_slice %89 {offsets = [1, 0, 0], sizes = [16, 16, 16], strides = [1, 1, 1]} : vector<18x18x16xf32> to vector<16x16x16xf32>
    %94 = vector.extract_strided_slice %89 {offsets = [1, 1, 0], sizes = [16, 16, 16], strides = [1, 1, 1]} : vector<18x18x16xf32> to vector<16x16x16xf32>
    %95 = vector.extract_strided_slice %89 {offsets = [1, 2, 0], sizes = [16, 16, 16], strides = [1, 1, 1]} : vector<18x18x16xf32> to vector<16x16x16xf32>
    %96 = vector.extract_strided_slice %89 {offsets = [2, 0, 0], sizes = [16, 16, 16], strides = [1, 1, 1]} : vector<18x18x16xf32> to vector<16x16x16xf32>
    %97 = vector.extract_strided_slice %89 {offsets = [2, 1, 0], sizes = [16, 16, 16], strides = [1, 1, 1]} : vector<18x18x16xf32> to vector<16x16x16xf32>
    %98 = vector.extract_strided_slice %89 {offsets = [2, 2, 0], sizes = [16, 16, 16], strides = [1, 1, 1]} : vector<18x18x16xf32> to vector<16x16x16xf32>
    %99 = tpu.concatenate %90, %91, %92, %93, %94, %95, %96, %97, %98 in 2 : vector<16x16x16xf32>, vector<16x16x16xf32>, vector<16x16x16xf32>, vector<16x16x16xf32>, vector<16x16x16xf32>, vector<16x16x16xf32>, vector<16x16x16xf32>, vector<16x16x16xf32>, vector<16x16x16xf32> -> vector<16x16x144xf32>
    %100 = vector.shape_cast %99 : vector<16x16x144xf32> to vector<256x144xf32>
    %cst_28 = arith.constant dense<0.000000e+00> : vector<256x8xf32>
    %101 = tpu.matmul %100, %83, %cst_28 {dimension_numbers = #tpu.dot_dimension_numbers<[1], [0], [0], [1], [0, 0, 1, 1], [], []>} : vector<256x144xf32>, vector<144x8xf32>, vector<256x8xf32> -> vector<256x8xf32>
    %102 = vector.broadcast %84 : vector<1x8xf32> to vector<256x8xf32>
    %103 = arith.mulf %101, %102 : vector<256x8xf32>
    %104 = vector.broadcast %85 : vector<1x8xf32> to vector<256x8xf32>
    %105 = arith.addf %103, %104 : vector<256x8xf32>
    %cst_29 = arith.constant 0.000000e+00 : f32
    %106 = vector.broadcast %cst_29 : f32 to vector<256x8xf32>
    %107 = arith.maximumf %105, %106 : vector<256x8xf32>
    %108 = vector.shape_cast %107 : vector<256x8xf32> to vector<16x16x8xf32>
    %c0_30 = arith.constant 0 : index
    %c0_31 = arith.constant 0 : index
    %109 = vector.load %arg11[%c0_30, %c0_31] : memref<72x8xf32, #tpu.memory_space<vmem>>, vector<72x8xf32>
    %c0_32 = arith.constant 0 : index
    %c0_33 = arith.constant 0 : index
    %110 = vector.load %arg12[%c0_32, %c0_33] : memref<1x8xf32, #tpu.memory_space<vmem>>, vector<1x8xf32>
    %c0_34 = arith.constant 0 : index
    %c0_35 = arith.constant 0 : index
    %111 = vector.load %arg13[%c0_34, %c0_35] : memref<1x8xf32, #tpu.memory_space<vmem>>, vector<1x8xf32>
    %cst_36 = arith.constant 0.000000e+00 : f32
    %112 = vector.broadcast %cst_36 : f32 to vector<16x1x8xf32>
    %113 = tpu.concatenate %108, %112 in 1 : vector<16x16x8xf32>, vector<16x1x8xf32> -> vector<16x17x8xf32>
    %cst_37 = arith.constant 0.000000e+00 : f32
    %114 = vector.broadcast %cst_37 : f32 to vector<2x17x8xf32>
    %115 = tpu.concatenate %113, %114 in 0 : vector<16x17x8xf32>, vector<2x17x8xf32> -> vector<18x17x8xf32>
    %116 = vector.shape_cast %115 : vector<18x17x8xf32> to vector<9x2x17x8xf32>
    %117 = vector.extract_strided_slice %116 {offsets = [0, 0, 0, 0], sizes = [9, 1, 17, 8], strides = [1, 1, 1, 1]} : vector<9x2x17x8xf32> to vector<9x1x17x8xf32>
    %118 = vector.shape_cast %117 : vector<9x1x17x8xf32> to vector<9x17x8xf32>
    %119 = vector.extract_strided_slice %116 {offsets = [0, 1, 0, 0], sizes = [9, 1, 17, 8], strides = [1, 1, 1, 1]} : vector<9x2x17x8xf32> to vector<9x1x17x8xf32>
    %120 = vector.shape_cast %119 : vector<9x1x17x8xf32> to vector<9x17x8xf32>
    %121 = vector.extract_strided_slice %118 {offsets = [0, 0, 0], sizes = [9, 1, 8], strides = [1, 1, 1]} : vector<9x17x8xf32> to vector<9x1x8xf32>
    %122 = vector.extract_strided_slice %118 {offsets = [0, 2, 0], sizes = [9, 1, 8], strides = [1, 1, 1]} : vector<9x17x8xf32> to vector<9x1x8xf32>
    %123 = vector.extract_strided_slice %118 {offsets = [0, 4, 0], sizes = [9, 1, 8], strides = [1, 1, 1]} : vector<9x17x8xf32> to vector<9x1x8xf32>
    %124 = vector.extract_strided_slice %118 {offsets = [0, 6, 0], sizes = [9, 1, 8], strides = [1, 1, 1]} : vector<9x17x8xf32> to vector<9x1x8xf32>
    %125 = vector.extract_strided_slice %118 {offsets = [0, 8, 0], sizes = [9, 1, 8], strides = [1, 1, 1]} : vector<9x17x8xf32> to vector<9x1x8xf32>
    %126 = vector.extract_strided_slice %118 {offsets = [0, 10, 0], sizes = [9, 1, 8], strides = [1, 1, 1]} : vector<9x17x8xf32> to vector<9x1x8xf32>
    %127 = vector.extract_strided_slice %118 {offsets = [0, 12, 0], sizes = [9, 1, 8], strides = [1, 1, 1]} : vector<9x17x8xf32> to vector<9x1x8xf32>
    %128 = vector.extract_strided_slice %118 {offsets = [0, 14, 0], sizes = [9, 1, 8], strides = [1, 1, 1]} : vector<9x17x8xf32> to vector<9x1x8xf32>
    %129 = vector.extract_strided_slice %118 {offsets = [0, 16, 0], sizes = [9, 1, 8], strides = [1, 1, 1]} : vector<9x17x8xf32> to vector<9x1x8xf32>
    %130 = tpu.concatenate %121, %122, %123, %124, %125, %126, %127, %128, %129 in 1 : vector<9x1x8xf32>, vector<9x1x8xf32>, vector<9x1x8xf32>, vector<9x1x8xf32>, vector<9x1x8xf32>, vector<9x1x8xf32>, vector<9x1x8xf32>, vector<9x1x8xf32>, vector<9x1x8xf32> -> vector<9x9x8xf32>
    %131 = vector.extract_strided_slice %118 {offsets = [0, 1, 0], sizes = [9, 1, 8], strides = [1, 1, 1]} : vector<9x17x8xf32> to vector<9x1x8xf32>
    %132 = vector.extract_strided_slice %118 {offsets = [0, 3, 0], sizes = [9, 1, 8], strides = [1, 1, 1]} : vector<9x17x8xf32> to vector<9x1x8xf32>
    %133 = vector.extract_strided_slice %118 {offsets = [0, 5, 0], sizes = [9, 1, 8], strides = [1, 1, 1]} : vector<9x17x8xf32> to vector<9x1x8xf32>
    %134 = vector.extract_strided_slice %118 {offsets = [0, 7, 0], sizes = [9, 1, 8], strides = [1, 1, 1]} : vector<9x17x8xf32> to vector<9x1x8xf32>
    %135 = vector.extract_strided_slice %118 {offsets = [0, 9, 0], sizes = [9, 1, 8], strides = [1, 1, 1]} : vector<9x17x8xf32> to vector<9x1x8xf32>
    %136 = vector.extract_strided_slice %118 {offsets = [0, 11, 0], sizes = [9, 1, 8], strides = [1, 1, 1]} : vector<9x17x8xf32> to vector<9x1x8xf32>
    %137 = vector.extract_strided_slice %118 {offsets = [0, 13, 0], sizes = [9, 1, 8], strides = [1, 1, 1]} : vector<9x17x8xf32> to vector<9x1x8xf32>
    %138 = vector.extract_strided_slice %118 {offsets = [0, 15, 0], sizes = [9, 1, 8], strides = [1, 1, 1]} : vector<9x17x8xf32> to vector<9x1x8xf32>
    %139 = tpu.concatenate %131, %132, %133, %134, %135, %136, %137, %138 in 1 : vector<9x1x8xf32>, vector<9x1x8xf32>, vector<9x1x8xf32>, vector<9x1x8xf32>, vector<9x1x8xf32>, vector<9x1x8xf32>, vector<9x1x8xf32>, vector<9x1x8xf32> -> vector<9x8x8xf32>
    %140 = vector.extract_strided_slice %120 {offsets = [0, 0, 0], sizes = [9, 1, 8], strides = [1, 1, 1]} : vector<9x17x8xf32> to vector<9x1x8xf32>
    %141 = vector.extract_strided_slice %120 {offsets = [0, 2, 0], sizes = [9, 1, 8], strides = [1, 1, 1]} : vector<9x17x8xf32> to vector<9x1x8xf32>
    %142 = vector.extract_strided_slice %120 {offsets = [0, 4, 0], sizes = [9, 1, 8], strides = [1, 1, 1]} : vector<9x17x8xf32> to vector<9x1x8xf32>
    %143 = vector.extract_strided_slice %120 {offsets = [0, 6, 0], sizes = [9, 1, 8], strides = [1, 1, 1]} : vector<9x17x8xf32> to vector<9x1x8xf32>
    %144 = vector.extract_strided_slice %120 {offsets = [0, 8, 0], sizes = [9, 1, 8], strides = [1, 1, 1]} : vector<9x17x8xf32> to vector<9x1x8xf32>
    %145 = vector.extract_strided_slice %120 {offsets = [0, 10, 0], sizes = [9, 1, 8], strides = [1, 1, 1]} : vector<9x17x8xf32> to vector<9x1x8xf32>
    %146 = vector.extract_strided_slice %120 {offsets = [0, 12, 0], sizes = [9, 1, 8], strides = [1, 1, 1]} : vector<9x17x8xf32> to vector<9x1x8xf32>
    %147 = vector.extract_strided_slice %120 {offsets = [0, 14, 0], sizes = [9, 1, 8], strides = [1, 1, 1]} : vector<9x17x8xf32> to vector<9x1x8xf32>
    %148 = vector.extract_strided_slice %120 {offsets = [0, 16, 0], sizes = [9, 1, 8], strides = [1, 1, 1]} : vector<9x17x8xf32> to vector<9x1x8xf32>
    %149 = tpu.concatenate %140, %141, %142, %143, %144, %145, %146, %147, %148 in 1 : vector<9x1x8xf32>, vector<9x1x8xf32>, vector<9x1x8xf32>, vector<9x1x8xf32>, vector<9x1x8xf32>, vector<9x1x8xf32>, vector<9x1x8xf32>, vector<9x1x8xf32>, vector<9x1x8xf32> -> vector<9x9x8xf32>
    %150 = vector.extract_strided_slice %120 {offsets = [0, 1, 0], sizes = [9, 1, 8], strides = [1, 1, 1]} : vector<9x17x8xf32> to vector<9x1x8xf32>
    %151 = vector.extract_strided_slice %120 {offsets = [0, 3, 0], sizes = [9, 1, 8], strides = [1, 1, 1]} : vector<9x17x8xf32> to vector<9x1x8xf32>
    %152 = vector.extract_strided_slice %120 {offsets = [0, 5, 0], sizes = [9, 1, 8], strides = [1, 1, 1]} : vector<9x17x8xf32> to vector<9x1x8xf32>
    %153 = vector.extract_strided_slice %120 {offsets = [0, 7, 0], sizes = [9, 1, 8], strides = [1, 1, 1]} : vector<9x17x8xf32> to vector<9x1x8xf32>
    %154 = vector.extract_strided_slice %120 {offsets = [0, 9, 0], sizes = [9, 1, 8], strides = [1, 1, 1]} : vector<9x17x8xf32> to vector<9x1x8xf32>
    %155 = vector.extract_strided_slice %120 {offsets = [0, 11, 0], sizes = [9, 1, 8], strides = [1, 1, 1]} : vector<9x17x8xf32> to vector<9x1x8xf32>
    %156 = vector.extract_strided_slice %120 {offsets = [0, 13, 0], sizes = [9, 1, 8], strides = [1, 1, 1]} : vector<9x17x8xf32> to vector<9x1x8xf32>
    %157 = vector.extract_strided_slice %120 {offsets = [0, 15, 0], sizes = [9, 1, 8], strides = [1, 1, 1]} : vector<9x17x8xf32> to vector<9x1x8xf32>
    %158 = tpu.concatenate %150, %151, %152, %153, %154, %155, %156, %157 in 1 : vector<9x1x8xf32>, vector<9x1x8xf32>, vector<9x1x8xf32>, vector<9x1x8xf32>, vector<9x1x8xf32>, vector<9x1x8xf32>, vector<9x1x8xf32>, vector<9x1x8xf32> -> vector<9x8x8xf32>
    %159 = vector.extract_strided_slice %130 {offsets = [0, 0, 0], sizes = [8, 8, 8], strides = [1, 1, 1]} : vector<9x9x8xf32> to vector<8x8x8xf32>
    %160 = vector.extract_strided_slice %139 {offsets = [0, 0, 0], sizes = [8, 8, 8], strides = [1, 1, 1]} : vector<9x8x8xf32> to vector<8x8x8xf32>
    %161 = vector.extract_strided_slice %130 {offsets = [0, 1, 0], sizes = [8, 8, 8], strides = [1, 1, 1]} : vector<9x9x8xf32> to vector<8x8x8xf32>
    %162 = vector.extract_strided_slice %149 {offsets = [0, 0, 0], sizes = [8, 8, 8], strides = [1, 1, 1]} : vector<9x9x8xf32> to vector<8x8x8xf32>
    %163 = vector.extract_strided_slice %158 {offsets = [0, 0, 0], sizes = [8, 8, 8], strides = [1, 1, 1]} : vector<9x8x8xf32> to vector<8x8x8xf32>
    %164 = vector.extract_strided_slice %149 {offsets = [0, 1, 0], sizes = [8, 8, 8], strides = [1, 1, 1]} : vector<9x9x8xf32> to vector<8x8x8xf32>
    %165 = vector.extract_strided_slice %130 {offsets = [1, 0, 0], sizes = [8, 8, 8], strides = [1, 1, 1]} : vector<9x9x8xf32> to vector<8x8x8xf32>
    %166 = vector.extract_strided_slice %139 {offsets = [1, 0, 0], sizes = [8, 8, 8], strides = [1, 1, 1]} : vector<9x8x8xf32> to vector<8x8x8xf32>
    %167 = vector.extract_strided_slice %130 {offsets = [1, 1, 0], sizes = [8, 8, 8], strides = [1, 1, 1]} : vector<9x9x8xf32> to vector<8x8x8xf32>
    %168 = tpu.concatenate %159, %160, %161, %162, %163, %164, %165, %166, %167 in 2 : vector<8x8x8xf32>, vector<8x8x8xf32>, vector<8x8x8xf32>, vector<8x8x8xf32>, vector<8x8x8xf32>, vector<8x8x8xf32>, vector<8x8x8xf32>, vector<8x8x8xf32>, vector<8x8x8xf32> -> vector<8x8x72xf32>
    %169 = vector.shape_cast %168 : vector<8x8x72xf32> to vector<64x72xf32>
    %cst_38 = arith.constant dense<0.000000e+00> : vector<64x8xf32>
    %170 = tpu.matmul %169, %109, %cst_38 {dimension_numbers = #tpu.dot_dimension_numbers<[1], [0], [0], [1], [0, 0, 1, 1], [], []>} : vector<64x72xf32>, vector<72x8xf32>, vector<64x8xf32> -> vector<64x8xf32>
    %171 = vector.broadcast %110 : vector<1x8xf32> to vector<64x8xf32>
    %172 = arith.mulf %170, %171 : vector<64x8xf32>
    %173 = vector.broadcast %111 : vector<1x8xf32> to vector<64x8xf32>
    %174 = arith.addf %172, %173 : vector<64x8xf32>
    %cst_39 = arith.constant 0.000000e+00 : f32
    %175 = vector.broadcast %cst_39 : f32 to vector<64x8xf32>
    %176 = arith.maximumf %174, %175 : vector<64x8xf32>
    %177 = vector.shape_cast %176 : vector<64x8xf32> to vector<8x8x8xf32>
    %cst_40 = arith.constant 0.000000e+00 : f32
    %178 = vector.broadcast %cst_40 : f32 to vector<16x1x8xf32>
    %179 = tpu.concatenate %1, %178 in 1 : vector<16x16x8xf32>, vector<16x1x8xf32> -> vector<16x17x8xf32>
    %cst_41 = arith.constant 0.000000e+00 : f32
    %180 = vector.broadcast %cst_41 : f32 to vector<2x17x8xf32>
    %181 = tpu.concatenate %179, %180 in 0 : vector<16x17x8xf32>, vector<2x17x8xf32> -> vector<18x17x8xf32>
    %182 = vector.shape_cast %181 : vector<18x17x8xf32> to vector<9x2x17x8xf32>
    %183 = vector.extract_strided_slice %182 {offsets = [0, 0, 0, 0], sizes = [9, 1, 17, 8], strides = [1, 1, 1, 1]} : vector<9x2x17x8xf32> to vector<9x1x17x8xf32>
    %184 = vector.shape_cast %183 : vector<9x1x17x8xf32> to vector<9x17x8xf32>
    %185 = vector.extract_strided_slice %182 {offsets = [0, 1, 0, 0], sizes = [9, 1, 17, 8], strides = [1, 1, 1, 1]} : vector<9x2x17x8xf32> to vector<9x1x17x8xf32>
    %186 = vector.shape_cast %185 : vector<9x1x17x8xf32> to vector<9x17x8xf32>
    %187 = vector.extract_strided_slice %184 {offsets = [0, 0, 0], sizes = [9, 1, 8], strides = [1, 1, 1]} : vector<9x17x8xf32> to vector<9x1x8xf32>
    %188 = vector.extract_strided_slice %184 {offsets = [0, 2, 0], sizes = [9, 1, 8], strides = [1, 1, 1]} : vector<9x17x8xf32> to vector<9x1x8xf32>
    %189 = vector.extract_strided_slice %184 {offsets = [0, 4, 0], sizes = [9, 1, 8], strides = [1, 1, 1]} : vector<9x17x8xf32> to vector<9x1x8xf32>
    %190 = vector.extract_strided_slice %184 {offsets = [0, 6, 0], sizes = [9, 1, 8], strides = [1, 1, 1]} : vector<9x17x8xf32> to vector<9x1x8xf32>
    %191 = vector.extract_strided_slice %184 {offsets = [0, 8, 0], sizes = [9, 1, 8], strides = [1, 1, 1]} : vector<9x17x8xf32> to vector<9x1x8xf32>
    %192 = vector.extract_strided_slice %184 {offsets = [0, 10, 0], sizes = [9, 1, 8], strides = [1, 1, 1]} : vector<9x17x8xf32> to vector<9x1x8xf32>
    %193 = vector.extract_strided_slice %184 {offsets = [0, 12, 0], sizes = [9, 1, 8], strides = [1, 1, 1]} : vector<9x17x8xf32> to vector<9x1x8xf32>
    %194 = vector.extract_strided_slice %184 {offsets = [0, 14, 0], sizes = [9, 1, 8], strides = [1, 1, 1]} : vector<9x17x8xf32> to vector<9x1x8xf32>
    %195 = vector.extract_strided_slice %184 {offsets = [0, 16, 0], sizes = [9, 1, 8], strides = [1, 1, 1]} : vector<9x17x8xf32> to vector<9x1x8xf32>
    %196 = tpu.concatenate %187, %188, %189, %190, %191, %192, %193, %194, %195 in 1 : vector<9x1x8xf32>, vector<9x1x8xf32>, vector<9x1x8xf32>, vector<9x1x8xf32>, vector<9x1x8xf32>, vector<9x1x8xf32>, vector<9x1x8xf32>, vector<9x1x8xf32>, vector<9x1x8xf32> -> vector<9x9x8xf32>
    %197 = vector.extract_strided_slice %184 {offsets = [0, 1, 0], sizes = [9, 1, 8], strides = [1, 1, 1]} : vector<9x17x8xf32> to vector<9x1x8xf32>
    %198 = vector.extract_strided_slice %184 {offsets = [0, 3, 0], sizes = [9, 1, 8], strides = [1, 1, 1]} : vector<9x17x8xf32> to vector<9x1x8xf32>
    %199 = vector.extract_strided_slice %184 {offsets = [0, 5, 0], sizes = [9, 1, 8], strides = [1, 1, 1]} : vector<9x17x8xf32> to vector<9x1x8xf32>
    %200 = vector.extract_strided_slice %184 {offsets = [0, 7, 0], sizes = [9, 1, 8], strides = [1, 1, 1]} : vector<9x17x8xf32> to vector<9x1x8xf32>
    %201 = vector.extract_strided_slice %184 {offsets = [0, 9, 0], sizes = [9, 1, 8], strides = [1, 1, 1]} : vector<9x17x8xf32> to vector<9x1x8xf32>
    %202 = vector.extract_strided_slice %184 {offsets = [0, 11, 0], sizes = [9, 1, 8], strides = [1, 1, 1]} : vector<9x17x8xf32> to vector<9x1x8xf32>
    %203 = vector.extract_strided_slice %184 {offsets = [0, 13, 0], sizes = [9, 1, 8], strides = [1, 1, 1]} : vector<9x17x8xf32> to vector<9x1x8xf32>
    %204 = vector.extract_strided_slice %184 {offsets = [0, 15, 0], sizes = [9, 1, 8], strides = [1, 1, 1]} : vector<9x17x8xf32> to vector<9x1x8xf32>
    %205 = tpu.concatenate %197, %198, %199, %200, %201, %202, %203, %204 in 1 : vector<9x1x8xf32>, vector<9x1x8xf32>, vector<9x1x8xf32>, vector<9x1x8xf32>, vector<9x1x8xf32>, vector<9x1x8xf32>, vector<9x1x8xf32>, vector<9x1x8xf32> -> vector<9x8x8xf32>
    %206 = vector.extract_strided_slice %186 {offsets = [0, 0, 0], sizes = [9, 1, 8], strides = [1, 1, 1]} : vector<9x17x8xf32> to vector<9x1x8xf32>
    %207 = vector.extract_strided_slice %186 {offsets = [0, 2, 0], sizes = [9, 1, 8], strides = [1, 1, 1]} : vector<9x17x8xf32> to vector<9x1x8xf32>
    %208 = vector.extract_strided_slice %186 {offsets = [0, 4, 0], sizes = [9, 1, 8], strides = [1, 1, 1]} : vector<9x17x8xf32> to vector<9x1x8xf32>
    %209 = vector.extract_strided_slice %186 {offsets = [0, 6, 0], sizes = [9, 1, 8], strides = [1, 1, 1]} : vector<9x17x8xf32> to vector<9x1x8xf32>
    %210 = vector.extract_strided_slice %186 {offsets = [0, 8, 0], sizes = [9, 1, 8], strides = [1, 1, 1]} : vector<9x17x8xf32> to vector<9x1x8xf32>
    %211 = vector.extract_strided_slice %186 {offsets = [0, 10, 0], sizes = [9, 1, 8], strides = [1, 1, 1]} : vector<9x17x8xf32> to vector<9x1x8xf32>
    %212 = vector.extract_strided_slice %186 {offsets = [0, 12, 0], sizes = [9, 1, 8], strides = [1, 1, 1]} : vector<9x17x8xf32> to vector<9x1x8xf32>
    %213 = vector.extract_strided_slice %186 {offsets = [0, 14, 0], sizes = [9, 1, 8], strides = [1, 1, 1]} : vector<9x17x8xf32> to vector<9x1x8xf32>
    %214 = vector.extract_strided_slice %186 {offsets = [0, 16, 0], sizes = [9, 1, 8], strides = [1, 1, 1]} : vector<9x17x8xf32> to vector<9x1x8xf32>
    %215 = tpu.concatenate %206, %207, %208, %209, %210, %211, %212, %213, %214 in 1 : vector<9x1x8xf32>, vector<9x1x8xf32>, vector<9x1x8xf32>, vector<9x1x8xf32>, vector<9x1x8xf32>, vector<9x1x8xf32>, vector<9x1x8xf32>, vector<9x1x8xf32>, vector<9x1x8xf32> -> vector<9x9x8xf32>
    %216 = vector.extract_strided_slice %186 {offsets = [0, 1, 0], sizes = [9, 1, 8], strides = [1, 1, 1]} : vector<9x17x8xf32> to vector<9x1x8xf32>
    %217 = vector.extract_strided_slice %186 {offsets = [0, 3, 0], sizes = [9, 1, 8], strides = [1, 1, 1]} : vector<9x17x8xf32> to vector<9x1x8xf32>
    %218 = vector.extract_strided_slice %186 {offsets = [0, 5, 0], sizes = [9, 1, 8], strides = [1, 1, 1]} : vector<9x17x8xf32> to vector<9x1x8xf32>
    %219 = vector.extract_strided_slice %186 {offsets = [0, 7, 0], sizes = [9, 1, 8], strides = [1, 1, 1]} : vector<9x17x8xf32> to vector<9x1x8xf32>
    %220 = vector.extract_strided_slice %186 {offsets = [0, 9, 0], sizes = [9, 1, 8], strides = [1, 1, 1]} : vector<9x17x8xf32> to vector<9x1x8xf32>
    %221 = vector.extract_strided_slice %186 {offsets = [0, 11, 0], sizes = [9, 1, 8], strides = [1, 1, 1]} : vector<9x17x8xf32> to vector<9x1x8xf32>
    %222 = vector.extract_strided_slice %186 {offsets = [0, 13, 0], sizes = [9, 1, 8], strides = [1, 1, 1]} : vector<9x17x8xf32> to vector<9x1x8xf32>
    %223 = vector.extract_strided_slice %186 {offsets = [0, 15, 0], sizes = [9, 1, 8], strides = [1, 1, 1]} : vector<9x17x8xf32> to vector<9x1x8xf32>
    %224 = tpu.concatenate %216, %217, %218, %219, %220, %221, %222, %223 in 1 : vector<9x1x8xf32>, vector<9x1x8xf32>, vector<9x1x8xf32>, vector<9x1x8xf32>, vector<9x1x8xf32>, vector<9x1x8xf32>, vector<9x1x8xf32>, vector<9x1x8xf32> -> vector<9x8x8xf32>
    %225 = vector.extract_strided_slice %196 {offsets = [0, 0, 0], sizes = [8, 8, 8], strides = [1, 1, 1]} : vector<9x9x8xf32> to vector<8x8x8xf32>
    %226 = vector.extract_strided_slice %205 {offsets = [0, 0, 0], sizes = [8, 8, 8], strides = [1, 1, 1]} : vector<9x8x8xf32> to vector<8x8x8xf32>
    %227 = vector.extract_strided_slice %196 {offsets = [0, 1, 0], sizes = [8, 8, 8], strides = [1, 1, 1]} : vector<9x9x8xf32> to vector<8x8x8xf32>
    %228 = vector.extract_strided_slice %215 {offsets = [0, 0, 0], sizes = [8, 8, 8], strides = [1, 1, 1]} : vector<9x9x8xf32> to vector<8x8x8xf32>
    %229 = vector.extract_strided_slice %224 {offsets = [0, 0, 0], sizes = [8, 8, 8], strides = [1, 1, 1]} : vector<9x8x8xf32> to vector<8x8x8xf32>
    %230 = vector.extract_strided_slice %215 {offsets = [0, 1, 0], sizes = [8, 8, 8], strides = [1, 1, 1]} : vector<9x9x8xf32> to vector<8x8x8xf32>
    %231 = vector.extract_strided_slice %196 {offsets = [1, 0, 0], sizes = [8, 8, 8], strides = [1, 1, 1]} : vector<9x9x8xf32> to vector<8x8x8xf32>
    %232 = vector.extract_strided_slice %205 {offsets = [1, 0, 0], sizes = [8, 8, 8], strides = [1, 1, 1]} : vector<9x8x8xf32> to vector<8x8x8xf32>
    %233 = vector.extract_strided_slice %196 {offsets = [1, 1, 0], sizes = [8, 8, 8], strides = [1, 1, 1]} : vector<9x9x8xf32> to vector<8x8x8xf32>
    %234 = arith.maximumf %225, %226 : vector<8x8x8xf32>
    %235 = arith.maximumf %234, %227 : vector<8x8x8xf32>
    %236 = arith.maximumf %235, %228 : vector<8x8x8xf32>
    %237 = arith.maximumf %236, %229 : vector<8x8x8xf32>
    %238 = arith.maximumf %237, %230 : vector<8x8x8xf32>
    %239 = arith.maximumf %238, %231 : vector<8x8x8xf32>
    %240 = arith.maximumf %239, %232 : vector<8x8x8xf32>
    %241 = arith.maximumf %240, %233 : vector<8x8x8xf32>
    %242 = tpu.concatenate %82, %177, %241 in 2 : vector<8x8x16xf32>, vector<8x8x8xf32>, vector<8x8x8xf32> -> vector<8x8x32xf32>
    %243 = vector.extract_strided_slice %242 {offsets = [0, 0, 0], sizes = [7, 7, 32], strides = [1, 1, 1]} : vector<8x8x32xf32> to vector<7x7x32xf32>
    %cst_42 = arith.constant dense<0.000000e+00> : vector<32xf32>
    %244 = vector.multi_reduction <add>, %243, %cst_42 [0, 1] : vector<7x7x32xf32> to vector<32xf32>
    %245 = vector.shape_cast %244 : vector<32xf32> to vector<1x1x32xf32>
    %cst_43 = arith.constant 0.0204081628 : f32
    %246 = vector.broadcast %cst_43 : f32 to vector<1x1x32xf32>
    %247 = arith.mulf %245, %246 : vector<1x1x32xf32>
    %248 = vector.shape_cast %247 : vector<1x1x32xf32> to vector<1x32xf32>
    %c0_44 = arith.constant 0 : index
    %c0_45 = arith.constant 0 : index
    %249 = vector.load %arg14[%c0_44, %c0_45] : memref<32x2xf32, #tpu.memory_space<vmem>>, vector<32x2xf32>
    %cst_46 = arith.constant dense<0.000000e+00> : vector<1x2xf32>
    %250 = tpu.matmul %248, %249, %cst_46 {dimension_numbers = #tpu.dot_dimension_numbers<[1], [0], [0], [1], [0, 0, 1, 1], [], []>} : vector<1x32xf32>, vector<32x2xf32>, vector<1x2xf32> -> vector<1x2xf32>
    %cst_47 = arith.constant 0.000000e+00 : f32
    %251 = vector.broadcast %cst_47 : f32 to vector<1x2xf32>
    %252 = arith.maximumf %250, %251 : vector<1x2xf32>
    %c0_48 = arith.constant 0 : index
    %c0_49 = arith.constant 0 : index
    %253 = vector.load %arg15[%c0_48, %c0_49] : memref<2x32xf32, #tpu.memory_space<vmem>>, vector<2x32xf32>
    %cst_50 = arith.constant dense<0.000000e+00> : vector<1x32xf32>
    %254 = tpu.matmul %252, %253, %cst_50 {dimension_numbers = #tpu.dot_dimension_numbers<[1], [0], [0], [1], [0, 0, 1, 1], [], []>} : vector<1x2xf32>, vector<2x32xf32>, vector<1x32xf32> -> vector<1x32xf32>
    %cst_51 = arith.constant 0.000000e+00 : f32
    %255 = vector.broadcast %cst_51 : f32 to vector<1x32xf32>
    %256 = arith.subf %255, %254 : vector<1x32xf32>
    %257 = math.exp %256 : vector<1x32xf32>
    %cst_52 = arith.constant 1.000000e+00 : f32
    %258 = vector.broadcast %cst_52 : f32 to vector<1x32xf32>
    %259 = arith.addf %258, %257 : vector<1x32xf32>
    %cst_53 = arith.constant 1.000000e+00 : f32
    %260 = vector.broadcast %cst_53 : f32 to vector<1x32xf32>
    %261 = arith.divf %260, %259 : vector<1x32xf32>
    %262 = vector.shape_cast %261 : vector<1x32xf32> to vector<1x1x32xf32>
    %263 = vector.broadcast %262 : vector<1x1x32xf32> to vector<7x7x32xf32>
    %264 = arith.mulf %243, %263 : vector<7x7x32xf32>
    %c0_54 = arith.constant 0 : index
    %c0_55 = arith.constant 0 : index
    %c0_56 = arith.constant 0 : index
    %c0_57 = arith.constant 0 : index
    %265 = vector.load %arg16[%c0_54, %c0_55, %c0_56, %c0_57] : memref<1x7x7x32xf32, #tpu.memory_space<vmem>>, vector<1x7x7x32xf32>
    %266 = vector.shape_cast %265 : vector<1x7x7x32xf32> to vector<7x7x32xf32>
    %267 = vector.shape_cast %264 : vector<7x7x32xf32> to vector<1x7x7x32xf32>
    tpu.vector_store %arg16[%c0_54, %c0_55, %c0_56, %c0_57], %267 {strides = array<i32>} : memref<1x7x7x32xf32, #tpu.memory_space<vmem>>, vector<1x7x7x32xf32>,
    return
  }
  func.func @transform_0(%arg0: i32) -> (i32, i32, i32, i32) {
    %c0_i32 = arith.constant 0 : i32
    %c0_i32_0 = arith.constant 0 : i32
    %c0_i32_1 = arith.constant 0 : i32
    %c0_i32_2 = arith.constant 0 : i32
    return %arg0, %c0_i32, %c0_i32_0, %c0_i32_1 : i32, i32, i32, i32
  }
  func.func @transform_1(%arg0: i32) -> (i32, i32) {
    %c0_i32 = arith.constant 0 : i32
    %c0_i32_0 = arith.constant 0 : i32
    %c0_i32_1 = arith.constant 0 : i32
    return %c0_i32, %c0_i32_0 : i32, i32
  }
  func.func @transform_2(%arg0: i32) -> (i32, i32) {
    %c0_i32 = arith.constant 0 : i32
    %c0_i32_0 = arith.constant 0 : i32
    %c0_i32_1 = arith.constant 0 : i32
    return %c0_i32, %c0_i32_0 : i32, i32
  }
  func.func @transform_3(%arg0: i32) -> (i32, i32) {
    %c0_i32 = arith.constant 0 : i32
    %c0_i32_0 = arith.constant 0 : i32
    %c0_i32_1 = arith.constant 0 : i32
    return %c0_i32, %c0_i32_0 : i32, i32
  }
  func.func @transform_4(%arg0: i32) -> (i32, i32) {
    %c0_i32 = arith.constant 0 : i32
    %c0_i32_0 = arith.constant 0 : i32
    %c0_i32_1 = arith.constant 0 : i32
    return %c0_i32, %c0_i32_0 : i32, i32
  }
  func.func @transform_5(%arg0: i32) -> (i32, i32) {
    %c0_i32 = arith.constant 0 : i32
    %c0_i32_0 = arith.constant 0 : i32
    %c0_i32_1 = arith.constant 0 : i32
    return %c0_i32, %c0_i32_0 : i32, i32
  }
  func.func @transform_6(%arg0: i32) -> (i32, i32) {
    %c0_i32 = arith.constant 0 : i32
    %c0_i32_0 = arith.constant 0 : i32
    %c0_i32_1 = arith.constant 0 : i32
    return %c0_i32, %c0_i32_0 : i32, i32
  }
  func.func @transform_7(%arg0: i32) -> (i32, i32) {
    %c0_i32 = arith.constant 0 : i32
    %c0_i32_0 = arith.constant 0 : i32
    %c0_i32_1 = arith.constant 0 : i32
    return %c0_i32, %c0_i32_0 : i32, i32
  }
  func.func @transform_8(%arg0: i32) -> (i32, i32) {
    %c0_i32 = arith.constant 0 : i32
    %c0_i32_0 = arith.constant 0 : i32
    %c0_i32_1 = arith.constant 0 : i32
    return %c0_i32, %c0_i32_0 : i32, i32
  }
  func.func @transform_9(%arg0: i32) -> (i32, i32) {
    %c0_i32 = arith.constant 0 : i32
    %c0_i32_0 = arith.constant 0 : i32
    %c0_i32_1 = arith.constant 0 : i32
    return %c0_i32, %c0_i32_0 : i32, i32
  }
  func.func @transform_10(%arg0: i32) -> (i32, i32) {
    %c0_i32 = arith.constant 0 : i32
    %c0_i32_0 = arith.constant 0 : i32
    %c0_i32_1 = arith.constant 0 : i32
    return %c0_i32, %c0_i32_0 : i32, i32
  }
  func.func @transform_11(%arg0: i32) -> (i32, i32) {
    %c0_i32 = arith.constant 0 : i32
    %c0_i32_0 = arith.constant 0 : i32
    %c0_i32_1 = arith.constant 0 : i32
    return %c0_i32, %c0_i32_0 : i32, i32
  }
  func.func @transform_12(%arg0: i32) -> (i32, i32) {
    %c0_i32 = arith.constant 0 : i32
    %c0_i32_0 = arith.constant 0 : i32
    %c0_i32_1 = arith.constant 0 : i32
    return %c0_i32, %c0_i32_0 : i32, i32
  }
  func.func @transform_13(%arg0: i32) -> (i32, i32) {
    %c0_i32 = arith.constant 0 : i32
    %c0_i32_0 = arith.constant 0 : i32
    %c0_i32_1 = arith.constant 0 : i32
    return %c0_i32, %c0_i32_0 : i32, i32
  }
  func.func @transform_14(%arg0: i32) -> (i32, i32) {
    %c0_i32 = arith.constant 0 : i32
    %c0_i32_0 = arith.constant 0 : i32
    %c0_i32_1 = arith.constant 0 : i32
    return %c0_i32, %c0_i32_0 : i32, i32
  }
  func.func @transform_15(%arg0: i32) -> (i32, i32, i32, i32) {
    %c0_i32 = arith.constant 0 : i32
    %c0_i32_0 = arith.constant 0 : i32
    %c0_i32_1 = arith.constant 0 : i32
    %c0_i32_2 = arith.constant 0 : i32
    return %arg0, %c0_i32, %c0_i32_0, %c0_i32_1 : i32, i32, i32, i32
  }
}

</mosaic_0001>

<bundles_post_ra>
// kernel: inception_v3d_forward.1
= control target key start
LH: loop header
LB: loop body
LE: loop exit
PB: predicated region body
PF: predicated region fallthrough
CT: control target
= control target key end

     0   :  { %s6644_s18 = smov 0   ;;  %s11485_s0 = inlined_call_operand.vmem [shape: f32[2,16,16,8], index: 0, kind: input, shape index: {}]   ;;  %s11486_s1 = inlined_call_operand.vmem [shape: f32[8,16], index: 1, kind: input, shape index: {}]   ;;  %s11487_s2 = inlined_call_operand.vmem [shape: f32[1,16], index: 2, kind: input, shape index: {}]   ;;  %s11488_s3 = inlined_call_operand.vmem [shape: f32[1,16], index: 3, kind: input, shape index: {}]   ;;  %s11489_s4 = inlined_call_operand.vmem [shape: f32[144,16], index: 4, kind: input, shape index: {}]   ;;  %s11490_s5 = inlined_call_operand.vmem [shape: f32[1,16], index: 5, kind: input, shape index: {}]   ;;  %s11491_s6 = inlined_call_operand.vmem [shape: f32[1,16], index: 6, kind: input, shape index: {}]   ;;  %s11492_s7 = inlined_call_operand.vmem [shape: f32[144,8], index: 7, kind: input, shape index: {}]   ;;  %s11493_s8 = inlined_call_operand.vmem [shape: f32[1,8], index: 8, kind: input, shape index: {}]   ;;  %s11494_s9 = inlined_call_operand.vmem [shape: f32[1,8], index: 9, kind: input, shape index: {}]   ;;  %s11495_s10 = inlined_call_operand.vmem [shape: f32[72,8], index: 10, kind: input, shape index: {}]   ;;  %s11496_s11 = inlined_call_operand.vmem [shape: f32[1,8], index: 11, kind: input, shape index: {}]   ;;  %s11497_s12 = inlined_call_operand.vmem [shape: f32[1,8], index: 12, kind: input, shape index: {}]   ;;  %s11498_s13 = inlined_call_operand.vmem [shape: f32[32,2], index: 13, kind: input, shape index: {}]   ;;  %s11499_s14 = inlined_call_operand.vmem [shape: f32[2,32], index: 14, kind: input, shape index: {}]   ;;  %s11500_s15 = inlined_call_operand.vmem [shape: f32[2,7,7,32], index: 15, kind: output, shape index: {}]  }
   0x1 LB: > { %s5466_s19 = sadd.s32 4294967295, %s6548_s18   ;;  %p5470_p0 = scmp.ge.s32.totalorder %s6548_s18, 1  ;;  %s6548_s18 = sphi %s6644_s18, %s25_s18  }
   0x2   : > { %p437_p1 = scmp.lt.s32.totalorder %s6548_s18, 3 }
   0x4   : > { %p438_p2 = pnand %p5470_p0, %p437_p1 }
   0x6   : > { %441 = sbr.rel (%p438_p2) target bundleno = 1921 (0x781), region = 80 }
   0xd   : > { %v527_v0 = vld [vmem:[%s11486_s1] sm:$0xff]  ;;  %p485_p3 = scmp.lt.s32.totalorder %s5466_s19, 1  ;;  %vm528_vm0 = vcmask 64512   ;;  %vm1123_vm1 = vcmask 1040384   ;;  %vm1133_vm2 = vcmask 1041408   ;;  %vm1143_vm3 = vcmask 1042432  }
   0xe   : > { %5625 = vmatprep.subr.mxu0 %v527_v0  ;;  %vm1153_vm4 = vcmask 1043456   ;;  %vm1163_vm5 = vcmask 1044480   ;;  %vm1173_vm6 = vcmask 1045504   ;;  %vm1183_vm7 = vcmask 1046528   ;;  %s11600_s30 = smov 48   ;;  %s6552_s16 = smov 16  }
   0xf   : > { %5626 = vmatpush3.msra.mxu0 %v527_v0  ;;  %s12103_s19 = smov (!%p485_p3, %s5466_s19), 1  ;;  %vm1764_vm8 = vcmask 130048   ;;  %s11675_s17 = smov 64   ;;  %vm1773_vm9 = vcmask 261120   ;;  %vm1782_vm10 = vcmask 392192   ;;  %vm1791_vm11 = vcmask 523264  }
  0x10   : > { %s5567_s22 = sshll.u32 %s12103_s19, 8  ;;  %s6554_s20 = smov 80   ;;  %vm1800_vm12 = vcmask 654336   ;;  %vm1809_vm13 = vcmask 785408   ;;  %vm1818_vm14 = vcmask 916480   ;;  %vm4361_vm15 = vcmask 195584  }
  0x11   : > { %s6661_s25 = scalar_lea.vmem %s11485_s0, %s5567_s22  ;;  %s6555_s21 = smov 96  }
  0x12   : > { %v495_v1 = vld [vmem:[%s6661_s25] sm:$0xff]  ;;  %v496_v2 = vld [vmem:[%s6661_s25 + $0x8] sm:$0xff]  ;;  %v497_v3 = vld [vmem:[%s6661_s25 + $0x10] sm:$0xff]  ;;  %s11552_s22 = smov 112   ;;  %s11669_s23 = smov 32  }
  0x13   : > { %5627 = vmatprep.mubr.msk.f32.mxu0 %vm528_vm0, %v495_v1  ;;  %v4574_v4 = vrot.slane %v495_v1, 1  ;;  %v4590_v5 = vrot.slane %v495_v1, 2  ;;  %v4606_v6 = vrot.slane %v495_v1, 3  ;;  %v4742_v7 = vrot.slane %v495_v1, 4  ;;  %v498_v13 = vld [vmem:[%s6661_s25 + $0x18] sm:$0xff]  ;;  %v499_v17 = vld [vmem:[%s6661_s25 + $0x20] sm:$0xff] }
  0x14   : > { %5628 = vmatmul.mubr.msk.f32.vlgmr.msra.gmra.mrb[0].mxu0 %vm528_vm0, %v496_v2  ;;  %v4622_v8 = vrot.slane %v496_v2, 4  ;;  %v4638_v9 = vrot.slane %v496_v2, 5  ;;  %v4654_v12 = vrot.slane %v496_v2, 6  ;;  %v4670_v16 = vrot.slane %v496_v2, 7  ;;  %v500_v24 = vld [vmem:[%s6661_s25 + $0x28] sm:$0xff]  ;;  %v501_v27 = vld [vmem:[%s6661_s25 + $0x30] sm:$0xff] }
  0x15   : > { %v4686_v10 = vsel %vm1123_vm1, %v495_v1, %v4574_v4  ;;  %v4758_v11 = vsel %vm1123_vm1, %v4574_v4, %v4590_v5  ;;  %5630 = vmatprep.mubr.msk.f32.mxu0 %vm528_vm0, %v497_v3  ;;  %v4575_v31 = vrot.slane %v499_v17, 1  ;;  %v4591_v32 = vrot.slane %v499_v17, 2  ;;  %v502_v34 = vld [vmem:[%s6661_s25 + $0x38] sm:$0xff]  ;;  %v503_v38 = vld [vmem:[%s6661_s25 + $0x40] sm:$0xff]  ;;  %v504_v47 = vld [vmem:[%s6661_s25 + $0x48] sm:$0xff]  ;;  %s11824_s28 = smov 112  }
  0x16   : > { %v4694_v14 = vsel %vm1133_vm2, %v4686_v10, %v4590_v5  ;;  %v4766_v15 = vsel %vm1133_vm2, %v4758_v11, %v4606_v6  ;;  %v4607_v33 = vrot.slane %v499_v17, 3  ;;  %v4743_v35 = vrot.slane %v499_v17, 4  ;;  %v505_v50 = vld [vmem:[%s6661_s25 + $0x50] sm:$0xff]  ;;  %v506_v57 = vld [vmem:[%s6661_s25 + $0x58] sm:$0xff]  ;;  %v507_v58 = vld [vmem:[%s6661_s25 + $0x60] sm:$0xff]  ;;  %s6560_s26 = smov 8  }
  0x17   : > { %v4702_v18 = vsel %vm1143_vm3, %v4694_v14, %v4606_v6  ;;  %v4774_v19 = vsel %vm1143_vm3, %v4766_v15, %v4742_v7  ;;  %v4623_v36 = vrot.slane %v500_v24, 4  ;;  %v4639_v37 = vrot.slane %v500_v24, 5  ;;  %v508_v59 = vld [vmem:[%s6661_s25 + $0x68] sm:$0xff]  ;;  %v509_v60 = vld [vmem:[%s6661_s25 + $0x70] sm:$0xff]  ;;  %v510_v61 = vld [vmem:[%s6661_s25 + $0x78] sm:$0xff]  ;;  %s11671_s27 = smov 24  }
  0x18   : > { %v4710_v20 = vsel %vm1153_vm4, %v4702_v18, %v4622_v8  ;;  %v4782_v21 = vsel %vm1153_vm4, %v4774_v19, %v4638_v9  ;;  %5631 = vmatmul.mubr.msk.f32.gmra.mrb[2].mxu0 %vm528_vm0, %v498_v13  ;;  %v4687_v39 = vsel %vm1123_vm1, %v499_v17, %v4575_v31  ;;  %v4759_v40 = vsel %vm1123_vm1, %v4575_v31, %v4591_v32  ;;  %v511_v62 = vld [vmem:[%s6661_s25 + $0x80] sm:$0xff]  ;;  %v512_v63 = vld [vmem:[%s6661_s25 + $0x88] sm:$0xff]  ;;  %v513_v0 = vld [vmem:[%s6661_s25 + $0x90] sm:$0xff] }
  0x19   : > { %v4718_v22 = vsel %vm1163_vm5, %v4710_v20, %v4638_v9  ;;  %v4790_v23 = vsel %vm1163_vm5, %v4782_v21, %v4654_v12  ;;  %5633 = vmatprep.mubr.msk.f32.mxu0 %vm528_vm0, %v499_v17  ;;  %v4655_v41 = vrot.slane %v500_v24, 6  ;;  %v4695_v42 = vsel %vm1133_vm2, %v4687_v39, %v4591_v32  ;;  %v514_v1 = vld [vmem:[%s6661_s25 + $0x98] sm:$0xff]  ;;  %v516_v3 = vld [vmem:[%s6661_s25 + $0xa8] sm:$0xff]  ;;  %v517_v4 = vld [vmem:[%s6661_s25 + $0xb0] sm:$0xff] }
  0x1a   : > { %v4726_v25 = vsel %vm1173_vm6, %v4718_v22, %v4654_v12  ;;  %v4798_v26 = vsel %vm1173_vm6, %v4790_v23, %v4670_v16  ;;  %v4767_v43 = vsel %vm1133_vm2, %v4759_v40, %v4607_v33  ;;  %v4671_v44 = vrot.slane %v500_v24, 7  ;;  %v518_v5 = vld [vmem:[%s6661_s25 + $0xb8] sm:$0xff]  ;;  %v519_v6 = vld [vmem:[%s6661_s25 + $0xc0] sm:$0xff]  ;;  %v520_v7 = vld [vmem:[%s6661_s25 + $0xc8] sm:$0xff] }
  0x1b   : > { %v6688_v28 = vsel %vm1183_vm7, %v4726_v25, %v4670_v16  ;;  %v6691_v29 = vsel %vm1183_vm7, %v4798_v26, %v496_v2  ;;  %v4703_v45 = vsel %vm1143_vm3, %v4695_v42, %v4607_v33  ;;  %v4775_v46 = vsel %vm1143_vm3, %v4767_v43, %v4743_v35  ;;  %v515_v2 = vld [vmem:[%s6661_s25 + $0xa0] sm:$0xff]  ;;  %v521_v8 = vld [vmem:[%s6661_s25 + $0xd0] sm:$0xff]  ;;  %v522_v9 = vld [vmem:[%s6661_s25 + $0xd8] sm:$0xff] }
  0x1c   : > { %11685 = vst [vmem:[#allocation2_spill] sm:$0xff] %v6688_v28  ;;  %11686 = vst [vmem:[#allocation3_spill] sm:$0xff] %v6691_v29  ;;  %5634 = vmatmul.mubr.msk.f32.gmra.mrb[4].mxu0 %vm528_vm0, %v500_v24  ;;  %v4711_v48 = vsel %vm1153_vm4, %v4703_v45, %v4623_v36  ;;  %v4783_v49 = vsel %vm1153_vm4, %v4775_v46, %v4639_v37  ;;  %v523_v10 = vld [vmem:[%s6661_s25 + $0xe0] sm:$0xff]  ;;  %v524_v11 = vld [vmem:[%s6661_s25 + $0xe8] sm:$0xff] }
  0x1d   : > { %5636 = vmatprep.mubr.msk.f32.mxu0 %vm528_vm0, %v501_v27  ;;  %v4719_v51 = vsel %vm1163_vm5, %v4711_v48, %v4639_v37  ;;  %v4791_v52 = vsel %vm1163_vm5, %v4783_v49, %v4655_v41  ;;  %v525_v12 = vld [vmem:[%s6661_s25 + $0xf0] sm:$0xff]  ;;  %v526_v13 = vld [vmem:[%s6661_s25 + $0xf8] sm:$0xff]  ;;  %v6768_v14 = vld [vmem:[%s11487_s2] ss:$0 sm:$0xff] }
  0x1e   : > { %v4727_v53 = vsel %vm1173_vm6, %v4719_v51, %v4655_v41  ;;  %v4799_v54 = vsel %vm1173_vm6, %v4791_v52, %v4671_v44  ;;  %v6773_v16 = vld [vmem:[%s11488_s3] ss:$0 sm:$0xff] }
  0x1f   : > { %v6717_v55 = vsel %vm1183_vm7, %v4727_v53, %v4671_v44  ;;  %v6720_v56 = vsel %vm1183_vm7, %v4799_v54, %v500_v24 }
  0x20   : > { %5637 = vmatmul.mubr.msk.f32.gmra.mrb[6].mxu0 %vm528_vm0, %v502_v34  ;;  %11687 = vst [vmem:[#allocation4_spill] sm:$0xff] %v6717_v55  ;;  %11688 = vst [vmem:[#allocation5_spill] sm:$0xff] %v6720_v56 }
  0x21   : > { %5639 = vmatprep.mubr.msk.f32.mxu0 %vm528_vm0, %v503_v38 }
  0x24   : > { %5640 = vmatmul.mubr.msk.f32.gmra.mrb[8].mxu0 %vm528_vm0, %v504_v47 }
  0x25   : > { %5642 = vmatprep.mubr.msk.f32.mxu0 %vm528_vm0, %v505_v50 }
  0x28   : > { %5643 = vmatmul.mubr.msk.f32.gmra.mrb[10].mxu0 %vm528_vm0, %v506_v57 }
  0x29   : > { %5645 = vmatprep.mubr.msk.f32.mxu0 %vm528_vm0, %v507_v58 }
  0x2c   : > { %5646 = vmatmul.mubr.msk.f32.gmra.mrb[12].mxu0 %vm528_vm0, %v508_v59 }
  0x2d   : > { %5648 = vmatprep.mubr.msk.f32.mxu0 %vm528_vm0, %v509_v60 }
  0x30   : > { %5649 = vmatmul.mubr.msk.f32.gmra.mrb[14].mxu0 %vm528_vm0, %v510_v61 }
  0x31   : > { %5651 = vmatprep.mubr.msk.f32.mxu0 %vm528_vm0, %v511_v62  ;;  %v11501_v62 = vmov 0.0  }
  0x34   : > { %5652 = vmatmul.mubr.msk.f32.gmra.mrb[16].mxu0 %vm528_vm0, %v512_v63  ;;  %v6841_v63 = vrot.slane %v11501_v62, 1 }
  0x35   : > { %5654 = vmatprep.mubr.msk.f32.mxu0 %vm528_vm0, %v513_v0 }
  0x36   : > { %11692 = vst [vmem:[#allocation9_spill] sm:$0xff] %v6841_v63 }
  0x38   : > { %5655 = vmatmul.mubr.msk.f32.gmra.mrb[18].mxu0 %vm528_vm0, %v514_v1 }
  0x39   : > { %5657 = vmatprep.mubr.msk.f32.mxu0 %vm528_vm0, %v515_v2 }
  0x3c   : > { %5658 = vmatmul.mubr.msk.f32.gmra.mrb[20].mxu0 %vm528_vm0, %v516_v3 }
  0x3d   : > { %5660 = vmatprep.mubr.msk.f32.mxu0 %vm528_vm0, %v517_v4 }
  0x40   : > { %5661 = vmatmul.mubr.msk.f32.gmra.mrb[22].mxu0 %vm528_vm0, %v518_v5 }
  0x41   : > { %5663 = vmatprep.mubr.msk.f32.mxu0 %vm528_vm0, %v519_v6 }
  0x44   : > { %5664 = vmatmul.mubr.msk.f32.gmra.mrb[24].mxu0 %vm528_vm0, %v520_v7 }
  0x45   : > { %5666 = vmatprep.mubr.msk.f32.mxu0 %vm528_vm0, %v521_v8 }
  0x48   : > { %5667 = vmatmul.mubr.msk.f32.gmra.mrb[26].mxu0 %vm528_vm0, %v522_v9 }
  0x49   : > { %5669 = vmatprep.mubr.msk.f32.mxu0 %vm528_vm0, %v523_v10 }
  0x4c   : > { %5670 = vmatmul.mubr.msk.f32.gmra.mrb[28].mxu0 %vm528_vm0, %v524_v11 }
  0x4d   : > { %5672 = vmatprep.mubr.msk.f32.mxu0 %vm528_vm0, %v525_v12 }
  0x50   : > { %5673 = vmatmul.mubr.msk.f32.gmra.mrb[30].mxu0 %vm528_vm0, %v526_v13 }
  0xe7   : > { %v5629_v15 = vpop.f32.mrb[0].mxu0 }
  0xe8   : > { %v858_v17 = vmul.f32 %v5629_v15, %v6768_v14  ;;  %v691_v18 = vpop.f32.mrb[1].mxu0 }
  0xe9   : > { %v857_v19 = vmul.f32 %v6768_v14, %v691_v18 }
  0xea   : > { %v897_v20 = vadd.f32 %v6773_v16, %v858_v17  ;;  %v6875_v17 = vrot.slane %v11501_v62, 2 }
  0xeb   : > { %v896_v21 = vadd.f32 %v6773_v16, %v857_v19  ;;  %v5632_v22 = vpop.f32.mrb[2].mxu0 }
  0xec   : > { %v6779_v23 = vmax.f32 %v897_v20, 0.0  ;;  %v860_v24 = vmul.f32 %v5632_v22, %v6768_v14  ;;  %v701_v25 = vpop.f32.mrb[3].mxu0  ;;  %11693 = vst [vmem:[#allocation10_spill] sm:$0xff] %v6875_v17 }
  0xed   : > { %v6782_v26 = vmax.f32 %v896_v21, 0.0  ;;  %v859_v27 = vmul.f32 %v6768_v14, %v701_v25  ;;  %v1033_v21 = vrot.slane %v11501_v62, 3 }
  0xee   : > { %v899_v31 = vadd.f32 %v6773_v16, %v860_v24  ;;  %v6787_v32 = vrot.slane %v6779_v23, 7  ;;  %v11505_v53 = vrot.slane %v6779_v23, 5  ;;  %v11504_v59 = vrot.slane %v6779_v23, 6 }
  0xef   : > { %v989_v33 = vrot.slane %v6782_v26, 1  ;;  %v1007_v34 = vrot.slane %v6782_v26, 2  ;;  %v898_v35 = vadd.f32 %v6773_v16, %v859_v27  ;;  %v5635_v36 = vpop.f32.mrb[4].mxu0  ;;  %v2000_v37 = vrot.slane %v6782_v26, 7 }
  0xf0   : > { %v6793_v38 = vmax.f32 %v899_v31, 0.0  ;;  %v711_v39 = vpop.f32.mrb[5].mxu0  ;;  %v11513_v40 = vrot.slane %v6782_v26, 3  ;;  %v1193_v47 = vrot.slane %v6782_v26, 4  ;;  %v862_v22 = vmul.f32 %v5635_v36, %v6768_v14 }
  0xf1   : > { %v6796_v41 = vmax.f32 %v898_v35, 0.0  ;;  %v6802_v42 = vsel %vm1123_vm1, %v2000_v37, %v6787_v32  ;;  %v1209_v44 = vsel %vm1123_vm1, %v989_v33, %v1007_v34  ;;  %v861_v10 = vmul.f32 %v6768_v14, %v711_v39 }
  0xf2   : > { %11689 = vst [vmem:[#allocation6_spill] sm:$0xff] %v6802_v42  ;;  %v6805_v43 = vrot.slane %v6793_v38, 7  ;;  %v1218_v48 = vsel %vm1133_vm2, %v1209_v44, %v11513_v40  ;;  %v1336_v13 = vrot.slane %v6793_v38, 4  ;;  %v1352_v18 = vrot.slane %v6793_v38, 5 }
  0xf3   : > { %v6812_v45 = vpop.f32.mrb[6].mxu0  ;;  %v2002_v46 = vrot.slane %v6796_v41, 7  ;;  %v1227_v52 = vsel %vm1143_vm3, %v1218_v48, %v1193_v47  ;;  %v1280_v2 = vrot.slane %v6796_v41, 1  ;;  %v1296_v5 = vrot.slane %v6796_v41, 2 }
  0xf4   : > { %v6819_v49 = vpop.f32.mrb[7].mxu0  ;;  %v1236_v0 = vsel %vm1153_vm4, %v1227_v52, %v11505_v53  ;;  %v1312_v11 = vrot.slane %v6796_v41, 3  ;;  %v1368_v24 = vrot.slane %v6793_v38, 6  ;;  %v1217_v31 = vsel %vm1123_vm1, %v6841_v63, %v6875_v17 }
  0xf5   : > { %v6822_v50 = vsel %vm1123_vm1, 0.0, %v2002_v46  ;;  %v6826_v51 = vsel %vm1123_vm1, %v2002_v46, %v6805_v43  ;;  %v1245_v1 = vsel %vm1163_vm5, %v1236_v0, %v11504_v59  ;;  %v1400_v12 = vsel %vm1123_vm1, %v6796_v41, %v1280_v2 }
  0xf6   : > { %11690 = vst [vmem:[#allocation7_spill] sm:$0xff] %v6822_v50  ;;  %11691 = vst [vmem:[#allocation8_spill] sm:$0xff] %v6826_v51  ;;  %v5838_v54 = vpack.i.bf16 %v6822_v50, %v6802_v42  ;;  %v2300_v58 = vrot.slane %v6822_v50, 2  ;;  %v11503_v61 = vrot.slane %v6826_v51, 2  ;;  %v1254_v4 = vsel %vm1173_vm6, %v1245_v1, %v6787_v32 }
  0xf7   : > { %v6832_v57 = vpop.f32.mrb[8].mxu0  ;;  %v1263_v7 = vsel %vm1183_vm7, %v1254_v4, %v6779_v23  ;;  %v1408_v15 = vsel %vm1133_vm2, %v1400_v12, %v1296_v5  ;;  %v900_v35 = vadd.f32 %v6773_v16, %v861_v10  ;;  %v6894_v44 = vsel %vm1123_vm1, %v6787_v32, 0.0 }
  0xf8   : > { %5839 = vrot.lane.b32.xlu0 %v5838_v54, %s11600_s30  ;;  %v6837_v60 = vpop.f32.mrb[9].mxu0  ;;  %v6853_v3 = vsel %vm1173_vm6, %v2300_v58, %v11503_v61  ;;  %v5843_v8 = vpack.i.bf16 %v1263_v7, %v6841_v63  ;;  %v1416_v19 = vsel %vm1143_vm3, %v1408_v15, %v1312_v11  ;;  %v1132_v36 = vsel %vm1123_vm1, 0.0, %v6841_v63 }
  0xf9   : > { %5518 = vmatprep.mubr.msk.f32.mxu0 %vm1764_vm8, %v6853_v3  ;;  %v1424_v25 = vsel %vm1153_vm4, %v1416_v19, %v1336_v13  ;;  %v1059_v47 = vrot.slane %v11501_v62, 4  ;;  %v6907_v52 = vsel %vm1123_vm1, 0.0, %v2000_v37  ;;  %v2127_v54 = vrot.slane %v6802_v42, 1 }
  0xfa   : > { %v1432_v39 = vsel %vm1163_vm5, %v1424_v25, %v1352_v18  ;;  %11694 = vst [vmem:[#allocation11_spill] sm:$0xff] %v6907_v52  ;;  %v1226_v0 = vsel %vm1133_vm2, %v1217_v31, %v1033_v21  ;;  %v901_v1 = vadd.f32 %v6773_v16, %v862_v22  ;;  %v2129_v7 = vrot.slane %v6894_v44, 1 }
  0xfb   : > { %v6860_v6 = vpop.f32.mrb[10].mxu0  ;;  %v1440_v46 = vsel %vm1173_vm6, %v1432_v39, %v1368_v24  ;;  %v1142_v10 = vsel %vm1133_vm2, %v1132_v36, %v6875_v17  ;;  %v6921_v37 = vmax.f32 %v900_v35, 0.0  ;;  %v2131_v12 = vrot.slane %v6822_v50, 1 }
  0xfc   : > { %v6865_v9 = vpop.f32.mrb[11].mxu0  ;;  %5844 = vrot.lane.b32.xlu0 %v5843_v8, %s6552_s16  ;;  %v6902_v48 = vsel %vm1183_vm7, %v1440_v46, %v6805_v43  ;;  %v2132_v13 = vrot.slane %v6826_v51, 1  ;;  %v1456_v15 = vrot.slane %v6796_v41, 4  ;;  %v1472_v19 = vsel %vm1123_vm1, %v1280_v2, %v1296_v5 }
  0xfd   : > { %v5868_v4 = vpack.i.bf16 %v6902_v48, %v6907_v52  ;;  %v1077_v22 = vrot.slane %v11501_v62, 5  ;;  %v1235_v25 = vsel %vm1143_vm3, %v1226_v0, %v1059_v47  ;;  %v6931_v31 = vsel %vm1183_vm7, %v2127_v54, %v2129_v7 }
  0xfe   : > { %v6936_v35 = vsel %vm1183_vm7, %v2131_v12, %v2132_v13  ;;  %v1480_v39 = vsel %vm1133_vm2, %v1472_v19, %v1312_v11  ;;  %v1152_v41 = vsel %vm1143_vm3, %v1142_v10, %v1033_v21  ;;  %v6942_v46 = vmax.f32 %v901_v1, 0.0 }
  0xff   : > { %v6879_v20 = vpop.f32.mrb[12].mxu0  ;;  %5869 = vrot.lane.b32.xlu1 %v5868_v4, %s11600_s30  ;;  %v5848_v2 = vpack.i.bf16 %v6936_v35, %v6931_v31  ;;  %v1488_v5 = vsel %vm1143_vm3, %v1480_v39, %v1456_v15  ;;  %v2126_v0 = vrot.slane %v6907_v52, 1  ;;  %v11508_v7 = vrot.slane %v6921_v37, 1 }
 0x100   : > { %v6885_v27 = vpop.f32.mrb[13].mxu0  ;;  %v1496_v12 = vsel %vm1153_vm4, %v1488_v5, %v1352_v18  ;;  %v6953_v11 = vrot.slane %v11501_v62, 6  ;;  %v11511_v21 = vrot.slane %v6921_v37, 2  ;;  %v6959_v10 = vrot.slane %v11501_v62, 7 }
 0x101   : > { %5849 = vrot.lane.b32.xlu0 %v5848_v2, %s11675_s17  ;;  %v1504_v1 = vsel %vm1163_vm5, %v1496_v12, %v1368_v24  ;;  %v1244_v15 = vsel %vm1153_vm4, %v1235_v25, %v1077_v22  ;;  %v11506_v18 = vrot.slane %v6802_v42, 2  ;;  %v11507_v39 = vrot.slane %v6921_v37, 3 }
 0x102   : > { %v1512_v19 = vsel %vm1173_vm6, %v1504_v1, %v6805_v43  ;;  %v1162_v30 = vsel %vm1153_vm4, %v1152_v41, %v1059_v47  ;;  %v1052_v2 = vrot.slane %v6942_v46, 4  ;;  %v6973_v12 = vsel %vm1183_vm7, %v2126_v0, %v2127_v54 }
 0x103   : > { %v6910_v58 = vpop.f32.mrb[14].mxu0  ;;  %v1520_v24 = vsel %vm1183_vm7, %v1512_v19, %v6793_v38  ;;  %v6976_v25 = vrot.slane %v6942_v46, 7  ;;  %v11509_v62 = vrot.slane %v6942_v46, 5  ;;  %v1125_v47 = vsel %vm1123_vm1, %v6921_v37, %v11508_v7 }
 0x104   : > { %v6917_v8 = vpop.f32.mrb[15].mxu0  ;;  %v5873_v61 = vpack.i.bf16 %v1520_v24, %v6973_v12  ;;  %v2298_v41 = vrot.slane %v6894_v44, 2  ;;  %v11510_v38 = vrot.slane %v6942_v46, 6  ;;  %v1135_v54 = vsel %vm1133_vm2, %v1125_v47, %v11511_v21 }
 0x105   : > { %v2004_v0 = vrot.slane %v6921_v37, 7  ;;  %v1253_v19 = vsel %vm1163_vm5, %v1244_v15, %v6953_v11  ;;  %v863_v24 = vmul.f32 %v6768_v14, %v6819_v49  ;;  %v1145_v44 = vsel %vm1143_vm3, %v1135_v54, %v11507_v39 }
 0x106   : > { %5874 = vrot.lane.b32.xlu1 %v5873_v61, %s11675_s17  ;;  %v7003_v59 = vsel %vm1173_vm6, %v11506_v18, %v2298_v41  ;;  %v7007_v47 = vsel %vm1123_vm1, %v6805_v43, 0.0  ;;  %v1155_v15 = vsel %vm1153_vm4, %v1145_v44, %v1052_v2  ;;  %v1172_v41 = vsel %vm1163_vm5, %v1162_v30, %v1077_v22 }
 0x107   : > { %v6939_v36 = vpop.f32.mrb[16].mxu0  ;;  %v5853_v49 = vpack.i.bf16 %v6853_v3, %v7003_v59  ;;  %v7016_v61 = vsel %vm1123_vm1, %v2004_v0, %v6976_v25  ;;  %v1165_v43 = vsel %vm1163_vm5, %v1155_v15, %v11509_v62  ;;  %v7025_v18 = vsel %vm1123_vm1, 0.0, %v2004_v0 }
 0x108   : > { %v6948_v4 = vpop.f32.mrb[17].mxu0  ;;  %11695 = vst [vmem:[#allocation12_spill] sm:$0xff] %v7016_v61  ;;  %11696 = vst [vmem:[#allocation13_spill] sm:$0xff] %v7025_v18  ;;  %v2134_v2 = vrot.slane %v7007_v47, 1  ;;  %v11512_v44 = vrot.slane %v7016_v61, 1  ;;  %v1124_v39 = vsel %vm1123_vm1, %v6782_v26, %v989_v33  ;;  %v865_v7 = vmul.f32 %v6768_v14, %v6837_v60 }
 0x109   : > { %v1175_v30 = vsel %vm1173_vm6, %v1165_v43, %v11510_v38  ;;  %5854 = vrot.lane.b32.xlu0 %v5853_v49, %s6554_s20  ;;  %v2136_v22 = vrot.slane %v7025_v18, 1  ;;  %v864_v0 = vmul.f32 %v6812_v45, %v6768_v14  ;;  %v902_v15 = vadd.f32 %v6773_v16, %v863_v24 }
 0x10a   : > { %v866_v33 = vmul.f32 %v6832_v57, %v6768_v14  ;;  %v7047_v60 = vsel %vm1183_vm7, %v1175_v30, %v6976_v25  ;;  %v7055_v49 = vsel %vm1183_vm7, %v2132_v13, %v2134_v2  ;;  %v5858_v57 = vpack.i.bf16 %v7025_v18, %v6826_v51 }
 0x10b   : > { %v6966_v5 = vpop.f32.mrb[18].mxu0  ;;  %11697 = vst [vmem:[#allocation14_spill] sm:$0xff] %v7047_v60  ;;  %v1570_v43 = vrot.slane %v7047_v60, 1  ;;  %v7060_v45 = vsel %vm1183_vm7, %v2136_v22, %v11512_v44  ;;  %v1262_v38 = vsel %vm1173_vm6, %v1253_v19, %v6959_v10  ;;  %v1051_v21 = vrot.slane %v6779_v23, 4 }
 0x10c   : > { %v6978_v1 = vpop.f32.mrb[19].mxu0  ;;  %v5878_v30 = vpack.i.bf16 %v7060_v45, %v7055_v49  ;;  %v904_v13 = vadd.f32 %v6773_v16, %v865_v7  ;;  %v1134_v22 = vsel %vm1133_vm2, %v1124_v39, %v1007_v34  ;;  %v903_v44 = vadd.f32 %v6773_v16, %v864_v0 }
 0x10d   : > { %v7074_v2 = vsel %vm1183_vm7, %v1570_v43, %v6841_v63  ;;  %5859 = vrot.lane.b32.xlu0 %v5858_v57, %s6555_s21  ;;  %v7081_v40 = vmax.f32 %v902_v15, 0.0  ;;  %v11698_v7 = vrot.slane %v6782_v26, 3  ;;  %v1182_v57 = vsel %vm1173_vm6, %v1172_v41, %v6953_v11 }
 0x10e   : > { %5508 = vmatprep.mubr.msk.f32.mxu1 %vm1764_vm8, %v7074_v2  ;;  %5879 = vrot.lane.b32.xlu1 %v5878_v30, %s11552_s22  ;;  %v905_v34 = vadd.f32 %v6773_v16, %v866_v33  ;;  %v1194_v0 = vrot.slane %v6921_v37, 4  ;;  %v11699_v15 = vrot.slane %v6921_v37, 2  ;;  %v11700_v29 = vrot.slane %v6921_v37, 1 }
 0x10f   : > { %v7009_v53 = vpop.f32.mrb[20].mxu0  ;;  %v1144_v19 = vsel %vm1143_vm3, %v1134_v22, %v11698_v7  ;;  %v868_v22 = vmul.f32 %v6860_v6, %v6768_v14  ;;  %v867_v11 = vmul.f32 %v6768_v14, %v6865_v9  ;;  %v5888_v41 = vpack.i.bf16 %v7047_v60, %v6822_v50 }
 0x110   : > { %v7018_v54 = vpop.f32.mrb[21].mxu0  ;;  %v1154_v39 = vsel %vm1153_vm4, %v1144_v19, %v1051_v21  ;;  %v1210_v30 = vsel %vm1123_vm1, %v11700_v29, %v11699_v15  ;;  %v11701_v21 = vrot.slane %v6779_v23, 5  ;;  %v7112_v7 = vmax.f32 %v904_v13, 0.0 }
 0x111   : > { %v11702_v19 = vrot.slane %v6779_v23, 6  ;;  %v11703_v15 = vrot.slane %v6921_v37, 3  ;;  %v7121_v28 = vsel %vm1183_vm7, %v1262_v38, 0.0  ;;  %v7123_v9 = vmax.f32 %v903_v44, 0.0 }
 0x112   : > { %v1164_v33 = vsel %vm1163_vm5, %v1154_v39, %v11701_v21  ;;  %11704 = vst [vmem:[#allocation15_spill] sm:$0xff] %v7121_v28  ;;  %5889 = vrot.lane.b32.xlu1 %v5888_v41, %s6555_s21  ;;  %v7135_v37 = vsel %vm1183_vm7, %v1182_v57, %v6959_v10  ;;  %v1672_v38 = vrot.slane %v6902_v48, 1  ;;  %v11706_v41 = vrot.slane %v6942_v46, 5 }
 0x113   : > { %v7049_v62 = vpop.f32.mrb[22].mxu0  ;;  %v1174_v29 = vsel %vm1173_vm6, %v1164_v33, %v11702_v19  ;;  %v1219_v6 = vsel %vm1133_vm2, %v1210_v30, %v11703_v15  ;;  %11705 = vst [vmem:[#allocation16_spill] sm:$0xff] %v7135_v37  ;;  %v7137_v30 = vmax.f32 %v905_v34, 0.0  ;;  %v907_v33 = vadd.f32 %v6773_v16, %v868_v22 }
 0x114   : > { %v7064_v24 = vpop.f32.mrb[23].mxu0  ;;  %v7128_v39 = vsel %vm1183_vm7, %v1174_v29, %v6787_v32  ;;  %v1228_v13 = vsel %vm1143_vm3, %v1219_v6, %v1194_v0  ;;  %v1281_v0 = vrot.slane %v7081_v40, 1  ;;  %v906_v19 = vadd.f32 %v6773_v16, %v867_v11 }
 0x115   : > { %v1568_v44 = vrot.slane %v7128_v39, 1  ;;  %v1237_v21 = vsel %vm1153_vm4, %v1228_v13, %v11706_v41  ;;  %v11707_v10 = vrot.slane %v6942_v46, 6  ;;  %v991_v48 = vrot.slane %v7112_v7, 1 }
 0x116   : > { %v2295_v34 = vrot.slane %v6907_v52, 2  ;;  %v1337_v6 = vrot.slane %v7123_v9, 4  ;;  %v870_v22 = vmul.f32 %v6879_v20, %v6768_v14  ;;  %v7175_v56 = vmax.f32 %v906_v19, 0.0 }
 0x117   : > { %v7089_v43 = vpop.f32.mrb[24].mxu0  ;;  %v1246_v57 = vsel %vm1163_vm5, %v1237_v21, %v11707_v10  ;;  %v1569_v29 = vsel %vm1183_vm7, %v1568_v44, %v6841_v63  ;;  %v1673_v44 = vsel %vm1183_vm7, %v1672_v38, %v6841_v63  ;;  %v7181_v38 = vsel %vm1123_vm1, %v7112_v7, %v991_v48 }
 0x118   : > { %v7101_v26 = vpop.f32.mrb[25].mxu0  ;;  %v1255_v15 = vsel %vm1173_vm6, %v1246_v57, %v6976_v25  ;;  %v5863_v11 = vpack.i.bf16 %v1569_v29, %v6875_v17  ;;  %v1297_v57 = vrot.slane %v7081_v40, 2  ;;  %v11708_v21 = vrot.slane %v6802_v42, 2 }
 0x119   : > { %v1264_v13 = vsel %vm1183_vm7, %v1255_v15, %v6942_v46  ;;  %v1313_v46 = vrot.slane %v7081_v40, 3  ;;  %v7183_v15 = vmax.f32 %v907_v33, 0.0  ;;  %v1401_v19 = vsel %vm1123_vm1, %v7081_v40, %v1281_v0 }
 0x11a   : > { %v5893_v10 = vpack.i.bf16 %v1264_v13, %v6936_v35  ;;  %5864 = vrot.lane.b32.xlu0 %v5863_v11, %s11669_s23  ;;  %v2297_v17 = vsel %vm1173_vm6, %v2295_v34, %v11708_v21  ;;  %v909_v11 = vadd.f32 %v6773_v16, %v870_v22  ;;  %v1353_v50 = vrot.slane %v7123_v9, 5 }
 0x11b   : > { %v7131_v23 = vpop.f32.mrb[26].mxu0  ;;  %v5883_v29 = vpack.i.bf16 %v1673_v44, %v2297_v17  ;;  %v5898_v33 = vpack.i.bf16 %v1264_v13, %v6973_v12  ;;  %v1369_v42 = vrot.slane %v7123_v9, 6  ;;  %v1409_v34 = vsel %vm1133_vm2, %v1401_v19, %v1297_v57 }
 0x11c   : > { %v7144_v32 = vpop.f32.mrb[27].mxu0  ;;  %5894 = vrot.lane.b32.xlu1 %v5893_v10, %s11552_s22  ;;  %v869_v20 = vmul.f32 %v6768_v14, %v6885_v27  ;;  %v7206_v22 = vrot.slane %v7123_v9, 7  ;;  %v1417_v44 = vsel %vm1143_vm3, %v1409_v34, %v1313_v46  ;;  %v1195_v12 = vrot.slane %v7112_v7, 4 }
 0x11d   : > { %v872_v13 = vmul.f32 %v6910_v58, %v6768_v14  ;;  %v871_v19 = vmul.f32 %v6768_v14, %v6917_v8  ;;  %v1425_v21 = vsel %vm1153_vm4, %v1417_v44, %v1337_v6  ;;  %v11711_v27 = vrot.slane %v7112_v7, 2 }
 0x11e   : > { %5884 = vrot.lane.b32.xlu0 %v5883_v29, %s6554_s20  ;;  %v1433_v34 = vsel %vm1163_vm5, %v1425_v21, %v1353_v50  ;;  %v11712_v58 = vrot.slane %v7112_v7, 3  ;;  %v5903_v8 = vpack.i.bf16 %v7074_v2, %v2297_v17  ;;  %v7229_v6 = vrot.slane %v7137_v30, 7 }
 0x11f   : > { %v7164_v41 = vpop.f32.mrb[28].mxu0  ;;  %v1211_v29 = vsel %vm1123_vm1, %v991_v48, %v11711_v27  ;;  %v11713_v21 = vrot.slane %v7137_v30, 5  ;;  %v1457_v27 = vrot.slane %v7081_v40, 4  ;;  %v1338_v17 = vrot.slane %v7183_v15, 4 }
 0x120   : > { %v7171_v55 = vpop.f32.mrb[29].mxu0  ;;  %5899 = vrot.lane.b32.xlu1 %v5898_v33, %s6552_s16  ;;  %v1220_v52 = vsel %vm1133_vm2, %v1211_v29, %v11712_v58  ;;  %v1441_v33 = vsel %vm1173_vm6, %v1433_v34, %v1369_v42  ;;  %v1473_v29 = vsel %vm1123_vm1, %v1281_v0, %v1297_v57  ;;  %v7243_v2 = vrot.slane %v7183_v15, 7 }
 0x121   : > { %v1229_v48 = vsel %vm1143_vm3, %v1220_v52, %v1195_v12  ;;  %v1282_v34 = vrot.slane %v7175_v56, 1  ;;  %v7249_v12 = vmax.f32 %v909_v11, 0.0  ;;  %v908_v58 = vadd.f32 %v6773_v16, %v869_v20 }
 0x122   : > { %v1238_v44 = vsel %vm1153_vm4, %v1229_v48, %v11713_v21  ;;  %v910_v57 = vadd.f32 %v6773_v16, %v871_v19  ;;  %v1481_v21 = vsel %vm1133_vm2, %v1473_v29, %v1313_v46  ;;  %v11714_v11 = vrot.slane %v7175_v56, 7 }
 0x123   : > { %v7194_v60 = vpop.f32.mrb[30].mxu0  ;;  %v876_v46 = vmul.f32 %v6966_v5, %v6768_v14 }
 0x124   : > { %11709 = vst [vmem:[#allocation17_spill] sm:$0xff] %v7194_v60  ;;  %v7200_v10 = vpop.f32.mrb[31].mxu0  ;;  %v1089_v60 = vrot.slane %v7137_v30, 6  ;;  %5904 = vrot.lane.b32.xlu1 %v5903_v8, %s11669_s23  ;;  %v7265_v20 = vsel %vm1123_vm1, %v11714_v11, %v7243_v2  ;;  %v873_v8 = vmul.f32 %v6768_v14, %v6948_v4  ;;  %v875_v4 = vmul.f32 %v6768_v14, %v6978_v1 }
 0x125   : > { %11710 = vst [vmem:[#allocation18_spill] sm:$0xff] %v7200_v10  ;;  %v874_v10 = vmul.f32 %v6939_v36, %v6768_v14  ;;  %v7234_v36 = vsel %vm1183_vm7, %v1441_v33, %v7206_v22  ;;  %v911_v33 = vadd.f32 %v6773_v16, %v872_v13  ;;  %11715 = vst [vmem:[#allocation19_spill] sm:$0xff] %v7265_v20 }
 0x126   : > { %v5908_v52 = vpack.i.bf16 %v6826_v51, %v7234_v36  ;;  %v1247_v0 = vsel %vm1163_vm5, %v1238_v44, %v1089_v60  ;;  %v1489_v44 = vsel %vm1143_vm3, %v1481_v21, %v1457_v27  ;;  %v7290_v21 = vmax.f32 %v908_v58, 0.0 }
 0x127   : > { %v1256_v48 = vsel %vm1173_vm6, %v1247_v0, %v7229_v6  ;;  %v913_v13 = vadd.f32 %v6773_v16, %v874_v10  ;;  %v7282_v10 = vsel %vm1123_vm1, %v7243_v2, 0.0  ;;  %v912_v11 = vadd.f32 %v6773_v16, %v873_v8 }
 0x128   : > { %5909 = vrot.lane.b32.xlu0 %v5908_v52, %s11600_s30  ;;  %v7272_v19 = vsel %vm1183_vm7, %v1256_v48, %v7137_v30  ;;  %v1497_v52 = vsel %vm1153_vm4, %v1489_v44, %v1353_v50  ;;  %v11525_v48 = vrot.slane %v7265_v20, 1  ;;  %v2154_v27 = vrot.slane %v7282_v10, 1 }
 0x129   : > { %v5928_v29 = vpack.i.bf16 %v7272_v19, %v6931_v31  ;;  %v1505_v0 = vsel %vm1163_vm5, %v1497_v52, %v1369_v42  ;;  %v7292_v31 = vmax.f32 %v911_v33, 0.0  ;;  %v11716_v58 = vrot.slane %v7112_v7, 2 }
 0x12a   : > { %v1513_v50 = vsel %vm1173_vm6, %v1505_v0, %v7206_v22  ;;  %v7303_v1 = vsel %vm1183_vm7, %v11525_v48, %v2154_v27  ;;  %v7309_v44 = vmax.f32 %v910_v57, 0.0  ;;  %v915_v52 = vadd.f32 %v6773_v16, %v876_v46 }
 0x12b   : > { %v1521_v42 = vsel %vm1183_vm7, %v1513_v50, %v7123_v9  ;;  %v1136_v33 = vsel %vm1133_vm2, %v7181_v38, %v11716_v58  ;;  %v914_v9 = vadd.f32 %v6773_v16, %v875_v4  ;;  %v1674_v0 = vrot.slane %v7234_v36, 1 }
 0x12c   : > { %5929 = vrot.lane.b32.xlu0 %v5928_v29, %s6552_s16  ;;  %v7311_v29 = vmax.f32 %v913_v13, 0.0  ;;  %v5913_v8 = vpack.i.bf16 %v7055_v49, %v1521_v42  ;;  %v5943_v27 = vpack.i.bf16 %v7303_v1, %v7121_v28  ;;  %v11717_v50 = vrot.slane %v7112_v7, 3 }
 0x12d   : > { %v878_v38 = vmul.f32 %v7009_v53, %v6768_v14  ;;  %v5918_v57 = vpack.i.bf16 %v7265_v20, %v7135_v37  ;;  %v11718_v13 = vrot.slane %v7137_v30, 4  ;;  %v2303_v36 = vrot.slane %v7007_v47, 2 }
 0x12e   : > { %v1146_v48 = vsel %vm1143_vm3, %v1136_v33, %v11717_v50  ;;  %5914 = vrot.lane.b32.xlu1 %v5913_v8, %s11675_s17  ;;  %v1010_v58 = vrot.slane %v7290_v21, 2  ;;  %v7334_v33 = vmax.f32 %v912_v11, 0.0  ;;  %v7338_v8 = vmax.f32 %v915_v52, 0.0 }
 0x12f   : > { %v1156_v46 = vsel %vm1153_vm4, %v1146_v48, %v11718_v13  ;;  %v11720_v50 = vrot.slane %v7137_v30, 5  ;;  %v11721_v47 = vrot.slane %v6826_v51, 2  ;;  %v7348_v5 = vmax.f32 %v914_v9, 0.0 }
 0x130   : > { %11719 = vst [vmem:[#allocation20_spill] sm:$0xff] %v7334_v33  ;;  %5944 = vrot.lane.b32.xlu0 %v5943_v27, %s11552_s22  ;;  %v877_v11 = vmul.f32 %v6768_v14, %v7018_v54  ;;  %v1675_v52 = vsel %vm1183_vm7, %v1674_v0, %v6841_v63  ;;  %v880_v54 = vmul.f32 %v7049_v62, %v6768_v14  ;;  %v1298_v30 = vrot.slane %v7175_v56, 2 }
 0x131   : > { %v1166_v48 = vsel %vm1163_vm5, %v1156_v46, %v11720_v50  ;;  %v7346_v13 = vsel %vm1173_vm6, %v11721_v47, %v2303_v36  ;;  %v917_v36 = vadd.f32 %v6773_v16, %v878_v38  ;;  %v1314_v38 = vrot.slane %v7175_v56, 3 }
 0x132   : > { %v1176_v27 = vsel %vm1173_vm6, %v1166_v48, %v1089_v60  ;;  %5919 = vrot.lane.b32.xlu1 %v5918_v57, %s6555_s21  ;;  %v5923_v47 = vpack.i.bf16 %v7346_v13, %v1675_v52  ;;  %v7376_v46 = vrot.slane %v7338_v8, 7  ;;  %v1354_v52 = vrot.slane %v7183_v15, 5 }
 0x133   : > { %v7367_v60 = vsel %vm1183_vm7, %v1176_v27, %v7229_v6  ;;  %v916_v27 = vadd.f32 %v6773_v16, %v877_v11  ;;  %v7380_v50 = vmax.f32 %v917_v36, 0.0  ;;  %v1402_v57 = vsel %vm1123_vm1, %v7175_v56, %v1282_v34 }
 0x134   : > { %11722 = vst [vmem:[#allocation21_spill] sm:$0xff] %v7367_v60  ;;  %v1572_v48 = vrot.slane %v7367_v60, 1  ;;  %v919_v0 = vadd.f32 %v6773_v16, %v880_v54  ;;  %v1370_v36 = vrot.slane %v7183_v15, 6  ;;  %v1410_v62 = vsel %vm1133_vm2, %v1402_v57, %v1298_v30 }
 0x135   : > { %v1418_v53 = vsel %vm1143_vm3, %v1410_v62, %v1314_v38  ;;  %v5933_v4 = vpack.i.bf16 %v7016_v61, %v7367_v60  ;;  %v7402_v42 = vmax.f32 %v916_v27, 0.0  ;;  %v1458_v54 = vrot.slane %v7175_v56, 4 }
 0x136   : > { %v7384_v9 = vsel %vm1183_vm7, %v1572_v48, %v6841_v63  ;;  %5924 = vrot.lane.b32.xlu1 %v5923_v47, %s6554_s20  ;;  %v1474_v57 = vsel %vm1123_vm1, %v1282_v34, %v1298_v30  ;;  %v7413_v48 = vrot.slane %v7380_v50, 7 }
 0x137   : > { %v5948_v11 = vpack.i.bf16 %v7384_v9, %v7003_v59  ;;  %v1426_v59 = vsel %vm1153_vm4, %v1418_v53, %v1338_v17  ;;  %v1482_v27 = vsel %vm1133_vm2, %v1474_v57, %v1314_v38  ;;  %v7422_v17 = vmax.f32 %v919_v0, 0.0 }
 0x138   : > { %v1434_v62 = vsel %vm1163_vm5, %v1426_v59, %v1354_v52  ;;  %v1490_v47 = vsel %vm1143_vm3, %v1482_v27, %v1458_v54  ;;  %v11526_v38 = vrot.slane %v7016_v61, 2  ;;  %v7437_v54 = vmul.f32 %v6768_v14, %v7064_v24 }
 0x139   : > { %5949 = vrot.lane.b32.xlu0 %v5948_v11, %s11669_s23  ;;  %v7420_v11 = vsel %vm1123_vm1, %v6976_v25, 0.0  ;;  %v1442_v53 = vsel %vm1173_vm6, %v1434_v62, %v1370_v36  ;;  %v1498_v59 = vsel %vm1153_vm4, %v1490_v47, %v1354_v52  ;;  %v1028_v47 = vrot.slane %v7290_v21, 3 }
 0x13a   : > { %5934 = vrot.lane.b32.xlu1 %v5933_v4, %s6555_s21  ;;  %v2139_v34 = vrot.slane %v7420_v11, 1  ;;  %v1450_v30 = vsel %vm1183_vm7, %v1442_v53, %v7243_v2  ;;  %v2305_v4 = vrot.slane %v7025_v18, 2  ;;  %v1506_v27 = vsel %vm1163_vm5, %v1498_v59, %v1370_v36 }
 0x13b   : > { %v5953_v57 = vpack.i.bf16 %v7025_v18, %v1450_v30  ;;  %v1676_v62 = vrot.slane %v1450_v30, 1  ;;  %v11723_v53 = vrot.slane %v7016_v61, 1  ;;  %v7448_v25 = vmul.f32 %v7089_v43, %v6768_v14 }
 0x13c   : > { %v1514_v30 = vsel %vm1173_vm6, %v1506_v27, %v7243_v2  ;;  %v7462_v59 = vsel %vm1173_vm6, %v2305_v4, %v11526_v38  ;;  %v1090_v14 = vrot.slane %v7249_v12, 6  ;;  %v7466_v43 = vrot.slane %v7249_v12, 7 }
 0x13d   : > { %v7443_v52 = vsel %vm1183_vm7, %v11723_v53, %v2139_v34  ;;  %5954 = vrot.lane.b32.xlu0 %v5953_v57, %s11600_s30  ;;  %v1677_v36 = vsel %vm1183_vm7, %v1676_v62, %v6841_v63  ;;  %v1522_v34 = vsel %vm1183_vm7, %v1514_v30, %v7183_v15  ;;  %v1196_v57 = vrot.slane %v7290_v21, 4 }
 0x13e   : > { %11724 = vst [vmem:[#allocation22_spill] sm:$0xff] %v7443_v52  ;;  %v5938_v24 = vpack.i.bf16 %v7443_v52, %v7272_v19  ;;  %v5958_v2 = vpack.i.bf16 %v7060_v45, %v1522_v34  ;;  %v5963_v19 = vpack.i.bf16 %v7462_v59, %v1677_v36  ;;  %v11725_v15 = vrot.slane %v7290_v21, 1 }
 0x13f   : > { %v2006_v30 = vrot.slane %v7081_v40, 7  ;;  %v11727_v0 = vrot.slane %v7249_v12, 5  ;;  %v11739_v18 = vrot.slane %v7334_v33, 1 }
 0x140   : > { %5939 = vrot.lane.b32.xlu1 %v5938_v24, %s11552_s22  ;;  %v1212_v4 = vsel %vm1123_vm1, %v11725_v15, %v1010_v58  ;;  %v11726_v27 = vmov %v11725_v15  ;;  %v1299_v24 = vrot.slane %v7309_v44, 2  ;;  %v1315_v15 = vrot.slane %v7309_v44, 3 }
 0x141   : > { %v1221_v62 = vsel %vm1133_vm2, %v1212_v4, %v1028_v47  ;;  %v1127_v53 = vsel %vm1123_vm1, %v7290_v21, %v11726_v27  ;;  %5959 = vrot.lane.b32.xlu0 %v5958_v2, %s11675_s17  ;;  %v1355_v4 = vrot.slane %v7292_v31, 5  ;;  %v7497_v38 = vsel %vm1123_vm1, %v2006_v30, %v7206_v22 }
 0x142   : > { %v1230_v36 = vsel %vm1143_vm3, %v1221_v62, %v1196_v57  ;;  %v1137_v34 = vsel %vm1133_vm2, %v1127_v53, %v1010_v58  ;;  %11728 = vst [vmem:[#allocation23_spill] sm:$0xff] %v7497_v38  ;;  %v7500_v2 = vsel %vm1123_vm1, 0.0, %v2006_v30  ;;  %v11730_v58 = vrot.slane %v7249_v12, 4 }
 0x143   : > { %v1239_v27 = vsel %vm1153_vm4, %v1230_v36, %v11727_v0  ;;  %v1147_v40 = vsel %vm1143_vm3, %v1137_v34, %v1028_v47  ;;  %11729 = vst [vmem:[#allocation24_spill] sm:$0xff] %v7500_v2  ;;  %v2141_v53 = vrot.slane %v7500_v2, 1  ;;  %v11528_v28 = vrot.slane %v7497_v38, 1 }
 0x144   : > { %v1248_v57 = vsel %vm1163_vm5, %v1239_v27, %v1090_v14  ;;  %v1157_v62 = vsel %vm1153_vm4, %v1147_v40, %v11730_v58  ;;  %v11731_v47 = vrot.slane %v7249_v12, 5  ;;  %v1371_v30 = vrot.slane %v7292_v31, 6 }
 0x145   : > { %v1257_v0 = vsel %vm1173_vm6, %v1248_v57, %v7466_v43  ;;  %v7515_v34 = vrot.slane %v7292_v31, 7  ;;  %5964 = vrot.lane.b32.xlu0 %v5963_v19, %s6554_s20  ;;  %v7524_v57 = vsel %vm1183_vm7, %v2141_v53, %v11528_v28  ;;  %v11733_v58 = vrot.slane %v7309_v44, 1 }
 0x146   : > { %v1167_v36 = vsel %vm1163_vm5, %v1157_v62, %v11731_v47  ;;  %v1266_v27 = vsel %vm1183_vm7, %v1257_v0, %v7249_v12  ;;  %11732 = vst [vmem:[#allocation25_spill] sm:$0xff] %v7524_v57  ;;  %v1029_v28 = vrot.slane %v7334_v33, 3 }
 0x147   : > { %v1177_v40 = vsel %vm1173_vm6, %v1167_v36, %v1090_v14  ;;  %v1403_v62 = vsel %vm1123_vm1, %v7309_v44, %v11733_v58  ;;  %v5968_v47 = vpack.i.bf16 %v1266_v27, %v6936_v35  ;;  %v5978_v12 = vpack.i.bf16 %v7524_v57, %v1266_v27 }
 0x148   : > { %v7533_v19 = vsel %vm1183_vm7, %v1177_v40, %v7466_v43  ;;  %v1411_v14 = vsel %vm1133_vm2, %v1403_v62, %v1299_v24  ;;  %v11735_v35 = vrot.slane %v7292_v31, 4  ;;  %v7548_v27 = vrot.slane %v7311_v29, 7 }
 0x149   : > { %11734 = vst [vmem:[#allocation26_spill] sm:$0xff] %v7533_v19  ;;  %v5973_v0 = vpack.i.bf16 %v7500_v2, %v7533_v19  ;;  %v1574_v53 = vrot.slane %v7533_v19, 1  ;;  %v1419_v36 = vsel %vm1143_vm3, %v1411_v14, %v1315_v15  ;;  %5969 = vrot.lane.b32.xlu1 %v5968_v47, %s6552_s16  ;;  %v1197_v62 = vrot.slane %v7334_v33, 4 }
 0x14a   : > { %v1427_v40 = vsel %vm1153_vm4, %v1419_v36, %v11735_v35  ;;  %11736 = vst [vmem:[#allocation27_spill] sm:$0xff] %v7548_v27  ;;  %v11738_v47 = vrot.slane %v7334_v33, 2  ;;  %v1459_v35 = vrot.slane %v7309_v44, 4 }
 0x14b   : > { %5974 = vrot.lane.b32.xlu0 %v5973_v0, %s6555_s21  ;;  %v7554_v14 = vsel %vm1183_vm7, %v1574_v53, %v6841_v63  ;;  %v1435_v37 = vsel %vm1163_vm5, %v1427_v40, %v1355_v4  ;;  %v11740_v53 = vrot.slane %v7309_v44, 1 }
 0x14c   : > { %11737 = vst [vmem:[#allocation28_spill] sm:$0xff] %v7554_v14  ;;  %v1213_v36 = vsel %vm1123_vm1, %v11739_v18, %v11738_v47  ;;  %v5983_v58 = vpack.i.bf16 %v7554_v14, %v6853_v3  ;;  %v1443_v51 = vsel %vm1173_vm6, %v1435_v37, %v1371_v30  ;;  %v2018_v47 = vrot.slane %v7348_v5, 7 }
 0x14d   : > { %v1222_v0 = vsel %vm1133_vm2, %v1213_v36, %v1029_v28  ;;  %v1475_v19 = vsel %vm1123_vm1, %v11740_v53, %v1299_v24  ;;  %v1451_v40 = vsel %vm1183_vm7, %v1443_v51, %v7515_v34  ;;  %v11741_v36 = vrot.slane %v7311_v29, 5 }
 0x14e   : > { %v1231_v60 = vsel %vm1143_vm3, %v1222_v0, %v1197_v62  ;;  %v1483_v18 = vsel %vm1133_vm2, %v1475_v19, %v1315_v15  ;;  %5984 = vrot.lane.b32.xlu1 %v5983_v58, %s11669_s23  ;;  %v5988_v3 = vpack.i.bf16 %v7016_v61, %v1451_v40  ;;  %v1678_v37 = vrot.slane %v1451_v40, 1 }
 0x14f   : > { %v1240_v14 = vsel %vm1153_vm4, %v1231_v60, %v11741_v36  ;;  %v1491_v24 = vsel %vm1143_vm3, %v1483_v18, %v1459_v35  ;;  %5979 = vrot.lane.b32.xlu0 %v5978_v12, %s11552_s22  ;;  %v11742_v51 = vrot.slane %v7311_v29, 6  ;;  %v7588_v19 = vsel %vm1123_vm1, %v2018_v47, %v7376_v46 }
 0x150   : > { %v1499_v15 = vsel %vm1153_vm4, %v1491_v24, %v1355_v4  ;;  %11743 = vst [vmem:[#allocation29_spill] sm:$0xff] %v7588_v19  ;;  %v7591_v58 = vsel %vm1123_vm1, 0.0, %v2018_v47  ;;  %v2082_v12 = vsel %vm1123_vm1, %v7206_v22, 0.0  ;;  %v2172_v40 = vrot.slane %v7588_v19, 1 }
 0x151   : > { %v1249_v62 = vsel %vm1163_vm5, %v1240_v14, %v11742_v51  ;;  %11744 = vst [vmem:[#allocation30_spill] sm:$0xff] %v7591_v58  ;;  %v1507_v35 = vsel %vm1163_vm5, %v1499_v15, %v1371_v30  ;;  %v2171_v0 = vrot.slane %v7591_v58, 1  ;;  %v2144_v53 = vrot.slane %v2082_v12, 1 }
 0x152   : > { %v1258_v60 = vsel %vm1173_vm6, %v1249_v62, %v7548_v27  ;;  %v1515_v14 = vsel %vm1173_vm6, %v1507_v35, %v7515_v34  ;;  %v918_v18 = vadd.f32 %v6773_v16, %v7437_v54  ;;  %5989 = vrot.lane.b32.xlu1 %v5988_v3, %s11600_s30  ;;  %v2308_v47 = vrot.slane %v7420_v11, 2 }
 0x153   : > { %v7601_v4 = vsel %vm1183_vm7, %v1258_v60, %v7311_v29  ;;  %v1523_v30 = vsel %vm1183_vm7, %v1515_v14, %v7292_v31  ;;  %v921_v36 = vadd.f32 %v6773_v16, %v7448_v25  ;;  %v7618_v51 = vsel %vm1183_vm7, %v2171_v0, %v2172_v40 }
 0x154   : > { %v6003_v22 = vpack.i.bf16 %v7601_v4, %v7055_v49  ;;  %v5993_v24 = vpack.i.bf16 %v7443_v52, %v1523_v30  ;;  %11745 = vst [vmem:[#allocation31_spill] sm:$0xff] %v7618_v51  ;;  %v1679_v54 = vsel %vm1183_vm7, %v1678_v37, %v6841_v63  ;;  %v11746_v49 = vrot.slane %v7497_v38, 1 }
 0x155   : > { %v11536_v31 = vrot.slane %v7497_v38, 2  ;;  %v2313_v11 = vrot.slane %v2082_v12, 2  ;;  %v2340_v16 = vrot.slane %v7591_v58, 2  ;;  %v11748_v25 = vrot.slane %v7016_v61, 2 }
 0x156   : > { %6004 = vrot.lane.b32.xlu0 %v6003_v22, %s6552_s16  ;;  %v7626_v3 = vsel %vm1183_vm7, %v11746_v49, %v2144_v53  ;;  %v2341_v15 = vrot.slane %v7588_v19, 2  ;;  %v11750_v37 = vrot.slane %v7334_v33, 1  ;;  %v2008_v35 = vrot.slane %v7112_v7, 7  ;;  %5994 = vrot.lane.b32.xlu1 %v5993_v24, %s11675_s17 }
 0x157   : > { %11747 = vst [vmem:[#allocation32_spill] sm:$0xff] %v7626_v3  ;;  %v7633_v62 = vsel %vm1173_vm6, %v11748_v25, %v2308_v47  ;;  %v6018_v12 = vpack.i.bf16 %v7618_v51, %v7626_v3  ;;  %v11751_v14 = vrot.slane %v7334_v33, 2  ;;  %v2088_v22 = vsel %vm1123_vm1, %v7376_v46, 0.0 }
 0x158   : > { %11749 = vst [vmem:[#allocation33_spill] sm:$0xff] %v7633_v62  ;;  %v1128_v60 = vsel %vm1123_vm1, %v7334_v33, %v11750_v37  ;;  %v5998_v0 = vpack.i.bf16 %v7633_v62, %v1679_v54  ;;  %v7651_v30 = vsel %vm1173_vm6, %v2340_v16, %v2341_v15  ;;  %v7656_v7 = vsel %vm1123_vm1, %v2008_v35, %v7229_v6 }
 0x159   : > { %v1138_v53 = vsel %vm1133_vm2, %v1128_v60, %v11751_v14  ;;  %11752 = vst [vmem:[#allocation34_spill] sm:$0xff] %v7651_v30  ;;  %11753 = vst [vmem:[#allocation35_spill] sm:$0xff] %v7656_v7  ;;  %v7659_v24 = vsel %vm1123_vm1, 0.0, %v2008_v35  ;;  %v7665_v54 = vsel %vm1173_vm6, %v11536_v31, %v2313_v11  ;;  %v11756_v49 = vrot.slane %v7311_v29, 4 }
 0x15a   : > { %v1148_v47 = vsel %vm1143_vm3, %v1138_v53, %v1029_v28  ;;  %11754 = vst [vmem:[#allocation36_spill] sm:$0xff] %v7659_v24  ;;  %6019 = vrot.lane.b32.xlu0 %v6018_v12, %s6552_s16  ;;  %11755 = vst [vmem:[#allocation37_spill] sm:$0xff] %v7665_v54  ;;  %v2146_v28 = vrot.slane %v7659_v24, 1  ;;  %v11537_v25 = vrot.slane %v7656_v7, 1  ;;  %v11757_v37 = vrot.slane %v7311_v29, 5  ;;  %5999 = vrot.lane.b32.xlu1 %v5998_v0, %s6554_s20 }
 0x15b   : > { %v1158_v16 = vsel %vm1153_vm4, %v1148_v47, %v11756_v49  ;;  %v2174_v35 = vrot.slane %v2088_v22, 1  ;;  %v2315_v12 = vrot.slane %v7659_v24, 2  ;;  %v6023_v53 = vpack.i.bf16 %v7651_v30, %v7665_v54  ;;  %v1982_v54 = vld [vmem:[%s11492_s7 + $0x10] sm:$0xff] }
 0x15c   : > { %v1168_v60 = vsel %vm1163_vm5, %v1158_v16, %v11757_v37  ;;  %v11758_v47 = vrot.slane %v7311_v29, 6  ;;  %v2020_v31 = vrot.slane %v7402_v42, 7  ;;  %v7692_v37 = vsel %vm1183_vm7, %v2146_v28, %v11537_v25 }
 0x15d   : > { %v7695_v0 = vsel %vm1183_vm7, %v2172_v40, %v2174_v35  ;;  %v2343_v11 = vrot.slane %v2088_v22, 2  ;;  %v7698_v14 = vrot.slane %v7422_v17, 7  ;;  %v7700_v29 = vmax.f32 %v918_v18, 0.0 }
 0x15e   : > { %v1178_v49 = vsel %vm1173_vm6, %v1168_v60, %v11758_v47  ;;  %11760 = vst [vmem:[#allocation39_spill] sm:$0xff] %v7695_v0  ;;  %v7705_v60 = vld [vmem:[%s11487_s2] ss:$0 sm:$0xff]  ;;  %6024 = vrot.lane.b32.xlu0 %v6023_v53, %s11669_s23  ;;  %v7712_v28 = vmax.f32 %v921_v36, 0.0  ;;  %v11762_v22 = vrot.slane %v7656_v7, 2  ;;  %v7721_v35 = vsel %vm1123_vm1, %v2020_v31, %v7413_v48 }
 0x15f   : > { %v7687_v16 = vsel %vm1183_vm7, %v1178_v49, %v7548_v27  ;;  %v881_v47 = vmul.f32 %v7705_v60, %v7101_v26  ;;  %11764 = vst [vmem:[#allocation42_spill] sm:$0xff] %v7721_v35  ;;  %v1300_v49 = vrot.slane %v7348_v5, 2  ;;  %v6028_v53 = vpack.i.bf16 %v7695_v0, %v7692_v37 }
 0x160   : > { %11759 = vst [vmem:[#allocation38_spill] sm:$0xff] %v7687_v16  ;;  %v6008_v40 = vpack.i.bf16 %v7497_v38, %v7687_v16  ;;  %11761 = vst [vmem:[#allocation40_spill] sm:$0xff] %v7712_v28  ;;  %v7717_v18 = vsel %vm1173_vm6, %v2315_v12, %v11762_v22  ;;  %v1576_v26 = vrot.slane %v7687_v16, 1  ;;  %v11765_v36 = vrot.slane %v7175_v56, 7  ;;  %v7748_v56 = vld [vmem:[%s11488_s3] ss:$0 sm:$0xff] }
 0x161   : > { %11763 = vst [vmem:[#allocation41_spill] sm:$0xff] %v7717_v18  ;;  %v1316_v12 = vrot.slane %v7348_v5, 3  ;;  %v7735_v22 = vsel %vm1173_vm6, %v2341_v15, %v2343_v11  ;;  %v7738_v61 = vsel %vm1123_vm1, 0.0, %v2020_v31  ;;  %v11769_v30 = vrot.slane %v7348_v5, 1  ;;  %11770 = vst [vmem:[#allocation46_spill] sm:$0xff] %v7748_v56 }
 0x162   : > { %6009 = vrot.lane.b32.xlu1 %v6008_v40, %s6555_s21  ;;  %v7731_v25 = vsel %vm1123_vm1, 0.0, %v11765_v36  ;;  %11767 = vst [vmem:[#allocation44_spill] sm:$0xff] %v7735_v22  ;;  %11768 = vst [vmem:[#allocation45_spill] sm:$0xff] %v7738_v61  ;;  %v1356_v40 = vrot.slane %v7338_v8, 5  ;;  %v920_v36 = vadd.f32 %v7748_v56, %v881_v47  ;;  %6029 = vrot.lane.b32.xlu0 %v6028_v53, %s6552_s16  ;;  %v1372_v15 = vrot.slane %v7338_v8, 6 }
 0x163   : > { %11766 = vst [vmem:[#allocation43_spill] sm:$0xff] %v7731_v25  ;;  %v1404_v0 = vsel %vm1123_vm1, %v7348_v5, %v11769_v30  ;;  %v6013_v31 = vpack.i.bf16 %v7626_v3, %v7601_v4  ;;  %v1460_v19 = vrot.slane %v7348_v5, 4  ;;  %v11771_v51 = vrot.slane %v7348_v5, 1 }
 0x164   : > { %v1412_v11 = vsel %vm1133_vm2, %v1404_v0, %v1300_v49  ;;  %v6033_v47 = vpack.i.bf16 %v7735_v22, %v7717_v18  ;;  %v6038_v4 = vpack.i.bf16 %v7731_v25, %v7738_v61  ;;  %v11772_v0 = vrot.slane %v7338_v8, 4  ;;  %v962_v18 = vld [vmem:[%s11489_s4 + $0x10] sm:$0xff] }
 0x165   : > { %v1420_v30 = vsel %vm1143_vm3, %v1412_v11, %v1316_v12  ;;  %v1476_v58 = vsel %vm1123_vm1, %v11771_v51, %v1300_v49  ;;  %v7773_v16 = vsel %vm1183_vm7, %v1576_v26, %v6841_v63  ;;  %v2151_v51 = vrot.slane %v7731_v25, 1 }
 0x166   : > { %6014 = vrot.lane.b32.xlu1 %v6013_v31, %s11552_s22  ;;  %v1428_v53 = vsel %vm1153_vm4, %v1420_v30, %v11772_v0  ;;  %v1484_v11 = vsel %vm1133_vm2, %v1476_v58, %v1316_v12  ;;  %11773 = vst [vmem:[#allocation47_spill] sm:$0xff] %v7773_v16  ;;  %6034 = vrot.lane.b32.xlu0 %v6033_v47, %s11669_s23  ;;  %v2176_v22 = vrot.slane %v7738_v61, 1  ;;  %v2177_v30 = vrot.slane %v7721_v35, 1 }
 0x167   : > { %v1436_v5 = vsel %vm1163_vm5, %v1428_v53, %v1356_v40  ;;  %v1492_v49 = vsel %vm1143_vm3, %v1484_v11, %v1460_v19  ;;  %v7791_v19 = vsel %vm1123_vm1, %v7413_v48, 0.0  ;;  %v884_v47 = vmul.f32 %v7705_v60, %v7131_v23 }
 0x168   : > { %v1444_v31 = vsel %vm1173_vm6, %v1436_v5, %v1372_v15  ;;  %v1500_v58 = vsel %vm1153_vm4, %v1492_v49, %v1356_v40  ;;  %v6048_v40 = vpack.i.bf16 %v7773_v16, %v7346_v13  ;;  %v2320_v11 = vrot.slane %v7731_v25, 2  ;;  %v1983_v16 = vld [vmem:[%s11492_s7 + $0x18] sm:$0xff] }
 0x169   : > { %v7786_v26 = vsel %vm1183_vm7, %v1444_v31, %v7376_v46  ;;  %v1508_v0 = vsel %vm1163_vm5, %v1500_v58, %v1372_v15  ;;  %v2321_v5 = vrot.slane %v7265_v20, 2  ;;  %v2345_v49 = vrot.slane %v7738_v61, 2 }
 0x16a   : > { %6039 = vrot.lane.b32.xlu1 %v6038_v4, %s11600_s30  ;;  %v1516_v53 = vsel %vm1173_vm6, %v1508_v0, %v7376_v46  ;;  %v2346_v31 = vrot.slane %v7721_v35, 2  ;;  %6049 = vrot.lane.b32.xlu0 %v6048_v40, %s11669_s23  ;;  %v6043_v23 = vpack.i.bf16 %v7265_v20, %v7721_v35  ;;  %v11774_v4 = vrot.slane %v7265_v20, 1  ;;  %v960_v0 = vld [vmem:[%s11489_s4] sm:$0xff]  ;;  %v1981_v20 = vld [vmem:[%s11492_s7 + $0x8] sm:$0xff] }
 0x16b   : > { %v1524_v15 = vsel %vm1183_vm7, %v1516_v53, %v7338_v8  ;;  %v7815_v58 = vsel %vm1183_vm7, %v2176_v22, %v2177_v30  ;;  %v2179_v8 = vrot.slane %v7791_v19, 1  ;;  %v7820_v53 = vrot.slane %v7712_v28, 7  ;;  %v1980_v40 = vld [vmem:[%s11492_s7] sm:$0xff] }
 0x16c   : > { %v7812_v46 = vsel %vm1183_vm7, %v2151_v51, %v11774_v4  ;;  %11776 = vst [vmem:[#allocation49_spill] sm:$0xff] %v7815_v58  ;;  %v7824_v35 = vmax.f32 %v920_v36, 0.0  ;;  %v883_v51 = vmul.f32 %v7705_v60, %v7144_v32  ;;  %v6053_v22 = vpack.i.bf16 %v7500_v2, %v7786_v26  ;;  %v961_v36 = vld [vmem:[%s11489_s4 + $0x8] sm:$0xff] }
 0x16d   : > { %11775 = vst [vmem:[#allocation48_spill] sm:$0xff] %v7812_v46  ;;  %v7833_v4 = vsel %vm1123_vm1, %v7229_v6, 0.0  ;;  %v7842_v12 = vadd.f32 %v7748_v56, %v884_v47  ;;  %v6063_v32 = vpack.i.bf16 %v7812_v46, %v7815_v58  ;;  %v7850_v6 = vsel %vm1173_vm6, %v2345_v49, %v2346_v31 }
 0x16e   : > { %6044 = vrot.lane.b32.xlu1 %v6043_v23, %s11600_s30  ;;  %v7847_v23 = vsel %vm1173_vm6, %v2320_v11, %v2321_v5  ;;  %11778 = vst [vmem:[#allocation51_spill] sm:$0xff] %v7850_v6  ;;  %6054 = vrot.lane.b32.xlu0 %v6053_v22, %s11600_s30  ;;  %v7860_v47 = vsel %vm1183_vm7, %v2177_v30, %v2179_v8  ;;  %v11780_v11 = vrot.slane %v7290_v21, 7  ;;  %v11782_v49 = vrot.slane %v7700_v29, 7  ;;  %v963_v30 = vld [vmem:[%s11489_s4 + $0x18] sm:$0xff] }
 0x16f   : > { %11777 = vst [vmem:[#allocation50_spill] sm:$0xff] %v7847_v23  ;;  %11779 = vst [vmem:[#allocation52_spill] sm:$0xff] %v7860_v47  ;;  %v2149_v8 = vrot.slane %v7833_v4, 1  ;;  %v2323_v22 = vrot.slane %v7282_v10, 2  ;;  %v11567_v52 = vmov 0.0|0.0   ;;  %v7892_v27 = vadd.f32 %v7748_v56, %v883_v51 }
 0x170   : > { %v7866_v61 = vsel %vm1123_vm1, %v11780_v11, %v7466_v43  ;;  %v7872_v25 = vsel %vm1123_vm1, %v11782_v49, %v7698_v14  ;;  %v2348_v11 = vrot.slane %v7791_v19, 2  ;;  %5721 = vmatprep.subr.bf16.mxu1 %v11567_v52  ;;  %5748 = vmatprep.subr.bf16.mxu0 %v11567_v52  ;;  %v5722_v49 = vpack.c.bf16 %v961_v36, %v960_v0  ;;  %v7902_v36 = vpop.permute.xlu0 %5839 }
 0x171   : > { %11781 = vst [vmem:[#allocation53_spill] sm:$0xff] %v7866_v61  ;;  %11783 = vst [vmem:[#allocation54_spill] sm:$0xff] %v7872_v25  ;;  %v7896_v10 = vmul.f32 %v7705_v60, %v7164_v41  ;;  %v6058_v19 = vpack.i.bf16 %v7524_v57, %v1524_v15  ;;  %v7900_v0 = vpack.c.bf16 %v1981_v20, %v1980_v40  ;;  %v2318_v51 = vrot.slane %v7833_v4, 2  ;;  %v965_v4 = vld [vmem:[%s11489_s4 + $0x28] sm:$0xff] }
 0x172   : > { %6064 = vrot.lane.b32.xlu1 %v6063_v32, %s11675_s17  ;;  %v6068_v52 = vpack.i.bf16 %v7847_v23, %v7850_v6  ;;  %v6078_v33 = vpack.i.bf16 %v7303_v1, %v7860_v47  ;;  %5723 = vmatpush1.bf16.msra.mxu1 %v5722_v49  ;;  %v5725_v3 = vpack.c.bf16 %v963_v30, %v962_v18  ;;  %v11573_v20 = vrot.slane %v7402_v42, 3  ;;  %v964_v18 = vld [vmem:[%s11489_s4 + $0x20] sm:$0xff] }
 0x173   : > { %6059 = vrot.lane.b32.xlu0 %v6058_v19, %s11675_s17  ;;  %5750 = vmatpush1.bf16.msra.mxu0 %v7900_v0  ;;  %v7911_v41 = vpack.c.bf16 %v1983_v16, %v1982_v54  ;;  %v1198_v15 = vrot.slane %v7402_v42, 4  ;;  %v11784_v40 = vrot.slane %v7402_v42, 2  ;;  %v11785_v32 = vrot.slane %v7402_v42, 1 }
 0x174   : > { %v11786_v54 = vrot.slane %v7656_v7, 1  ;;  %v7932_v30 = vsel %vm1173_vm6, %v2321_v5, %v2323_v22  ;;  %v7935_v49 = vsel %vm1173_vm6, %v2346_v31, %v2348_v11  ;;  %v11790_v19 = vmov 0.0|0.0  }
 0x175   : > { %v1214_v57 = vsel %vm1123_vm1, %v11785_v32, %v11784_v40  ;;  %11788 = vst [vmem:[#allocation56_spill] sm:$0xff] %v7932_v30  ;;  %11789 = vst [vmem:[#allocation57_spill] sm:$0xff] %v7935_v49  ;;  %5724 = vmatprep.subr.bf16.mxu1 %v11790_v19  ;;  %5751 = vmatprep.subr.bf16.mxu0 %v11790_v19  ;;  %v1984_v32 = vld [vmem:[%s11492_s7 + $0x20] sm:$0xff]  ;;  %v7954_v22 = vsel %vm1123_vm1, %v7466_v43, 0.0  ;;  %v7958_v11 = vsel %vm1123_vm1, %v7698_v14, 0.0 }
 0x176   : > { %v7929_v16 = vsel %vm1183_vm7, %v11786_v54, %v2149_v8  ;;  %v1985_v8 = vld [vmem:[%s11492_s7 + $0x28] sm:$0xff]  ;;  %6069 = vrot.lane.b32.xlu1 %v6068_v52, %s6554_s20  ;;  %v1223_v31 = vsel %vm1133_vm2, %v1214_v57, %v11573_v20  ;;  %5726 = vmatpush1.bf16.msra.mxu1 %v5725_v3  ;;  %v5728_v40 = vpack.c.bf16 %v965_v4, %v964_v18  ;;  %v11576_v52 = vrot.slane %v7866_v61, 1  ;;  %v966_v18 = vld [vmem:[%s11489_s4 + $0x30] sm:$0xff] }
 0x177   : > { %11787 = vst [vmem:[#allocation55_spill] sm:$0xff] %v7929_v16  ;;  %v6073_v5 = vpack.i.bf16 %v7815_v58, %v7929_v16  ;;  %v1232_v54 = vsel %vm1143_vm3, %v1223_v31, %v1198_v15  ;;  %v2159_v58 = vrot.slane %v7954_v22, 1  ;;  %6079 = vrot.lane.b32.xlu0 %v6078_v33, %s11675_s17  ;;  %5753 = vmatpush1.bf16.msra.mxu0 %v7911_v41  ;;  %v11791_v57 = vrot.slane %v7380_v50, 5  ;;  %v7970_v16 = vpop.permute.xlu0 %5844  ;;  %v967_v33 = vld [vmem:[%s11489_s4 + $0x38] sm:$0xff] }
 0x178   : > { %v7968_v20 = vpack.c.bf16 %v1985_v8, %v1984_v32  ;;  %v11581_v3 = vrot.slane %v7872_v25, 1  ;;  %v2184_v15 = vrot.slane %v7958_v11, 1  ;;  %v885_v32 = vmul.f32 %v7705_v60, %v7171_v55  ;;  %5727 = vmatprep.subr.bf16.mxu1 %v11790_v19  ;;  %5754 = vmatprep.subr.bf16.mxu0 %v11790_v19  ;;  %v1987_v55 = vld [vmem:[%s11492_s7 + $0x38] sm:$0xff] }
 0x179   : > { %v1241_v43 = vsel %vm1153_vm4, %v1232_v54, %v11791_v57  ;;  %v11793_v8 = vrot.slane %v7380_v50, 6  ;;  %v7991_v54 = vsel %vm1183_vm7, %v11576_v52, %v2159_v58  ;;  %v1986_v57 = vld [vmem:[%s11492_s7 + $0x30] sm:$0xff]  ;;  %v8000_v4 = vmax.f32 %v7842_v12, 0.0 }
 0x17a   : > { %11792 = vst [vmem:[#allocation58_spill] sm:$0xff] %v7968_v20  ;;  %11794 = vst [vmem:[#allocation59_spill] sm:$0xff] %v7991_v54  ;;  %6074 = vrot.lane.b32.xlu1 %v6073_v5, %s6552_s16  ;;  %v11796_v52 = vrot.slane %v7656_v7, 2  ;;  %5729 = vmatpush1.bf16.msra.mxu1 %v5728_v40  ;;  %v5731_v62 = vpack.c.bf16 %v967_v33, %v966_v18  ;;  %v8038_v40 = vpack.c.bf16 %v1987_v55, %v1986_v57 }
 0x17b   : > { %v1250_v31 = vsel %vm1163_vm5, %v1241_v43, %v11793_v8  ;;  %v6088_v43 = vpack.i.bf16 %v7932_v30, %v7935_v49  ;;  %v8010_v8 = vsel %vm1183_vm7, %v11581_v3, %v2184_v15  ;;  %v8028_v15 = vmax.f32 %v7892_v27, 0.0  ;;  %5756 = vmatpush1.bf16.msra.mxu0 %v7968_v20  ;;  %v969_v27 = vld [vmem:[%s11489_s4 + $0x48] sm:$0xff]  ;;  %5730 = vmatprep.subr.bf16.mxu1 %v11790_v19 }
 0x17c   : > { %v1259_v58 = vsel %vm1173_vm6, %v1250_v31, %v7413_v48  ;;  %11795 = vst [vmem:[#allocation60_spill] sm:$0xff] %v8010_v8  ;;  %v8015_v28 = vsel %vm1173_vm6, %v11796_v52, %v2318_v51  ;;  %v8023_v5 = vpack.i.bf16 %v7991_v54, %v8010_v8  ;;  %v8025_v31 = vpop.permute.xlu1 %5869  ;;  %v8032_v3 = vadd.f32 %v7748_v56, %v7896_v10  ;;  %v968_v52 = vld [vmem:[%s11489_s4 + $0x40] sm:$0xff] }
 0x17d   : > { %11797 = vst [vmem:[#allocation61_spill] sm:$0xff] %v8015_v28  ;;  %v8019_v12 = vsel %vm1183_vm7, %v1259_v58, %v7380_v50  ;;  %6089 = vrot.lane.b32.xlu0 %v6088_v43, %s6554_s20  ;;  %v6083_v51 = vpack.i.bf16 %v7850_v6, %v8015_v28  ;;  %11798 = vst [vmem:[#allocation62_spill] sm:$0xff] %v8038_v40  ;;  %v8047_v10 = vadd.f32 %v7748_v56, %v885_v32  ;;  %v1988_v43 = vld [vmem:[%s11492_s7 + $0x40] sm:$0xff] }
 0x17e   : > { %v1680_v18 = vrot.slane %v7786_v26, 1  ;;  %v6093_v33 = vpack.i.bf16 %v7860_v47, %v7812_v46  ;;  %5757 = vmatprep.subr.bf16.mxu0 %v11790_v19  ;;  %v11799_v57 = vrot.slane %v7402_v42, 1  ;;  %v1989_v26 = vld [vmem:[%s11492_s7 + $0x48] sm:$0xff]  ;;  %v6108_v32 = vpack.i.bf16 %v7866_v61, %v7872_v25  ;;  %v8074_v47 = vpop.permute.xlu0 %5849  ;;  %5732 = vmatpush1.bf16.msra.mxu1 %v5731_v62  ;;  %v971_v62 = vld [vmem:[%s11489_s4 + $0x58] sm:$0xff] }
 0x17f   : > { %6084 = vrot.lane.b32.xlu1 %v6083_v51, %s11669_s23  ;;  %v6098_v58 = vpack.i.bf16 %v7935_v49, %v7847_v23  ;;  %v11800_v6 = vrot.slane %v7290_v21, 7  ;;  %v11802_v28 = vrot.slane %v7402_v42, 2  ;;  %v11803_v7 = vrot.slane %v7700_v29, 7  ;;  %5759 = vmatpush1.bf16.msra.mxu0 %v8038_v40 }
 0x180   : > { %v1129_v55 = vsel %vm1123_vm1, %v7402_v42, %v11799_v57  ;;  %v11805_v54 = vrot.slane %v7402_v42, 3  ;;  %v5734_v21 = vpack.c.bf16 %v969_v27, %v968_v52  ;;  %v5846_v23 = vunpack.i.l.bf16 %v7970_v16  ;;  %v970_v42 = vld [vmem:[%s11489_s4 + $0x50] sm:$0xff]  ;;  %5733 = vmatprep.subr.bf16.mxu1 %v11790_v19  ;;  %5760 = vmatprep.subr.bf16.mxu0 %v11790_v19 }
 0x181   : > { %v8072_v57 = vsel %vm1123_vm1, 0.0, %v11800_v6  ;;  %v1139_v46 = vsel %vm1133_vm2, %v1129_v55, %v11802_v28  ;;  %v8082_v51 = vsel %vm1123_vm1, 0.0, %v11803_v7  ;;  %6094 = vrot.lane.b32.xlu0 %v6093_v33, %s6552_s16  ;;  %v5847_v6 = vunpack.i.h.bf16 %v7970_v16  ;;  %v1990_v33 = vld [vmem:[%s11492_s7 + $0x50] sm:$0xff] }
 0x182   : > { %11801 = vst [vmem:[#allocation63_spill] sm:$0xff] %v8072_v57  ;;  %11804 = vst [vmem:[#allocation64_spill] sm:$0xff] %v8082_v51  ;;  %v1149_v49 = vsel %vm1143_vm3, %v1139_v46, %v11805_v54  ;;  %v11806_v28 = vrot.slane %v7380_v50, 4  ;;  %v8094_v7 = vpack.c.bf16 %v1989_v26, %v1988_v43  ;;  %v8104_v46 = vpack.i.bf16 %v8072_v57, %v8082_v51  ;;  %v1991_v43 = vld [vmem:[%s11492_s7 + $0x58] sm:$0xff] }
 0x183   : > { %v2156_v54 = vrot.slane %v8072_v57, 1  ;;  %v11808_v52 = vrot.slane %v7380_v50, 5  ;;  %6109 = vrot.lane.b32.xlu1 %v6108_v32, %s6555_s21  ;;  %v2181_v16 = vrot.slane %v8082_v51, 1  ;;  %v11809_v40 = vrot.slane %v7380_v50, 6  ;;  %5735 = vmatpush1.bf16.msra.mxu1 %v5734_v21  ;;  %v972_v21 = vld [vmem:[%s11489_s4 + $0x60] sm:$0xff] }
 0x184   : > { %v1159_v55 = vsel %vm1153_vm4, %v1149_v49, %v11806_v28  ;;  %11807 = vst [vmem:[#allocation65_spill] sm:$0xff] %v8094_v7  ;;  %v8110_v49 = vpop.permute.xlu1 %5874  ;;  %v2310_v28 = vrot.slane %v7500_v2, 2  ;;  %v2325_v8 = vrot.slane %v8072_v57, 2  ;;  %v5737_v56 = vpack.c.bf16 %v971_v62, %v970_v42  ;;  %5762 = vmatpush1.bf16.msra.mxu0 %v8094_v7  ;;  %5736 = vmatprep.subr.bf16.mxu1 %v11790_v19 }
 0x185   : > { %v1169_v27 = vsel %vm1163_vm5, %v1159_v55, %v11808_v52  ;;  %6099 = vrot.lane.b32.xlu0 %v6098_v58, %s11669_s23  ;;  %v8137_v26 = vsel %vm1764_vm8, %v7128_v39, %v5847_v6  ;;  %v8140_v50 = vsel %vm1764_vm8, 0.0, %v5846_v23  ;;  %v973_v58 = vld [vmem:[%s11489_s4 + $0x68] sm:$0xff]  ;;  %v8155_v39 = vsel %vm1183_vm7, %v1680_v18, %v6841_v63  ;;  %5763 = vmatprep.subr.bf16.mxu0 %v11790_v19 }
 0x186   : > { %v1179_v55 = vsel %vm1173_vm6, %v1169_v27, %v11809_v40  ;;  %v8143_v40 = vpop.permute.xlu0 %5854  ;;  %v11812_v23 = vrot.slane %v7866_v61, 1  ;;  %v2350_v42 = vrot.slane %v8082_v51, 2  ;;  %v1992_v27 = vld [vmem:[%s11492_s7 + $0x60] sm:$0xff]  ;;  %v1993_v18 = vld [vmem:[%s11492_s7 + $0x68] sm:$0xff]  ;;  %v11815_v62 = vrot.slane %v7872_v25, 1 }
 0x187   : > { %v8130_v52 = vsel %vm1183_vm7, %v1179_v55, %v7413_v48  ;;  %v8145_v48 = vpack.c.bf16 %v1991_v43, %v1990_v33  ;;  %6119 = vrot.lane.b32.xlu1 %v6108_v32, %s11600_s30  ;;  %v11813_v55 = vrot.slane %v7497_v38, 2  ;;  %v11816_v2 = vrot.slane %v7866_v61, 2  ;;  %5738 = vmatpush1.bf16.msra.mxu1 %v5737_v56  ;;  %v974_v56 = vld [vmem:[%s11489_s4 + $0x70] sm:$0xff] }
 0x188   : > { %11810 = vst [vmem:[#allocation66_spill] sm:$0xff] %v8130_v52  ;;  %v8160_v6 = vsel %vm1183_vm7, %v2156_v54, %v11812_v23  ;;  %v6128_v54 = vpack.i.bf16 %v8019_v12, %v7060_v45  ;;  %v8185_v20 = vsel %vm1183_vm7, %v2181_v16, %v11815_v62  ;;  %v8192_v45 = vpop.permute.xlu1 %5879  ;;  %v5740_v33 = vpack.c.bf16 %v973_v58, %v972_v21 }
 0x189   : > { %11811 = vst [vmem:[#allocation67_spill] sm:$0xff] %v8145_v48  ;;  %v8180_v23 = vsel %vm1173_vm6, %v2310_v28, %v11813_v55  ;;  %v8190_v32 = vsel %vm1173_vm6, %v2325_v8, %v11816_v2  ;;  %6104 = vrot.lane.b32.xlu0 %v8104_v46, %s6555_s21  ;;  %v8201_v16 = vpack.i.bf16 %v8160_v6, %v8185_v20  ;;  %v975_v8 = vld [vmem:[%s11489_s4 + $0x78] sm:$0xff]  ;;  %v1301_v57 = vrot.slane %v7700_v29, 2 }
 0x18a   : > { %11814 = vst [vmem:[#allocation68_spill] sm:$0xff] %v8180_v23  ;;  %11817 = vst [vmem:[#allocation69_spill] sm:$0xff] %v8190_v32  ;;  %v6123_v28 = vpack.i.bf16 %v8180_v23, %v8155_v39  ;;  %5765 = vmatpush1.bf16.msra.mxu0 %v8145_v48  ;;  %v8204_v2 = vpack.c.bf16 %v1993_v18, %v1992_v27  ;;  %v11819_v39 = vrot.slane %v7872_v25, 2  ;;  %5739 = vmatprep.subr.bf16.mxu1 %v11790_v19  ;;  %v1994_v27 = vld [vmem:[%s11492_s7 + $0x70] sm:$0xff]  ;;  %v1995_v18 = vld [vmem:[%s11492_s7 + $0x78] sm:$0xff]  ;;  %v8236_v43 = vpop.permute.xlu0 %5859 }
 0x18b   : > { %5766 = vmatprep.subr.bf16.mxu0 %v11790_v19  ;;  %6129 = vrot.lane.b32.xlu1 %v6128_v54, %s6552_s16  ;;  %v5743_v55 = vpack.c.bf16 %v975_v8, %v974_v56  ;;  %v11821_v54 = vrot.slane %v7824_v35, 7  ;;  %v976_v56 = vld [vmem:[%s11489_s4 + $0x80] sm:$0xff]  ;;  %v977_v8 = vld [vmem:[%s11489_s4 + $0x88] sm:$0xff]  ;;  %v1317_v21 = vrot.slane %v7700_v29, 3  ;;  %v11825_v23 = vrot.slane %v7700_v29, 1 }
 0x18c   : > { %11818 = vst [vmem:[#allocation70_spill] sm:$0xff] %v8204_v2  ;;  %v8217_v62 = vsel %vm1173_vm6, %v2350_v42, %v11819_v39  ;;  %v6133_v42 = vpack.i.bf16 %v7659_v24, %v8130_v52  ;;  %5741 = vmatpush1.bf16.msra.mxu1 %v5740_v33  ;;  %v8248_v39 = vpop.permute.xlu1 %5889  ;;  %v8253_v33 = vpack.c.bf16 %v1995_v18, %v1994_v27  ;;  %v1996_v27 = vld [vmem:[%s11492_s7 + $0x80] sm:$0xff]  ;;  %v1997_v18 = vld [vmem:[%s11492_s7 + $0x88] sm:$0xff]  ;;  %v1357_v24 = vrot.slane %v7422_v17, 5 }
 0x18d   : > { %11820 = vst [vmem:[#allocation71_spill] sm:$0xff] %v8217_v62  ;;  %v8244_v51 = vsel %vm1123_vm1, %v11821_v54, %v7820_v53  ;;  %6114 = vrot.lane.b32.xlu0 %v8104_v46, %s11600_s30  ;;  %5742 = vmatprep.subr.bf16.mxu1 %v11790_v19  ;;  %v5746_v54 = vpack.c.bf16 %v977_v8, %v976_v56  ;;  %v1461_v48 = vrot.slane %v7700_v29, 4  ;;  %v1373_v58 = vrot.slane %v7422_v17, 6  ;;  %s11857_s30 = smov 48  }
 0x18e   : > { %11822 = vst [vmem:[#allocation72_spill] sm:$0xff] %v8244_v51  ;;  %5768 = vmatpush1.bf16.msra.mxu0 %v8204_v2  ;;  %11823 = vst [vmem:[#allocation73_spill] sm:$0xff] %v8253_v33  ;;  %v1405_v2 = vsel %vm1123_vm1, %v7700_v29, %v11825_v23  ;;  %v8285_v46 = vpack.c.bf16 %v1997_v18, %v1996_v27  ;;  %v11827_v56 = vmov %v11825_v23  ;;  %v5865_v7 = vpop.permute.xlu0 %5864  ;;  %v11828_v23 = vrot.slane %v7309_v44, 7 }
 0x18f   : > { %5769 = vmatprep.subr.bf16.mxu0 %v11790_v19  ;;  %6149 = vrot.lane.b32.xlu1 %v8023_v5, %s11824_s28  ;;  %v1477_v8 = vsel %vm1123_vm1, %v11827_v56, %v1301_v57  ;;  %v5867_v29 = vunpack.i.h.bf16 %v5865_v7  ;;  %v11830_v56 = vrot.slane %v7422_v17, 4 }
 0x190   : > { %5744 = vmatpush1.bf16.msra.mxu1 %v5743_v55  ;;  %11826 = vst [vmem:[#allocation74_spill] sm:$0xff] %v8285_v46  ;;  %v1413_v55 = vsel %vm1133_vm2, %v1405_v2, %v1301_v57  ;;  %v8296_v38 = vsel %vm1123_vm1, %v11828_v23, %v7515_v34  ;;  %v1485_v2 = vsel %vm1133_vm2, %v1477_v8, %v1317_v21  ;;  %v5866_v57 = vunpack.i.l.bf16 %v5865_v7  ;;  %v5895_v18 = vpop.permute.xlu1 %5894 }
 0x191   : > { %6124 = vrot.lane.b32.xlu0 %v6123_v28, %s6554_s20  ;;  %11829 = vst [vmem:[#allocation75_spill] sm:$0xff] %v8296_v38  ;;  %5745 = vmatprep.subr.bf16.mxu1 %v11790_v19  ;;  %v1421_v27 = vsel %vm1143_vm3, %v1413_v55, %v1317_v21  ;;  %v5892_v21 = vunpack.i.h.bf16 %v8248_v39  ;;  %v1774_v7 = vsel %vm1773_vm9, %v8137_v26, %v5867_v29 }
 0x192   : > { %5771 = vmatpush1.bf16.msra.mxu0 %v8253_v33  ;;  %v1429_v23 = vsel %vm1153_vm4, %v1421_v27, %v11830_v56  ;;  %v1493_v33 = vsel %vm1143_vm3, %v1485_v2, %v1461_v48  ;;  %v2980_v8 = vsel %vm1773_vm9, %v8140_v50, %v5866_v57  ;;  %v5885_v26 = vpop.permute.xlu0 %5884  ;;  %v11835_v57 = vunpack.i.l.bf16 %v8110_v49 }
 0x193   : > { %5772 = vmatprep.subr.bf16.mxu0 %v11790_v19  ;;  %6154 = vrot.lane.b32.xlu1 %v8201_v16, %s11675_s17  ;;  %v1437_v28 = vsel %vm1163_vm5, %v1429_v23, %v1357_v24  ;;  %v1501_v55 = vsel %vm1153_vm4, %v1493_v33, %v1357_v24  ;;  %v11832_v24 = vunpack.i.l.bf16 %v8025_v31  ;;  %v11833_v33 = vunpack.i.l.bf16 %v7902_v36 }
 0x194   : > { %5747 = vmatpush1.bf16.msra.mxu1 %v5746_v54  ;;  %v1445_v48 = vsel %vm1173_vm6, %v1437_v28, %v1373_v58  ;;  %v11831_v54 = vunpack.i.h.bf16 %v8025_v31  ;;  %v11834_v28 = vpack.i.bf16 %v8190_v32, %v8217_v62  ;;  %v5887_v29 = vunpack.i.h.bf16 %v5885_v26  ;;  %v8340_v23 = vpop.permute.xlu1 %5899 }
 0x195   : > { %6134 = vrot.lane.b32.xlu0 %v6133_v42, %s6555_s21  ;;  %v3011_v42 = vsel %vm1782_vm10, %v2980_v8, %v11832_v24  ;;  %v3012_v2 = vsel %vm1782_vm10, %v2980_v8, %v11833_v33  ;;  %v8330_v50 = vsel %vm1183_vm7, %v1445_v48, %v7698_v14  ;;  %5797 = vmatprep.subr.bf16.mxu1 %v11790_v19  ;;  %v5886_v31 = vunpack.i.l.bf16 %v5885_v26 }
 0x196   : > { %5774 = vmatpush1.bf16.msra.mxu0 %v8285_v46  ;;  %v1783_v27 = vsel %vm1782_vm10, %v1774_v7, %v11831_v54  ;;  %v3043_v56 = vsel %vm1791_vm11, %v3011_v42, %v11835_v57  ;;  %v11836_v7 = vunpack.i.h.bf16 %v8110_v49  ;;  %v5891_v48 = vunpack.i.l.bf16 %v8248_v39 }
 0x197   : > { %6159 = vrot.lane.b32.xlu1 %v11834_v28, %s6554_s20  ;;  %v5897_v54 = vunpack.i.h.bf16 %v5895_v18  ;;  %v5901_v24 = vunpack.i.l.bf16 %v8340_v23  ;;  %v11837_v33 = vunpack.i.l.bf16 %v8074_v47  ;;  %v11838_v26 = vpack.i.bf16 %v7692_v37, %v8019_v12 }
 0x198   : > { %v1792_v8 = vsel %vm1791_vm11, %v1783_v27, %v11836_v7  ;;  %v5896_v42 = vunpack.i.l.bf16 %v5895_v18  ;;  %v3075_v57 = vsel %vm1800_vm12, %v3043_v56, %v5886_v31  ;;  %v11839_v27 = vunpack.i.l.bf16 %v8143_v40  ;;  %v8374_v31 = vpop.permute.xlu1 %5904 }
 0x199   : > { %v3044_v28 = vsel %vm1791_vm11, %v3012_v2, %v11837_v33  ;;  %6139 = vrot.lane.b32.xlu0 %v11838_v26, %s11824_s28  ;;  %v1801_v49 = vsel %vm1800_vm12, %v1792_v8, %v5887_v29  ;;  %v3107_v7 = vsel %vm1809_vm13, %v3075_v57, %v5891_v48  ;;  %v8363_v2 = vsel %vm1123_vm1, %v7515_v34, 0.0  ;;  %v11841_v8 = vld [vmem:[#allocation11_spill] sm:$0xff] }
 0x19a   : > { %v3076_v39 = vsel %vm1800_vm12, %v3044_v28, %v11839_v27  ;;  %v1810_v46 = vsel %vm1809_vm13, %v1801_v49, %v5892_v21  ;;  %v8367_v12 = vsel %vm1123_vm1, %v7820_v53, 0.0  ;;  %v11840_v18 = vpack.i.bf16 %v8185_v20, %v7303_v1 }
 0x19b   : > { %v3139_v29 = vsel %vm1818_vm14, %v3107_v7, %v5896_v42  ;;  %v1819_v56 = vsel %vm1818_vm14, %v1810_v46, %v5897_v54  ;;  %v1509_v21 = vsel %vm1163_vm5, %v1501_v55, %v1373_v58  ;;  %v11616_v34 = vrot.slane %v8296_v38, 1  ;;  %v8407_v42 = vpop.permute.xlu0 %5909 }
 0x19c   : > { %6164 = vrot.lane.b32.xlu1 %v11840_v18, %s6552_s16  ;;  %v2950_v48 = vsel %vm1764_vm8, %v11841_v8, %v5901_v24  ;;  %3298 = vmatmul.mubr.f32.vlgmr.msra.gmra.mrb[32].mxu0 %v3139_v29  ;;  %v5906_v33 = vunpack.i.l.bf16 %v8374_v31  ;;  %v11842_v1 = vunpack.i.l.bf16 %v8236_v43  ;;  %v1517_v28 = vsel %vm1173_vm6, %v1509_v21, %v7698_v14  ;;  %v11852_v8 = vld [vmem:[#allocation17_spill] sm:$0xff] }
 0x19d   : > { %1908 = vmatmul.mubr.f32.vlgmr.msra.gmra.mrb[0].mxu1 %v1819_v56  ;;  %6144 = vrot.lane.b32.xlu0 %v8201_v16, %s11824_s28  ;;  %v8393_v58 = vsel %vm1183_vm7, %v1517_v28, %v7422_v17  ;;  %v2164_v46 = vrot.slane %v8363_v2, 1  ;;  %v11615_v55 = vrot.slane %v8244_v51, 1  ;;  %v2189_v54 = vrot.slane %v8367_v12, 1 }
 0x19e   : > { %v3108_v20 = vsel %vm1809_vm13, %v3076_v39, %v11842_v1  ;;  %5509 = vmatprep.mubr.msk.f32.mxu1 %vm1764_vm8, %v7384_v9  ;;  %v5852_v24 = vunpack.i.h.bf16 %v8074_v47  ;;  %v5857_v14 = vunpack.i.h.bf16 %v8143_v40  ;;  %v11843_v26 = vrot.slane %v7954_v22, 2  ;;  %5519 = vmatprep.mubr.msk.f32.mxu0 %vm1764_vm8, %v7346_v13  ;;  %v11853_v1 = vld [vmem:[#allocation18_spill] sm:$0xff] }
 0x19f   : > { %v11844_v16 = vrot.slane %v7866_v61, 2  ;;  %v2981_v17 = vsel %vm1773_vm9, %v2950_v48, %v5906_v33  ;;  %5806 = vmatpush1.bf16.msra.mxu1 %v7900_v0  ;;  %v11846_v47 = vpack.i.bf16 %v8217_v62, %v7932_v30  ;;  %v11847_v22 = vunpack.i.h.bf16 %v7902_v36 }
 0x1a0   : > { %v11848_v57 = vunpack.i.l.bf16 %v8192_v45  ;;  %v8426_v27 = vsel %vm1183_vm7, %v11616_v34, %v2164_v46  ;;  %v8431_v13 = vsel %vm1183_vm7, %v11615_v55, %v2189_v54  ;;  %v5862_v0 = vunpack.i.h.bf16 %v8236_v43  ;;  %5798 = vmatprep.subr.bf16.mxu1 %v11790_v19 }
 0x1a1   : > { %v8405_v9 = vsel %vm1173_vm6, %v11844_v16, %v11843_v26  ;;  %6174 = vrot.lane.b32.xlu1 %v11846_v47, %s11669_s23  ;;  %v3013_v40 = vsel %vm1782_vm10, %v2981_v17, %v11847_v22  ;;  %v11849_v36 = vrot.slane %v7958_v11, 2  ;;  %v11850_v39 = vrot.slane %v7872_v25, 2  ;;  %6169 = vrot.lane.b32.xlu0 %v8023_v5, %s11675_s17  ;;  %v8485_v17 = vpop.permute.xlu1 %5914  ;;  %v11854_v47 = vld [vmem:[#allocation33_spill] sm:$0xff] }
 0x1a2   : > { %11845 = vst [vmem:[#allocation11_spill] sm:$0xff] %v8405_v9  ;;  %v3140_v49 = vsel %vm1818_vm14, %v3108_v20, %v11848_v57  ;;  %v3045_v18 = vsel %vm1791_vm11, %v3013_v40, %v5852_v24  ;;  %v8444_v29 = vpack.i.bf16 %v8426_v27, %v8431_v13  ;;  %v5882_v56 = vunpack.i.h.bf16 %v8192_v45  ;;  %v11855_v40 = vld [vmem:[#allocation46_spill] sm:$0xff] }
 0x1a3   : > { %v8439_v7 = vsel %vm1173_vm6, %v11850_v39, %v11849_v36  ;;  %3303 = vmatmul.mubr.f32.gmra.mrb[34].mxu0 %v3140_v49  ;;  %v6198_v11 = vpack.i.bf16 %v8296_v38, %v8244_v51  ;;  %v3077_v43 = vsel %vm1800_vm12, %v3045_v18, %v5857_v14  ;;  %v11614_v21 = vrot.slane %v8028_v15, 1  ;;  %5807 = vmatpush1.bf16.msra.mxu1 %v7911_v41  ;;  %v8477_v14 = vpop.permute.xlu0 %5929 }
 0x1a4   : > { %11851 = vst [vmem:[#allocation76_spill] sm:$0xff] %v8439_v7  ;;  %5520 = vmatprep.mubr.msk.f32.mxu0 %vm1764_vm8, %v7462_v59  ;;  %v888_v48 = vmul.f32 %v7705_v60, %v11852_v8  ;;  %v1578_v33 = vrot.slane %v8130_v52, 1  ;;  %v3109_v45 = vsel %vm1809_vm13, %v3077_v43, %v5862_v0  ;;  %v8462_v5 = vmax.f32 %v8032_v3, 0.0  ;;  %5799 = vmatprep.subr.bf16.mxu1 %v11790_v19  ;;  %v11856_v0 = vld [vmem:[#allocation58_spill] sm:$0xff]  ;;  %v11955_v52 = vld [vmem:[#allocation48_spill] sm:$0xff] }
 0x1a5   : > { %v887_v20 = vmul.f32 %v7705_v60, %v11853_v1  ;;  %6199 = vrot.lane.b32.xlu1 %v6198_v11, %s6555_s21  ;;  %v6178_v28 = vpack.i.bf16 %v8405_v9, %v8439_v7  ;;  %v3141_v46 = vsel %vm1818_vm14, %v3109_v45, %v5882_v56  ;;  %v1013_v54 = vrot.slane %v7824_v35, 2  ;;  %v11858_v56 = vld [vmem:[#allocation60_spill] sm:$0xff] }
 0x1a6   : > { %v8475_v3 = vmax.f32 %v8047_v10, 0.0  ;;  %v8480_v60 = vrot.slane %v8000_v4, 7  ;;  %v8493_v10 = vsel %vm1123_vm1, %v8028_v15, %v11614_v21  ;;  %v927_v57 = vadd.f32 %v11855_v40, %v888_v48  ;;  %v11872_v21 = vld [vmem:[#allocation65_spill] sm:$0xff] }
 0x1a7   : > { %3308 = vmatmul.mubr.f32.gmra.mrb[36].mxu0 %v3141_v46  ;;  %6179 = vrot.lane.b32.xlu0 %v6178_v28, %s6554_s20  ;;  %v8499_v49 = vsel %vm1183_vm7, %v1578_v33, %v6841_v63  ;;  %v926_v18 = vadd.f32 %v11855_v40, %v887_v20  ;;  %v6183_v43 = vpack.i.bf16 %v11858_v56, %v8160_v6  ;;  %v8511_v48 = vrot.slane %v8462_v5, 7  ;;  %v8519_v20 = vpop.permute.xlu1 %5919  ;;  %v11869_v40 = vld [vmem:[#allocation40_spill] sm:$0xff] }
 0x1a8   : > { %5521 = vmatprep.mubr.msk.f32.mxu0 %vm1764_vm8, %v11854_v47  ;;  %5808 = vmatpush1.bf16.msra.mxu1 %v11856_v0  ;;  %v5902_v45 = vunpack.i.h.bf16 %v8340_v23  ;;  %v5907_v1 = vunpack.i.h.bf16 %v8374_v31  ;;  %11859 = vst [vmem:[#allocation17_spill] sm:$0xff] %v8519_v20  ;;  %v11860_v6 = vrot.slane %v7309_v44, 7  ;;  %v11613_v46 = vrot.slane %v8028_v15, 7  ;;  %v8531_v31 = vpop.permute.xlu0 %5944 }
 0x1a9   : > { %6209 = vrot.lane.b32.xlu1 %v6198_v11, %s11857_s30  ;;  %5800 = vmatprep.subr.bf16.mxu1 %v11790_v19  ;;  %v6213_v11 = vpack.i.bf16 %v8499_v49, %v7462_v59  ;;  %v8529_v0 = vmax.f32 %v927_v57, 0.0  ;;  %11862 = vst [vmem:[#allocation33_spill] sm:$0xff] %v8531_v31  ;;  %v1031_v56 = vrot.slane %v7824_v35, 3  ;;  %v11863_v59 = vld [vmem:[#allocation62_spill] sm:$0xff]  ;;  %v6188_v44 = vpack.i.bf16 %v8439_v7, %v8190_v32 }
 0x1aa   : > { %v8524_v28 = vsel %vm1123_vm1, 0.0, %v11860_v6  ;;  %v11864_v6 = vrot.slane %v7824_v35, 7  ;;  %v8549_v57 = vsel %vm1123_vm1, %v11613_v46, %v8480_v60  ;;  %v1093_v46 = vrot.slane %v11869_v40, 6 }
 0x1ab   : > { %6184 = vrot.lane.b32.xlu0 %v6183_v43, %s6552_s16  ;;  %11861 = vst [vmem:[#allocation18_spill] sm:$0xff] %v8524_v28  ;;  %v8535_v43 = vmax.f32 %v926_v18, 0.0  ;;  %11866 = vst [vmem:[#allocation58_spill] sm:$0xff] %v8549_v57  ;;  %v11867_v18 = vld [vmem:[#allocation14_spill] sm:$0xff]  ;;  %v8560_v23 = vpop.permute.xlu1 %5924  ;;  %v1199_v22 = vrot.slane %v7824_v35, 4  ;;  %v5911_v41 = vunpack.i.l.bf16 %v8407_v42  ;;  %v5931_v24 = vunpack.i.l.bf16 %v8477_v14 }
 0x1ac   : > { %5809 = vmatpush1.bf16.msra.mxu1 %v11863_v59  ;;  %v8543_v36 = vsel %vm1123_vm1, 0.0, %v11864_v6  ;;  %v1766_v59 = vsel %vm1764_vm8, %v11867_v18, %v5902_v45  ;;  %v11870_v45 = vrot.slane %v7824_v35, 1  ;;  %v5912_v16 = vunpack.i.h.bf16 %v8407_v42  ;;  %v8586_v55 = vpop.permute.xlu0 %5949 }
 0x1ad   : > { %6214 = vrot.lane.b32.xlu1 %v6213_v11, %s11669_s23  ;;  %11865 = vst [vmem:[#allocation46_spill] sm:$0xff] %v8543_v36  ;;  %5801 = vmatprep.subr.bf16.mxu1 %v11790_v19  ;;  %v11868_v11 = vld [vmem:[#allocation23_spill] sm:$0xff]  ;;  %v6193_v39 = vpack.i.bf16 %v8524_v28, %v8543_v36  ;;  %v1775_v6 = vsel %vm1773_vm9, %v1766_v59, %v5907_v1  ;;  %v2161_v26 = vrot.slane %v8524_v28, 1  ;;  %v11874_v42 = vrot.slane %v11869_v40, 5 }
 0x1ae   : > { %v6218_v8 = vpack.i.bf16 %v11868_v11, %v8330_v50  ;;  %v1215_v18 = vsel %vm1123_vm1, %v11870_v45, %v1013_v54 }
 0x1af   : > { %6189 = vrot.lane.b32.xlu0 %v6188_v44, %s11669_s23  ;;  %v1224_v1 = vsel %vm1133_vm2, %v1215_v18, %v1031_v56  ;;  %v11871_v44 = vmov %v11870_v45  ;;  %v1784_v18 = vsel %vm1782_vm10, %v1775_v6, %v5911_v41  ;;  %v11875_v41 = vrot.slane %v11869_v40, 4 }
 0x1b0   : > { %v1130_v59 = vsel %vm1123_vm1, %v7824_v35, %v11871_v44  ;;  %5810 = vmatpush1.bf16.msra.mxu1 %v11872_v21  ;;  %v1233_v45 = vsel %vm1143_vm3, %v1224_v1, %v1199_v22  ;;  %v11873_v21 = vld [vmem:[#allocation32_spill] sm:$0xff]  ;;  %v5951_v35 = vunpack.i.l.bf16 %v8586_v55  ;;  %v11876_v1 = vld [vmem:[#allocation6_spill] sm:$0xff] }
 0x1b1   : > { %6219 = vrot.lane.b32.xlu1 %v6218_v8, %s11857_s30  ;;  %v1140_v33 = vsel %vm1133_vm2, %v1130_v59, %v1013_v54  ;;  %5802 = vmatprep.subr.bf16.mxu1 %v11790_v19  ;;  %v6223_v44 = vpack.i.bf16 %v11873_v21, %v8393_v58  ;;  %v1242_v8 = vsel %vm1153_vm4, %v1233_v45, %v11874_v42  ;;  %v2186_v54 = vrot.slane %v8543_v36, 1  ;;  %v5935_v59 = vpop.permute.xlu1 %5934 }
 0x1b2   : > { %v1150_v34 = vsel %vm1143_vm3, %v1140_v33, %v1031_v56  ;;  %v1251_v22 = vsel %vm1163_vm5, %v1242_v8, %v1093_v46  ;;  %v2951_v58 = vsel %vm1764_vm8, %v11876_v1, %v5931_v24  ;;  %v2330_v45 = vrot.slane %v8524_v28, 2 }
 0x1b3   : > { %6194 = vrot.lane.b32.xlu0 %v6193_v39, %s6555_s21  ;;  %v1160_v6 = vsel %vm1153_vm4, %v1150_v34, %v11875_v41  ;;  %v1260_v33 = vsel %vm1173_vm6, %v1251_v22, %v7820_v53  ;;  %v11877_v56 = vmov %v11874_v42  ;;  %v11878_v42 = vld [vmem:[#allocation67_spill] sm:$0xff]  ;;  %v2982_v8 = vsel %vm1773_vm9, %v2951_v58, %v5951_v35 }
 0x1b4   : > { %v1170_v21 = vsel %vm1163_vm5, %v1160_v6, %v11877_v56  ;;  %5811 = vmatpush1.bf16.msra.mxu1 %v11878_v42  ;;  %v11879_v34 = vrot.slane %v8296_v38, 1  ;;  %v8619_v41 = vsel %vm1183_vm7, %v1260_v33, %v11869_v40  ;;  %v5917_v1 = vunpack.i.h.bf16 %v8485_v17 }
 0x1b5   : > { %6224 = vrot.lane.b32.xlu1 %v6223_v44, %s11675_s17  ;;  %v1180_v22 = vsel %vm1173_vm6, %v1170_v21, %v1093_v46  ;;  %v5916_v6 = vunpack.i.l.bf16 %v8485_v17  ;;  %v3014_v56 = vsel %vm1782_vm10, %v2982_v8, %v5912_v16  ;;  %5803 = vmatprep.subr.bf16.mxu1 %v11790_v19  ;;  %v5927_v35 = vunpack.i.h.bf16 %v8560_v23  ;;  %v8639_v16 = vpop.permute.xlu0 %5954  ;;  %v5940_v42 = vpop.permute.xlu1 %5939 }
 0x1b6   : > { %v8615_v24 = vsel %vm1183_vm7, %v2161_v26, %v11879_v34  ;;  %v8627_v44 = vsel %vm1183_vm7, %v1180_v22, %v7820_v53  ;;  %v5932_v26 = vunpack.i.h.bf16 %v8477_v14  ;;  %v5926_v40 = vunpack.i.l.bf16 %v8560_v23  ;;  %v11882_v14 = vld [vmem:[#allocation70_spill] sm:$0xff] }
 0x1b7   : > { %11880 = vst [vmem:[#allocation60_spill] sm:$0xff] %v8627_v44  ;;  %6204 = vrot.lane.b32.xlu0 %v6193_v39, %s11857_s30  ;;  %v11881_v46 = vrot.slane %v8244_v51, 1  ;;  %v5937_v58 = vunpack.i.h.bf16 %v5935_v59  ;;  %v5936_v53 = vunpack.i.l.bf16 %v5935_v59  ;;  %v2331_v33 = vrot.slane %v8296_v38, 2 }
 0x1b8   : > { %v3046_v21 = vsel %vm1791_vm11, %v3014_v56, %v5917_v1  ;;  %5812 = vmatpush1.bf16.msra.mxu1 %v11882_v14  ;;  %v2355_v23 = vrot.slane %v8543_v36, 2  ;;  %v1793_v59 = vsel %vm1791_vm11, %v1784_v18, %v5916_v6  ;;  %v2333_v8 = vrot.slane %v8363_v2, 2  ;;  %v11885_v6 = vld [vmem:[#allocation73_spill] sm:$0xff] }
 0x1b9   : > { %v8637_v17 = vsel %vm1183_vm7, %v2186_v54, %v11881_v46  ;;  %6234 = vrot.lane.b32.xlu1 %v8444_v29, %s11824_s28  ;;  %v2356_v54 = vrot.slane %v8244_v51, 2  ;;  %5804 = vmatprep.subr.bf16.mxu1 %v11790_v19  ;;  %v2358_v34 = vrot.slane %v8367_v12, 2  ;;  %v11619_v22 = vrot.slane %v8475_v3, 7  ;;  %v8658_v38 = vpop.permute.xlu0 %5959 }
 0x1ba   : > { %v6228_v39 = vpack.i.bf16 %v8615_v24, %v8637_v17  ;;  %v5942_v1 = vunpack.i.h.bf16 %v5940_v42  ;;  %v5941_v56 = vunpack.i.l.bf16 %v5940_v42  ;;  %v1802_v46 = vsel %vm1800_vm12, %v1793_v59, %v5926_v40 }
 0x1bb   : > { %v3078_v14 = vsel %vm1800_vm12, %v3046_v21, %v5927_v35  ;;  %v8661_v7 = vsel %vm1173_vm6, %v2330_v45, %v2331_v33  ;;  %v1811_v18 = vsel %vm1809_vm13, %v1802_v46, %v5936_v53  ;;  %v8669_v12 = vsel %vm1123_vm1, %v11619_v22, %v8511_v48 }
 0x1bc   : > { %6229 = vrot.lane.b32.xlu0 %v6228_v39, %s11824_s28  ;;  %11883 = vst [vmem:[#allocation62_spill] sm:$0xff] %v8661_v7  ;;  %v3110_v2 = vsel %vm1809_vm13, %v3078_v14, %v5937_v58  ;;  %11884 = vst [vmem:[#allocation14_spill] sm:$0xff] %v8669_v12  ;;  %5813 = vmatpush1.bf16.msra.mxu1 %v11885_v6  ;;  %v11886_v40 = vrot.slane %v8475_v3, 1  ;;  %v1820_v58 = vsel %vm1818_vm14, %v1811_v18, %v5941_v56  ;;  %v11890_v14 = vld [vmem:[#allocation28_spill] sm:$0xff] }
 0x1bd   : > { %6239 = vrot.lane.b32.xlu1 %v6228_v39, %s11675_s17  ;;  %v3142_v53 = vsel %vm1818_vm14, %v3110_v2, %v5942_v1  ;;  %5805 = vmatprep.subr.bf16.mxu1 %v11790_v19  ;;  %v8685_v59 = vsel %vm1173_vm6, %v2355_v23, %v2356_v54  ;;  %v8688_v42 = vsel %vm1173_vm6, %v2331_v33, %v2333_v8  ;;  %v8695_v56 = vrot.slane %v8529_v0, 7  ;;  %v8708_v18 = vpop.permute.xlu0 %5964  ;;  %v11892_v2 = vld [vmem:[#allocation68_spill] sm:$0xff]  ;;  %v8736_v1 = vpop.permute.xlu1 %5969 }
 0x1be   : > { %v8676_v35 = vsel %vm1123_vm1, %v8475_v3, %v11886_v40  ;;  %11887 = vst [vmem:[#allocation23_spill] sm:$0xff] %v8685_v59  ;;  %1913 = vmatmul.mubr.f32.gmra.mrb[2].mxu1 %v1820_v58  ;;  %3313 = vmatmul.mubr.f32.gmra.mrb[38].mxu0 %v3142_v53  ;;  %11888 = vst [vmem:[#allocation40_spill] sm:$0xff] %v8688_v42  ;;  %v8691_v46 = vsel %vm1173_vm6, %v2356_v54, %v2358_v34  ;;  %v11891_v54 = vld [vmem:[#allocation21_spill] sm:$0xff]  ;;  %v11893_v6 = vld [vmem:[#allocation20_spill] sm:$0xff]  ;;  %v5952_v39 = vunpack.i.h.bf16 %v8586_v55 }
 0x1bf   : > { %11889 = vst [vmem:[#allocation65_spill] sm:$0xff] %v8691_v46  ;;  %v6243_v23 = vpack.i.bf16 %v8661_v7, %v8685_v59  ;;  %5510 = vmatprep.mubr.msk.f32.mxu1 %vm1764_vm8, %v11890_v14  ;;  %v1767_v8 = vsel %vm1764_vm8, %v11891_v54, %v5932_v26  ;;  %5522 = vmatprep.mubr.msk.f32.mxu0 %vm1764_vm8, %v11892_v2  ;;  %v11894_v40 = vld [vmem:[#allocation74_spill] sm:$0xff]  ;;  %v11895_v53 = vld [vmem:[#allocation59_spill] sm:$0xff]  ;;  %v1374_v26 = vrot.slane %v8000_v4, 6  ;;  %v11896_v54 = vrot.slane %v8028_v15, 2 }
 0x1c0   : > { %6254 = vrot.lane.b32.xlu0 %v8444_v29, %s11675_s17  ;;  %v2016_v29 = vrot.slane %v11893_v6, 7  ;;  %5814 = vmatpush1.bf16.msra.mxu1 %v11894_v40  ;;  %v6263_v58 = vpack.i.bf16 %v8688_v42, %v8691_v46  ;;  %v6248_v14 = vpack.i.bf16 %v8637_v17, %v11895_v53  ;;  %v6268_v6 = vpack.i.bf16 %v8431_v13, %v8615_v24 }
 0x1c1   : > { %6244 = vrot.lane.b32.xlu1 %v6243_v23, %s6554_s20  ;;  %v1414_v22 = vsel %vm1133_vm2, %v8493_v10, %v11896_v54  ;;  %v11897_v23 = vrot.slane %v8028_v15, 3  ;;  %v11898_v21 = vmov %v11896_v54  ;;  %v11899_v17 = vrot.slane %v8028_v15, 1 }
 0x1c2   : > { %v5956_v33 = vunpack.i.l.bf16 %v8639_v16  ;;  %v6258_v55 = vpack.i.bf16 %v8685_v59, %v8405_v9  ;;  %v11900_v13 = vrot.slane %v8000_v4, 4  ;;  %v5961_v54 = vunpack.i.l.bf16 %v8658_v38 }
 0x1c3   : > { %v1422_v40 = vsel %vm1143_vm3, %v1414_v22, %v11897_v23  ;;  %v1478_v53 = vsel %vm1123_vm1, %v11899_v17, %v11898_v21  ;;  %v11901_v24 = vmov %v11897_v23  ;;  %v5975_v21 = vpop.permute.xlu0 %5974  ;;  %v11902_v23 = vld [vmem:[#allocation27_spill] sm:$0xff]  ;;  %v11905_v34 = vrot.slane %v8028_v15, 4 }
 0x1c4   : > { %6264 = vrot.lane.b32.xlu0 %v6263_v58, %s6554_s20  ;;  %v1430_v10 = vsel %vm1153_vm4, %v1422_v40, %v11900_v13  ;;  %v1486_v22 = vsel %vm1133_vm2, %v1478_v53, %v11901_v24  ;;  %v8750_v17 = vsel %vm1123_vm1, %v2016_v29, %v11902_v23  ;;  %v11904_v58 = vrot.slane %v8000_v4, 5 }
 0x1c5   : > { %11903 = vst [vmem:[#allocation32_spill] sm:$0xff] %v8750_v17  ;;  %v1494_v19 = vsel %vm1143_vm3, %v1486_v22, %v11905_v34  ;;  %v5966_v40 = vunpack.i.l.bf16 %v8708_v18  ;;  %v5971_v13 = vunpack.i.l.bf16 %v8736_v1  ;;  %6249 = vrot.lane.b32.xlu1 %v6248_v14, %s6552_s16  ;;  %v1776_v9 = vsel %vm1773_vm9, %v1767_v8, %v5952_v39 }
 0x1c6   : > { %v1438_v45 = vsel %vm1163_vm5, %v1430_v10, %v11904_v58  ;;  %v11906_v24 = vmov %v11904_v58  ;;  %v5976_v62 = vunpack.i.l.bf16 %v5975_v21  ;;  %v1785_v22 = vsel %vm1782_vm10, %v1776_v9, %v5956_v33  ;;  %v8772_v58 = vpop.permute.xlu1 %5984 }
 0x1c7   : > { %v1446_v53 = vsel %vm1173_vm6, %v1438_v45, %v1374_v26  ;;  %v1502_v59 = vsel %vm1153_vm4, %v1494_v19, %v11906_v24  ;;  %v6273_v45 = vpack.i.bf16 %v8691_v46, %v8661_v7  ;;  %v8778_v19 = vsel %vm1123_vm1, 0.0, %v2016_v29  ;;  %v11928_v7 = vld [vmem:[#allocation26_spill] sm:$0xff] }
 0x1c8   : > { %v8768_v10 = vsel %vm1183_vm7, %v1446_v53, %v8480_v60  ;;  %v1510_v34 = vsel %vm1163_vm5, %v1502_v59, %v1374_v26  ;;  %6269 = vrot.lane.b32.xlu0 %v6268_v6, %s6552_s16  ;;  %11907 = vst [vmem:[#allocation6_spill] sm:$0xff] %v8778_v19  ;;  %v1794_v8 = vsel %vm1791_vm11, %v1785_v22, %v5961_v54  ;;  %v5986_v14 = vunpack.i.l.bf16 %v8772_v58  ;;  %v5980_v59 = vpop.permute.xlu0 %5979  ;;  %v11908_v6 = vld [vmem:[#allocation7_spill] sm:$0xff] }
 0x1c9   : > { %v1518_v39 = vsel %vm1173_vm6, %v1510_v34, %v8480_v60  ;;  %v6283_v9 = vpack.i.bf16 %v8750_v17, %v8549_v57  ;;  %v5957_v26 = vunpack.i.h.bf16 %v8639_v16  ;;  %v2952_v29 = vsel %vm1764_vm8, %v11908_v6, %v5971_v13  ;;  %6259 = vrot.lane.b32.xlu1 %v6258_v55, %s11669_s23 }
 0x1ca   : > { %v8788_v33 = vsel %vm1183_vm7, %v1518_v39, %v8000_v4  ;;  %v5981_v53 = vunpack.i.l.bf16 %v5980_v59  ;;  %v1803_v54 = vsel %vm1800_vm12, %v1794_v8, %v5966_v40  ;;  %v5962_v24 = vunpack.i.h.bf16 %v8658_v38  ;;  %v8805_v6 = vpop.permute.xlu1 %5989 }
 0x1cb   : > { %v2983_v34 = vsel %vm1773_vm9, %v2952_v29, %v5986_v14  ;;  %v1812_v22 = vsel %vm1809_vm13, %v1803_v54, %v5976_v62  ;;  %v11909_v46 = vrot.slane %v8475_v3, 2  ;;  %v11910_v4 = vrot.slane %v8475_v3, 1 }
 0x1cc   : > { %v5967_v39 = vunpack.i.h.bf16 %v8708_v18  ;;  %v3015_v13 = vsel %vm1782_vm10, %v2983_v34, %v5957_v26  ;;  %6274 = vrot.lane.b32.xlu0 %v6273_v45, %s11669_s23  ;;  %v1821_v38 = vsel %vm1818_vm14, %v1812_v22, %v5981_v53  ;;  %v11911_v55 = vrot.slane %v8475_v3, 3  ;;  %v8822_v29 = vpop.permute.xlu0 %6004  ;;  %v11915_v53 = vld [vmem:[#allocation47_spill] sm:$0xff] }
 0x1cd   : > { %v1216_v16 = vsel %vm1123_vm1, %v11910_v4, %v11909_v46  ;;  %v5977_v40 = vunpack.i.h.bf16 %v5975_v21  ;;  %1918 = vmatmul.mubr.f32.gmra.mrb[4].mxu1 %v1821_v38  ;;  %v11912_v8 = vrot.slane %v8028_v15, 7  ;;  %v3047_v18 = vsel %vm1791_vm11, %v3015_v13, %v5962_v24  ;;  %6284 = vrot.lane.b32.xlu1 %v6283_v9, %s6555_s21 }
 0x1ce   : > { %v1225_v62 = vsel %vm1133_vm2, %v1216_v16, %v11911_v55  ;;  %v11914_v14 = vrot.slane %v8330_v50, 1  ;;  %v5982_v26 = vunpack.i.h.bf16 %v5980_v59  ;;  %5511 = vmatprep.mubr.msk.f32.mxu1 %vm1764_vm8, %v11915_v53  ;;  %v3079_v21 = vsel %vm1800_vm12, %v3047_v18, %v5967_v39  ;;  %v8839_v4 = vpop.permute.xlu1 %5994  ;;  %v11918_v39 = vld [vmem:[#allocation37_spill] sm:$0xff] }
 0x1cf   : > { %v8815_v46 = vsel %vm1123_vm1, 0.0, %v11912_v8  ;;  %v11916_v54 = vrot.slane %v8475_v3, 4  ;;  %v1319_v50 = vrot.slane %v8535_v43, 3  ;;  %v11917_v59 = vrot.slane %v8535_v43, 1 }
 0x1d0   : > { %11913 = vst [vmem:[#allocation67_spill] sm:$0xff] %v8815_v46  ;;  %v1683_v45 = vsel %vm1183_vm7, %v11914_v14, %v6841_v63  ;;  %v6278_v15 = vpack.i.bf16 %v8778_v19, %v8815_v46  ;;  %v3111_v22 = vsel %vm1809_vm13, %v3079_v21, %v5977_v40  ;;  %v11919_v38 = vrot.slane %v8462_v5, 5 }
 0x1d1   : > { %v1234_v24 = vsel %vm1143_vm3, %v1225_v62, %v11916_v54  ;;  %v1407_v34 = vsel %vm1123_vm1, %v8535_v43, %v11917_v59  ;;  %v3143_v16 = vsel %vm1818_vm14, %v3111_v22, %v5982_v26  ;;  %v6298_v13 = vpack.i.bf16 %v11918_v39, %v1683_v45  ;;  %v8854_v26 = vpop.permute.xlu0 %6019  ;;  %6294 = vrot.lane.b32.xlu1 %v6283_v9, %s11857_s30 }
 0x1d2   : > { %6279 = vrot.lane.b32.xlu0 %v6278_v15, %s6555_s21  ;;  %v1243_v55 = vsel %vm1153_vm4, %v1234_v24, %v11919_v38  ;;  %3318 = vmatmul.mubr.f32.gmra.mrb[40].mxu0 %v3143_v16  ;;  %v2166_v62 = vrot.slane %v8778_v19, 1  ;;  %v2167_v8 = vrot.slane %v8750_v17, 1  ;;  %v2191_v18 = vrot.slane %v8815_v46, 1  ;;  %v11923_v16 = vld [vmem:[#allocation22_spill] sm:$0xff] }
 0x1d3   : > { %v2192_v40 = vrot.slane %v8549_v57, 1  ;;  %v1463_v14 = vrot.slane %v8535_v43, 4  ;;  %5523 = vmatprep.mubr.msk.f32.mxu0 %vm1764_vm8, %v11918_v39  ;;  %v11920_v45 = vrot.slane %v8462_v5, 6  ;;  %v11921_v21 = vrot.slane %v8475_v3, 2 }
 0x1d4   : > { %v11922_v24 = vrot.slane %v8535_v43, 2  ;;  %v5972_v22 = vunpack.i.h.bf16 %v8736_v1  ;;  %v6303_v39 = vpack.i.bf16 %v8619_v41, %v11923_v16  ;;  %v8872_v9 = vsel %vm1123_vm1, %v11902_v23, 0.0 }
 0x1d5   : > { %v1252_v53 = vsel %vm1163_vm5, %v1243_v55, %v11920_v45  ;;  %v1141_v54 = vsel %vm1133_vm2, %v8676_v35, %v11921_v21  ;;  %v8876_v55 = vpop.permute.xlu1 %5999  ;;  %v8881_v35 = vsel %vm1123_vm1, %v8480_v60, 0.0  ;;  %v11925_v21 = vld [vmem:[#allocation35_spill] sm:$0xff]  ;;  %v8898_v60 = vsel %vm1183_vm7, %v2191_v18, %v2192_v40  ;;  %v8900_v16 = vpop.permute.xlu0 %6024  ;;  %6299 = vrot.lane.b32.xlu1 %v6298_v13, %s6554_s20 }
 0x1d6   : > { %v1415_v59 = vsel %vm1133_vm2, %v1407_v34, %v11922_v24  ;;  %v1261_v38 = vsel %vm1173_vm6, %v1252_v53, %v8511_v48  ;;  %6289 = vrot.lane.b32.xlu0 %v6278_v15, %s11857_s30  ;;  %v11924_v34 = vrot.slane %v8475_v3, 3  ;;  %v5987_v53 = vunpack.i.h.bf16 %v8772_v58 }
 0x1d7   : > { %v8885_v1 = vsel %vm1183_vm7, %v1261_v38, %v8462_v5  ;;  %v1423_v45 = vsel %vm1143_vm3, %v1415_v59, %v1319_v50  ;;  %v6308_v24 = vpack.i.bf16 %v11925_v21, %v8627_v44  ;;  %v8895_v15 = vsel %vm1183_vm7, %v2166_v62, %v2167_v8 }
 0x1d8   : > { %v1151_v23 = vsel %vm1143_vm3, %v1141_v54, %v11924_v34  ;;  %v2169_v38 = vrot.slane %v8872_v9, 1  ;;  %v11926_v54 = vrot.slane %v8462_v5, 4  ;;  %v1375_v58 = vrot.slane %v8529_v0, 6 }
 0x1d9   : > { %v11927_v34 = vrot.slane %v8529_v0, 4  ;;  %v1768_v18 = vsel %vm1764_vm8, %v11928_v7, %v5972_v22  ;;  %v5991_v32 = vunpack.i.l.bf16 %v8805_v6  ;;  %v2194_v30 = vrot.slane %v8881_v35, 1  ;;  %6309 = vrot.lane.b32.xlu1 %v6308_v24, %s6555_s21  ;;  %v11935_v24 = vld [vmem:[#allocation55_spill] sm:$0xff] }
 0x1da   : > { %v1161_v59 = vsel %vm1153_vm4, %v1151_v23, %v11926_v54  ;;  %v11929_v13 = vrot.slane %v8462_v5, 5  ;;  %v5996_v51 = vunpack.i.l.bf16 %v8839_v4  ;;  %v8919_v23 = vpop.permute.xlu1 %6009  ;;  %6304 = vrot.lane.b32.xlu0 %v6303_v39, %s6552_s16  ;;  %v11930_v54 = vrot.slane %v8462_v5, 6 }
 0x1db   : > { %v1431_v62 = vsel %vm1153_vm4, %v1423_v45, %v11927_v34  ;;  %v11931_v7 = vrot.slane %v8529_v0, 5  ;;  %v11932_v34 = vrot.slane %v8535_v43, 2  ;;  %v11933_v36 = vrot.slane %v8535_v43, 1 }
 0x1dc   : > { %v1171_v28 = vsel %vm1163_vm5, %v1161_v59, %v11929_v13  ;;  %v1777_v13 = vsel %vm1773_vm9, %v1768_v18, %v5987_v53  ;;  %v6001_v61 = vunpack.i.l.bf16 %v8876_v55  ;;  %v6318_v39 = vpack.i.bf16 %v8895_v15, %v8898_v60 }
 0x1dd   : > { %v1181_v45 = vsel %vm1173_vm6, %v1171_v28, %v11930_v54  ;;  %v1439_v22 = vsel %vm1163_vm5, %v1431_v62, %v11931_v7  ;;  %v1479_v59 = vsel %vm1123_vm1, %v11933_v36, %v11932_v34  ;;  %v6011_v5 = vunpack.i.l.bf16 %v8919_v23  ;;  %v8938_v28 = vpop.permute.xlu0 %6029 }
 0x1de   : > { %v8943_v62 = vsel %vm1183_vm7, %v1181_v45, %v8511_v48  ;;  %v1447_v54 = vsel %vm1173_vm6, %v1439_v22, %v1375_v58  ;;  %v1487_v36 = vsel %vm1133_vm2, %v1479_v59, %v1319_v50  ;;  %v1786_v53 = vsel %vm1782_vm10, %v1777_v13, %v5991_v32  ;;  %v6015_v25 = vpop.permute.xlu1 %6014  ;;  %6319 = vrot.lane.b32.xlu0 %v6318_v39, %s11824_s28 }
 0x1df   : > { %11934 = vst [vmem:[#allocation70_spill] sm:$0xff] %v8943_v62  ;;  %v8949_v18 = vsel %vm1183_vm7, %v2167_v8, %v2169_v38  ;;  %v8952_v7 = vsel %vm1183_vm7, %v2192_v40, %v2194_v30  ;;  %v1795_v34 = vsel %vm1791_vm11, %v1786_v53, %v5996_v51  ;;  %v6313_v45 = vpack.i.bf16 %v11935_v24, %v8619_v41 }
 0x1e0   : > { %v8960_v22 = vsel %vm1183_vm7, %v1447_v54, %v8695_v56  ;;  %v1495_v32 = vsel %vm1143_vm3, %v1487_v36, %v1463_v14  ;;  %v6016_v50 = vunpack.i.l.bf16 %v6015_v25  ;;  %v1804_v8 = vsel %vm1800_vm12, %v1795_v34, %v6001_v61 }
 0x1e1   : > { %v8964_v38 = vpop.permute.xlu0 %6034  ;;  %6314 = vrot.lane.b32.xlu1 %v6313_v45, %s11824_s28  ;;  %v1813_v30 = vsel %vm1809_vm13, %v1804_v8, %v6011_v5  ;;  %v6343_v51 = vpack.i.bf16 %v8949_v18, %v8952_v7  ;;  %v11936_v41 = vrot.slane %v8529_v0, 5  ;;  %v1580_v59 = vrot.slane %v8627_v44, 1 }
 0x1e2   : > { %v1822_v14 = vsel %vm1818_vm14, %v1813_v30, %v6016_v50  ;;  %v6006_v13 = vunpack.i.l.bf16 %v8822_v29  ;;  %v8976_v61 = vpop.permute.xlu1 %6039  ;;  %v11937_v54 = vrot.slane %v8475_v3, 7  ;;  %v2335_v53 = vrot.slane %v8778_v19, 2 }
 0x1e3   : > { %v1503_v40 = vsel %vm1153_vm4, %v1495_v32, %v11936_v41  ;;  %1923 = vmatmul.mubr.f32.gmra.mrb[6].mxu1 %v1822_v14  ;;  %6344 = vrot.lane.b32.xlu0 %v6343_v51, %s11675_s17  ;;  %v11633_v34 = vrot.slane %v8750_v17, 2  ;;  %v11939_v32 = vld [vmem:[#allocation30_spill] sm:$0xff]  ;;  %v2360_v8 = vrot.slane %v8815_v46, 2  ;;  %v5992_v41 = vunpack.i.h.bf16 %v8805_v6 }
 0x1e4   : > { %v1511_v5 = vsel %vm1163_vm5, %v1503_v40, %v1375_v58  ;;  %5512 = vmatprep.mubr.msk.f32.mxu1 %vm1764_vm8, %v8499_v49  ;;  %v8985_v36 = vsel %vm1123_vm1, 0.0, %v11937_v54  ;;  %v9001_v58 = vsel %vm1183_vm7, %v1580_v59, %v6841_v63  ;;  %v5997_v59 = vunpack.i.h.bf16 %v8839_v4 }
 0x1e5   : > { %11938 = vst [vmem:[#allocation73_spill] sm:$0xff] %v8985_v36  ;;  %v8989_v45 = vpop.permute.xlu0 %6049  ;;  %6324 = vrot.lane.b32.xlu1 %v6343_v51, %s11824_s28  ;;  %v8994_v50 = vpack.i.bf16 %v11939_v32, %v8985_v36  ;;  %v1519_v49 = vsel %vm1173_vm6, %v1511_v5, %v8695_v56  ;;  %v11940_v51 = vld [vmem:[#allocation8_spill] sm:$0xff]  ;;  %v9021_v6 = vsel %vm1173_vm6, %v2335_v53, %v11633_v34  ;;  %v2030_v4 = vrot.slane %v8535_v43, 7 }
 0x1e6   : > { %v6051_v3 = vunpack.i.l.bf16 %v8989_v45  ;;  %v2953_v40 = vsel %vm1764_vm8, %v11940_v51, %v6006_v13  ;;  %v9008_v14 = vpop.permute.xlu1 %6044  ;;  %v9014_v5 = vsel %vm1183_vm7, %v1519_v49, %v8529_v0  ;;  %11941 = vst [vmem:[#allocation28_spill] sm:$0xff] %v9021_v6  ;;  %v6002_v13 = vunpack.i.h.bf16 %v8876_v55 }
 0x1e7   : > { %6354 = vrot.lane.b32.xlu0 %v8994_v50, %s6555_s21  ;;  %v6358_v0 = vpack.i.bf16 %v9001_v58, %v11854_v47  ;;  %v6012_v49 = vunpack.i.h.bf16 %v8919_v23  ;;  %v9046_v23 = vsel %vm1123_vm1, 0.0, %v2030_v4  ;;  %v6046_v31 = vunpack.i.l.bf16 %v9008_v14 }
 0x1e8   : > { %v2984_v54 = vsel %vm1773_vm9, %v2953_v40, %v6051_v3  ;;  %v11942_v3 = vrot.slane %v8549_v57, 2  ;;  %v6017_v40 = vunpack.i.h.bf16 %v6015_v25  ;;  %v2662_v34 = vrot.slane %v9046_v23, 2 }
 0x1e9   : > { %v3016_v51 = vsel %vm1782_vm10, %v2984_v54, %v5992_v41  ;;  %v9025_v30 = vpop.permute.xlu0 %6054  ;;  %6329 = vrot.lane.b32.xlu1 %v6318_v39, %s11675_s17 }
 0x1ea   : > { %v9035_v53 = vsel %vm1173_vm6, %v2360_v8, %v11942_v3  ;;  %v3048_v55 = vsel %vm1791_vm11, %v3016_v51, %v5997_v59  ;;  %v9038_v41 = vpop.permute.xlu1 %6064  ;;  %v11944_v8 = vld [vmem:[#allocation36_spill] sm:$0xff]  ;;  %v9056_v51 = vsel %vm1123_vm1, %v2030_v4, %v8695_v56  ;;  %v2196_v3 = vrot.slane %v8985_v36, 1 }
 0x1eb   : > { %11943 = vst [vmem:[#allocation21_spill] sm:$0xff] %v9035_v53  ;;  %6359 = vrot.lane.b32.xlu0 %v6358_v0, %s11669_s23  ;;  %v6333_v39 = vpack.i.bf16 %v9021_v6, %v9035_v53  ;;  %v3080_v47 = vsel %vm1800_vm12, %v3048_v55, %v6002_v13  ;;  %v6363_v59 = vpack.i.bf16 %v11944_v8, %v8768_v10  ;;  %v11945_v0 = vld [vmem:[#allocation41_spill] sm:$0xff]  ;;  %v11634_v55 = vrot.slane %v8669_v12, 1 }
 0x1ec   : > { %v3112_v43 = vsel %vm1809_vm13, %v3080_v47, %v6012_v49  ;;  %v6338_v13 = vpack.i.bf16 %v8898_v60, %v8426_v27  ;;  %v2562_v4 = vrot.slane %v9056_v51, 1  ;;  %v6368_v27 = vpack.i.bf16 %v7692_v37, %v8788_v33 }
 0x1ed   : > { %v9048_v54 = vpop.permute.xlu0 %6059  ;;  %6334 = vrot.lane.b32.xlu1 %v6333_v39, %s6554_s20  ;;  %v3144_v25 = vsel %vm1818_vm14, %v3112_v43, %v6017_v40  ;;  %v2561_v40 = vrot.slane %v9046_v23, 1  ;;  %v1684_v47 = vrot.slane %v8768_v10, 1  ;;  %v2094_v33 = vsel %vm1123_vm1, %v8695_v56, 0.0  ;;  %v11946_v10 = vld [vmem:[#allocation31_spill] sm:$0xff]  ;;  %v11947_v56 = vld [vmem:[#allocation25_spill] sm:$0xff] }
 0x1ee   : > { %3323 = vmatmul.mubr.f32.gmra.mrb[42].mxu0 %v3144_v25  ;;  %v9062_v49 = vpop.permute.xlu1 %6069  ;;  %v6348_v25 = vpack.i.bf16 %v9035_v53, %v8688_v42 }
 0x1ef   : > { %5524 = vmatprep.mubr.msk.f32.mxu0 %vm1764_vm8, %v11945_v0  ;;  %6364 = vrot.lane.b32.xlu0 %v6363_v59, %s11857_s30  ;;  %v9075_v60 = vsel %vm1183_vm7, %v2561_v40, %v2562_v4  ;;  %v9086_v59 = vsel %vm1183_vm7, %v2196_v3, %v11634_v55  ;;  %v2663_v3 = vrot.slane %v9056_v51, 2  ;;  %v2665_v55 = vrot.slane %v2094_v33, 2 }
 0x1f0   : > { %v1685_v37 = vsel %vm1183_vm7, %v1684_v47, %v6841_v63  ;;  %v6072_v20 = vunpack.i.h.bf16 %v9062_v49 }
 0x1f1   : > { %v9069_v39 = vpop.permute.xlu0 %6079  ;;  %6339 = vrot.lane.b32.xlu1 %v6338_v13, %s6552_s16  ;;  %v9094_v13 = vpack.i.bf16 %v11946_v10, %v9086_v59  ;;  %v6383_v10 = vpack.i.bf16 %v8885_v1, %v11947_v56  ;;  %v9116_v19 = vsel %vm1173_vm6, %v2663_v3, %v2665_v55  ;;  %v6378_v46 = vpack.i.bf16 %v11945_v0, %v1685_v37 }
 0x1f2   : > { %v9078_v43 = vpop.permute.xlu1 %6074  ;;  %11949 = vst [vmem:[#allocation20_spill] sm:$0xff] %v9116_v19  ;;  %v2338_v37 = vrot.slane %v8872_v9, 2 }
 0x1f3   : > { %6369 = vrot.lane.b32.xlu0 %v6368_v27, %s11675_s17  ;;  %v2564_v27 = vrot.slane %v2094_v33, 1  ;;  %v1582_v33 = vrot.slane %v8943_v62, 1 }
 0x1f5   : > { %v9096_v40 = vpop.permute.xlu0 %6089  ;;  %6349 = vrot.lane.b32.xlu1 %v6348_v25, %s11669_s23  ;;  %v9110_v42 = vsel %vm1183_vm7, %v2562_v4, %v2564_v27  ;;  %v9113_v25 = vsel %vm1173_vm6, %v2662_v34, %v2663_v3  ;;  %v11951_v4 = vld [vmem:[#allocation29_spill] sm:$0xff]  ;;  %v9132_v34 = vsel %vm1183_vm7, %v1582_v33, %v6841_v63  ;;  %v11953_v3 = vld [vmem:[#allocation43_spill] sm:$0xff] }
 0x1f6   : > { %v9103_v53 = vpop.permute.xlu1 %6084  ;;  %11948 = vst [vmem:[#allocation68_spill] sm:$0xff] %v9113_v25  ;;  %v9128_v27 = vpack.i.bf16 %v11951_v4, %v8669_v12  ;;  %11952 = vst [vmem:[#allocation59_spill] sm:$0xff] %v9132_v34  ;;  %v6388_v0 = vpack.i.bf16 %v11953_v3, %v8943_v62  ;;  %v11956_v62 = vrot.slane %v8750_v17, 2  ;;  %v6052_v17 = vunpack.i.h.bf16 %v8989_v45  ;;  %v11964_v45 = vld [vmem:[#allocation38_spill] sm:$0xff] }
 0x1f7   : > { %6374 = vrot.lane.b32.xlu0 %v9094_v13, %s11824_s28 }
 0x1f8   : > { %v9155_v9 = vsel %vm1173_vm6, %v11956_v62, %v2338_v37  ;;  %v2093_v62 = vsel %vm1123_vm1, %v8511_v48, 0.0 }
 0x1f9   : > { %v9119_v47 = vpop.permute.xlu0 %6094  ;;  %6384 = vrot.lane.b32.xlu1 %v6383_v10, %s6552_s16  ;;  %v6413_v10 = vpack.i.bf16 %v9132_v34, %v11892_v2  ;;  %11957 = vst [vmem:[#allocation7_spill] sm:$0xff] %v9155_v9  ;;  %v6418_v2 = vpack.i.bf16 %v11925_v21, %v8960_v22 }
 0x1fa   : > { %v9123_v44 = vpop.permute.xlu1 %6109 }
 0x1fb   : > { %11950 = vst [vmem:[#allocation74_spill] sm:$0xff] %v9123_v44  ;;  %6379 = vrot.lane.b32.xlu0 %v6378_v46, %s6554_s20  ;;  %v2363_v46 = vrot.slane %v8881_v35, 2  ;;  %v6393_v44 = vpack.i.bf16 %v11955_v52, %v8885_v1  ;;  %v11958_v35 = vrot.slane %v8549_v57, 2 }
 0x1fd   : > { %v9134_v55 = vpop.permute.xlu0 %6099  ;;  %6404 = vrot.lane.b32.xlu1 %v9128_v27, %s6555_s21  ;;  %v9160_v3 = vsel %vm1173_vm6, %v11958_v35, %v2363_v46  ;;  %v2199_v46 = vrot.slane %v2093_v62, 1 }
 0x1fe   : > { %v9142_v56 = vpop.permute.xlu1 %6119  ;;  %11959 = vst [vmem:[#allocation47_spill] sm:$0xff] %v9160_v3  ;;  %v6398_v1 = vpack.i.bf16 %v9155_v9, %v9160_v3 }
 0x1ff   : > { %6389 = vrot.lane.b32.xlu0 %v6388_v0, %s6555_s21 }
 0x201   : > { %v9147_v33 = vpop.permute.xlu0 %6104  ;;  %6414 = vrot.lane.b32.xlu1 %v6413_v10, %s11669_s23  ;;  %v1686_v10 = vrot.slane %v8960_v22, 1 }
 0x202   : > { %11954 = vst [vmem:[#allocation27_spill] sm:$0xff] %v9147_v33  ;;  %v9162_v0 = vpop.permute.xlu1 %6129 }
 0x203   : > { %6394 = vrot.lane.b32.xlu0 %v6393_v44, %s11824_s28  ;;  %v6423_v44 = vpack.i.bf16 %v11935_v24, %v9014_v5  ;;  %v1687_v22 = vsel %vm1183_vm7, %v1686_v10, %v6841_v63  ;;  %v6056_v24 = vunpack.i.l.bf16 %v9025_v30  ;;  %v11963_v5 = vrot.slane %v8669_v12, 1 }
 0x205   : > { %v9168_v52 = vpop.permute.xlu0 %6114  ;;  %6419 = vrot.lane.b32.xlu1 %v6418_v2, %s11857_s30  ;;  %v6007_v2 = vunpack.i.h.bf16 %v8822_v29  ;;  %v9196_v10 = vsel %vm1183_vm7, %v11963_v5, %v2199_v46  ;;  %v6438_v29 = vpack.i.bf16 %v8952_v7, %v8895_v15  ;;  %v11965_v5 = vld [vmem:[#allocation39_spill] sm:$0xff] }
 0x206   : > { %v9175_v37 = vpop.permute.xlu1 %6149  ;;  %v6433_v33 = vpack.i.bf16 %v11965_v5, %v9196_v10 }
 0x207   : > { %11960 = vst [vmem:[#allocation37_spill] sm:$0xff] %v9175_v37  ;;  %6399 = vrot.lane.b32.xlu0 %v6398_v1, %s6554_s20  ;;  %v11962_v1 = vld [vmem:[#allocation61_spill] sm:$0xff] }
 0x208   : > { %v6428_v57 = vpack.i.bf16 %v11962_v1, %v1687_v22 }
 0x209   : > { %v9182_v35 = vpop.permute.xlu0 %6124  ;;  %6424 = vrot.lane.b32.xlu1 %v6423_v44, %s11675_s17  ;;  %v6061_v44 = vunpack.i.l.bf16 %v9048_v54 }
 0x20a   : > { %v9187_v48 = vpop.permute.xlu1 %6154  ;;  %v6126_v22 = vunpack.i.l.bf16 %v9182_v35 }
 0x20b   : > { %11961 = vst [vmem:[#allocation22_spill] sm:$0xff] %v9187_v48  ;;  %6409 = vrot.lane.b32.xlu0 %v8994_v50, %s11857_s30  ;;  %v1769_v50 = vsel %vm1764_vm8, %v11964_v45, %v6007_v2 }
 0x20c   : > { %v1778_v37 = vsel %vm1773_vm9, %v1769_v50, %v6052_v17  ;;  %v6448_v17 = vpack.i.bf16 %v9160_v3, %v9021_v6  ;;  %v2366_v50 = vrot.slane %v8669_v12, 2 }
 0x20d   : > { %v9199_v34 = vpop.permute.xlu0 %6134  ;;  %6429 = vrot.lane.b32.xlu1 %v6428_v57, %s6554_s20  ;;  %v1787_v57 = vsel %vm1782_vm10, %v1778_v37, %v6056_v24 }
 0x20e   : > { %v6136_v48 = vunpack.i.l.bf16 %v9199_v34  ;;  %v9209_v46 = vpop.permute.xlu1 %6159  ;;  %v1796_v15 = vsel %vm1791_vm11, %v1787_v57, %v6061_v44 }
 0x20f   : > { %6439 = vrot.lane.b32.xlu0 %v6438_v29, %s6552_s16  ;;  %v1805_v45 = vsel %vm1800_vm12, %v1796_v15, %v6126_v22  ;;  %v2365_v29 = vrot.slane %v8985_v36, 2  ;;  %v11966_v22 = vld [vmem:[#allocation45_spill] sm:$0xff] }
 0x210   : > { %v1814_v37 = vsel %vm1809_vm13, %v1805_v45, %v6136_v48  ;;  %v6458_v57 = vpack.i.bf16 %v11966_v22, %v9046_v23  ;;  %v11968_v48 = vld [vmem:[#allocation34_spill] sm:$0xff] }
 0x211   : > { %v9216_v7 = vpop.permute.xlu0 %6139  ;;  %6434 = vrot.lane.b32.xlu1 %v6433_v33, %s11824_s28  ;;  %v9239_v15 = vsel %vm1173_vm6, %v2365_v29, %v2366_v50 }
 0x212   : > { %v6141_v2 = vunpack.i.l.bf16 %v9216_v7  ;;  %v9225_v5 = vpop.permute.xlu1 %6164  ;;  %11967 = vst [vmem:[#allocation35_spill] sm:$0xff] %v9239_v15 }
 0x213   : > { %6449 = vrot.lane.b32.xlu0 %v6448_v17, %s11669_s23 }
 0x214   : > { %v1823_v24 = vsel %vm1818_vm14, %v1814_v37, %v6141_v2  ;;  %v6453_v2 = vpack.i.bf16 %v11968_v48, %v9239_v15 }
 0x215   : > { %1928 = vmatmul.mubr.f32.gmra.mrb[8].mxu1 %v1823_v24  ;;  %v9230_v44 = vpop.permute.xlu0 %6144  ;;  %6444 = vrot.lane.b32.xlu1 %v9094_v13, %s11675_s17  ;;  %v11969_v13 = vld [vmem:[#allocation49_spill] sm:$0xff]  ;;  %v2368_v24 = vrot.slane %v2093_v62, 2  ;;  %v6131_v62 = vunpack.i.l.bf16 %v9162_v0 }
 0x216   : > { %5513 = vmatprep.mubr.msk.f32.mxu1 %vm1764_vm8, %v9001_v58  ;;  %v9241_v17 = vpop.permute.xlu1 %6174  ;;  %v6468_v37 = vpack.i.bf16 %v11969_v13, %v9075_v60 }
 0x217   : > { %6459 = vrot.lane.b32.xlu0 %v6458_v57, %s6555_s21  ;;  %v9259_v29 = vsel %vm1173_vm6, %v2366_v50, %v2368_v24  ;;  %v6483_v50 = vpack.i.bf16 %v9239_v15, %v9155_v9  ;;  %v11973_v15 = vpack.i.bf16 %v9056_v51, %v9046_v23 }
 0x218   : > { %11970 = vst [vmem:[#allocation26_spill] sm:$0xff] %v9259_v29 }
 0x219   : > { %v9246_v45 = vpop.permute.xlu0 %6169  ;;  %6454 = vrot.lane.b32.xlu1 %v6453_v2, %s6554_s20  ;;  %v6473_v2 = vpack.i.bf16 %v9086_v59, %v8949_v18  ;;  %v6057_v18 = vunpack.i.h.bf16 %v9025_v30  ;;  %v11972_v59 = vld [vmem:[#allocation13_spill] sm:$0xff]  ;;  %v11974_v30 = vld [vmem:[#allocation42_spill] sm:$0xff] }
 0x21a   : > { %v9251_v12 = vpop.permute.xlu1 %6199  ;;  %v2954_v24 = vsel %vm1764_vm8, %v11972_v59, %v6131_v62  ;;  %v6493_v62 = vpack.i.bf16 %v11974_v30, %v9056_v51  ;;  %v6127_v59 = vunpack.i.h.bf16 %v9182_v35  ;;  %v11975_v51 = vld [vmem:[#allocation52_spill] sm:$0xff] }
 0x21b   : > { %6469 = vrot.lane.b32.xlu0 %v6468_v37, %s11824_s28  ;;  %v11971_v37 = vld [vmem:[#allocation44_spill] sm:$0xff] }
 0x21c   : > { %v6488_v36 = vpack.i.bf16 %v11971_v37, %v9259_v29  ;;  %v6062_v37 = vunpack.i.h.bf16 %v9048_v54 }
 0x21d   : > { %v9254_v58 = vpop.permute.xlu0 %6179  ;;  %6464 = vrot.lane.b32.xlu1 %v9128_v27, %s11857_s30 }
 0x21e   : > { %v9261_v57 = vpop.permute.xlu1 %6209 }
 0x21f   : > { %6479 = vrot.lane.b32.xlu0 %v6433_v33, %s11675_s17 }
 0x221   : > { %v9267_v13 = vpop.permute.xlu0 %6184  ;;  %6474 = vrot.lane.b32.xlu1 %v6473_v2, %s6552_s16 }
 0x222   : > { %v9272_v27 = vpop.permute.xlu1 %6214 }
 0x223   : > { %6489 = vrot.lane.b32.xlu0 %v6488_v36, %s6554_s20  ;;  %v6216_v33 = vunpack.i.l.bf16 %v9272_v27 }
 0x225   : > { %v9281_v48 = vpop.permute.xlu0 %6189  ;;  %6484 = vrot.lane.b32.xlu1 %v6483_v50, %s11669_s23  ;;  %v2985_v2 = vsel %vm1773_vm9, %v2954_v24, %v6216_v33  ;;  %v6137_v50 = vunpack.i.h.bf16 %v9199_v34  ;;  %v6142_v33 = vunpack.i.h.bf16 %v9216_v7  ;;  %v6503_v34 = vpack.i.bf16 %v11975_v51, %v9110_v42 }
 0x226   : > { %v3017_v36 = vsel %vm1782_vm10, %v2985_v2, %v6057_v18  ;;  %v9287_v3 = vpop.permute.xlu1 %6219  ;;  %v11976_v2 = vmov 0.0   ;;  %v6026_v51 = vunpack.i.l.bf16 %v8900_v16 }
 0x227   : > { %6499 = vrot.lane.b32.xlu0 %v11973_v15, %s11857_s30  ;;  %v3049_v54 = vsel %vm1791_vm11, %v3017_v36, %v6062_v37 }
 0x228   : > { %v3081_v18 = vsel %vm1800_vm12, %v3049_v54, %v6127_v59  ;;  %v6031_v54 = vunpack.i.l.bf16 %v8938_v28 }
 0x229   : > { %v9297_v9 = vpop.permute.xlu0 %6194  ;;  %6494 = vrot.lane.b32.xlu1 %v6493_v62, %s6555_s21  ;;  %v3113_v23 = vsel %vm1809_vm13, %v3081_v18, %v6137_v50  ;;  %v6022_v50 = vunpack.i.h.bf16 %v8854_v26 }
 0x22a   : > { %v9303_v24 = vpop.permute.xlu1 %6224  ;;  %v3145_v35 = vsel %vm1818_vm14, %v3113_v23, %v6142_v33  ;;  %v6021_v33 = vunpack.i.l.bf16 %v8854_v26  ;;  %v11978_v26 = vld [vmem:[#allocation16_spill] sm:$0xff] }
 0x22b   : > { %2626 = vrot.lane.b32.xlu0 %v9075_v60, %s11675_s17  ;;  %3328 = vmatmul.mubr.f32.gmra.mrb[44].mxu0 %v3145_v35  ;;  %v2968_v23 = vsel %vm1764_vm8, %v11939_v32, %v6022_v50  ;;  %v6042_v35 = vunpack.i.h.bf16 %v8976_v61  ;;  %v6066_v50 = vunpack.i.l.bf16 %v9038_v41 }
 0x22c   : > { %5525 = vmatprep.mubr.msk.f32.mxu0 %vm1764_vm8, %v11962_v1 }
 0x22d   : > { %v9311_v15 = vpop.permute.xlu0 %6204  ;;  %6504 = vrot.lane.b32.xlu1 %v6503_v34, %s11824_s28  ;;  %v6032_v34 = vunpack.i.h.bf16 %v8938_v28  ;;  %v2958_v28 = vsel %vm1764_vm8, %v11944_v8, %v6031_v54  ;;  %v6067_v8 = vunpack.i.h.bf16 %v9038_v41  ;;  %v6077_v41 = vunpack.i.h.bf16 %v9078_v43 }
 0x22e   : > { %v9316_v7 = vpop.permute.xlu1 %6234 }
 0x22f   : > { %2727 = vrot.lane.b32.xlu0 %v9113_v25, %s6554_s20  ;;  %v6037_v25 = vunpack.i.h.bf16 %v8964_v38  ;;  %v2969_v32 = vsel %vm1764_vm8, %v11951_v4, %v6032_v34  ;;  %v6081_v34 = vunpack.i.l.bf16 %v9069_v39 }
 0x231   : > { %v9320_v60 = vpop.permute.xlu0 %6229  ;;  %2261 = vrot.lane.b32.xlu1 %v9196_v10, %s6552_s16  ;;  %v3000_v54 = vsel %vm1773_vm9, %v2969_v32, %v6037_v25 }
 0x232   : > { %v9324_v37 = vpop.permute.xlu1 %6239 }
 0x233   : > { %2823 = vrot.lane.b32.xlu0 %v11976_v2, %s6555_s21  ;;  %v6041_v2 = vunpack.i.l.bf16 %v8976_v61  ;;  %v6071_v61 = vunpack.i.l.bf16 %v9062_v49  ;;  %v6092_v49 = vunpack.i.h.bf16 %v9096_v40 }
 0x235   : > { %v9328_v36 = vpop.permute.xlu0 %6254  ;;  %2430 = vrot.lane.b32.xlu1 %v9259_v29, %s11669_s23 }
 0x236   : > { %v9332_v1 = vpop.permute.xlu1 %6244 }
 0x237   : > { %2628 = vrot.lane.b32.xlu0 %v9110_v42, %s11675_s17  ;;  %v6036_v42 = vunpack.i.l.bf16 %v8964_v38 }
 0x239   : > { %v9336_v62 = vpop.permute.xlu0 %6264  ;;  %2916 = vrot.lane.b32.xlu1 %v6841_v63, %s11824_s28  ;;  %v2989_v38 = vsel %vm1773_vm9, %v2958_v28, %v6036_v42  ;;  %v3032_v28 = vsel %vm1782_vm10, %v3000_v54, %v6046_v31  ;;  %v6096_v31 = vunpack.i.l.bf16 %v9119_v47  ;;  %v6082_v54 = vunpack.i.h.bf16 %v9069_v39  ;;  %s11673_s28 = smov 40  }
 0x23a   : > { %v9340_v10 = vpop.permute.xlu1 %6249  ;;  %v3021_v4 = vsel %vm1782_vm10, %v2989_v38, %v6042_v35  ;;  %v6087_v38 = vunpack.i.h.bf16 %v9103_v53  ;;  %v6091_v39 = vunpack.i.l.bf16 %v9096_v40  ;;  %v6117_v40 = vunpack.i.h.bf16 %v9168_v52 }
 0x23d   : > { %v9342_v59 = vpop.permute.xlu0 %6269  ;;  %2729 = vrot.lane.b32.xlu1 %v9116_v19, %s6554_s20  ;;  %v6027_v19 = vunpack.i.h.bf16 %v8900_v16  ;;  %v2957_v16 = vsel %vm1764_vm8, %v11868_v11, %v6021_v33  ;;  %v6076_v33 = vunpack.i.l.bf16 %v9078_v43  ;;  %s6559_s20 = smov 56   ;;  %v6102_v43 = vunpack.i.h.bf16 %v9134_v55 }
 0x23e   : > { %v9350_v18 = vpop.permute.xlu1 %6259  ;;  %v9377_v6 = vsel %vm1773_vm9, %v2957_v16, %v6026_v51  ;;  %v11980_v51 = vld [vmem:[#allocation15_spill] sm:$0xff]  ;;  %v6097_v16 = vunpack.i.h.bf16 %v9119_v47  ;;  %v6121_v47 = vunpack.i.l.bf16 %v9142_v56 }
 0x23f   : > { %11979 = vst [vmem:[#allocation30_spill] sm:$0xff] %v9377_v6  ;;  %v2999_v11 = vsel %vm1773_vm9, %v2968_v23, %v6027_v19  ;;  %v6086_v19 = vunpack.i.l.bf16 %v9103_v53  ;;  %v6047_v23 = vunpack.i.h.bf16 %v9008_v14  ;;  %v2959_v14 = vsel %vm1764_vm8, %v11925_v21, %v6076_v33 }
 0x240   : > { %v3031_v25 = vsel %vm1782_vm10, %v2999_v11, %v6041_v2  ;;  %v2970_v53 = vsel %vm1764_vm8, %v11966_v22, %v6077_v41  ;;  %v6101_v21 = vunpack.i.l.bf16 %v9134_v55  ;;  %v6132_v22 = vunpack.i.h.bf16 %v9162_v0 }
 0x241   : > { %v9359_v29 = vpop.permute.xlu0 %6274  ;;  %4287 = vrot.lane.b32.xlu1 %v11978_v26, %s11857_s30  ;;  %v3063_v35 = vsel %vm1791_vm11, %v3031_v25, %v6066_v50  ;;  %v2990_v50 = vsel %vm1773_vm9, %v2959_v14, %v6086_v19  ;;  %v11983_v19 = vld [vmem:[#allocation43_spill] sm:$0xff]  ;;  %v6217_v55 = vunpack.i.h.bf16 %v9272_v27 }
 0x242   : > { %11977 = vst [vmem:[#allocation55_spill] sm:$0xff] %v9359_v29  ;;  %v9374_v29 = vpop.permute.xlu1 %6284  ;;  %v3095_v2 = vsel %vm1800_vm12, %v3063_v35, %v6071_v61  ;;  %v2971_v61 = vsel %vm1764_vm8, %v11974_v30, %v6097_v16  ;;  %v3022_v41 = vsel %vm1782_vm10, %v2990_v50, %v6047_v23  ;;  %v2960_v25 = vsel %vm1764_vm8, %v11983_v19, %v6096_v31  ;;  %v11984_v30 = vld [vmem:[#allocation74_spill] sm:$0xff] }
 0x243   : > { %v6111_v35 = vunpack.i.l.bf16 %v11984_v30  ;;  %v2991_v0 = vsel %vm1773_vm9, %v2960_v25, %v6101_v21  ;;  %v6122_v23 = vunpack.i.h.bf16 %v9142_v56  ;;  %v6226_v31 = vunpack.i.l.bf16 %v9303_v24 }
 0x244   : > { %v3023_v6 = vsel %vm1782_vm10, %v2991_v0, %v6117_v40 }
 0x245   : > { %v9387_v42 = vpop.permute.xlu0 %6279  ;;  %4311 = vrot.lane.b32.xlu1 %v11980_v51, %s6559_s20  ;;  %v3053_v51 = vsel %vm1791_vm11, %v3021_v4, %v6067_v8  ;;  %v3064_v8 = vsel %vm1791_vm11, %v3032_v28, %v6081_v34  ;;  %v3001_v4 = vsel %vm1773_vm9, %v2970_v53, %v6087_v38  ;;  %v3002_v34 = vsel %vm1773_vm9, %v2971_v61, %v6102_v43  ;;  %v11985_v53 = vld [vmem:[#allocation27_spill] sm:$0xff]  ;;  %v11986_v61 = vld [vmem:[#allocation66_spill] sm:$0xff] }
 0x246   : > { %v9399_v32 = vpop.permute.xlu1 %6294  ;;  %v6112_v28 = vunpack.i.h.bf16 %v11984_v30  ;;  %v6221_v38 = vunpack.i.l.bf16 %v9287_v3  ;;  %v1762_v43 = vrot.slane %v11978_v26, 1  ;;  %v9442_v14 = vsel %vm1782_vm10, %v3002_v34, %v6121_v47 }
 0x247   : > { %11981 = vst [vmem:[#allocation8_spill] sm:$0xff] %v9399_v32  ;;  %v6107_v50 = vunpack.i.h.bf16 %v11985_v53  ;;  %v1770_v19 = vsel %vm1764_vm8, %v11986_v61, %v6132_v22  ;;  %v6116_v30 = vunpack.i.l.bf16 %v9168_v52  ;;  %v6106_v21 = vunpack.i.l.bf16 %v11985_v53  ;;  %v11989_v61 = vld [vmem:[#allocation22_spill] sm:$0xff] }
 0x248   : > { %v1779_v56 = vsel %vm1773_vm9, %v1770_v19, %v6217_v55  ;;  %v3085_v25 = vsel %vm1800_vm12, %v3053_v51, %v6072_v20  ;;  %v9463_v52 = vsel %vm1183_vm7, %v1762_v43, %v6841_v63  ;;  %v6157_v53 = vunpack.i.h.bf16 %v11989_v61  ;;  %v11990_v43 = vld [vmem:[#allocation37_spill] sm:$0xff] }
 0x249   : > { %v9410_v11 = vpop.permute.xlu0 %6289  ;;  %v1788_v22 = vsel %vm1782_vm10, %v1779_v56, %v6221_v38  ;;  %11988 = vst [vmem:[#allocation31_spill] sm:$0xff] %v9463_v52  ;;  %v6156_v55 = vunpack.i.l.bf16 %v11989_v61  ;;  %v6176_v19 = vunpack.i.l.bf16 %v9241_v17  ;;  %v3033_v20 = vsel %vm1782_vm10, %v3001_v4, %v6116_v30 }
 0x24a   : > { %11982 = vst [vmem:[#allocation36_spill] sm:$0xff] %v9410_v11  ;;  %v9422_v33 = vpop.permute.xlu1 %6299  ;;  %v6166_v11 = vunpack.i.l.bf16 %v9225_v5  ;;  %v3054_v38 = vsel %vm1791_vm11, %v3022_v41, %v6082_v54  ;;  %v6152_v0 = vunpack.i.h.bf16 %v11990_v43  ;;  %v6151_v56 = vunpack.i.l.bf16 %v11990_v43 }
 0x24b   : > { %v6301_v26 = vunpack.i.l.bf16 %v9422_v33  ;;  %v3117_v30 = vsel %vm1809_vm13, %v3085_v25, %v6107_v50  ;;  %v3055_v54 = vsel %vm1791_vm11, %v3023_v6, %v6157_v53  ;;  %v3065_v41 = vsel %vm1791_vm11, %v3033_v20, %v6156_v55 }
 0x24c   : > { %v6147_v50 = vunpack.i.h.bf16 %v9230_v44  ;;  %v6146_v6 = vunpack.i.l.bf16 %v9230_v44  ;;  %v6172_v25 = vunpack.i.h.bf16 %v9246_v45 }
 0x24d   : > { %v9433_v16 = vpop.permute.xlu0 %6304 }
 0x24e   : > { %v9445_v27 = vpop.permute.xlu1 %6309  ;;  %v6306_v44 = vunpack.i.l.bf16 %v9433_v16 }
 0x24f   : > { %v6311_v47 = vunpack.i.l.bf16 %v9445_v27 }
 0x251   : > { %v9455_v34 = vpop.permute.xlu0 %6319 }
 0x252   : > { %11987 = vst [vmem:[#allocation41_spill] sm:$0xff] %v9455_v34  ;;  %v1797_v34 = vsel %vm1791_vm11, %v1788_v22, %v6226_v31  ;;  %v3096_v31 = vsel %vm1800_vm12, %v3064_v8, %v6091_v39  ;;  %v11991_v22 = vld [vmem:[#allocation19_spill] sm:$0xff]  ;;  %v3086_v8 = vsel %vm1800_vm12, %v3054_v38, %v6092_v49  ;;  %v6162_v39 = vunpack.i.h.bf16 %v9209_v46 }
 0x253   : > { %v9469_v32 = vpop.permute.xlu1 %6314  ;;  %v1806_v40 = vsel %vm1800_vm12, %v1797_v34, %v6301_v26  ;;  %v2961_v52 = vsel %vm1764_vm8, %v11991_v22, %v6166_v11  ;;  %v3127_v26 = vsel %vm1809_vm13, %v3095_v2, %v6106_v21  ;;  %v6161_v11 = vunpack.i.l.bf16 %v9209_v46  ;;  %v11992_v2 = vld [vmem:[#allocation59_spill] sm:$0xff] }
 0x254   : > { %v6316_v51 = vunpack.i.l.bf16 %v9469_v32  ;;  %v1815_v61 = vsel %vm1809_vm13, %v1806_v40, %v6311_v47  ;;  %v2992_v34 = vsel %vm1773_vm9, %v2961_v52, %v6176_v19  ;;  %v6167_v47 = vunpack.i.h.bf16 %v9225_v5 }
 0x255   : > { %v9477_v63 = vpop.permute.xlu0 %6344  ;;  %v6177_v21 = vunpack.i.h.bf16 %v9241_v17  ;;  %v6171_v52 = vunpack.i.l.bf16 %v9246_v45  ;;  %v3024_v53 = vsel %vm1782_vm10, %v2992_v34, %v6122_v23  ;;  %v6182_v46 = vunpack.i.h.bf16 %v9254_v58  ;;  %v11994_v34 = vld [vmem:[#allocation12_spill] sm:$0xff] }
 0x256   : > { %v1824_v4 = vsel %vm1818_vm14, %v1815_v61, %v6316_v51  ;;  %v3118_v5 = vsel %vm1809_vm13, %v3086_v8, %v6112_v28  ;;  %v3128_v55 = vsel %vm1809_vm13, %v3096_v31, %v6111_v35  ;;  %v6181_v19 = vunpack.i.l.bf16 %v9254_v58  ;;  %v11993_v51 = vld [vmem:[#allocation64_spill] sm:$0xff] }
 0x257   : > { %1933 = vmatmul.mubr.f32.gmra.mrb[10].mxu1 %v1824_v4  ;;  %v9489_v43 = vpop.permute.xlu1 %6324  ;;  %v9513_v17 = vsel %vm1818_vm14, %v3118_v5, %v6152_v0  ;;  %v9516_v45 = vsel %vm1818_vm14, %v3128_v55, %v6151_v56  ;;  %v2972_v23 = vsel %vm1764_vm8, %v11993_v51, %v6167_v47  ;;  %v9521_v40 = vsel %vm1818_vm14, %v3117_v30, %v6147_v50 }
 0x258   : > { %5514 = vmatprep.mubr.msk.f32.mxu1 %vm1764_vm8, %v11992_v2  ;;  %v3087_v28 = vsel %vm1800_vm12, %v3055_v54, %v6162_v39  ;;  %v3097_v58 = vsel %vm1800_vm12, %v3065_v41, %v6161_v11  ;;  %v3003_v35 = vsel %vm1773_vm9, %v2972_v23, %v6177_v21  ;;  %v3056_v38 = vsel %vm1791_vm11, %v3024_v53, %v6172_v25 }
 0x259   : > { %v9502_v49 = vpop.permute.xlu0 %6354  ;;  %v3066_v0 = vsel %vm1791_vm11, %v9442_v14, %v6171_v52  ;;  %v9532_v56 = vsel %vm1818_vm14, %v3127_v26, %v6146_v6  ;;  %v6202_v31 = vunpack.i.h.bf16 %v9251_v12  ;;  %v6201_v22 = vunpack.i.l.bf16 %v9251_v12 }
 0x25a   : > { %v3088_v30 = vsel %vm1800_vm12, %v3056_v38, %v6182_v46  ;;  %v6187_v54 = vunpack.i.h.bf16 %v9267_v13  ;;  %v6222_v41 = vunpack.i.h.bf16 %v9287_v3  ;;  %v2955_v14 = vsel %vm1764_vm8, %v11994_v34, %v6306_v44  ;;  %v11995_v46 = vld [vmem:[#allocation54_spill] sm:$0xff] }
 0x25b   : > { %v9510_v20 = vpop.permute.xlu1 %6329  ;;  %v3098_v26 = vsel %vm1800_vm12, %v3066_v0, %v6181_v19  ;;  %v6212_v39 = vunpack.i.h.bf16 %v9261_v57  ;;  %v6192_v11 = vunpack.i.h.bf16 %v9281_v48  ;;  %v6227_v12 = vunpack.i.h.bf16 %v9303_v24 }
 0x25c   : > { %v6211_v50 = vunpack.i.l.bf16 %v9261_v57  ;;  %v6302_v2 = vunpack.i.h.bf16 %v9422_v33  ;;  %v3120_v21 = vsel %vm1809_vm13, %v3088_v30, %v6202_v31  ;;  %v6186_v25 = vunpack.i.l.bf16 %v9267_v13 }
 0x25d   : > { %v9529_v61 = vpop.permute.xlu0 %6359  ;;  %v6312_v52 = vunpack.i.h.bf16 %v9445_v27  ;;  %v3130_v24 = vsel %vm1809_vm13, %v3098_v26, %v6201_v22  ;;  %v2973_v5 = vsel %vm1764_vm8, %v11995_v46, %v6187_v54  ;;  %v6191_v55 = vunpack.i.l.bf16 %v9281_v48  ;;  %v11996_v22 = vld [vmem:[#allocation63_spill] sm:$0xff] }
 0x25e   : > { %v6361_v4 = vunpack.i.l.bf16 %v9529_v61  ;;  %v6317_v33 = vunpack.i.h.bf16 %v9469_v32  ;;  %v3004_v51 = vsel %vm1773_vm9, %v2973_v5, %v6192_v11  ;;  %v6197_v13 = vunpack.i.h.bf16 %v9297_v9  ;;  %v11997_v11 = vld [vmem:[#allocation50_spill] sm:$0xff] }
 0x25f   : > { %v9542_v8 = vpop.permute.xlu1 %6334  ;;  %v6196_v27 = vunpack.i.l.bf16 %v9297_v9  ;;  %v6207_v38 = vunpack.i.h.bf16 %v9311_v15  ;;  %v6206_v0 = vunpack.i.l.bf16 %v9311_v15  ;;  %v6237_v48 = vunpack.i.h.bf16 %v9316_v7 }
 0x260   : > { %v2986_v47 = vsel %vm1773_vm9, %v2955_v14, %v6361_v4  ;;  %v2962_v4 = vsel %vm1764_vm8, %v11996_v22, %v6186_v25  ;;  %v6236_v30 = vunpack.i.l.bf16 %v9316_v7  ;;  %v6232_v54 = vunpack.i.h.bf16 %v9320_v60 }
 0x261   : > { %v3018_v3 = vsel %vm1782_vm10, %v2986_v47, %v6222_v41  ;;  %v9552_v6 = vpop.permute.xlu0 %6364  ;;  %v6231_v9 = vunpack.i.l.bf16 %v9320_v60  ;;  %v2993_v41 = vsel %vm1773_vm9, %v2962_v4, %v6191_v55  ;;  %v6242_v15 = vunpack.i.h.bf16 %v9324_v37  ;;  %v11998_v55 = vld [vmem:[#allocation53_spill] sm:$0xff] }
 0x262   : > { %v3050_v53 = vsel %vm1791_vm11, %v3018_v3, %v6227_v12  ;;  %v6241_v34 = vunpack.i.l.bf16 %v9324_v37  ;;  %v6251_v14 = vunpack.i.l.bf16 %v9340_v10  ;;  %v3036_v7 = vsel %vm1782_vm10, %v3004_v51, %v6211_v50 }
 0x263   : > { %v9563_v19 = vpop.permute.xlu1 %6339  ;;  %v3082_v44 = vsel %vm1800_vm12, %v3050_v53, %v6302_v2  ;;  %v6261_v12 = vunpack.i.l.bf16 %v9350_v18  ;;  %v3119_v60 = vsel %vm1809_vm13, %v3087_v28, %v6197_v13  ;;  %v3129_v47 = vsel %vm1809_vm13, %v3097_v58, %v6196_v27 }
 0x264   : > { %v3114_v23 = vsel %vm1809_vm13, %v3082_v44, %v6312_v52  ;;  %v3025_v2 = vsel %vm1782_vm10, %v2993_v41, %v6207_v38  ;;  %v3035_v3 = vsel %vm1782_vm10, %v3003_v35, %v6206_v0  ;;  %v6256_v37 = vunpack.i.l.bf16 %v9328_v36 }
 0x265   : > { %v9573_v31 = vpop.permute.xlu0 %6369  ;;  %v3146_v32 = vsel %vm1818_vm14, %v3114_v23, %v6317_v33  ;;  %v9599_v52 = vsel %vm1818_vm14, %v3120_v21, %v6237_v48  ;;  %v6247_v53 = vunpack.i.h.bf16 %v9332_v1  ;;  %v9603_v50 = vsel %vm1818_vm14, %v3119_v60, %v6232_v54  ;;  %v12003_v60 = vld [vmem:[#allocation60_spill] sm:$0xff] }
 0x266   : > { %3333 = vmatmul.mubr.f32.gmra.mrb[46].mxu0 %v3146_v32  ;;  %v9606_v28 = vsel %vm1818_vm14, %v3129_v47, %v6231_v9  ;;  %v9609_v58 = vsel %vm1818_vm14, %v3130_v24, %v6236_v30  ;;  %v3057_v35 = vsel %vm1791_vm11, %v3025_v2, %v6242_v15  ;;  %v3067_v46 = vsel %vm1791_vm11, %v3035_v3, %v6241_v34  ;;  %v11999_v32 = vld [vmem:[#allocation55_spill] sm:$0xff] }
 0x267   : > { %v9585_v26 = vpop.permute.xlu1 %6349  ;;  %5526 = vmatprep.mubr.msk.f32.mxu0 %vm1764_vm8, %v11997_v11  ;;  %v6246_v5 = vunpack.i.l.bf16 %v9332_v1  ;;  %v2963_v21 = vsel %vm1764_vm8, %v11998_v55, %v6251_v14  ;;  %v6266_v44 = vunpack.i.l.bf16 %v9336_v62  ;;  %v6252_v51 = vunpack.i.h.bf16 %v9340_v10 }
 0x268   : > { %v6272_v13 = vunpack.i.h.bf16 %v9342_v59  ;;  %v2994_v24 = vsel %vm1773_vm9, %v2963_v21, %v6261_v12  ;;  %v6257_v27 = vunpack.i.h.bf16 %v9328_v36  ;;  %v3068_v23 = vsel %vm1791_vm11, %v3036_v7, %v6256_v37 }
 0x269   : > { %v9596_v25 = vpop.permute.xlu0 %6374  ;;  %v6271_v38 = vunpack.i.l.bf16 %v9342_v59  ;;  %v6262_v1 = vunpack.i.h.bf16 %v9350_v18  ;;  %v6267_v48 = vunpack.i.h.bf16 %v9336_v62  ;;  %v6276_v22 = vunpack.i.l.bf16 %v11999_v32  ;;  %v12000_v62 = vld [vmem:[#allocation46_spill] sm:$0xff] }
 0x26a   : > { %v6307_v4 = vunpack.i.h.bf16 %v9433_v16  ;;  %v9630_v10 = vsel %vm1800_vm12, %v3057_v35, %v6247_v53  ;;  %v3026_v36 = vsel %vm1782_vm10, %v2994_v24, %v6212_v39  ;;  %v6277_v30 = vunpack.i.h.bf16 %v11999_v32  ;;  %v12001_v16 = vld [vmem:[#allocation72_spill] sm:$0xff]  ;;  %v12002_v39 = vld [vmem:[#allocation18_spill] sm:$0xff] }
 0x26b   : > { %v9616_v33 = vpop.permute.xlu1 %6384  ;;  %v6362_v59 = vunpack.i.h.bf16 %v9529_v61  ;;  %v9640_v18 = vsel %vm1800_vm12, %v3067_v46, %v6246_v5  ;;  %v2974_v9 = vsel %vm1764_vm8, %v12000_v62, %v6252_v51  ;;  %v2975_v41 = vsel %vm1764_vm8, %v12001_v16, %v6272_v13  ;;  %v9675_v13 = vld [vmem:[%s11493_s8] ss:$0 sm:$0xff] }
 0x26c   : > { %v6366_v15 = vunpack.i.l.bf16 %v9552_v6  ;;  %v3100_v57 = vsel %vm1800_vm12, %v3068_v23, %v6266_v44  ;;  %v2964_v34 = vsel %vm1764_vm8, %v12002_v39, %v6271_v38  ;;  %v9651_v61 = vsel %vm1773_vm9, %v2974_v9, %v6262_v1  ;;  %v12004_v23 = vld [vmem:[#allocation24_spill] sm:$0xff] }
 0x26d   : > { %v6380_v0 = vpop.permute.xlu0 %6379  ;;  %v6371_v14 = vunpack.i.l.bf16 %v9573_v31  ;;  %v6386_v11 = vunpack.i.l.bf16 %v9616_v33  ;;  %v9656_v12 = vsel %vm1773_vm9, %v2964_v34, %v6276_v22  ;;  %v1771_v47 = vsel %vm1764_vm8, %v12003_v60, %v6307_v4 }
 0x26e   : > { %v6381_v2 = vunpack.i.l.bf16 %v6380_v0  ;;  %v3058_v3 = vsel %vm1791_vm11, %v3026_v36, %v6257_v27  ;;  %v9662_v37 = vsel %vm1773_vm9, %v2975_v41, %v6277_v30  ;;  %v6287_v53 = vunpack.i.h.bf16 %v9374_v29 }
 0x26f   : > { %v9637_v54 = vpop.permute.xlu1 %6404  ;;  %v1780_v35 = vsel %vm1773_vm9, %v1771_v47, %v6362_v59  ;;  %v6286_v55 = vunpack.i.l.bf16 %v9374_v29  ;;  %v6282_v21 = vunpack.i.h.bf16 %v9387_v42  ;;  %v6367_v24 = vunpack.i.h.bf16 %v9552_v6  ;;  %v9690_v6 = vld [vmem:[%s11494_s9] ss:$0 sm:$0xff]  ;;  %v3299_v59 = vpop.f32.mrb[32].mxu0 }
 0x270   : > { %v1789_v44 = vsel %vm1782_vm10, %v1780_v35, %v6366_v15  ;;  %v2956_v38 = vsel %vm1764_vm8, %v12004_v23, %v6386_v11  ;;  %v9681_v29 = vpop.f32.mrb[0].mxu1  ;;  %v3090_v32 = vsel %vm1800_vm12, %v3058_v3, %v6267_v48  ;;  %v6372_v22 = vunpack.i.h.bf16 %v9573_v31  ;;  %v3301_v15 = vpop.f32.mrb[33].mxu0 }
 0x271   : > { %v6390_v7 = vpop.permute.xlu0 %6389  ;;  %v1798_v27 = vsel %vm1791_vm11, %v1789_v44, %v6371_v14  ;;  %v1911_v62 = vpop.f32.mrb[1].mxu1  ;;  %v6382_v9 = vunpack.i.h.bf16 %v6380_v0  ;;  %v3464_v31 = vmul.f32 %v9675_v13, %v3299_v59  ;;  %v6281_v39 = vunpack.i.l.bf16 %v9387_v42  ;;  %v12005_v42 = vld [vmem:[#allocation8_spill] sm:$0xff]  ;;  %v12009_v15 = vld [vmem:[#allocation70_spill] sm:$0xff] }
 0x272   : > { %v6391_v46 = vunpack.i.l.bf16 %v6390_v7  ;;  %v1807_v30 = vsel %vm1800_vm12, %v1798_v27, %v6381_v2  ;;  %v9699_v11 = vsel %vm1809_vm13, %v3100_v57, %v6286_v55  ;;  %v6392_v60 = vunpack.i.h.bf16 %v6390_v7  ;;  %v12006_v55 = vld [vmem:[#allocation31_spill] sm:$0xff] }
 0x273   : > { %v9666_v5 = vpop.permute.xlu1 %6414  ;;  %v3502_v2 = vadd.f32 %v9690_v6, %v3464_v31  ;;  %v9706_v35 = vsel %vm1809_vm13, %v3090_v32, %v6287_v53  ;;  %v6387_v44 = vunpack.i.h.bf16 %v9616_v33  ;;  %v6296_v32 = vunpack.i.l.bf16 %v12005_v42 }
 0x274   : > { %v6416_v51 = vunpack.i.l.bf16 %v9666_v5  ;;  %v1816_v48 = vsel %vm1809_vm13, %v1807_v30, %v6391_v46  ;;  %v6297_v46 = vunpack.i.h.bf16 %v12005_v42  ;;  %v3131_v62 = vsel %vm1809_vm13, %v9640_v18, %v6281_v39  ;;  %v12029_v42 = vld [vmem:[#allocation65_spill] sm:$0xff] }
 0x275   : > { %v6395_v1 = vpop.permute.xlu0 %6394 }
 0x276   : > { %v2987_v4 = vsel %vm1773_vm9, %v2956_v38, %v6416_v51  ;;  %v6396_v36 = vunpack.i.l.bf16 %v6395_v1  ;;  %v3304_v3 = vpop.f32.mrb[34].mxu0  ;;  %v6417_v51 = vunpack.i.h.bf16 %v9666_v5  ;;  %v6397_v57 = vunpack.i.h.bf16 %v6395_v1 }
 0x277   : > { %v3019_v16 = vsel %vm1782_vm10, %v2987_v4, %v6367_v24  ;;  %v6420_v41 = vpop.permute.xlu1 %6419  ;;  %v3306_v7 = vpop.f32.mrb[35].mxu0  ;;  %v9714_v38 = vmax.f32 %v3502_v2, 0.0  ;;  %v3465_v53 = vmul.f32 %v9675_v13, %v3304_v3  ;;  %v3121_v5 = vsel %vm1809_vm13, %v9630_v10, %v6282_v21  ;;  %v12010_v21 = vld [vmem:[#allocation56_spill] sm:$0xff] }
 0x278   : > { %v1825_v34 = vsel %vm1818_vm14, %v1816_v48, %v6396_v36  ;;  %v3051_v14 = vsel %vm1791_vm11, %v3019_v16, %v6372_v22  ;;  %v6422_v24 = vunpack.i.h.bf16 %v6420_v41  ;;  %v6421_v22 = vunpack.i.l.bf16 %v6420_v41  ;;  %v12008_v48 = vld [vmem:[#allocation41_spill] sm:$0xff] }
 0x279   : > { %v9701_v47 = vpop.permute.xlu0 %6399  ;;  %1938 = vmatmul.mubr.f32.gmra.mrb[12].mxu1 %v1825_v34  ;;  %v3083_v0 = vsel %vm1800_vm12, %v3051_v14, %v6382_v9  ;;  %v3585_v30 = vrot.slane %v9714_v38, 1  ;;  %v12007_v9 = vld [vmem:[#allocation36_spill] sm:$0xff]  ;;  %v6322_v31 = vunpack.i.h.bf16 %v12008_v48  ;;  %v1772_v10 = vsel %vm1764_vm8, %v12009_v15, %v6387_v44 }
 0x27a   : > { %5515 = vmatprep.mubr.msk.f32.mxu1 %vm1764_vm8, %v12006_v55  ;;  %v3115_v23 = vsel %vm1809_vm13, %v3083_v0, %v6392_v60  ;;  %v3309_v59 = vpop.f32.mrb[36].mxu0  ;;  %v6292_v16 = vunpack.i.h.bf16 %v12007_v9  ;;  %v6291_v41 = vunpack.i.l.bf16 %v12007_v9  ;;  %v1781_v14 = vsel %vm1773_vm9, %v1772_v10, %v6417_v51  ;;  %v12011_v60 = vld [vmem:[#allocation30_spill] sm:$0xff] }
 0x27b   : > { %v6425_v27 = vpop.permute.xlu1 %6424  ;;  %v3147_v33 = vsel %vm1818_vm14, %v3115_v23, %v6397_v57  ;;  %v3311_v34 = vpop.f32.mrb[37].mxu0  ;;  %v3020_v0 = vsel %vm1782_vm10, %v12011_v60, %v6422_v24  ;;  %v3601_v18 = vrot.slane %v9714_v38, 2  ;;  %v3503_v39 = vadd.f32 %v9690_v6, %v3465_v53 }
 0x27c   : > { %v6427_v1 = vunpack.i.h.bf16 %v6425_v27  ;;  %v6426_v4 = vunpack.i.l.bf16 %v6425_v27  ;;  %3338 = vmatmul.mubr.f32.gmra.mrb[48].mxu0 %v3147_v33  ;;  %v1790_v3 = vsel %vm1782_vm10, %v1781_v14, %v6421_v22  ;;  %v3705_v44 = vsel %vm1123_vm1, %v9714_v38, %v3585_v30 }
 0x27d   : > { %v9721_v36 = vpop.permute.xlu0 %6409  ;;  %5527 = vmatprep.mubr.msk.f32.mxu0 %vm1764_vm8, %v12010_v21  ;;  %v6321_v27 = vunpack.i.l.bf16 %v12008_v48  ;;  %v9746_v24 = vmax.f32 %v3503_v39, 0.0  ;;  %v6346_v9 = vunpack.i.l.bf16 %v9477_v63  ;;  %v3617_v53 = vrot.slane %v9714_v38, 3  ;;  %v12012_v48 = vld [vmem:[#allocation17_spill] sm:$0xff] }
 0x27e   : > { %v1799_v23 = vsel %vm1791_vm11, %v1790_v3, %v6426_v4  ;;  %v3052_v51 = vsel %vm1791_vm11, %v3020_v0, %v6427_v1  ;;  %v3713_v10 = vsel %vm1133_vm2, %v3705_v44, %v3601_v18  ;;  %v12013_v4 = vunpack.i.l.bf16 %v12012_v48  ;;  %v12015_v44 = vld [vmem:[#allocation33_spill] sm:$0xff] }
 0x27f   : > { %v6430_v2 = vpop.permute.xlu1 %6429  ;;  %v12014_v34 = vunpack.i.h.bf16 %v12012_v48  ;;  %v3777_v60 = vsel %vm1123_vm1, %v3585_v30, %v3601_v18  ;;  %v3038_v0 = vsel %vm1782_vm10, %v9662_v37, %v6296_v32  ;;  %v3037_v39 = vsel %vm1782_vm10, %v9651_v61, %v6291_v41 }
 0x280   : > { %v6432_v57 = vunpack.i.h.bf16 %v6430_v2  ;;  %v6431_v7 = vunpack.i.l.bf16 %v6430_v2  ;;  %v3027_v2 = vsel %vm1782_vm10, %v9656_v12, %v6292_v16  ;;  %v9769_v3 = vsel %vm1818_vm14, %v3121_v5, %v6322_v31 }
 0x281   : > { %v9744_v33 = vpop.permute.xlu0 %6439  ;;  %v12017_v18 = vunpack.i.h.bf16 %v12015_v44  ;;  %v3641_v12 = vrot.slane %v9746_v24, 4  ;;  %v6331_v32 = vunpack.i.l.bf16 %v9510_v20  ;;  %v6337_v61 = vunpack.i.h.bf16 %v9542_v8 }
 0x282   : > { %v1808_v22 = vsel %vm1800_vm12, %v1799_v23, %v6431_v7  ;;  %v3084_v15 = vsel %vm1800_vm12, %v3052_v51, %v6432_v57  ;;  %v6332_v57 = vunpack.i.h.bf16 %v9510_v20  ;;  %v12016_v23 = vunpack.i.l.bf16 %v12015_v44  ;;  %v12018_v51 = vld [vmem:[#allocation69_spill] sm:$0xff] }
 0x283   : > { %v9753_v21 = vpop.permute.xlu1 %6434  ;;  %v1817_v1 = vsel %vm1809_vm13, %v1808_v22, %v12013_v4  ;;  %v3116_v14 = vsel %vm1809_vm13, %v3084_v15, %v12014_v34  ;;  %v3785_v5 = vsel %vm1133_vm2, %v3777_v60, %v3617_v53  ;;  %v3721_v16 = vsel %vm1143_vm3, %v3713_v10, %v3617_v53  ;;  %v12019_v22 = vld [vmem:[#allocation71_spill] sm:$0xff] }
 0x284   : > { %v1826_v30 = vsel %vm1818_vm14, %v1817_v1, %v12016_v23  ;;  %v3148_v37 = vsel %vm1818_vm14, %v3116_v14, %v12017_v18  ;;  %v9786_v41 = vsel %vm1791_vm11, %v3038_v0, %v6346_v9  ;;  %v3761_v31 = vrot.slane %v9714_v38, 4 }
 0x285   : > { %v9772_v7 = vpop.permute.xlu0 %6449  ;;  %1943 = vmatmul.mubr.f32.gmra.mrb[14].mxu1 %v1826_v30  ;;  %3343 = vmatmul.mubr.f32.gmra.mrb[50].mxu0 %v3148_v37  ;;  %v3657_v15 = vrot.slane %v9746_v24, 5  ;;  %v9797_v48 = vsel %vm1818_vm14, %v3131_v62, %v6321_v27  ;;  %v6327_v53 = vunpack.i.h.bf16 %v9489_v43  ;;  %v6336_v9 = vunpack.i.l.bf16 %v9542_v8 }
 0x286   : > { %5528 = vmatprep.mubr.msk.f32.mxu0 %vm1764_vm8, %v12018_v51  ;;  %5538 = vmatprep.mubr.msk.f32.mxu1 %vm1764_vm8, %v12019_v22  ;;  %v3466_v10 = vmul.f32 %v9675_v13, %v3309_v59  ;;  %v3673_v38 = vrot.slane %v9746_v24, 6  ;;  %v3059_v4 = vsel %vm1791_vm11, %v3027_v2, %v6332_v57  ;;  %v6341_v1 = vunpack.i.l.bf16 %v9563_v19  ;;  %v12020_v2 = vld [vmem:[#allocation11_spill] sm:$0xff]  ;;  %v12021_v57 = vld [vmem:[#allocation76_spill] sm:$0xff] }
 0x287   : > { %v9793_v20 = vpop.permute.xlu1 %6444  ;;  %v3793_v14 = vsel %vm1143_vm3, %v3785_v5, %v3761_v31  ;;  %v3729_v60 = vsel %vm1153_vm4, %v3721_v16, %v3641_v12  ;;  %v6326_v62 = vunpack.i.l.bf16 %v9489_v43  ;;  %v6357_v27 = vunpack.i.h.bf16 %v9502_v49  ;;  %v12022_v12 = vld [vmem:[#allocation75_spill] sm:$0xff] }
 0x288   : > { %v3069_v8 = vsel %vm1791_vm11, %v3037_v39, %v6331_v32  ;;  %v3091_v59 = vsel %vm1800_vm12, %v3059_v4, %v6337_v61  ;;  %v6351_v0 = vunpack.i.l.bf16 %v9585_v26  ;;  %v3689_v43 = vrot.slane %v9746_v24, 7  ;;  %v12024_v4 = vld [vmem:[#allocation23_spill] sm:$0xff] }
 0x289   : > { %v9805_v34 = vpop.permute.xlu0 %6459  ;;  %3348 = vmatmul.mubr.f32.gmra.mrb[52].mxu0 %v9521_v40  ;;  %3398 = vmatmul.mubr.f32.vlgmr.msra.gmra.mrb[16].mxu1 %v9532_v56  ;;  %v3801_v39 = vsel %vm1153_vm4, %v3793_v14, %v3657_v15  ;;  %v3737_v40 = vsel %vm1163_vm5, %v3729_v60, %v3657_v15  ;;  %v3504_v56 = vadd.f32 %v9690_v6, %v3466_v10  ;;  %v6342_v37 = vunpack.i.h.bf16 %v9563_v19 }
 0x28a   : > { %5529 = vmatprep.mubr.msk.f32.mxu0 %vm1764_vm8, %v12020_v2  ;;  %5539 = vmatprep.mubr.msk.f32.mxu1 %vm1764_vm8, %v12021_v57  ;;  %v3809_v23 = vsel %vm1163_vm5, %v3801_v39, %v3673_v38  ;;  %v3745_v30 = vsel %vm1173_vm6, %v3737_v40, %v3673_v38  ;;  %v3101_v18 = vsel %vm1800_vm12, %v3069_v8, %v6336_v9  ;;  %v6352_v31 = vunpack.i.h.bf16 %v9585_v26  ;;  %v12023_v26 = vld [vmem:[#allocation62_spill] sm:$0xff]  ;;  %v12026_v8 = vld [vmem:[#allocation9_spill] sm:$0xff]  ;;  %v12028_v39 = vld [vmem:[#allocation40_spill] sm:$0xff] }
 0x28b   : > { %v9820_v44 = vpop.permute.xlu1 %6454  ;;  %v2965_v32 = vsel %vm1764_vm8, %v12022_v12, %v6341_v1  ;;  %v3817_v5 = vsel %vm1173_vm6, %v3809_v23, %v3689_v43  ;;  %v9836_v16 = vsel %vm1183_vm7, %v3745_v30, %v3689_v43  ;;  %v6377_v51 = vunpack.i.h.bf16 %v9596_v25  ;;  %v12025_v1 = vld [vmem:[#allocation67_spill] sm:$0xff] }
 0x28c   : > { %v3825_v19 = vsel %vm1183_vm7, %v3817_v5, %v9746_v24  ;;  %v4129_v22 = vrot.slane %v9836_v16, 1  ;;  %v6356_v15 = vunpack.i.l.bf16 %v9502_v49  ;;  %v2996_v9 = vsel %vm1773_vm9, %v2965_v32, %v6351_v0 }
 0x28d   : > { %v9832_v61 = vpop.permute.xlu0 %6469  ;;  %3353 = vmatmul.mubr.f32.gmra.mrb[54].mxu0 %v9513_v17  ;;  %3403 = vmatmul.mubr.f32.gmra.mrb[18].mxu1 %v9516_v45  ;;  %v6376_v10 = vunpack.i.l.bf16 %v9596_v25  ;;  %v6441_v38 = vunpack.i.l.bf16 %v9744_v33  ;;  %v6451_v45 = vunpack.i.l.bf16 %v9772_v7  ;;  %v9856_v24 = vmax.f32 %v3504_v56, 0.0 }
 0x28e   : > { %5530 = vmatprep.mubr.msk.f32.mxu0 %vm1764_vm8, %v12023_v26  ;;  %5540 = vmatprep.mubr.msk.f32.mxu1 %vm1764_vm8, %v12024_v4  ;;  %v9861_v49 = vsel %vm1818_vm14, %v9706_v35, %v6327_v53  ;;  %v9865_v25 = vsel %vm1818_vm14, %v9699_v11, %v6326_v62  ;;  %v2976_v14 = vsel %vm1764_vm8, %v12025_v1, %v6342_v37  ;;  %v6347_v43 = vunpack.i.h.bf16 %v9477_v63  ;;  %v12032_v26 = vld [vmem:[#allocation58_spill] sm:$0xff] }
 0x28f   : > { %v9853_v17 = vpop.permute.xlu1 %6464  ;;  %4097 = vrot.lane.b32.xlu0 %v3825_v19, %s6560_s26  ;;  %v4130_v0 = vsel %vm1183_vm7, %v4129_v22, %v12026_v8  ;;  %v3123_v2 = vsel %vm1809_vm13, %v3091_v59, %v6357_v27  ;;  %v3133_v57 = vsel %vm1809_vm13, %v3101_v18, %v6356_v15  ;;  %v3007_v35 = vsel %vm1773_vm9, %v2976_v14, %v6352_v31  ;;  %v12027_v59 = vld [vmem:[#allocation6_spill] sm:$0xff] }
 0x290   : > { %v3028_v11 = vsel %vm1782_vm10, %v2996_v9, %v6297_v46  ;;  %v9883_v53 = vsel %vm1818_vm14, %v3123_v2, %v6377_v51  ;;  %v6402_v62 = vunpack.i.h.bf16 %v9701_v47  ;;  %v6411_v27 = vunpack.i.l.bf16 %v9721_v36 }
 0x291   : > { %v9869_v60 = vpop.permute.xlu0 %6479  ;;  %3358 = vmatmul.mubr.f32.gmra.mrb[56].mxu0 %v9603_v50  ;;  %3408 = vmatmul.mubr.f32.gmra.mrb[20].mxu1 %v9606_v28  ;;  %v2966_v63 = vsel %vm1764_vm8, %v12027_v59, %v6441_v38  ;;  %v9896_v50 = vsel %vm1818_vm14, %v3133_v57, %v6376_v10  ;;  %v6442_v28 = vunpack.i.h.bf16 %v9744_v33  ;;  %v3841_v56 = vrot.slane %v9856_v24, 1  ;;  %v9908_v32 = vpop.f32.mrb[2].mxu1  ;;  %v12030_v10 = vld [vmem:[#allocation28_spill] sm:$0xff] }
 0x292   : > { %5531 = vmatprep.mubr.msk.f32.mxu0 %vm1764_vm8, %v12028_v39  ;;  %5541 = vmatprep.mubr.msk.f32.mxu1 %vm1764_vm8, %v12029_v42  ;;  %v2997_v40 = vsel %vm1773_vm9, %v2966_v63, %v6451_v45  ;;  %v3857_v23 = vrot.slane %v9856_v24, 2  ;;  %v6407_v30 = vunpack.i.h.bf16 %v9637_v54  ;;  %v6406_v18 = vunpack.i.l.bf16 %v9637_v54  ;;  %v3314_v22 = vpop.f32.mrb[38].mxu0  ;;  %v12033_v63 = vld [vmem:[#allocation7_spill] sm:$0xff] }
 0x293   : > { %v9893_v46 = vpop.permute.xlu1 %6474  ;;  %4145 = vrot.lane.b32.xlu0 %v4130_v0, %s6552_s16  ;;  %v6412_v37 = vunpack.i.h.bf16 %v9721_v36  ;;  %v3060_v33 = vsel %vm1791_vm11, %v3028_v11, %v6347_v43  ;;  %v6401_v5 = vunpack.i.l.bf16 %v9701_v47  ;;  %v6452_v31 = vunpack.i.h.bf16 %v9772_v7  ;;  %v1916_v36 = vpop.f32.mrb[3].mxu1  ;;  %v12031_v47 = vld [vmem:[#allocation21_spill] sm:$0xff]  ;;  %v12034_v39 = vld [vmem:[#allocation47_spill] sm:$0xff] }
 0x294   : > { %v6447_v51 = vunpack.i.h.bf16 %v9793_v20  ;;  %v6446_v19 = vunpack.i.l.bf16 %v9793_v20  ;;  %v3873_v9 = vrot.slane %v9856_v24, 3  ;;  %v3467_v20 = vmul.f32 %v9675_v13, %v3314_v22  ;;  %v3316_v38 = vpop.f32.mrb[39].mxu0 }
 0x295   : > { %v9906_v12 = vpop.permute.xlu0 %6489  ;;  %3363 = vmatmul.mubr.f32.gmra.mrb[58].mxu0 %v9599_v52  ;;  %3413 = vmatmul.mubr.f32.gmra.mrb[22].mxu1 %v9609_v58  ;;  %v3029_v15 = vsel %vm1782_vm10, %v2997_v40, %v6412_v37  ;;  %v9927_v52 = vsel %vm1800_vm12, %v3060_v33, %v6402_v62  ;;  %v3039_v58 = vsel %vm1782_vm10, %v3007_v35, %v6411_v27  ;;  %v6437_v14 = vunpack.i.h.bf16 %v9753_v21 }
 0x296   : > { %5532 = vmatprep.mubr.msk.f32.mxu0 %vm1764_vm8, %v12030_v10  ;;  %5542 = vmatprep.mubr.msk.f32.mxu1 %vm1764_vm8, %v12031_v47  ;;  %v2977_v4 = vsel %vm1764_vm8, %v12032_v26, %v6442_v28  ;;  %v3961_v45 = vsel %vm1123_vm1, %v9856_v24, %v3841_v56  ;;  %v4033_v1 = vsel %vm1123_vm1, %v3841_v56, %v3857_v23  ;;  %v6436_v0 = vunpack.i.l.bf16 %v9753_v21  ;;  %v12036_v47 = vld [vmem:[#allocation34_spill] sm:$0xff] }
 0x297   : > { %v9923_v7 = vpop.permute.xlu1 %6484  ;;  %v4017_v2 = vrot.slane %v9856_v24, 4  ;;  %v3505_v43 = vadd.f32 %v9690_v6, %v3467_v20  ;;  %v9942_v35 = vsel %vm1773_vm9, %v2977_v4, %v6452_v31  ;;  %v3061_v11 = vsel %vm1791_vm11, %v3029_v15, %v6447_v51  ;;  %v12035_v15 = vld [vmem:[#allocation32_spill] sm:$0xff] }
 0x298   : > { %v3071_v62 = vsel %vm1791_vm11, %v3039_v58, %v6446_v19  ;;  %v6457_v27 = vunpack.i.h.bf16 %v9820_v44  ;;  %v6476_v59 = vunpack.i.l.bf16 %v9893_v46  ;;  %v3969_v28 = vsel %vm1133_vm2, %v3961_v45, %v3857_v23 }
 0x299   : > { %v9938_v57 = vpop.permute.xlu0 %6499  ;;  %3368 = vmatmul.mubr.f32.gmra.mrb[60].mxu0 %v9769_v3  ;;  %3418 = vmatmul.mubr.f32.gmra.mrb[24].mxu1 %v9797_v48  ;;  %v3537_v24 = vmax.f32 %v3505_v43, 0.0  ;;  %v4041_v40 = vsel %vm1133_vm2, %v4033_v1, %v3873_v9  ;;  %v6462_v56 = vunpack.i.h.bf16 %v9805_v34  ;;  %v6461_v3 = vunpack.i.l.bf16 %v9805_v34 }
 0x29a   : > { %5533 = vmatprep.mubr.msk.f32.mxu0 %vm1764_vm8, %v12033_v63  ;;  %5543 = vmatprep.mubr.msk.f32.mxu1 %vm1764_vm8, %v12034_v39  ;;  %v6456_v48 = vunpack.i.l.bf16 %v9820_v44  ;;  %v6486_v37 = vunpack.i.l.bf16 %v9923_v7  ;;  %v3102_v31 = vsel %vm1800_vm12, %v9786_v41, %v6401_v5  ;;  %v6472_v23 = vunpack.i.h.bf16 %v9832_v61  ;;  %v12037_v41 = vld [vmem:[#allocation35_spill] sm:$0xff]  ;;  %v12038_v39 = vld [vmem:[#allocation44_spill] sm:$0xff] }
 0x29b   : > { %v9954_v42 = vpop.permute.xlu1 %6494  ;;  %v3897_v51 = vrot.slane %v3537_v24, 4  ;;  %v3913_v19 = vrot.slane %v3537_v24, 5  ;;  %v3929_v22 = vrot.slane %v3537_v24, 6  ;;  %v3977_v34 = vsel %vm1143_vm3, %v3969_v28, %v3873_v9  ;;  %v12039_v28 = vld [vmem:[#allocation26_spill] sm:$0xff] }
 0x29c   : > { %v3093_v44 = vsel %vm1800_vm12, %v3061_v11, %v6457_v27  ;;  %v4049_v36 = vsel %vm1143_vm3, %v4041_v40, %v4017_v2  ;;  %v2967_v10 = vsel %vm1764_vm8, %v12035_v15, %v6476_v59  ;;  %v3103_v58 = vsel %vm1800_vm12, %v3071_v62, %v6456_v48 }
 0x29d   : > { %v9962_v33 = vpop.permute.xlu0 %2626  ;;  %3373 = vmatmul.mubr.f32.gmra.mrb[62].mxu0 %v9861_v49  ;;  %3423 = vmatmul.mubr.f32.gmra.mrb[26].mxu1 %v9865_v25  ;;  %v3945_v49 = vrot.slane %v3537_v24, 7  ;;  %v3985_v25 = vsel %vm1153_vm4, %v3977_v34, %v3897_v51  ;;  %v4057_v9 = vsel %vm1153_vm4, %v4049_v36, %v3913_v19  ;;  %v2998_v20 = vsel %vm1773_vm9, %v2967_v10, %v6486_v37  ;;  %v12041_v34 = vld [vmem:[#allocation51_spill] sm:$0xff] }
 0x29e   : > { %5534 = vmatprep.mubr.msk.f32.mxu0 %vm1764_vm8, %v12036_v47  ;;  %5544 = vmatprep.mubr.msk.f32.mxu1 %vm1764_vm8, %v12037_v41  ;;  %v3993_v38 = vsel %vm1163_vm5, %v3985_v25, %v3913_v19  ;;  %v4065_v26 = vsel %vm1163_vm5, %v4057_v9, %v3929_v22  ;;  %v6467_v4 = vunpack.i.h.bf16 %v9853_v17  ;;  %v6466_v45 = vunpack.i.l.bf16 %v9853_v17  ;;  %v12040_v19 = vld [vmem:[#allocation73_spill] sm:$0xff]  ;;  %v12043_v47 = vld [vmem:[#allocation14_spill] sm:$0xff] }
 0x29f   : > { %v9978_v5 = vpop.permute.xlu1 %6504  ;;  %v4001_v2 = vsel %vm1173_vm6, %v3993_v38, %v3929_v22  ;;  %v4073_v43 = vsel %vm1173_vm6, %v4065_v26, %v3945_v49  ;;  %v6471_v11 = vunpack.i.l.bf16 %v9832_v61  ;;  %v3125_v27 = vsel %vm1809_vm13, %v3093_v44, %v6462_v56  ;;  %v12044_v26 = vld [vmem:[#allocation57_spill] sm:$0xff] }
 0x2a0   : > { %v4009_v62 = vsel %vm1183_vm7, %v4001_v2, %v3945_v49  ;;  %v4081_v59 = vsel %vm1183_vm7, %v4073_v43, %v3537_v24  ;;  %v6477_v17 = vunpack.i.h.bf16 %v9893_v46  ;;  %v3030_v63 = vsel %vm1782_vm10, %v2998_v20, %v6467_v4  ;;  %v12045_v4 = vld [vmem:[#allocation20_spill] sm:$0xff] }
 0x2a1   : > { %v9988_v1 = vpop.permute.xlu0 %2727  ;;  %3378 = vmatmul.mubr.f32.gmra.mrb[64].mxu0 %v9883_v53  ;;  %3428 = vmatmul.mubr.f32.gmra.mrb[28].mxu1 %v9896_v50  ;;  %v10004_v53 = vpop.f32.mrb[4].mxu1  ;;  %v4233_v50 = vrot.slane %v4009_v62, 1  ;;  %v3135_v40 = vsel %vm1809_vm13, %v3103_v58, %v6461_v3  ;;  %v6482_v56 = vunpack.i.h.bf16 %v9869_v60  ;;  %v6487_v24 = vunpack.i.h.bf16 %v9923_v7 }
 0x2a2   : > { %5535 = vmatprep.mubr.msk.f32.mxu0 %vm1764_vm8, %v12038_v39  ;;  %5545 = vmatprep.mubr.msk.f32.mxu1 %vm1764_vm8, %v12039_v28  ;;  %v1921_v48 = vpop.f32.mrb[5].mxu1  ;;  %v3124_v46 = vsel %vm1809_vm13, %v9927_v52, %v6407_v30  ;;  %v3134_v37 = vsel %vm1809_vm13, %v3102_v31, %v6406_v18  ;;  %v3040_v3 = vsel %vm1782_vm10, %v9942_v35, %v6466_v45  ;;  %v6481_v54 = vunpack.i.l.bf16 %v9869_v60  ;;  %v12042_v60 = vld [vmem:[#allocation68_spill] sm:$0xff]  ;;  %v12046_v28 = vld [vmem:[#allocation10_spill] sm:$0xff] }
 0x2a3   : > { %v2262_v61 = vpop.permute.xlu1 %2261  ;;  %4177 = vrot.lane.b32.xlu0 %v4009_v62, %s11671_s27  ;;  %v3156_v7 = vsel %vm1818_vm14, %v3124_v46, %v6437_v14  ;;  %v3166_v51 = vsel %vm1818_vm14, %v3134_v37, %v6436_v0  ;;  %v4234_v30 = vsel %vm1183_vm7, %v4233_v50, %v12026_v8  ;;  %v3157_v52 = vsel %vm1818_vm14, %v3125_v27, %v6472_v23 }
 0x2a4   : > { %v3167_v35 = vsel %vm1818_vm14, %v3135_v40, %v6471_v11  ;;  %v3062_v31 = vsel %vm1791_vm11, %v3030_v63, %v6482_v56  ;;  %v2978_v14 = vsel %vm1764_vm8, %v12040_v19, %v6477_v17  ;;  %v6492_v21 = vunpack.i.h.bf16 %v9906_v12  ;;  %4249 = vrot.lane.b32.xlu1 %v4234_v30, %s11673_s28 }
 0x2a5   : > { %v2824_v18 = vpop.permute.xlu0 %2823  ;;  %3383 = vmatmul.mubr.f32.gmra.mrb[66].mxu0 %v3156_v7  ;;  %3433 = vmatmul.mubr.f32.gmra.mrb[30].mxu1 %v3166_v51  ;;  %v6491_v0 = vunpack.i.l.bf16 %v9906_v12  ;;  %v6501_v22 = vunpack.i.l.bf16 %v9938_v57  ;;  %v3319_v23 = vpop.f32.mrb[40].mxu0  ;;  %v6497_v36 = vunpack.i.h.bf16 %v9954_v42  ;;  %v6496_v15 = vunpack.i.l.bf16 %v9954_v42 }
 0x2a6   : > { %5536 = vmatprep.mubr.msk.f32.mxu0 %vm1764_vm8, %v12041_v34  ;;  %5546 = vmatprep.mubr.msk.f32.mxu1 %vm1764_vm8, %v12042_v60  ;;  %v3009_v10 = vsel %vm1773_vm9, %v2978_v14, %v6487_v24  ;;  %v2979_v41 = vsel %vm1764_vm8, %v12043_v47, %v2262_v61  ;;  %v3321_v12 = vpop.f32.mrb[41].mxu0  ;;  %v6507_v49 = vunpack.i.h.bf16 %v9978_v5  ;;  %v6506_v25 = vunpack.i.l.bf16 %v9978_v5 }
 0x2a7   : > { %v2431_v44 = vpop.permute.xlu1 %2430  ;;  %4209 = vrot.lane.b32.xlu0 %v4081_v59, %s11669_s23  ;;  %v3094_v20 = vsel %vm1800_vm12, %v3062_v31, %v6492_v21  ;;  %v3072_v42 = vsel %vm1791_vm11, %v3040_v3, %v6481_v54  ;;  %v6502_v38 = vunpack.i.h.bf16 %v9938_v57  ;;  %v3041_v58 = vsel %vm1782_vm10, %v3009_v10, %v6501_v22 }
 0x2a8   : > { %v3010_v9 = vsel %vm1773_vm9, %v2979_v41, %v2431_v44  ;;  %v3104_v5 = vsel %vm1800_vm12, %v3072_v42, %v6491_v0  ;;  %v3126_v11 = vsel %vm1809_vm13, %v3094_v20, %v6497_v36  ;;  %v3073_v59 = vsel %vm1791_vm11, %v3041_v58, %v9962_v33 }
 0x2a9   : > { %3388 = vmatmul.mubr.f32.gmra.mrb[68].mxu0 %v3157_v52  ;;  %3438 = vmatmul.mubr.f32.gmra.mrb[32].mxu1 %v3167_v35  ;;  %v2629_v2 = vpop.permute.xlu0 %2628  ;;  %v3042_v43 = vsel %vm1782_vm10, %v3010_v9, %v6502_v38  ;;  %v3136_v57 = vsel %vm1809_vm13, %v3104_v5, %v6496_v15  ;;  %v3158_v62 = vsel %vm1818_vm14, %v3126_v11, %v6507_v49 }
 0x2aa   : > { %5537 = vmatprep.mubr.msk.f32.mxu0 %vm1764_vm8, %v12044_v26  ;;  %5547 = vmatprep.mubr.msk.f32.mxu1 %vm1764_vm8, %v12045_v4  ;;  %v3168_v27 = vsel %vm1818_vm14, %v3136_v57, %v6506_v25  ;;  %v3105_v17 = vsel %vm1800_vm12, %v3073_v59, %v9988_v1  ;;  %v3074_v63 = vsel %vm1791_vm11, %v3042_v43, %v2629_v2 }
 0x2ab   : > { %v2917_v45 = vpop.permute.xlu1 %2916  ;;  %v3137_v61 = vsel %vm1809_vm13, %v3105_v17, %v2824_v18  ;;  %v3468_v56 = vmul.f32 %v9675_v13, %v3319_v23 }
 0x2ac   : > { %v3169_v40 = vsel %vm1818_vm14, %v3137_v61, %v2917_v45 }
 0x2ad   : > { %3393 = vmatmul.mubr.f32.gmra.mrb[70].mxu0 %v3158_v62  ;;  %3443 = vmatmul.mubr.f32.gmra.mrb[34].mxu1 %v3168_v27  ;;  %v3506_v48 = vadd.f32 %v9690_v6, %v3468_v56 }
 0x2ae   : > { %5548 = vmatprep.mubr.msk.f32.mxu1 %vm1764_vm8, %v12046_v28 }
 0x2af   : > { %v2730_v39 = vpop.permute.xlu1 %2729  ;;  %v3538_v37 = vmax.f32 %v3506_v48, 0.0 }
 0x2b0   : > { %v3106_v50 = vsel %vm1800_vm12, %v3074_v63, %v2730_v39  ;;  %vm4378_vm12 = vcmask 326656  }
 0x2b1   : > { %3448 = vmatmul.mubr.f32.gmra.mrb[36].mxu1 %v3169_v40  ;;  %v3138_v33 = vsel %vm1809_vm13, %v3106_v50, %v2824_v18  ;;  %v3586_v3 = vrot.slane %v3538_v37, 1  ;;  %v3602_v7 = vrot.slane %v3538_v37, 2  ;;  %v3618_v30 = vrot.slane %v3538_v37, 3 }
 0x2b2   : > { %5549 = vmatprep.mubr.msk.f32.mxu1 %vm1764_vm8, %v12046_v28  ;;  %v3170_v1 = vsel %vm1818_vm14, %v3138_v33, %v2917_v45  ;;  %v3762_v0 = vrot.slane %v3538_v37, 4  ;;  %vm4395_vm13 = vcmask 457728   ;;  %vm4412_vm14 = vcmask 588800  }
 0x2b3   : > { %v3706_v52 = vsel %vm1123_vm1, %v3538_v37, %v3586_v3  ;;  %v3778_v35 = vsel %vm1123_vm1, %v3586_v3, %v3602_v7  ;;  %v10115_v11 = vpop.permute.xlu1 %4287 }
 0x2b4   : > { %v3786_v14 = vsel %vm1133_vm2, %v3778_v35, %v3618_v30  ;;  %v3714_v21 = vsel %vm1133_vm2, %v3706_v52, %v3602_v7 }
 0x2b5   : > { %3453 = vmatmul.mubr.f32.gmra.mrb[38].mxu1 %v3170_v1  ;;  %v3794_v23 = vsel %vm1143_vm3, %v3786_v14, %v3762_v0  ;;  %v3722_v44 = vsel %vm1143_vm3, %v3714_v21, %v3618_v30 }
 0x2b6   : > { %v10079_v24 = vpop.f32.mrb[6].mxu1 }
 0x2b7   : > { %v1926_v46 = vpop.f32.mrb[7].mxu1  ;;  %v10117_v62 = vpop.permute.xlu1 %4311 }
 0x2c1   : > { %v3324_v51 = vpop.f32.mrb[42].mxu0 }
 0x2c2   : > { %v3469_v54 = vmul.f32 %v9675_v13, %v3324_v51  ;;  %v3326_v18 = vpop.f32.mrb[43].mxu0 }
 0x2c4   : > { %v3507_v31 = vadd.f32 %v9690_v6, %v3469_v54 }
 0x2c6   : > { %v3539_v19 = vmax.f32 %v3507_v31, 0.0 }
 0x2c8   : > { %v3658_v22 = vrot.slane %v3539_v19, 5  ;;  %v3674_v34 = vrot.slane %v3539_v19, 6  ;;  %v3642_v60 = vrot.slane %v3539_v19, 4  ;;  %v3690_v36 = vrot.slane %v3539_v19, 7 }
 0x2ca   : > { %v3802_v15 = vsel %vm1153_vm4, %v3794_v23, %v3658_v22  ;;  %v3730_v10 = vsel %vm1153_vm4, %v3722_v44, %v3642_v60 }
 0x2cb   : > { %v3810_v47 = vsel %vm1163_vm5, %v3802_v15, %v3674_v34  ;;  %v3738_v41 = vsel %vm1163_vm5, %v3730_v10, %v3658_v22 }
 0x2cc   : > { %v3818_v12 = vsel %vm1173_vm6, %v3810_v47, %v3690_v36  ;;  %v3746_v49 = vsel %vm1173_vm6, %v3738_v41, %v3674_v34 }
 0x2cd   : > { %v3826_v25 = vsel %vm1183_vm7, %v3818_v12, %v3539_v19  ;;  %v10098_v9 = vsel %vm1183_vm7, %v3746_v49, %v3690_v36 }
 0x2ce   : > { %4099 = vrot.lane.b32.xlu1 %v3826_v25, %s6560_s26  ;;  %v4131_v20 = vrot.slane %v10098_v9, 1 }
 0x2d0   : > { %v4132_v42 = vsel %vm1183_vm7, %v4131_v20, %v12026_v8 }
 0x2d2   : > { %4273 = vrot.lane.b32.xlu1 %v10098_v9, %s11857_s30 }
 0x2d6   : > { %4297 = vrot.lane.b32.xlu1 %v3826_v25, %s6559_s20 }
 0x2da   : > { %4147 = vrot.lane.b32.xlu1 %v4132_v42, %s6552_s16 }
 0x2de   : > { %4321 = vrot.lane.b32.xlu1 %v4132_v42, %s11675_s17  ;;  %s12047_s17 = smov 64  }
 0x2e8   : > { %v10109_v38 = vpop.f32.mrb[8].mxu1 }
 0x2e9   : > { %v1931_v58 = vpop.f32.mrb[9].mxu1 }
 0x2fe   : > { %v3329_v26 = vpop.f32.mrb[44].mxu0 }
 0x2ff   : > { %v3331_v4 = vpop.f32.mrb[45].mxu0  ;;  %v3470_v5 = vmul.f32 %v9675_v13, %v3329_v26 }
 0x301   : > { %v3508_v43 = vadd.f32 %v9690_v6, %v3470_v5  ;;  %v4098_v17 = vpop.permute.xlu0 %4097 }
 0x302   : > { %v4345_v15 = vsel %vm528_vm0, %v9836_v16, %v4098_v17 }
 0x303   : > { %v3540_v57 = vmax.f32 %v3508_v43, 0.0 }
 0x305   : > { %v3842_v27 = vrot.slane %v3540_v57, 1  ;;  %v3858_v59 = vrot.slane %v3540_v57, 2  ;;  %v3874_v39 = vrot.slane %v3540_v57, 3  ;;  %v4146_v1 = vpop.permute.xlu0 %4145  ;;  %v4018_v3 = vrot.slane %v3540_v57, 4 }
 0x306   : > { %v4353_v12 = vsel %vm1764_vm8, %v4345_v15, %v4146_v1 }
 0x307   : > { %v3962_v50 = vsel %vm1123_vm1, %v3540_v57, %v3842_v27  ;;  %v4034_v40 = vsel %vm1123_vm1, %v3842_v27, %v3858_v59 }
 0x308   : > { %v4042_v46 = vsel %vm1133_vm2, %v4034_v40, %v3874_v39  ;;  %v3970_v37 = vsel %vm1133_vm2, %v3962_v50, %v3858_v59 }
 0x309   : > { %v4050_v18 = vsel %vm1143_vm3, %v4042_v46, %v4018_v3  ;;  %v3978_v52 = vsel %vm1143_vm3, %v3970_v37, %v3874_v39 }
 0x315   : > { %v4178_v35 = vpop.permute.xlu0 %4177 }
 0x316   : > { %v4250_v33 = vpop.permute.xlu1 %4249  ;;  %v4362_v49 = vsel %vm4361_vm15, %v4353_v12, %v4178_v35 }
 0x319   : > { %v4210_v10 = vpop.permute.xlu0 %4209 }
 0x31a   : > { %v4370_v25 = vsel %vm1773_vm9, %v4362_v49, %v4210_v10 }
 0x31b   : > { %v4379_v4 = vsel %vm4378_vm12, %v4370_v25, %v4250_v33 }
 0x32a   : > { %v10111_v45 = vpop.f32.mrb[10].mxu1 }
 0x32b   : > { %v1936_v2 = vpop.f32.mrb[11].mxu1 }
 0x339   : > { %v3334_v63 = vpop.f32.mrb[46].mxu0 }
 0x33a   : > { %v3471_v28 = vmul.f32 %v9675_v13, %v3334_v63  ;;  %v3336_v61 = vpop.f32.mrb[47].mxu0 }
 0x33c   : > { %v3509_v56 = vadd.f32 %v9690_v6, %v3471_v28 }
 0x33e   : > { %v3541_v48 = vmax.f32 %v3509_v56, 0.0 }
 0x340   : > { %v4100_v7 = vpop.permute.xlu1 %4099  ;;  %v3914_v51 = vrot.slane %v3541_v48, 5  ;;  %v3930_v30 = vrot.slane %v3541_v48, 6  ;;  %v3898_v54 = vrot.slane %v3541_v48, 4  ;;  %v3946_v31 = vrot.slane %v3541_v48, 7 }
 0x341   : > { %v4346_v20 = vsel %vm528_vm0, %v10098_v9, %v4100_v7 }
 0x342   : > { %v4058_v19 = vsel %vm1153_vm4, %v4050_v18, %v3914_v51  ;;  %v3986_v14 = vsel %vm1153_vm4, %v3978_v52, %v3898_v54 }
 0x343   : > { %v4066_v21 = vsel %vm1163_vm5, %v4058_v19, %v3930_v30  ;;  %v3994_v0 = vsel %vm1163_vm5, %v3986_v14, %v3914_v51  ;;  %v3566_v14 = vld [vmem:[%s11495_s10] sm:$0xff] }
 0x344   : > { %v4274_v22 = vpop.permute.xlu1 %4273  ;;  %v4074_v34 = vsel %vm1173_vm6, %v4066_v21, %v3946_v31  ;;  %v4002_v60 = vsel %vm1173_vm6, %v3994_v0, %v3930_v30  ;;  %v3567_v21 = vld [vmem:[%s11495_s10 + $0x8] sm:$0xff]  ;;  %v3568_v0 = vld [vmem:[%s11495_s10 + $0x10] sm:$0xff] }
 0x345   : > { %v4082_v23 = vsel %vm1183_vm7, %v4074_v34, %v3541_v48  ;;  %v4010_v44 = vsel %vm1183_vm7, %v4002_v60, %v3946_v31  ;;  %v4387_v5 = vsel %vm1782_vm10, %v4379_v4, %v4274_v22 }
 0x346   : > { %4211 = vrot.lane.b32.xlu0 %v4082_v23, %s11669_s23  ;;  %v4235_v36 = vrot.slane %v4010_v44, 1  ;;  %4179 = vrot.lane.b32.xlu1 %v4010_v44, %s11671_s27  ;;  %v3569_v44 = vld [vmem:[%s11495_s10 + $0x18] sm:$0xff]  ;;  %s12048_s23 = smov 40   ;;  %s12049_s27 = smov 24  }
 0x347   : > { %v5779_v12 = vpack.c.bf16 %v3569_v44, %v3568_v0 }
 0x348   : > { %v4298_v47 = vpop.permute.xlu1 %4297  ;;  %v4236_v41 = vsel %vm1183_vm7, %v4235_v36, %v12026_v8 }
 0x349   : > { %v4396_v2 = vsel %vm4395_vm13, %v4387_v5, %v4298_v47  ;;  %v3570_v5 = vld [vmem:[%s11495_s10 + $0x20] sm:$0xff] }
 0x34a   : > { %4251 = vrot.lane.b32.xlu0 %v4236_v41, %s11673_s28  ;;  %v5775_v41 = vpack.c.bf16 %v3567_v21, %v3566_v14  ;;  %s12050_s28 = smov 32  }
 0x34c   : > { %v10147_v42 = vpop.f32.mrb[12].mxu1  ;;  %v4148_v16 = vpop.permute.xlu1 %4147  ;;  %5776 = vmatprep.subr.bf16.mxu1 %v5775_v41 }
 0x34d   : > { %v10150_v58 = vsel %vm1764_vm8, %v4346_v20, %v4148_v16  ;;  %v1941_v26 = vpop.f32.mrb[13].mxu1  ;;  %5778 = vmatpush3.bf16.msra.mxu1 %v5775_v41 }
 0x34e   : > { %5780 = vmatprep.subr.bf16.mxu1 %v5779_v12 }
 0x34f   : > { %v3339_v43 = vpop.f32.mrb[48].mxu0 }
 0x350   : > { %v4322_v57 = vpop.permute.xlu1 %4321  ;;  %v3472_v27 = vmul.f32 %v9675_v13, %v3339_v43  ;;  %v3341_v9 = vpop.f32.mrb[49].mxu0 }
 0x351   : > { %v4404_v59 = vsel %vm1791_vm11, %v4396_v2, %v4322_v57  ;;  %v3571_v2 = vld [vmem:[%s11495_s10 + $0x28] sm:$0xff]  ;;  %5782 = vmatpush3.bf16.msra.mxu1 %v5779_v12 }
 0x352   : > { %5693 = vmatprep.mubr.msk.f32.mxu1 %vm4412_vm14, %v4404_v59  ;;  %v3510_v17 = vadd.f32 %v9690_v6, %v3472_v27 }
 0x354   : > { %v3542_v63 = vmax.f32 %v3510_v17, 0.0 }
 0x356   : > { %v3587_v39 = vrot.slane %v3542_v63, 1  ;;  %v3603_v28 = vrot.slane %v3542_v63, 2  ;;  %v3619_v61 = vrot.slane %v3542_v63, 3  ;;  %v3763_v3 = vrot.slane %v3542_v63, 4 }
 0x358   : > { %v1944_v50 = vpop.f32.mrb[14].mxu1  ;;  %v3344_v40 = vpop.f32.mrb[50].mxu0  ;;  %v3779_v48 = vsel %vm1123_vm1, %v3587_v39, %v3603_v28  ;;  %v3707_v46 = vsel %vm1123_vm1, %v3542_v63, %v3587_v39 }
 0x359   : > { %v3473_v33 = vmul.f32 %v9675_v13, %v3344_v40  ;;  %v1945_v56 = vpop.f32.mrb[15].mxu1  ;;  %v3346_v1 = vpop.f32.mrb[51].mxu0  ;;  %v3787_v30 = vsel %vm1133_vm2, %v3779_v48, %v3619_v61  ;;  %v3715_v19 = vsel %vm1133_vm2, %v3707_v46, %v3603_v28  ;;  %v5783_v50 = vpack.c.bf16 %v3571_v2, %v3570_v5 }
 0x35a   : > { %v3795_v23 = vsel %vm1143_vm3, %v3787_v30, %v3763_v3  ;;  %v3723_v47 = vsel %vm1143_vm3, %v3715_v19, %v3619_v61 }
 0x35b   : > { %v3511_v37 = vadd.f32 %v9690_v6, %v3473_v33  ;;  %5784 = vmatprep.subr.bf16.mxu1 %v5783_v50 }
 0x35c   : > { %v3349_v7 = vpop.f32.mrb[52].mxu0  ;;  %v3399_v51 = vpop.f32.mrb[16].mxu1  ;;  %5786 = vmatpush3.bf16.msra.mxu1 %v5783_v50 }
 0x35d   : > { %v10164_v54 = vmax.f32 %v3511_v37, 0.0  ;;  %v3474_v18 = vmul.f32 %v9675_v13, %v3349_v7  ;;  %v3484_v52 = vmul.f32 %v9675_v13, %v3399_v51  ;;  %v3351_v35 = vpop.f32.mrb[53].mxu0  ;;  %v3401_v31 = vpop.f32.mrb[17].mxu1  ;;  %v10219_v7 = vld [vmem:[%s11493_s8] ss:$0 sm:$0xff] }
 0x35f   : > { %v3512_v22 = vadd.f32 %v9690_v6, %v3474_v18  ;;  %v3522_v34 = vadd.f32 %v9690_v6, %v3484_v52  ;;  %v3659_v60 = vrot.slane %v10164_v54, 5  ;;  %v3643_v10 = vrot.slane %v10164_v54, 4 }
 0x360   : > { %v3354_v36 = vpop.f32.mrb[54].mxu0  ;;  %v3404_v15 = vpop.f32.mrb[18].mxu1  ;;  %v3675_v43 = vrot.slane %v10164_v54, 6  ;;  %v3691_v61 = vrot.slane %v10164_v54, 7 }
 0x361   : > { %v10187_v49 = vmax.f32 %v3512_v22, 0.0  ;;  %v10189_v25 = vmax.f32 %v3522_v34, 0.0  ;;  %v3475_v20 = vmul.f32 %v9675_v13, %v3354_v36  ;;  %v3485_v16 = vmul.f32 %v9675_v13, %v3404_v15  ;;  %v3356_v26 = vpop.f32.mrb[55].mxu0  ;;  %v3406_v4 = vpop.f32.mrb[19].mxu1 }
 0x362   : > { %v3803_v57 = vsel %vm1153_vm4, %v3795_v23, %v3659_v60  ;;  %v3731_v27 = vsel %vm1153_vm4, %v3723_v47, %v3643_v10 }
 0x363   : > { %v3843_v9 = vrot.slane %v10187_v49, 1  ;;  %v3859_v59 = vrot.slane %v10187_v49, 2  ;;  %v3875_v17 = vrot.slane %v10187_v49, 3  ;;  %v11680_v63 = vrot.slane %v10189_v25, 1 }
 0x364   : > { %v3359_v39 = vpop.f32.mrb[56].mxu0  ;;  %v3409_v28 = vpop.f32.mrb[20].mxu1  ;;  %v3513_v33 = vadd.f32 %v9690_v6, %v3475_v20  ;;  %v3523_v56 = vadd.f32 %v9690_v6, %v3485_v16  ;;  %v4019_v37 = vrot.slane %v10187_v49, 4  ;;  %v3811_v30 = vsel %vm1163_vm5, %v3803_v57, %v3675_v43 }
 0x365   : > { %v3963_v40 = vsel %vm1123_vm1, %v10187_v49, %v3843_v9  ;;  %v3476_v1 = vmul.f32 %v9675_v13, %v3359_v39  ;;  %v3361_v48 = vpop.f32.mrb[57].mxu0  ;;  %v3411_v46 = vpop.f32.mrb[21].mxu1  ;;  %v3486_v51 = vmul.f32 %v10219_v7, %v3409_v28  ;;  %v3819_v35 = vsel %vm1173_vm6, %v3811_v30, %v3691_v61 }
 0x366   : > { %v3971_v18 = vsel %vm1133_vm2, %v3963_v40, %v3859_v59  ;;  %v10226_v13 = vmax.f32 %v3513_v33, 0.0  ;;  %v3827_v14 = vsel %vm1183_vm7, %v3819_v35, %v10164_v54  ;;  %v3739_v21 = vsel %vm1163_vm5, %v3731_v27, %v3659_v60 }
 0x367   : > { %v3514_v52 = vadd.f32 %v9690_v6, %v3476_v1  ;;  %v3524_v19 = vadd.f32 %v9690_v6, %v3486_v51  ;;  %v10239_v34 = vsel %vm1123_vm1, %v10189_v25, %v11680_v63  ;;  %v10242_v44 = vmax.f32 %v3523_v56, 0.0  ;;  %4101 = vrot.lane.b32.xlu1 %v3827_v14, %s6560_s26  ;;  %v10277_v51 = vld [vmem:[%s11494_s9] ss:$0 sm:$0xff] }
 0x368   : > { %v3364_v0 = vpop.f32.mrb[58].mxu0  ;;  %v3414_v22 = vpop.f32.mrb[22].mxu1  ;;  %v3899_v60 = vrot.slane %v10226_v13, 4  ;;  %v3747_v10 = vsel %vm1173_vm6, %v3739_v21, %v3675_v43  ;;  %v3979_v47 = vsel %vm1143_vm3, %v3971_v18, %v3875_v17  ;;  %v3915_v41 = vrot.slane %v10226_v13, 5 }
 0x369   : > { %v10244_v36 = vmax.f32 %v3514_v52, 0.0  ;;  %v3366_v6 = vpop.f32.mrb[59].mxu0  ;;  %v3416_v54 = vpop.f32.mrb[23].mxu1  ;;  %v10248_v15 = vmax.f32 %v3524_v19, 0.0  ;;  %v3931_v12 = vrot.slane %v10226_v13, 6  ;;  %v3477_v20 = vmul.f32 %v10219_v7, %v3364_v0 }
 0x36a   : > { %v3487_v16 = vmul.f32 %v10219_v7, %v3414_v22  ;;  %v10266_v40 = vsel %vm1183_vm7, %v3747_v10, %v3691_v61  ;;  %v3947_v18 = vrot.slane %v10226_v13, 7  ;;  %v3987_v52 = vsel %vm1153_vm4, %v3979_v47, %v3899_v60 }
 0x36b   : > { %v3588_v26 = vrot.slane %v10244_v36, 1  ;;  %v3604_v4 = vrot.slane %v10244_v36, 2  ;;  %v3620_v5 = vrot.slane %v10244_v36, 3  ;;  %v3764_v2 = vrot.slane %v10244_v36, 4  ;;  %4275 = vrot.lane.b32.xlu0 %v10266_v40, %s11857_s30 }
 0x36c   : > { %v3369_v43 = vpop.f32.mrb[60].mxu0  ;;  %v3419_v57 = vpop.f32.mrb[24].mxu1  ;;  %v11678_v27 = vrot.slane %v10248_v15, 1  ;;  %v4133_v1 = vrot.slane %v10266_v40, 1  ;;  %v3515_v61 = vadd.f32 %v10277_v51, %v3477_v20  ;;  %v3525_v30 = vadd.f32 %v10277_v51, %v3487_v16 }
 0x36d   : > { %v3371_v50 = vpop.f32.mrb[61].mxu0  ;;  %v3421_v33 = vpop.f32.mrb[25].mxu1  ;;  %v3478_v48 = vmul.f32 %v10219_v7, %v3369_v43  ;;  %v3488_v46 = vmul.f32 %v10219_v7, %v3419_v57  ;;  %v3995_v0 = vsel %vm1163_vm5, %v3987_v52, %v3915_v41  ;;  %v4035_v16 = vsel %vm1123_vm1, %v3843_v9, %v3859_v59 }
 0x36e   : > { %v4134_v35 = vsel %vm1183_vm7, %v4133_v1, %v12026_v8  ;;  %v4003_v54 = vsel %vm1173_vm6, %v3995_v0, %v3931_v12  ;;  %v4043_v33 = vsel %vm1133_vm2, %v4035_v16, %v3875_v17  ;;  %v3708_v1 = vsel %vm1123_vm1, %v10244_v36, %v3588_v26 }
 0x36f   : > { %v3516_v19 = vadd.f32 %v10277_v51, %v3478_v48  ;;  %v3526_v21 = vadd.f32 %v10277_v51, %v3488_v46  ;;  %4149 = vrot.lane.b32.xlu1 %v4134_v35, %s6552_s16  ;;  %4299 = vrot.lane.b32.xlu0 %v3827_v14, %s6559_s20  ;;  %v4011_v50 = vsel %vm1183_vm7, %v4003_v54, %v3947_v18  ;;  %v10320_v59 = vmax.f32 %v3515_v61, 0.0 }
 0x370   : > { %v3374_v22 = vpop.f32.mrb[62].mxu0  ;;  %v3424_v6 = vpop.f32.mrb[26].mxu1  ;;  %v10318_v9 = vsel %vm1123_vm1, %v10248_v15, %v11678_v27  ;;  %v4237_v14 = vrot.slane %v4011_v50, 1  ;;  %v10322_v48 = vmax.f32 %v3525_v30, 0.0 }
 0x371   : > { %v3479_v60 = vmul.f32 %v10219_v7, %v3374_v22  ;;  %v3489_v10 = vmul.f32 %v10219_v7, %v3424_v6  ;;  %v3376_v47 = vpop.f32.mrb[63].mxu0  ;;  %v3426_v20 = vpop.f32.mrb[27].mxu1  ;;  %v10302_v43 = vmax.f32 %v3516_v19, 0.0  ;;  %v10304_v57 = vmax.f32 %v3526_v21, 0.0 }
 0x372   : > { %v4051_v21 = vsel %vm1143_vm3, %v4043_v33, %v4019_v37  ;;  %v4238_v37 = vsel %vm1183_vm7, %v4237_v14, %v12026_v8  ;;  %v3676_v49 = vrot.slane %v10320_v59, 6 }
 0x373   : > { %v3844_v46 = vrot.slane %v10302_v43, 1  ;;  %v3517_v17 = vadd.f32 %v10277_v51, %v3479_v60  ;;  %v3860_v0 = vrot.slane %v10302_v43, 2  ;;  %v3876_v22 = vrot.slane %v10302_v43, 3  ;;  %4323 = vrot.lane.b32.xlu1 %v4134_v35, %s12047_s17  ;;  %4253 = vrot.lane.b32.xlu0 %v4238_v37, %s12048_s23 }
 0x374   : > { %v3379_v52 = vpop.f32.mrb[64].mxu0  ;;  %v3429_v19 = vpop.f32.mrb[28].mxu1  ;;  %v4020_v61 = vrot.slane %v10302_v43, 4  ;;  %v3527_v30 = vadd.f32 %v10277_v51, %v3489_v10  ;;  %v11677_v60 = vrot.slane %v10304_v57, 1  ;;  %v4059_v10 = vsel %vm1153_vm4, %v4051_v21, %v3915_v41 }
 0x375   : > { %v3381_v6 = vpop.f32.mrb[65].mxu0  ;;  %v3431_v54 = vpop.f32.mrb[29].mxu1  ;;  %v3480_v16 = vmul.f32 %v10219_v7, %v3379_v52  ;;  %v3490_v35 = vmul.f32 %v10219_v7, %v3429_v19  ;;  %v10350_v33 = vsel %vm1123_vm1, %v10302_v43, %v3844_v46  ;;  %v4067_v14 = vsel %vm1163_vm5, %v4059_v10, %v3931_v12 }
 0x376   : > { %v10352_v6 = vmax.f32 %v3517_v17, 0.0  ;;  %v3660_v52 = vrot.slane %v10320_v59, 5  ;;  %v4075_v37 = vsel %vm1173_vm6, %v4067_v14, %v3947_v18  ;;  %v3780_v17 = vsel %vm1123_vm1, %v3588_v26, %v3604_v4 }
 0x377   : > { %4181 = vrot.lane.b32.xlu1 %v4011_v50, %s12049_s27  ;;  %v3518_v41 = vadd.f32 %v10277_v51, %v3480_v16  ;;  %v3528_v21 = vadd.f32 %v10277_v51, %v3490_v35  ;;  %v4083_v10 = vsel %vm1183_vm7, %v4075_v37, %v10226_v13  ;;  %v3788_v50 = vsel %vm1133_vm2, %v3780_v17, %v3620_v5 }
 0x378   : > { %v3384_v54 = vpop.f32.mrb[66].mxu0  ;;  %v3434_v19 = vpop.f32.mrb[30].mxu1  ;;  %v3796_v26 = vsel %vm1143_vm3, %v3788_v50, %v3764_v2  ;;  %v10386_v13 = vsel %vm1123_vm1, %v10304_v57, %v11677_v60  ;;  %v3644_v17 = vrot.slane %v10320_v59, 4 }
 0x379   : > { %v3386_v20 = vpop.f32.mrb[67].mxu0  ;;  %v3436_v12 = vpop.f32.mrb[31].mxu1  ;;  %v3481_v16 = vmul.f32 %v10219_v7, %v3384_v54  ;;  %v3491_v35 = vmul.f32 %v10219_v7, %v3434_v19  ;;  %v10374_v18 = vmax.f32 %v3518_v41, 0.0  ;;  %v10376_v14 = vmax.f32 %v3528_v21, 0.0 }
 0x37a   : > { %v10388_v20 = vmax.f32 %v3527_v30, 0.0  ;;  %v3692_v54 = vrot.slane %v10320_v59, 7  ;;  %v3804_v19 = vsel %vm1153_vm4, %v3796_v26, %v3660_v52  ;;  %v3716_v12 = vsel %vm1133_vm2, %v3708_v1, %v3604_v4 }
 0x37b   : > { %4213 = vrot.lane.b32.xlu1 %v4083_v10, %s12050_s28  ;;  %v3519_v37 = vadd.f32 %v10277_v51, %v3481_v16  ;;  %v3529_v2 = vadd.f32 %v10277_v51, %v3491_v35  ;;  %v3589_v60 = vrot.slane %v10374_v18, 1  ;;  %v3605_v26 = vrot.slane %v10374_v18, 2 }
 0x37c   : > { %v3389_v41 = vpop.f32.mrb[68].mxu0  ;;  %v3439_v21 = vpop.f32.mrb[32].mxu1  ;;  %v3621_v47 = vrot.slane %v10374_v18, 3  ;;  %v11679_v16 = vrot.slane %v10376_v14, 1  ;;  %v3812_v27 = vsel %vm1163_vm5, %v3804_v19, %v3676_v49  ;;  %v3900_v19 = vrot.slane %v10352_v6, 4 }
 0x37d   : > { %v3391_v30 = vpop.f32.mrb[69].mxu0  ;;  %v3441_v50 = vpop.f32.mrb[33].mxu1  ;;  %v3820_v1 = vsel %vm1173_vm6, %v3812_v27, %v3692_v54  ;;  %v3492_v56 = vmul.f32 %v10219_v7, %v3439_v21  ;;  %v10422_v36 = vsel %vm1123_vm1, %v10374_v18, %v3589_v60 }
 0x37e   : > { %v3724_v30 = vsel %vm1143_vm3, %v3716_v12, %v3620_v5  ;;  %v3482_v50 = vmul.f32 %v10219_v7, %v3389_v41  ;;  %v3828_v23 = vsel %vm1183_vm7, %v3820_v1, %v10320_v59  ;;  %v10425_v5 = vmax.f32 %v3519_v37, 0.0 }
 0x37f   : > { %v3732_v35 = vsel %vm1153_vm4, %v3724_v30, %v3644_v17  ;;  %4103 = vrot.lane.b32.xlu0 %v3828_v23, %s6560_s26  ;;  %v3530_v21 = vadd.f32 %v10277_v51, %v3492_v56  ;;  %v3972_v17 = vsel %vm1133_vm2, %v10350_v33, %v3860_v0  ;;  %v10456_v30 = vsel %vm1123_vm1, %v10376_v14, %v11679_v16 }
 0x380   : > { %v3394_v28 = vpop.f32.mrb[70].mxu0  ;;  %v3444_v39 = vpop.f32.mrb[34].mxu1  ;;  %v3740_v27 = vsel %vm1163_vm5, %v3732_v35, %v3660_v52  ;;  %v3520_v59 = vadd.f32 %v10277_v51, %v3482_v50  ;;  %v3980_v52 = vsel %vm1143_vm3, %v3972_v17, %v3876_v22 }
 0x381   : > { %v3396_v4 = vpop.f32.mrb[71].mxu0  ;;  %v3446_v31 = vpop.f32.mrb[35].mxu1  ;;  %v3748_v41 = vsel %vm1173_vm6, %v3740_v27, %v3676_v49  ;;  %v3483_v49 = vmul.f32 %v10219_v7, %v3394_v28  ;;  %v3988_v33 = vsel %vm1153_vm4, %v3980_v52, %v3900_v19  ;;  %v10458_v28 = vmax.f32 %v3529_v2, 0.0 }
 0x382   : > { %v3916_v31 = vrot.slane %v10352_v6, 5  ;;  %v10437_v12 = vsel %vm1183_vm7, %v3748_v41, %v3692_v54  ;;  %v10439_v37 = vmax.f32 %v3520_v59, 0.0  ;;  %v10448_v4 = vmax.f32 %v3530_v21, 0.0 }
 0x383   : > { %4277 = vrot.lane.b32.xlu1 %v10437_v12, %s11857_s30  ;;  %v4135_v56 = vrot.slane %v10437_v12, 1  ;;  %v3493_v54 = vmul.f32 %v10219_v7, %v3444_v39  ;;  %v3932_v27 = vrot.slane %v10352_v6, 6  ;;  %v3948_v41 = vrot.slane %v10352_v6, 7 }
 0x384   : > { %v3449_v35 = vpop.f32.mrb[36].mxu1  ;;  %v11681_v50 = vrot.slane %v10439_v37, 1  ;;  %v3861_v19 = vrot.slane %v10439_v37, 2  ;;  %v3592_v21 = vrot.slane %v10448_v4, 1  ;;  %v3996_v17 = vsel %vm1163_vm5, %v3988_v33, %v3916_v31 }
 0x385   : > { %v3451_v1 = vpop.f32.mrb[37].mxu1  ;;  %v4136_v59 = vsel %vm1183_vm7, %v4135_v56, %v12026_v8  ;;  %v3521_v52 = vadd.f32 %v10277_v51, %v3483_v49  ;;  %v3608_v16 = vrot.slane %v10448_v4, 2  ;;  %v4004_v39 = vsel %vm1173_vm6, %v3996_v17, %v3932_v27 }
 0x386   : > { %4151 = vrot.lane.b32.xlu0 %v4136_v59, %s6552_s16  ;;  %v3965_v2 = vsel %vm1123_vm1, %v10439_v37, %v11681_v50  ;;  %v4021_v1 = vrot.slane %v10439_v37, 4  ;;  %v3531_v63 = vadd.f32 %v10277_v51, %v3493_v54  ;;  %v3624_v50 = vrot.slane %v10448_v4, 3 }
 0x387   : > { %4301 = vrot.lane.b32.xlu1 %v3828_v23, %s6559_s20  ;;  %v4012_v10 = vsel %vm1183_vm7, %v4004_v39, %v3948_v41  ;;  %v3494_v33 = vmul.f32 %v10219_v7, %v3449_v35  ;;  %v4036_v49 = vsel %vm1123_vm1, %v3844_v46, %v3860_v0  ;;  %v3973_v23 = vsel %vm1133_vm2, %v3965_v2, %v3861_v19 }
 0x388   : > { %v3454_v56 = vpop.f32.mrb[38].mxu1  ;;  %v4239_v54 = vrot.slane %v4012_v10, 1  ;;  %v10499_v35 = vsel %vm1123_vm1, %v10448_v4, %v3592_v21  ;;  %v10502_v46 = vmax.f32 %v3521_v52, 0.0  ;;  %v10504_v0 = vmax.f32 %v3531_v63, 0.0 }
 0x389   : > { %v3456_v3 = vpop.f32.mrb[39].mxu1  ;;  %v3532_v39 = vadd.f32 %v10277_v51, %v3494_v33  ;;  %v3677_v17 = vrot.slane %v10425_v5, 6  ;;  %v3495_v52 = vmul.f32 %v10219_v7, %v3454_v56  ;;  %v3645_v33 = vrot.slane %v10425_v5, 4 }
 0x38a   : > { %v4044_v3 = vsel %vm1133_vm2, %v4036_v49, %v3876_v22  ;;  %4183 = vrot.lane.b32.xlu0 %v4012_v10, %s12049_s27  ;;  %v4240_v2 = vsel %vm1183_vm7, %v4239_v54, %v12026_v8  ;;  %v3661_v49 = vrot.slane %v10425_v5, 5  ;;  %v3901_v54 = vrot.slane %v10502_v46, 4 }
 0x38b   : > { %4325 = vrot.lane.b32.xlu1 %v4136_v59, %s12047_s17  ;;  %v4052_v22 = vsel %vm1143_vm3, %v4044_v3, %v4020_v61  ;;  %v10515_v10 = vmax.f32 %v3532_v39, 0.0  ;;  %v3781_v59 = vsel %vm1123_vm1, %v3589_v60, %v3605_v26  ;;  %v12051_v3 = vrot.slane %v10374_v18, 4 }
 0x38c   : > { %v4060_v63 = vsel %vm1153_vm4, %v4052_v22, %v3916_v31  ;;  %v3789_v61 = vsel %vm1133_vm2, %v3781_v59, %v3621_v47  ;;  %v3717_v31 = vsel %vm1133_vm2, %v10422_v36, %v3605_v26  ;;  %v3533_v22 = vadd.f32 %v10277_v51, %v3495_v52 }
 0x38d   : > { %v4068_v43 = vsel %vm1163_vm5, %v4060_v63, %v3932_v27  ;;  %v11682_v60 = vrot.slane %v10515_v10, 1  ;;  %v3864_v7 = vrot.slane %v10515_v10, 2  ;;  %v3693_v27 = vrot.slane %v10425_v5, 7 }
 0x38e   : > { %4255 = vrot.lane.b32.xlu0 %v4240_v2, %s12048_s23  ;;  %v4076_v56 = vsel %vm1173_vm6, %v4068_v43, %v3948_v41  ;;  %v3797_v39 = vsel %vm1143_vm3, %v3789_v61, %v12051_v3  ;;  %v3725_v26 = vsel %vm1143_vm3, %v3717_v31, %v3621_v47  ;;  %v3917_v59 = vrot.slane %v10502_v46, 5 }
 0x38f   : > { %v3968_v36 = vsel %vm1123_vm1, %v10515_v10, %v11682_v60  ;;  %v4084_v2 = vsel %vm1183_vm7, %v4076_v56, %v10352_v6  ;;  %v3805_v41 = vsel %vm1153_vm4, %v3797_v39, %v3661_v49  ;;  %v3733_v63 = vsel %vm1153_vm4, %v3725_v26, %v3645_v33 }
 0x390   : > { %4215 = vrot.lane.b32.xlu1 %v4084_v2, %s12050_s28  ;;  %v3813_v51 = vsel %vm1163_vm5, %v3805_v41, %v3677_v17  ;;  %v10557_v18 = vmax.f32 %v3533_v22, 0.0  ;;  %v3741_v47 = vsel %vm1163_vm5, %v3733_v63, %v3661_v49  ;;  %v3933_v52 = vrot.slane %v10502_v46, 6 }
 0x391   : > { %v3880_v43 = vrot.slane %v10515_v10, 3  ;;  %v3821_v6 = vsel %vm1173_vm6, %v3813_v51, %v3693_v27  ;;  %v3749_v61 = vsel %vm1173_vm6, %v3741_v47, %v3677_v17  ;;  %v10567_v33 = vsel %vm1133_vm2, %v3968_v36, %v3864_v7 }
 0x392   : > { %v3829_v56 = vsel %vm1183_vm7, %v3821_v6, %v10425_v5  ;;  %v3662_v49 = vrot.slane %v10242_v44, 5  ;;  %v10575_v3 = vsel %vm1183_vm7, %v3749_v61, %v3693_v27  ;;  %v3678_v39 = vrot.slane %v10242_v44, 6 }
 0x393   : > { %4105 = vrot.lane.b32.xlu0 %v3829_v56, %s6560_s26  ;;  %v12052_v17 = vrot.slane %v10189_v25, 2  ;;  %v12053_v22 = vrot.slane %v10189_v25, 1  ;;  %v3646_v36 = vrot.slane %v10242_v44, 4  ;;  %v3904_v2 = vrot.slane %v10557_v18, 4 }
 0x394   : > { %v4137_v5 = vrot.slane %v10575_v3, 1  ;;  %v12054_v41 = vrot.slane %v10189_v25, 3  ;;  %v3694_v47 = vrot.slane %v10242_v44, 7  ;;  %v12056_v6 = vrot.slane %v10189_v25, 4 }
 0x395   : > { %v3782_v26 = vsel %vm1123_vm1, %v12053_v22, %v12052_v17  ;;  %v12055_v27 = vmov %v12052_v17  ;;  %v12058_v31 = vrot.slane %v10439_v37, 3 }
 0x396   : > { %v3790_v63 = vsel %vm1133_vm2, %v3782_v26, %v12054_v41  ;;  %v3718_v51 = vsel %vm1133_vm2, %v10239_v34, %v12055_v27  ;;  %v12057_v17 = vmov %v12054_v41  ;;  %v4138_v26 = vsel %vm1183_vm7, %v4137_v5, %v12026_v8 }
 0x397   : > { %v3798_v61 = vsel %vm1143_vm3, %v3790_v63, %v12056_v6  ;;  %v3726_v22 = vsel %vm1143_vm3, %v3718_v51, %v12057_v17  ;;  %v3981_v60 = vsel %vm1143_vm3, %v3973_v23, %v12058_v31  ;;  %4279 = vrot.lane.b32.xlu0 %v10575_v3, %s11857_s30  ;;  %4153 = vrot.lane.b32.xlu1 %v4138_v26, %s6552_s16  ;;  %v3949_v23 = vrot.slane %v10502_v46, 7 }
 0x398   : > { %v3806_v41 = vsel %vm1153_vm4, %v3798_v61, %v3662_v49  ;;  %v3734_v34 = vsel %vm1153_vm4, %v3726_v22, %v3646_v36  ;;  %v3989_v27 = vsel %vm1153_vm4, %v3981_v60, %v3901_v54  ;;  %v3902_v54 = vrot.slane %v10322_v48, 4 }
 0x399   : > { %v3814_v25 = vsel %vm1163_vm5, %v3806_v41, %v3678_v39  ;;  %v3742_v63 = vsel %vm1163_vm5, %v3734_v34, %v3662_v49  ;;  %v3997_v31 = vsel %vm1163_vm5, %v3989_v27, %v3917_v59  ;;  %v3918_v61 = vrot.slane %v10322_v48, 5 }
 0x39a   : > { %v3822_v5 = vsel %vm1173_vm6, %v3814_v25, %v3694_v47  ;;  %v3750_v51 = vsel %vm1173_vm6, %v3742_v63, %v3678_v39  ;;  %v4005_v36 = vsel %vm1173_vm6, %v3997_v31, %v3933_v52  ;;  %v12059_v39 = vrot.slane %v10248_v15, 2 }
 0x39b   : > { %v3830_v60 = vsel %vm1183_vm7, %v3822_v5, %v10242_v44  ;;  %v10622_v6 = vsel %vm1183_vm7, %v3750_v51, %v3694_v47  ;;  %v10625_v49 = vsel %vm1183_vm7, %v4005_v36, %v3949_v23  ;;  %v12060_v44 = vrot.slane %v10439_v37, 1  ;;  %4303 = vrot.lane.b32.xlu0 %v3829_v56, %s6559_s20  ;;  %4327 = vrot.lane.b32.xlu1 %v4138_v26, %s12047_s17 }
 0x39c   : > { %v4139_v17 = vrot.slane %v10622_v6, 1  ;;  %v4241_v22 = vrot.slane %v10625_v49, 1  ;;  %v3974_v41 = vsel %vm1133_vm2, %v10318_v9, %v12059_v39  ;;  %v3934_v34 = vrot.slane %v10322_v48, 6 }
 0x39d   : > { %v4037_v47 = vsel %vm1123_vm1, %v12060_v44, %v3861_v19  ;;  %v12061_v27 = vrot.slane %v10248_v15, 3  ;;  %v12062_v63 = vrot.slane %v10439_v37, 3  ;;  %v12063_v31 = vmov %v12059_v39 }
 0x39e   : > { %v12064_v5 = vrot.slane %v10248_v15, 1  ;;  %v3950_v56 = vrot.slane %v10322_v48, 7  ;;  %v3663_v36 = vrot.slane %v10388_v20, 5  ;;  %v4140_v39 = vsel %vm1183_vm7, %v4139_v17, %v12026_v8 }
 0x39f   : > { %v3982_v25 = vsel %vm1143_vm3, %v3974_v41, %v12061_v27  ;;  %v4045_v9 = vsel %vm1133_vm2, %v4037_v47, %v12062_v63  ;;  %v12065_v47 = vmov %v12061_v27  ;;  %4107 = vrot.lane.b32.xlu0 %v3830_v60, %s6560_s26  ;;  %4281 = vrot.lane.b32.xlu1 %v10622_v6, %s11857_s30 }
 0x3a0   : > { %v4038_v19 = vsel %vm1123_vm1, %v12064_v5, %v12063_v31  ;;  %v3990_v26 = vsel %vm1153_vm4, %v3982_v25, %v3902_v54  ;;  %v4053_v51 = vsel %vm1143_vm3, %v4045_v9, %v4021_v1  ;;  %v4242_v54 = vsel %vm1183_vm7, %v4241_v22, %v12026_v8 }
 0x3a1   : > { %v3998_v41 = vsel %vm1163_vm5, %v3990_v26, %v3918_v61  ;;  %v4061_v44 = vsel %vm1153_vm4, %v4053_v51, %v3917_v59  ;;  %v4046_v27 = vsel %vm1133_vm2, %v4038_v19, %v12065_v47  ;;  %v12066_v25 = vrot.slane %v10248_v15, 4 }
 0x3a2   : > { %v4006_v37 = vsel %vm1173_vm6, %v3998_v41, %v3934_v34  ;;  %v4069_v1 = vsel %vm1163_vm5, %v4061_v44, %v3933_v52  ;;  %v3647_v22 = vrot.slane %v10388_v20, 4  ;;  %v3679_v31 = vrot.slane %v10388_v20, 6 }
 0x3a3   : > { %v4054_v63 = vsel %vm1143_vm3, %v4046_v27, %v12066_v25  ;;  %v4014_v59 = vsel %vm1183_vm7, %v4006_v37, %v3950_v56  ;;  %v4077_v17 = vsel %vm1173_vm6, %v4069_v1, %v3949_v23  ;;  %v12067_v5 = vrot.slane %v10304_v57, 2  ;;  %4305 = vrot.lane.b32.xlu1 %v3830_v60, %s6559_s20  ;;  %4155 = vrot.lane.b32.xlu0 %v4140_v39, %s6552_s16 }
 0x3a4   : > { %v4062_v9 = vsel %vm1153_vm4, %v4054_v63, %v3918_v61  ;;  %v10682_v52 = vsel %vm1183_vm7, %v4077_v17, %v10502_v46  ;;  %v12068_v19 = vrot.slane %v10304_v57, 1  ;;  %v3695_v61 = vrot.slane %v10388_v20, 7 }
 0x3a5   : > { %v4070_v15 = vsel %vm1163_vm5, %v4062_v9, %v3934_v34  ;;  %v12069_v51 = vrot.slane %v10304_v57, 3  ;;  %v12070_v46 = vmov %v12067_v5  ;;  %v12071_v47 = vrot.slane %v10304_v57, 4 }
 0x3a6   : > { %v3783_v26 = vsel %vm1123_vm1, %v12068_v19, %v12067_v5  ;;  %v4078_v23 = vsel %vm1173_vm6, %v4070_v15, %v3950_v56  ;;  %v3719_v34 = vsel %vm1133_vm2, %v10386_v13, %v12070_v46  ;;  %v3903_v1 = vrot.slane %v10458_v28, 4 }
 0x3a7   : > { %v3791_v41 = vsel %vm1133_vm2, %v3783_v26, %v12069_v51  ;;  %v10702_v44 = vsel %vm1183_vm7, %v4078_v23, %v10322_v48  ;;  %v12072_v56 = vmov %v12069_v51  ;;  %v4243_v25 = vrot.slane %v4014_v59, 1  ;;  %4329 = vrot.lane.b32.xlu1 %v4140_v39, %s12047_s17  ;;  %4257 = vrot.lane.b32.xlu0 %v4242_v54, %s12048_s23 }
 0x3a8   : > { %v3799_v27 = vsel %vm1143_vm3, %v3791_v41, %v12071_v47  ;;  %v3727_v37 = vsel %vm1143_vm3, %v3719_v34, %v12072_v56  ;;  %v3919_v63 = vrot.slane %v10458_v28, 5  ;;  %v3935_v57 = vrot.slane %v10458_v28, 6 }
 0x3a9   : > { %v3807_v13 = vsel %vm1153_vm4, %v3799_v27, %v3663_v36  ;;  %v3735_v48 = vsel %vm1153_vm4, %v3727_v37, %v3647_v22  ;;  %v12073_v15 = vrot.slane %v10376_v14, 2  ;;  %v12074_v26 = vrot.slane %v10376_v14, 3 }
 0x3aa   : > { %v3815_v17 = vsel %vm1163_vm5, %v3807_v13, %v3679_v31  ;;  %v3743_v9 = vsel %vm1163_vm5, %v3735_v48, %v3663_v36  ;;  %v12076_v51 = vrot.slane %v10376_v14, 1  ;;  %v3920_v47 = vrot.slane %v10557_v18, 5 }
 0x3ab   : > { %v3975_v60 = vsel %vm1133_vm2, %v10456_v30, %v12073_v15  ;;  %v3823_v5 = vsel %vm1173_vm6, %v3815_v17, %v3695_v61  ;;  %v3751_v19 = vsel %vm1173_vm6, %v3743_v9, %v3679_v31  ;;  %v12075_v23 = vmov %v12073_v15  ;;  %4185 = vrot.lane.b32.xlu1 %v10625_v49, %s12049_s27 }
 0x3ac   : > { %v3983_v22 = vsel %vm1143_vm3, %v3975_v60, %v12074_v26  ;;  %v4039_v36 = vsel %vm1123_vm1, %v12076_v51, %v12075_v23  ;;  %v10735_v41 = vsel %vm1183_vm7, %v3823_v5, %v10388_v20  ;;  %v10738_v30 = vsel %vm1183_vm7, %v3751_v19, %v3695_v61  ;;  %4187 = vrot.lane.b32.xlu0 %v4014_v59, %s12049_s27 }
 0x3ad   : > { %v3991_v46 = vsel %vm1153_vm4, %v3983_v22, %v3903_v1  ;;  %v12077_v31 = vmov %v12074_v26  ;;  %v3951_v27 = vrot.slane %v10458_v28, 7  ;;  %v12078_v56 = vrot.slane %v10376_v14, 4 }
 0x3ae   : > { %v4047_v34 = vsel %vm1133_vm2, %v4039_v36, %v12077_v31  ;;  %v3999_v20 = vsel %vm1163_vm5, %v3991_v46, %v3919_v63  ;;  %v3936_v37 = vrot.slane %v10557_v18, 6  ;;  %v3664_v48 = vrot.slane %v10504_v0, 5 }
 0x3af   : > { %v4055_v61 = vsel %vm1143_vm3, %v4047_v34, %v12078_v56  ;;  %v4007_v1 = vsel %vm1173_vm6, %v3999_v20, %v3935_v57  ;;  %v3680_v17 = vrot.slane %v10504_v0, 6  ;;  %v3784_v14 = vsel %vm1123_vm1, %v3592_v21, %v3608_v16  ;;  %4217 = vrot.lane.b32.xlu1 %v10682_v52, %s12050_s28 }
 0x3b0   : > { %v4063_v13 = vsel %vm1153_vm4, %v4055_v61, %v3919_v63  ;;  %v10757_v39 = vsel %vm1183_vm7, %v4007_v1, %v3951_v27  ;;  %v4244_v9 = vsel %vm1183_vm7, %v4243_v25, %v12026_v8  ;;  %v3792_v15 = vsel %vm1133_vm2, %v3784_v14, %v3624_v50 }
 0x3b1   : > { %v4071_v54 = vsel %vm1163_vm5, %v4063_v13, %v3935_v57  ;;  %v3648_v60 = vrot.slane %v10504_v0, 4  ;;  %v3696_v21 = vrot.slane %v10504_v0, 7  ;;  %v12079_v25 = vrot.slane %v10448_v4, 4  ;;  %4259 = vrot.lane.b32.xlu0 %v4244_v9, %s12048_s23  ;;  %v3574_v13 = vld [vmem:[%s11495_s10 + $0x40] sm:$0xff] }
 0x3b2   : > { %v4079_v63 = vsel %vm1173_vm6, %v4071_v54, %v3951_v27  ;;  %v3720_v19 = vsel %vm1133_vm2, %v10499_v35, %v3608_v16  ;;  %v3952_v59 = vrot.slane %v10557_v18, 7  ;;  %v12080_v4 = vrot.slane %v10515_v10, 1  ;;  %v3572_v35 = vld [vmem:[%s11495_s10 + $0x30] sm:$0xff] }
 0x3b3   : > { %v4087_v57 = vsel %vm1183_vm7, %v4079_v63, %v10458_v28  ;;  %v3800_v5 = vsel %vm1143_vm3, %v3792_v15, %v12079_v25  ;;  %v3728_v49 = vsel %vm1143_vm3, %v3720_v19, %v3624_v50  ;;  %v3984_v28 = vsel %vm1143_vm3, %v10567_v33, %v3880_v43  ;;  %v3573_v33 = vld [vmem:[%s11495_s10 + $0x38] sm:$0xff]  ;;  %4219 = vrot.lane.b32.xlu1 %v10702_v44, %s12050_s28 }
 0x3b4   : > { %v3808_v26 = vsel %vm1153_vm4, %v3800_v5, %v3664_v48  ;;  %v3736_v23 = vsel %vm1153_vm4, %v3728_v49, %v3648_v60  ;;  %v3992_v16 = vsel %vm1153_vm4, %v3984_v28, %v3904_v2  ;;  %v4040_v50 = vsel %vm1123_vm1, %v12080_v4, %v3864_v7  ;;  %v10865_v60 = vld [vmem:[%s6661_s25 + $0x38] sm:$0xff] }
 0x3b5   : > { %v3816_v22 = vsel %vm1163_vm5, %v3808_v26, %v3680_v17  ;;  %v3744_v36 = vsel %vm1163_vm5, %v3736_v23, %v3664_v48  ;;  %v4000_v2 = vsel %vm1163_vm5, %v3992_v16, %v3920_v47  ;;  %v4048_v46 = vsel %vm1133_vm2, %v4040_v50, %v3880_v43  ;;  %4109 = vrot.lane.b32.xlu0 %v10735_v41, %s6560_s26  ;;  %v6516_v48 = vld [vmem:[%s6661_s25 + $0x30] sm:$0xff]  ;;  %v10872_v26 = vld [vmem:[%s6661_s25 + $0x40] sm:$0xff]  ;;  %v12083_v50 = vld [vmem:[#allocation5_spill] sm:$0xff] }
 0x3b6   : > { %v3824_v51 = vsel %vm1173_vm6, %v3816_v22, %v3696_v21  ;;  %v3752_v31 = vsel %vm1173_vm6, %v3744_v36, %v3680_v17  ;;  %v4008_v34 = vsel %vm1173_vm6, %v4000_v2, %v3936_v37  ;;  %v12081_v43 = vrot.slane %v10515_v10, 4  ;;  %v10882_v23 = vld [vmem:[%s6661_s25 + $0x50] sm:$0xff] }
 0x3b7   : > { %v10822_v7 = vsel %vm1183_vm7, %v3824_v51, %v10504_v0  ;;  %v10827_v27 = vsel %vm1183_vm7, %v3752_v31, %v3696_v21  ;;  %v10830_v20 = vsel %vm1183_vm7, %v4008_v34, %v3952_v59  ;;  %v5787_v56 = vpack.c.bf16 %v3573_v33, %v3572_v35  ;;  %v10900_v31 = vld [vmem:[%s6661_s25 + $0x60] sm:$0xff] }
 0x3b8   : > { %v4056_v52 = vsel %vm1143_vm3, %v4048_v46, %v12081_v43  ;;  %v4141_v0 = vrot.slane %v10738_v30, 1  ;;  %v4815_v54 = vrot.slane %v6516_v48, 1  ;;  %v4829_v17 = vrot.slane %v6516_v48, 2 }
 0x3b9   : > { %v4064_v61 = vsel %vm1153_vm4, %v4056_v52, %v3920_v47  ;;  %5788 = vmatprep.subr.bf16.mxu1 %v5787_v56  ;;  %4283 = vrot.lane.b32.xlu0 %v10738_v30, %s11857_s30  ;;  %v12082_v14 = vmov 0.0|0.0   ;;  %v4962_v15 = vrot.slane %v6516_v48, 4  ;;  %v4857_v21 = vrot.slane %v10865_v60, 4 }
 0x3ba   : > { %v4072_v1 = vsel %vm1163_vm5, %v4064_v61, %v3936_v37  ;;  %5790 = vmatpush3.bf16.msra.mxu1 %v5787_v56  ;;  %v4142_v37 = vsel %vm1183_vm7, %v4141_v0, %v12026_v8  ;;  %v4913_v44 = vsel %vm1123_vm1, %v6516_v48, %v4815_v54  ;;  %v4976_v63 = vsel %vm1123_vm1, %v4815_v54, %v4829_v17 }
 0x3bb   : > { %v4080_v10 = vsel %vm1173_vm6, %v4072_v1, %v3952_v59  ;;  %5691 = vmatprep.subr.mxu1 %v3574_v13  ;;  %4157 = vrot.lane.b32.xlu1 %v4142_v37, %s6552_s16  ;;  %v4920_v9 = vsel %vm1133_vm2, %v4913_v44, %v4829_v17  ;;  %v4245_v19 = vrot.slane %v10757_v39, 1  ;;  %v4576_v49 = vrot.slane %v10872_v26, 1 }
 0x3bc   : > { %v10849_v47 = vsel %vm1183_vm7, %v4080_v10, %v10557_v18  ;;  %v4843_v18 = vrot.slane %v6516_v48, 3  ;;  %v4871_v59 = vrot.slane %v10865_v60, 5  ;;  %v4592_v22 = vrot.slane %v10872_v26, 2  ;;  %v10915_v48 = vld [vmem:[%s6661_s25 + $0x48] sm:$0xff] }
 0x3bd   : > { %4307 = vrot.lane.b32.xlu0 %v10735_v41, %s6559_s20  ;;  %v4246_v16 = vsel %vm1183_vm7, %v4245_v19, %v12026_v8  ;;  %v4247_v4 = vrot.slane %v10830_v20, 1  ;;  %v4885_v33 = vrot.slane %v10865_v60, 6  ;;  %v4688_v51 = vsel %vm1123_vm1, %v10872_v26, %v4576_v49 }
 0x3be   : > { %5692 = vmatpush3.msra.mxu1 %v3574_v13  ;;  %v4927_v25 = vsel %vm1143_vm3, %v4920_v9, %v4843_v18  ;;  %v4983_v5 = vsel %vm1133_vm2, %v4976_v63, %v4843_v18  ;;  %v4899_v2 = vrot.slane %v10865_v60, 7  ;;  %v4816_v46 = vrot.slane %v10882_v23, 1  ;;  %v10929_v63 = vld [vmem:[%s6661_s25 + $0x70] sm:$0xff] }
 0x3bf   : > { %5791 = vmatprep.subr.bf16.mxu1 %v12082_v14  ;;  %4189 = vrot.lane.b32.xlu1 %v10757_v39, %s12049_s27  ;;  %v4990_v41 = vsel %vm1143_vm3, %v4983_v5, %v4962_v15  ;;  %v4934_v28 = vsel %vm1153_vm4, %v4927_v25, %v4857_v21  ;;  %v4830_v39 = vrot.slane %v10882_v23, 2  ;;  %v4577_v34 = vrot.slane %v10900_v31, 1 }
 0x3c0   : > { %v4941_v43 = vsel %vm1163_vm5, %v4934_v28, %v4871_v59  ;;  %v10905_v52 = vsel %vm1153_vm4, %v4990_v41, %v4871_v59  ;;  %v4608_v56 = vrot.slane %v10872_v26, 3  ;;  %v4844_v61 = vrot.slane %v10882_v23, 3  ;;  %v10938_v41 = vld [vmem:[%s6661_s25 + $0x58] sm:$0xff] }
 0x3c1   : > { %4331 = vrot.lane.b32.xlu0 %v4142_v37, %s12047_s17  ;;  %v4696_v0 = vsel %vm1133_vm2, %v4688_v51, %v4592_v22  ;;  %v4744_v1 = vrot.slane %v10872_v26, 4  ;;  %v4977_v13 = vsel %vm1123_vm1, %v4816_v46, %v4830_v39  ;;  %v4248_v10 = vsel %vm1183_vm7, %v4247_v4, %v12026_v8 }
 0x3c2   : > { %v4624_v54 = vrot.slane %v10915_v48, 4  ;;  %v4640_v37 = vrot.slane %v10915_v48, 5  ;;  %v4963_v17 = vrot.slane %v10882_v23, 4  ;;  %v4593_v44 = vrot.slane %v10900_v31, 2 }
 0x3c3   : > { %4221 = vrot.lane.b32.xlu1 %v4087_v57, %s12050_s28  ;;  %v12084_v57 = vld [vmem:[#allocation4_spill] sm:$0xff]  ;;  %v4914_v18 = vsel %vm1123_vm1, %v10882_v23, %v4816_v46  ;;  %v4689_v9 = vsel %vm1123_vm1, %v10900_v31, %v4577_v34  ;;  %v4817_v15 = vrot.slane %v10929_v63, 1  ;;  %v4831_v21 = vrot.slane %v10929_v63, 2 }
 0x3c4   : > { %v4704_v25 = vsel %vm1143_vm3, %v4696_v0, %v4608_v56  ;;  %v4760_v5 = vsel %vm1123_vm1, %v4576_v49, %v4592_v22  ;;  %v4656_v19 = vrot.slane %v10915_v48, 6  ;;  %v4984_v26 = vsel %vm1133_vm2, %v4977_v13, %v4844_v61 }
 0x3c5   : > { %4111 = vrot.lane.b32.xlu0 %v10822_v7, %s6560_s26  ;;  %v4858_v59 = vrot.slane %v10938_v41, 4  ;;  %v4872_v28 = vrot.slane %v10938_v41, 5  ;;  %v11683_v23 = vrot.slane %v10900_v31, 3  ;;  %v4921_v4 = vsel %vm1133_vm2, %v4914_v18, %v4830_v39  ;;  %v10959_v18 = vld [vmem:[%s6661_s25 + $0x68] sm:$0xff] }
 0x3c6   : > { %v4886_v51 = vrot.slane %v10938_v41, 6  ;;  %v4697_v49 = vsel %vm1133_vm2, %v4689_v9, %v4593_v44  ;;  %v11684_v22 = vrot.slane %v10929_v63, 3  ;;  %v4991_v46 = vsel %vm1143_vm3, %v4984_v26, %v4963_v17  ;;  %v10969_v26 = vld [vmem:[%s6661_s25 + $0x78] sm:$0xff] }
 0x3c7   : > { %4261 = vrot.lane.b32.xlu1 %v4246_v16, %s12048_s23  ;;  %v4143_v16 = vrot.slane %v10827_v27, 1  ;;  %v4915_v39 = vsel %vm1123_vm1, %v10929_v63, %v4817_v15  ;;  %v4978_v13 = vsel %vm1123_vm1, %v4817_v15, %v4831_v21  ;;  %v4625_v9 = vrot.slane %v10959_v18, 4 }
 0x3c8   : > { %v4964_v17 = vrot.slane %v10929_v63, 4  ;;  %v4859_v15 = vrot.slane %v10969_v26, 4  ;;  %v4985_v0 = vsel %vm1133_vm2, %v4978_v13, %v11684_v22  ;;  %v4768_v36 = vsel %vm1133_vm2, %v4760_v5, %v4608_v56 }
 0x3c9   : > { %4285 = vrot.lane.b32.xlu0 %v10827_v27, %s11857_s30  ;;  %v4928_v13 = vsel %vm1143_vm3, %v4921_v4, %v4844_v61 }
 0x3ca   : > { %v4992_v4 = vsel %vm1143_vm3, %v4985_v0, %v4964_v17  ;;  %v12086_v0 = vmax.f32 %v12084_v57, %v12083_v50 }
 0x3cb   : > { %4263 = vrot.lane.b32.xlu1 %v4248_v10, %s12048_s23  ;;  %v4761_v10 = vsel %vm1123_vm1, %v4577_v34, %v4593_v44  ;;  %v4144_v34 = vsel %vm1183_vm7, %v4143_v16, %v12026_v8  ;;  %v4922_v44 = vsel %vm1133_vm2, %v4915_v39, %v4831_v21  ;;  %v4900_v16 = vrot.slane %v10938_v41, 7  ;;  %s5815_s23 = smul.u32 56, %s12103_s19 }
 0x3cc   : > { %v4776_v39 = vsel %vm1143_vm3, %v4768_v36, %v4744_v1  ;;  %v4998_v1 = vsel %vm1153_vm4, %v4991_v46, %v4872_v28 }
 0x3cd   : > { %4309 = vrot.lane.b32.xlu0 %v10822_v7, %s6559_s20  ;;  %v4948_v7 = vsel %vm1173_vm6, %v4941_v43, %v4885_v33  ;;  %v4784_v22 = vsel %vm1153_vm4, %v4776_v39, %v4640_v37  ;;  %s494_s24 = scalar_lea.vmem %s11500_s15, %s5815_s23 }
 0x3ce   : > { %v4955_v56 = vsel %vm1183_vm7, %v4948_v7, %v4899_v2  ;;  %v4792_v61 = vsel %vm1163_vm5, %v4784_v22, %v4656_v19  ;;  %v4180_v22 = vpop.permute.xlu1 %4179 }
 0x3cf   : > { %4335 = vrot.lane.b32.xlu1 %v12006_v55, %s12047_s17  ;;  %v4705_v55 = vsel %vm1143_vm3, %v4697_v49, %v11683_v23  ;;  %v4672_v49 = vrot.slane %v10915_v48, 7  ;;  %v4712_v23 = vsel %vm1153_vm4, %v4704_v25, %v4624_v54  ;;  %v4935_v54 = vsel %vm1153_vm4, %v4928_v13, %v4858_v59  ;;  %v10997_v25 = vpop.permute.xlu0 %4211 }
 0x3d0   : > { %v4720_v21 = vsel %vm1163_vm5, %v4712_v23, %v4640_v37  ;;  %v4942_v43 = vsel %vm1163_vm5, %v4935_v54, %v4872_v28  ;;  %v5004_v59 = vsel %vm1163_vm5, %v10905_v52, %v4885_v33  ;;  %v5005_v23 = vsel %vm1163_vm5, %v4998_v1, %v4886_v51 }
 0x3d1   : > { %4159 = vrot.lane.b32.xlu0 %v4144_v34, %s6552_s16  ;;  %v4728_v35 = vsel %vm1173_vm6, %v4720_v21, %v4656_v19  ;;  %v4800_v37 = vsel %vm1173_vm6, %v4792_v61, %v4672_v49  ;;  %v4949_v5 = vsel %vm1173_vm6, %v4942_v43, %v4886_v51  ;;  %v5011_v19 = vsel %vm1173_vm6, %v5004_v59, %v4899_v2 }
 0x3d2   : > { %v4736_v36 = vsel %vm1183_vm7, %v4728_v35, %v4672_v49  ;;  %v4956_v35 = vsel %vm1183_vm7, %v4949_v5, %v4900_v16  ;;  %v5012_v28 = vsel %vm1173_vm6, %v5005_v23, %v4900_v16  ;;  %v5018_v46 = vsel %vm1183_vm7, %v5011_v19, %v10865_v60 }
 0x3d3   : > { %v12085_v52 = vrot.slane %v12084_v57, 1  ;;  %v5019_v2 = vsel %vm1183_vm7, %v5012_v28, %v10938_v41  ;;  %v5042_v51 = vrot.slane %v4736_v36, 1  ;;  %v5089_v60 = vrot.slane %v4955_v56, 1 }
 0x3d4   : > { %v5091_v17 = vrot.slane %v4956_v35, 1  ;;  %v4673_v49 = vrot.slane %v10959_v18, 7  ;;  %v4713_v16 = vsel %vm1153_vm4, %v4705_v55, %v4625_v9  ;;  %v12087_v21 = vrot.slane %v10900_v31, 3 }
 0x3d5   : > { %4191 = vrot.lane.b32.xlu0 %v10830_v20, %s12049_s27  ;;  %v4808_v20 = vsel %vm1183_vm7, %v4800_v37, %v10915_v48  ;;  %v11026_v48 = vsel %vm1183_vm7, %v12085_v52, %v12026_v8  ;;  %v5043_v41 = vsel %vm1183_vm7, %v5042_v51, %v12026_v8  ;;  %v5090_v54 = vsel %vm1183_vm7, %v5089_v60, %v12026_v8 }
 0x3d6   : > { %v5026_v33 = vmax.f32 %v4736_v36, %v4808_v20  ;;  %v5060_v7 = vmax.f32 %v12086_v0, %v11026_v48  ;;  %v4769_v39 = vsel %vm1133_vm2, %v4761_v10, %v12087_v21  ;;  %v4901_v61 = vrot.slane %v10969_v26, 7 }
 0x3d7   : > { %v12088_v37 = vrot.slane %v10959_v18, 5  ;;  %v12089_v55 = vrot.slane %v10900_v31, 4  ;;  %v12090_v5 = vrot.slane %v10929_v63, 3  ;;  %v12091_v23 = vrot.slane %v10959_v18, 6 }
 0x3d8   : > { %v5067_v13 = vmax.f32 %v5060_v7, %v4955_v56  ;;  %v5061_v1 = vmax.f32 %v5026_v33, %v5043_v41 }
 0x3d9   : > { %4223 = vrot.lane.b32.xlu0 %v10849_v47, %s12050_s28  ;;  %v4252_v47 = vpop.permute.xlu0 %4251  ;;  %v4102_v43 = vpop.permute.xlu1 %4101  ;;  %v4721_v9 = vsel %vm1163_vm5, %v4713_v16, %v12088_v37  ;;  %v4777_v10 = vsel %vm1143_vm3, %v4769_v39, %v12089_v55  ;;  %v4929_v59 = vsel %vm1143_vm3, %v4922_v44, %v12090_v5  ;;  %v12092_v28 = vmov %v12088_v37 }
 0x3da   : > { %v5074_v56 = vmax.f32 %v5067_v13, %v5018_v46  ;;  %v4729_v19 = vsel %vm1173_vm6, %v4721_v9, %v12091_v23  ;;  %v4785_v33 = vsel %vm1153_vm4, %v4777_v10, %v12092_v28  ;;  %v4936_v52 = vsel %vm1153_vm4, %v4929_v59, %v4859_v15 }
 0x3db   : > { %v5068_v31 = vmax.f32 %v5061_v1, %v4956_v35  ;;  %v4737_v51 = vsel %vm1183_vm7, %v4729_v19, %v4673_v49  ;;  %v12093_v63 = vmov %v12091_v23  ;;  %v4363_v15 = vsel %vm4361_vm15, %v10150_v58, %v4180_v22 }
 0x3dc   : > { %v4793_v44 = vsel %vm1163_vm5, %v4785_v33, %v12093_v63  ;;  %v5109_v7 = vmax.f32 %v5074_v56, %v5090_v54  ;;  %v12096_v13 = vrot.slane %v10969_v26, 6  ;;  %v5044_v55 = vrot.slane %v4737_v51, 1 }
 0x3dd   : > { %4333 = vrot.lane.b32.xlu0 %v4144_v34, %s12047_s17  ;;  %v12094_v34 = vrot.slane %v10969_v26, 5  ;;  %v4276_v0 = vpop.permute.xlu0 %4275  ;;  %v4801_v60 = vsel %vm1173_vm6, %v4793_v44, %v4673_v49  ;;  %v5075_v35 = vmax.f32 %v5068_v31, %v5019_v2  ;;  %v5092_v58 = vsel %vm1183_vm7, %v5091_v17, %v12026_v8 }
 0x3de   : > { %v4809_v39 = vsel %vm1183_vm7, %v4801_v60, %v10959_v18  ;;  %v5116_v37 = vmax.f32 %v5109_v7, %v4736_v36  ;;  %v12097_v54 = vmov %v12096_v13  ;;  %v4371_v18 = vsel %vm1773_vm9, %v4363_v15, %v10997_v25 }
 0x3df   : > { %v4943_v46 = vsel %vm1163_vm5, %v4936_v52, %v12094_v34  ;;  %v12095_v16 = vmov %v12094_v34  ;;  %v5027_v9 = vmax.f32 %v4737_v51, %v4809_v39  ;;  %v5045_v36 = vsel %vm1183_vm7, %v5044_v55, %v12026_v8 }
 0x3e0   : > { %v4999_v21 = vsel %vm1153_vm4, %v4992_v4, %v12095_v16  ;;  %v4950_v1 = vsel %vm1173_vm6, %v4943_v46, %v12096_v13  ;;  %v5123_v2 = vmax.f32 %v5116_v37, %v4808_v20  ;;  %v4380_v59 = vsel %vm4378_vm12, %v4371_v18, %v4252_v47 }
 0x3e1   : > { %v5006_v49 = vsel %vm1163_vm5, %v4999_v21, %v12097_v54  ;;  %v4150_v10 = vpop.permute.xlu1 %4149  ;;  %v4300_v22 = vpop.permute.xlu0 %4299  ;;  %v11090_v5 = vsel %vm1183_vm7, %v4950_v1, %v4901_v61  ;;  %v5062_v56 = vmax.f32 %v5027_v9, %v5045_v36  ;;  %v5110_v23 = vmax.f32 %v5075_v35, %v5092_v58 }
 0x3e2   : > { %v5013_v4 = vsel %vm1173_vm6, %v5006_v49, %v4901_v61  ;;  %v4388_v19 = vsel %vm1782_vm10, %v4380_v59, %v4276_v0  ;;  %v5134_v28 = vmax.f32 %v5123_v2, %v5043_v41  ;;  %v4347_v46 = vsel %vm528_vm0, %v10266_v40, %v4102_v43 }
 0x3e3   : > { %v5020_v17 = vsel %vm1183_vm7, %v5013_v4, %v10969_v26  ;;  %v4397_v25 = vsel %vm4395_vm13, %v4388_v19, %v4300_v22  ;;  %v5069_v20 = vmax.f32 %v5062_v56, %v11090_v5  ;;  %v5117_v61 = vmax.f32 %v5110_v23, %v4737_v51 }
 0x3e4   : > { %5177 = vrot.lane.b32.xlu1 %v5134_v28, %s12049_s27  ;;  %v4355_v0 = vsel %vm1764_vm8, %v4347_v46, %v4150_v10 }
 0x3e5   : > { %v4324_v33 = vpop.permute.xlu1 %4323  ;;  %v11103_v47 = vmax.f32 %v5069_v20, %v5020_v17  ;;  %v5124_v31 = vmax.f32 %v5117_v61, %v4809_v39  ;;  %v4254_v26 = vpop.permute.xlu0 %4253 }
 0x3e6   : > { %v4405_v52 = vsel %vm1791_vm11, %v4397_v25, %v4324_v33 }
 0x3e7   : > { %5694 = vmatmul.mubr.msk.f32.vlgmr.msra.gmra.mrb[40].mxu1 %vm4412_vm14, %v4405_v52  ;;  %v5135_v41 = vmax.f32 %v5124_v31, %v5045_v36 }
 0x3e9   : > { %v4182_v63 = vpop.permute.xlu1 %4181  ;;  %5179 = vrot.lane.b32.xlu1 %v5135_v41, %s12049_s27 }
 0x3ea   : > { %v4364_v7 = vsel %vm4361_vm15, %v4355_v0, %v4182_v63 }
 0x3ed   : > { %v4214_v44 = vpop.permute.xlu1 %4213 }
 0x3ee   : > { %v4372_v60 = vsel %vm1773_vm9, %v4364_v7, %v4214_v44 }
 0x3ef   : > { %v4381_v15 = vsel %vm4378_vm12, %v4372_v60, %v4254_v26 }
 0x3f1   : > { %v4104_v34 = vpop.permute.xlu0 %4103 }
 0x3f2   : > { %v4348_v49 = vsel %vm528_vm0, %v10437_v12, %v4104_v34 }
 0x3f5   : > { %v4278_v51 = vpop.permute.xlu1 %4277 }
 0x3f6   : > { %v4389_v35 = vsel %vm1782_vm10, %v4381_v15, %v4278_v51 }
 0x3f8   : > { %v4152_v16 = vpop.permute.xlu0 %4151 }
 0x3f9   : > { %v4302_v21 = vpop.permute.xlu1 %4301  ;;  %v4356_v9 = vsel %vm1764_vm8, %v4348_v49, %v4152_v16 }
 0x3fa   : > { %v4398_v13 = vsel %vm4395_vm13, %v4389_v35, %v4302_v21 }
 0x3fc   : > { %v4184_v39 = vpop.permute.xlu0 %4183 }
 0x3fd   : > { %v4326_v1 = vpop.permute.xlu1 %4325  ;;  %v4365_v55 = vsel %vm4361_vm15, %v4356_v9, %v4184_v39  ;;  %v6526_v39 = vld [vmem:[%s6661_s25 + $0x10] sm:$0xff] }
 0x3fe   : > { %v4406_v37 = vsel %vm1791_vm11, %v4398_v13, %v4326_v1  ;;  %v4814_v13 = vrot.slane %v6526_v39, 1  ;;  %v4828_v1 = vrot.slane %v6526_v39, 2 }
 0x3ff   : > { %5696 = vmatprep.mubr.msk.f32.mxu1 %vm4412_vm14, %v4406_v37 }
 0x400   : > { %v4256_v40 = vpop.permute.xlu0 %4255  ;;  %v4912_v9 = vsel %vm1123_vm1, %v6526_v39, %v4814_v13 }
 0x402   : > { %v4216_v43 = vpop.permute.xlu1 %4215 }
 0x403   : > { %v4373_v10 = vsel %vm1773_vm9, %v4365_v55, %v4216_v43  ;;  %v4975_v55 = vsel %vm1123_vm1, %v4814_v13, %v4828_v1 }
 0x404   : > { %v4382_v18 = vsel %vm4378_vm12, %v4373_v10, %v4256_v40  ;;  %v6527_v10 = vld [vmem:[%s6661_s25 + $0x80] sm:$0xff] }
 0x405   : > { %v4106_v54 = vpop.permute.xlu0 %4105 }
 0x406   : > { %v4349_v61 = vsel %vm528_vm0, %v10575_v3, %v4106_v54 }
 0x409   : > { %v4280_v4 = vpop.permute.xlu0 %4279  ;;  %v4154_v58 = vpop.permute.xlu1 %4153 }
 0x40a   : > { %v4390_v22 = vsel %vm1782_vm10, %v4382_v18, %v4280_v4  ;;  %v4357_v52 = vsel %vm1764_vm8, %v4349_v61, %v4154_v58  ;;  %v4578_v4 = vrot.slane %v6527_v10, 1  ;;  %v6528_v18 = vld [vmem:[%s6661_s25 + $0x90] sm:$0xff] }
 0x40d   : > { %v4304_v2 = vpop.permute.xlu0 %4303  ;;  %v4328_v36 = vpop.permute.xlu1 %4327 }
 0x40e   : > { %v4399_v59 = vsel %vm4395_vm13, %v4390_v22, %v4304_v2  ;;  %v4832_v22 = vrot.slane %v6528_v18, 2  ;;  %v4961_v2 = vrot.slane %v6526_v39, 4 }
 0x40f   : > { %v4407_v56 = vsel %vm1791_vm11, %v4399_v59, %v4328_v36  ;;  %v4919_v36 = vsel %vm1133_vm2, %v4912_v9, %v4828_v1 }
 0x410   : > { %5697 = vmatmul.mubr.msk.f32.gmra.mrb[42].mxu1 %vm4412_vm14, %v4407_v56  ;;  %v4594_v56 = vrot.slane %v6527_v10, 2 }
 0x411   : > { %v4108_v12 = vpop.permute.xlu0 %4107  ;;  %v4282_v23 = vpop.permute.xlu1 %4281 }
 0x412   : > { %v4350_v3 = vsel %vm528_vm0, %v10622_v6, %v4108_v12  ;;  %v4842_v6 = vrot.slane %v6526_v39, 3  ;;  %v4818_v12 = vrot.slane %v6528_v18, 1 }
 0x414   : > { %v4982_v59 = vsel %vm1133_vm2, %v4975_v55, %v4842_v6  ;;  %v4979_v61 = vsel %vm1123_vm1, %v4818_v12, %v4832_v22 }
 0x415   : > { %v4306_v19 = vpop.permute.xlu1 %4305  ;;  %v4156_v28 = vpop.permute.xlu0 %4155 }
 0x416   : > { %v4358_v16 = vsel %vm1764_vm8, %v4350_v3, %v4156_v28  ;;  %v4690_v28 = vsel %vm1123_vm1, %v6527_v10, %v4578_v4 }
 0x419   : > { %v4330_v17 = vpop.permute.xlu1 %4329  ;;  %v4258_v25 = vpop.permute.xlu0 %4257 }
 0x41d   : > { %v4186_v33 = vpop.permute.xlu1 %4185 }
 0x41e   : > { %v4188_v20 = vpop.permute.xlu0 %4187  ;;  %v4366_v31 = vsel %vm4361_vm15, %v4357_v52, %v4186_v33  ;;  %v4926_v52 = vsel %vm1143_vm3, %v4919_v36, %v4842_v6  ;;  %v6531_v6 = vld [vmem:[%s6661_s25 + $0x98] sm:$0xff] }
 0x41f   : > { %v4367_v21 = vsel %vm4361_vm15, %v4358_v16, %v4188_v20 }
 0x421   : > { %v4218_v63 = vpop.permute.xlu1 %4217 }
 0x422   : > { %v4374_v26 = vsel %vm1773_vm9, %v4366_v31, %v4218_v63  ;;  %v4989_v31 = vsel %vm1143_vm3, %v4982_v59, %v4961_v2  ;;  %v4610_v63 = vrot.slane %v6527_v10, 3  ;;  %v4888_v2 = vrot.slane %v6531_v6, 6 }
 0x423   : > { %v4260_v41 = vpop.permute.xlu0 %4259  ;;  %v4383_v44 = vsel %vm4378_vm12, %v4374_v26, %v4258_v25  ;;  %v11157_v25 = vld [vmem:[%s6661_s25 + $0x18] sm:$0xff]  ;;  %v4698_v26 = vsel %vm1133_vm2, %v4690_v28, %v4594_v56 }
 0x424   : > { %v4391_v34 = vsel %vm1782_vm10, %v4383_v44, %v4282_v23  ;;  %v4856_v33 = vrot.slane %v11157_v25, 4  ;;  %v4870_v20 = vrot.slane %v11157_v25, 5  ;;  %v4965_v44 = vrot.slane %v6528_v18, 4 }
 0x425   : > { %v4400_v51 = vsel %vm4395_vm13, %v4391_v34, %v4306_v19  ;;  %v4220_v7 = vpop.permute.xlu1 %4219  ;;  %v4898_v3 = vrot.slane %v11157_v25, 7  ;;  %v4706_v1 = vsel %vm1143_vm3, %v4698_v26, %v4610_v63 }
 0x426   : > { %v4408_v0 = vsel %vm1791_vm11, %v4400_v51, %v4330_v17  ;;  %v4375_v15 = vsel %vm1773_vm9, %v4367_v21, %v4220_v7  ;;  %v4846_v17 = vrot.slane %v6528_v18, 3  ;;  %v12098_v51 = vld [vmem:[#allocation2_spill] sm:$0xff]  ;;  %v4916_v7 = vsel %vm1123_vm1, %v6528_v18, %v4818_v12 }
 0x427   : > { %v11133_v46 = vpop.permute.xlu0 %4109  ;;  %5699 = vmatprep.mubr.msk.f32.mxu1 %vm4412_vm14, %v4408_v0  ;;  %v4384_v37 = vsel %vm4378_vm12, %v4375_v15, %v4260_v41  ;;  %v4884_v41 = vrot.slane %v11157_v25, 6  ;;  %v5038_v0 = vrot.slane %v12098_v51, 1  ;;  %v4933_v16 = vsel %vm1153_vm4, %v4926_v52, %v4856_v33 }
 0x428   : > { %v4996_v21 = vsel %vm1153_vm4, %v4989_v31, %v4870_v20  ;;  %v4746_v15 = vrot.slane %v6527_v10, 4  ;;  %v4923_v9 = vsel %vm1133_vm2, %v4916_v7, %v4832_v22  ;;  %v4940_v10 = vsel %vm1163_vm5, %v4933_v16, %v4870_v20 }
 0x429   : > { %v4351_v36 = vsel %vm528_vm0, %v10738_v30, %v11133_v46  ;;  %v4930_v20 = vsel %vm1143_vm3, %v4923_v9, %v4846_v17  ;;  %v4902_v46 = vrot.slane %v6531_v6, 7 }
 0x42b   : > { %v4284_v60 = vpop.permute.xlu0 %4283 }
 0x42c   : > { %v4392_v43 = vsel %vm1782_vm10, %v4384_v37, %v4284_v60  ;;  %v4986_v60 = vsel %vm1133_vm2, %v4979_v61, %v4846_v17  ;;  %v4762_v37 = vsel %vm1123_vm1, %v4578_v4, %v4594_v56  ;;  %v5093_v4 = vrot.slane %v11090_v5, 1 }
 0x42d   : > { %v4158_v40 = vpop.permute.xlu1 %4157  ;;  %v4993_v55 = vsel %vm1143_vm3, %v4986_v60, %v4965_v44  ;;  %v4770_v22 = vsel %vm1133_vm2, %v4762_v37, %v4610_v63 }
 0x42e   : > { %v4359_v59 = vsel %vm1764_vm8, %v4351_v36, %v4158_v40  ;;  %v4778_v33 = vsel %vm1143_vm3, %v4770_v22, %v4746_v15 }
 0x42f   : > { %v4308_v35 = vpop.permute.xlu0 %4307 }
 0x430   : > { %v4401_v54 = vsel %vm4395_vm13, %v4392_v43, %v4308_v35  ;;  %v6530_v35 = vld [vmem:[%s6661_s25 + $0x88] sm:$0xff] }
 0x431   : > { %v4190_v23 = vpop.permute.xlu1 %4189  ;;  %v4626_v39 = vrot.slane %v6530_v35, 4  ;;  %v4642_v43 = vrot.slane %v6530_v35, 5  ;;  %v4674_v56 = vrot.slane %v6530_v35, 7 }
 0x432   : > { %v4368_v17 = vsel %vm4361_vm15, %v4359_v59, %v4190_v23 }
 0x433   : > { %v4332_v49 = vpop.permute.xlu0 %4331  ;;  %v4714_v12 = vsel %vm1153_vm4, %v4706_v1, %v4626_v39  ;;  %v4786_v5 = vsel %vm1153_vm4, %v4778_v33, %v4642_v43 }
 0x434   : > { %v4409_v58 = vsel %vm1791_vm11, %v4401_v54, %v4332_v49  ;;  %v4874_v54 = vrot.slane %v6531_v6, 5  ;;  %v4658_v49 = vrot.slane %v6530_v35, 6  ;;  %v4722_v28 = vsel %vm1163_vm5, %v4714_v12, %v4642_v43 }
 0x435   : > { %5700 = vmatmul.mubr.msk.f32.gmra.mrb[44].mxu1 %vm4412_vm14, %v4409_v58  ;;  %v4222_v13 = vpop.permute.xlu1 %4221  ;;  %v4860_v58 = vrot.slane %v6531_v6, 4  ;;  %v5094_v43 = vsel %vm1183_vm7, %v5093_v4, %v12026_v8 }
 0x436   : > { %v5000_v61 = vsel %vm1153_vm4, %v4993_v55, %v4874_v54  ;;  %v4730_v30 = vsel %vm1173_vm6, %v4722_v28, %v4658_v49  ;;  %v4794_v63 = vsel %vm1163_vm5, %v4786_v5, %v4658_v49  ;;  %v4376_v39 = vsel %vm1773_vm9, %v4368_v17, %v4222_v13 }
 0x437   : > { %v4112_v19 = vpop.permute.xlu0 %4111  ;;  %v4937_v40 = vsel %vm1153_vm4, %v4930_v20, %v4860_v58  ;;  %v4738_v26 = vsel %vm1183_vm7, %v4730_v30, %v4674_v56  ;;  %v5007_v7 = vsel %vm1163_vm5, %v5000_v61, %v4888_v2  ;;  %v4802_v60 = vsel %vm1173_vm6, %v4794_v63, %v4674_v56 }
 0x438   : > { %v4944_v44 = vsel %vm1163_vm5, %v4937_v40, %v4874_v54  ;;  %v5046_v15 = vrot.slane %v4738_v26, 1  ;;  %v4352_v1 = vsel %vm528_vm0, %v10827_v27, %v4112_v19  ;;  %v4810_v37 = vsel %vm1183_vm7, %v4802_v60, %v6530_v35 }
 0x439   : > { %v4262_v52 = vpop.permute.xlu1 %4261  ;;  %v4951_v16 = vsel %vm1173_vm6, %v4944_v44, %v4888_v2  ;;  %v5014_v23 = vsel %vm1173_vm6, %v5007_v7, %v4902_v46  ;;  %v5028_v9 = vmax.f32 %v4738_v26, %v4810_v37  ;;  %v5111_v55 = vmax.f32 %v11103_v47, %v5094_v43 }
 0x43a   : > { %v11211_v49 = vsel %vm1183_vm7, %v4951_v16, %v4902_v46  ;;  %v5047_v13 = vsel %vm1183_vm7, %v5046_v15, %v12026_v8  ;;  %v4947_v58 = vsel %vm1173_vm6, %v4940_v10, %v4884_v41  ;;  %v5003_v27 = vsel %vm1163_vm5, %v4996_v21, %v4884_v41  ;;  %v12099_v41 = vld [vmem:[#allocation3_spill] sm:$0xff]  ;;  %v6533_v15 = vld [vmem:[%s6661_s25 + $0xb0] sm:$0xff] }
 0x43b   : > { %v11166_v34 = vpop.permute.xlu0 %4285  ;;  %v5039_v19 = vsel %vm1183_vm7, %v5038_v0, %v12026_v8  ;;  %v5063_v2 = vmax.f32 %v5028_v9, %v5047_v13  ;;  %v5118_v36 = vmax.f32 %v5111_v55, %v4738_v26  ;;  %v4954_v4 = vsel %vm1183_vm7, %v4947_v58, %v4898_v3  ;;  %v11268_v9 = vld [vmem:[%s6661_s25 + $0xd0] sm:$0xff] }
 0x43c   : > { %v5010_v47 = vsel %vm1173_vm6, %v5003_v27, %v4898_v3  ;;  %v5021_v10 = vsel %vm1183_vm7, %v5014_v23, %v6531_v6  ;;  %v12100_v21 = vmax.f32 %v12098_v51, %v12099_v41  ;;  %v5087_v0 = vrot.slane %v4954_v4, 1  ;;  %v6536_v27 = vld [vmem:[%s6661_s25 + $0xa8] sm:$0xff] }
 0x43d   : > { %v4264_v35 = vpop.permute.xlu1 %4263  ;;  %v5070_v28 = vmax.f32 %v5063_v2, %v11211_v49  ;;  %v5125_v33 = vmax.f32 %v5118_v36, %v4810_v37  ;;  %v5017_v20 = vsel %vm1183_vm7, %v5010_v47, %v11157_v25  ;;  %v4385_v3 = vsel %vm4378_vm12, %v4376_v39, %v4262_v52 }
 0x43e   : > { %v5059_v56 = vmax.f32 %v12100_v21, %v5039_v19  ;;  %v5088_v46 = vsel %vm1183_vm7, %v5087_v0, %v12026_v8  ;;  %v4393_v40 = vsel %vm1782_vm10, %v4385_v3, %v11166_v34  ;;  %v4833_v39 = vrot.slane %v6533_v15, 2 }
 0x43f   : > { %v11180_v18 = vpop.permute.xlu0 %4309  ;;  %v11239_v51 = vmax.f32 %v5070_v28, %v5021_v10  ;;  %v5136_v5 = vmax.f32 %v5125_v33, %v5047_v13  ;;  %v4819_v43 = vrot.slane %v6533_v15, 1  ;;  %v4627_v19 = vrot.slane %v6536_v27, 4 }
 0x440   : > { %v4402_v26 = vsel %vm4395_vm13, %v4393_v40, %v11180_v18  ;;  %v4820_v2 = vrot.slane %v11268_v9, 1  ;;  %v4643_v10 = vrot.slane %v6536_v27, 5  ;;  %vm6563_vm0 = vmmov 0  }
 0x441   : > { %v4336_v30 = vpop.permute.xlu1 %4335  ;;  %5181 = vrot.lane.b32.xlu1 %v5136_v5, %s12049_s27  ;;  %v4980_v13 = vsel %vm1123_vm1, %v4819_v43, %v4833_v39  ;;  %v4917_v41 = vsel %vm1123_vm1, %v6533_v15, %v4819_v43 }
 0x442   : > { %v4918_v5 = vsel %vm1123_vm1, %v11268_v9, %v4820_v2 }
 0x443   : > { %v4160_v31 = vpop.permute.xlu0 %4159 }
 0x444   : > { %v4360_v59 = vsel %vm1764_vm8, %v4352_v1, %v4160_v31  ;;  %v5066_v31 = vmax.f32 %v5059_v56, %v4954_v4  ;;  %v4966_v4 = vrot.slane %v6533_v15, 4 }
 0x446   : > { %v5073_v52 = vmax.f32 %v5066_v31, %v5017_v20  ;;  %v4967_v31 = vrot.slane %v11268_v9, 4 }
 0x447   : > { %v4192_v54 = vpop.permute.xlu0 %4191 }
 0x448   : > { %v4369_v12 = vsel %vm4361_vm15, %v4360_v59, %v4192_v54  ;;  %v5108_v17 = vmax.f32 %v5073_v52, %v5088_v46  ;;  %v11264_v54 = vld [vmem:[%s6661_s25 + $0xc0] sm:$0xff]  ;;  %v4848_v59 = vrot.slane %v11268_v9, 3  ;;  %v11298_v52 = vld [vmem:[%s6661_s25 + $0xc8] sm:$0xff] }
 0x449   : > { %v4580_v23 = vrot.slane %v11264_v54, 1  ;;  %v4612_v33 = vrot.slane %v11264_v54, 3  ;;  %v4748_v40 = vrot.slane %v11264_v54, 4 }
 0x44b   : > { %v4224_v22 = vpop.permute.xlu0 %4223  ;;  %v4692_v47 = vsel %vm1123_vm1, %v11264_v54, %v4580_v23 }
 0x44c   : > { %v4377_v61 = vsel %vm1773_vm9, %v4369_v12, %v4224_v22  ;;  %v4659_v12 = vrot.slane %v6536_v27, 6  ;;  %v6537_v22 = vld [vmem:[%s6661_s25 + $0xb8] sm:$0xff] }
 0x44d   : > { %v4386_v6 = vsel %vm4378_vm12, %v4377_v61, %v4264_v35  ;;  %v4596_v35 = vrot.slane %v11264_v54, 2  ;;  %v4861_v28 = vrot.slane %v6537_v22, 4  ;;  %v4875_v20 = vrot.slane %v6537_v22, 5 }
 0x44e   : > { %v4394_v25 = vsel %vm1782_vm10, %v4386_v6, %v10115_v11  ;;  %v5115_v11 = vmax.f32 %v5108_v17, %v12084_v57  ;;  %v4847_v57 = vrot.slane %v6533_v15, 3  ;;  %v4889_v3 = vrot.slane %v6537_v22, 6 }
 0x44f   : > { %v4334_v63 = vpop.permute.xlu0 %4333  ;;  %v4403_v44 = vsel %vm4395_vm13, %v4394_v25, %v10117_v62  ;;  %v6532_v62 = vld [vmem:[%s6661_s25 + $0xa0] sm:$0xff]  ;;  %v4700_v61 = vsel %vm1133_vm2, %v4692_v47, %v4596_v35  ;;  %v4924_v6 = vsel %vm1133_vm2, %v4917_v41, %v4833_v39  ;;  %v4764_v25 = vsel %vm1123_vm1, %v4580_v23, %v4596_v35 }
 0x450   : > { %v4410_v7 = vsel %vm1791_vm11, %v4402_v26, %v4334_v63  ;;  %v4411_v34 = vsel %vm1791_vm11, %v4403_v44, %v4336_v30  ;;  %v5122_v18 = vmax.f32 %v5115_v11, %v12083_v50  ;;  %v4579_v16 = vrot.slane %v6532_v62, 1 }
 0x451   : > { %5702 = vmatprep.mubr.msk.f32.mxu1 %vm4412_vm14, %v4410_v7  ;;  %v4595_v1 = vrot.slane %v6532_v62, 2  ;;  %v4834_v50 = vrot.slane %v11268_v9, 2  ;;  %v4747_v55 = vrot.slane %v6532_v62, 4  ;;  %v4987_v21 = vsel %vm1133_vm2, %v4980_v13, %v4847_v57 }
 0x452   : > { %5703 = vmatmul.mubr.msk.f32.gmra.mrb[46].mxu1 %vm4412_vm14, %v4411_v34  ;;  %v5133_v60 = vmax.f32 %v5122_v18, %v11026_v48  ;;  %v4691_v37 = vsel %vm1123_vm1, %v6532_v62, %v4579_v16  ;;  %v4611_v48 = vrot.slane %v6532_v62, 3  ;;  %v4994_v30 = vsel %vm1143_vm3, %v4987_v21, %v4966_v4  ;;  %v11305_v34 = vld [vmem:[%s6661_s25 + $0xd8] sm:$0xff] }
 0x453   : > { %v4699_v58 = vsel %vm1133_vm2, %v4691_v37, %v4595_v1  ;;  %v4763_v36 = vsel %vm1123_vm1, %v4579_v16, %v4595_v1  ;;  %v4981_v56 = vsel %vm1123_vm1, %v4820_v2, %v4834_v50  ;;  %v4628_v26 = vrot.slane %v11298_v52, 4 }
 0x454   : > { %5175 = vrot.lane.b32.xlu0 %v5133_v60, %s12049_s27  ;;  %v4707_v0 = vsel %vm1143_vm3, %v4699_v58, %v4611_v48  ;;  %v4988_v46 = vsel %vm1133_vm2, %v4981_v56, %v4848_v59  ;;  %v4644_v63 = vrot.slane %v11298_v52, 5  ;;  %v4708_v44 = vsel %vm1143_vm3, %v4700_v61, %v4612_v33 }
 0x455   : > { %v4660_v7 = vrot.slane %v11298_v52, 6  ;;  %v4862_v17 = vrot.slane %v11305_v34, 4  ;;  %v4876_v11 = vrot.slane %v11305_v34, 5  ;;  %v4925_v18 = vsel %vm1133_vm2, %v4918_v5, %v4834_v50 }
 0x456   : > { %v4995_v60 = vsel %vm1143_vm3, %v4988_v46, %v4967_v31  ;;  %v4890_v62 = vrot.slane %v11305_v34, 6  ;;  %v5095_v16 = vrot.slane %v11211_v49, 1  ;;  %v4675_v15 = vrot.slane %v6536_v27, 7 }
 0x457   : > { %v4715_v39 = vsel %vm1153_vm4, %v4707_v0, %v4627_v19  ;;  %v4771_v1 = vsel %vm1133_vm2, %v4763_v36, %v4611_v48  ;;  %v4903_v37 = vrot.slane %v6537_v22, 7  ;;  %v4931_v23 = vsel %vm1143_vm3, %v4924_v6, %v4847_v57 }
 0x458   : > { %v4723_v43 = vsel %vm1163_vm5, %v4715_v39, %v4643_v10  ;;  %v4779_v54 = vsel %vm1143_vm3, %v4771_v1, %v4747_v55  ;;  %v5001_v50 = vsel %vm1153_vm4, %v4994_v30, %v4875_v20  ;;  %v4938_v49 = vsel %vm1153_vm4, %v4931_v23, %v4861_v28 }
 0x459   : > { %v4731_v13 = vsel %vm1173_vm6, %v4723_v43, %v4659_v12  ;;  %v4787_v58 = vsel %vm1153_vm4, %v4779_v54, %v4643_v10  ;;  %v5008_v35 = vsel %vm1163_vm5, %v5001_v50, %v4889_v3  ;;  %v4945_v2 = vsel %vm1163_vm5, %v4938_v49, %v4875_v20  ;;  %v6540_v49 = vld [vmem:[%s6661_s25 + $0xe0] sm:$0xff] }
 0x45a   : > { %v4739_v19 = vsel %vm1183_vm7, %v4731_v13, %v4675_v15  ;;  %v4795_v48 = vsel %vm1163_vm5, %v4787_v58, %v4659_v12  ;;  %v5015_v55 = vsel %vm1173_vm6, %v5008_v35, %v4903_v37  ;;  %v4952_v36 = vsel %vm1173_vm6, %v4945_v2, %v4889_v3 }
 0x45b   : > { %v4803_v57 = vsel %vm1173_vm6, %v4795_v48, %v4675_v15  ;;  %v5022_v4 = vsel %vm1183_vm7, %v5015_v55, %v6537_v22  ;;  %v5048_v47 = vrot.slane %v4739_v19, 1  ;;  %v4959_v41 = vsel %vm1183_vm7, %v4952_v36, %v4903_v37 }
 0x45c   : > { %v4811_v10 = vsel %vm1183_vm7, %v4803_v57, %v6536_v27  ;;  %v5096_v21 = vsel %vm1183_vm7, %v5095_v16, %v12026_v8  ;;  %v4676_v56 = vrot.slane %v11298_v52, 7  ;;  %v5097_v28 = vrot.slane %v4959_v41, 1 }
 0x45d   : > { %v5029_v0 = vmax.f32 %v4739_v19, %v4811_v10  ;;  %v5049_v12 = vsel %vm1183_vm7, %v5048_v47, %v12026_v8  ;;  %v5112_v20 = vmax.f32 %v11239_v51, %v5096_v21  ;;  %v4716_v3 = vsel %vm1153_vm4, %v4708_v44, %v4628_v26 }
 0x45e   : > { %v4772_v22 = vsel %vm1133_vm2, %v4764_v25, %v4612_v33  ;;  %v4904_v27 = vrot.slane %v11305_v34, 7  ;;  %v4932_v61 = vsel %vm1143_vm3, %v4925_v18, %v4848_v59  ;;  %v4724_v30 = vsel %vm1163_vm5, %v4716_v3, %v4644_v63 }
 0x45f   : > { %v5064_v31 = vmax.f32 %v5029_v0, %v5049_v12  ;;  %v5119_v6 = vmax.f32 %v5112_v20, %v4739_v19  ;;  %v4780_v5 = vsel %vm1143_vm3, %v4772_v22, %v4748_v40  ;;  %v4732_v46 = vsel %vm1173_vm6, %v4724_v30, %v4660_v7 }
 0x460   : > { %v4788_v51 = vsel %vm1153_vm4, %v4780_v5, %v4644_v63  ;;  %v4939_v26 = vsel %vm1153_vm4, %v4932_v61, %v4862_v17  ;;  %v5002_v33 = vsel %vm1153_vm4, %v4995_v60, %v4876_v11  ;;  %v4740_v9 = vsel %vm1183_vm7, %v4732_v46, %v4676_v56 }
 0x461   : > { %v5071_v25 = vmax.f32 %v5064_v31, %v4959_v41  ;;  %v5126_v44 = vmax.f32 %v5119_v6, %v4811_v10  ;;  %v4796_v59 = vsel %vm1163_vm5, %v4788_v51, %v4660_v7  ;;  %v4946_v16 = vsel %vm1163_vm5, %v4939_v26, %v4876_v11  ;;  %v6541_v10 = vld [vmem:[%s6661_s25 + $0xe8] sm:$0xff] }
 0x462   : > { %v4804_v18 = vsel %vm1173_vm6, %v4796_v59, %v4676_v56  ;;  %v5009_v40 = vsel %vm1163_vm5, %v5002_v33, %v4890_v62  ;;  %v5050_v15 = vrot.slane %v4740_v9, 1  ;;  %v4953_v60 = vsel %vm1173_vm6, %v4946_v16, %v4890_v62  ;;  %v5561_v59 = vld [vmem:[%s11497_s12] ss:$0 sm:$0xff] }
 0x463   : > { %v5078_v39 = vmax.f32 %v5071_v25, %v5022_v4  ;;  %v5137_v63 = vmax.f32 %v5126_v44, %v5049_v12  ;;  %v4812_v17 = vsel %vm1183_vm7, %v4804_v18, %v11298_v52  ;;  %v5016_v1 = vsel %vm1173_vm6, %v5009_v40, %v4904_v27 }
 0x464   : > { %v5030_v37 = vmax.f32 %v4740_v9, %v4812_v17  ;;  %v4960_v7 = vsel %vm1183_vm7, %v4953_v60, %v4904_v27  ;;  %v5051_v43 = vsel %vm1183_vm7, %v5050_v15, %v12026_v8  ;;  %v5098_v11 = vsel %vm1183_vm7, %v5097_v28, %v12026_v8 }
 0x465   : > { %v5113_v23 = vmax.f32 %v5078_v39, %v5098_v11  ;;  %v5023_v50 = vsel %vm1183_vm7, %v5016_v1, %v11305_v34  ;;  %v4581_v35 = vrot.slane %v6540_v49, 1  ;;  %v4597_v48 = vrot.slane %v6540_v49, 2 }
 0x466   : > { %v5065_v54 = vmax.f32 %v5030_v37, %v5051_v43  ;;  %v4613_v55 = vrot.slane %v6540_v49, 3  ;;  %v5099_v57 = vrot.slane %v4960_v7, 1  ;;  %v4749_v4 = vrot.slane %v6540_v49, 4 }
 0x467   : > { %v5120_v13 = vmax.f32 %v5113_v23, %v4740_v9  ;;  %v4693_v2 = vsel %vm1123_vm1, %v6540_v49, %v4581_v35  ;;  %v4765_v47 = vsel %vm1123_vm1, %v4581_v35, %v4597_v48  ;;  %v4629_v41 = vrot.slane %v6541_v10, 4  ;;  %v5560_v9 = vld [vmem:[%s11496_s11] ss:$0 sm:$0xff] }
 0x468   : > { %v5072_v52 = vmax.f32 %v5065_v54, %v4960_v7  ;;  %v4701_v36 = vsel %vm1133_vm2, %v4693_v2, %v4597_v48  ;;  %v4645_v34 = vrot.slane %v6541_v10, 5  ;;  %v4661_v21 = vrot.slane %v6541_v10, 6 }
 0x469   : > { %v5127_v58 = vmax.f32 %v5120_v13, %v4812_v17  ;;  %v4677_v56 = vrot.slane %v6541_v10, 7  ;;  %v4709_v0 = vsel %vm1143_vm3, %v4701_v36, %v4613_v55  ;;  %v4773_v12 = vsel %vm1133_vm2, %v4765_v47, %v4613_v55  ;;  %v5232_v47 = vld [vmem:[%s11498_s13 + $0x8] sm:$0xff] }
 0x46a   : > { %v5079_v62 = vmax.f32 %v5072_v52, %v5023_v50  ;;  %v5100_v28 = vsel %vm1183_vm7, %v5099_v57, %v12026_v8  ;;  %v4717_v20 = vsel %vm1153_vm4, %v4709_v0, %v4629_v41  ;;  %v4781_v3 = vsel %vm1143_vm3, %v4773_v12, %v4749_v4  ;;  %v5231_v4 = vld [vmem:[%s11498_s13] sm:$0xff]  ;;  %v5178_v0 = vpop.permute.xlu1 %5177 }
 0x46b   : > { %v5138_v19 = vmax.f32 %v5127_v58, %v5051_v43  ;;  %v4725_v27 = vsel %vm1163_vm5, %v4717_v20, %v4645_v34  ;;  %v4789_v61 = vsel %vm1153_vm4, %v4781_v3, %v4645_v34  ;;  %v5792_v41 = vpack.c.bf16 %v5232_v47, %v5231_v4  ;;  %v5234_v34 = vld [vmem:[%s11498_s13 + $0x18] sm:$0xff]  ;;  %v5516_v3 = vld [vmem:[%s11490_s5] ss:$0 sm:$0xff] }
 0x46c   : > { %v5114_v22 = vmax.f32 %v5079_v62, %v5100_v28  ;;  %v4733_v31 = vsel %vm1173_vm6, %v4725_v27, %v4661_v21  ;;  %v4797_v6 = vsel %vm1163_vm5, %v4789_v61, %v4661_v21  ;;  %v12101_v21 = vmov 0.0  }
 0x46d   : > { %v4741_v30 = vsel %vm1183_vm7, %v4733_v31, %v4677_v56  ;;  %v4805_v5 = vsel %vm1173_vm6, %v4797_v6, %v4677_v56  ;;  %5713 = vmatprep.mubr.msk.f32.mxu1 %vm6563_vm0, %v12101_v21  ;;  %5793 = vmatpush3.bf16.msra.mxu1 %v5792_v41  ;;  %v1953_v27 = vmul.f32 %v5516_v3, %v9681_v29  ;;  %vm5210_vm1 = vcmask 260096  }
 0x46e   : > { %v4813_v46 = vsel %vm1183_vm7, %v4805_v5, %v6541_v10  ;;  %v5121_v51 = vmax.f32 %v5114_v22, %v4741_v30  ;;  %v5130_v26 = vrot.slane %v4741_v30, 1  ;;  %v5233_v10 = vld [vmem:[%s11498_s13 + $0x10] sm:$0xff]  ;;  %5794 = vmatprep.subr.bf16.mxu1 %v12082_v14  ;;  %v5180_v28 = vpop.permute.xlu1 %5179  ;;  %v1954_v61 = vmul.f32 %v5516_v3, %v9908_v32  ;;  %v5517_v14 = vld [vmem:[%s11491_s6] ss:$0 sm:$0xff] }
 0x46f   : > { %v5795_v56 = vpack.c.bf16 %v5234_v34, %v5233_v10  ;;  %v1955_v6 = vmul.f32 %v5516_v3, %v10004_v53  ;;  %v1966_v30 = vadd.f32 %v5517_v14, %v1953_v27  ;;  %v1957_v29 = vmul.f32 %v5516_v3, %v10109_v38 }
 0x470   : > { %v5128_v33 = vmax.f32 %v5121_v51, %v4813_v46  ;;  %v5131_v25 = vsel %vm1183_vm7, %v5130_v26, %v12026_v8  ;;  %v1967_v5 = vadd.f32 %v5517_v14, %v1954_v61  ;;  %vm5310_vm3 = vcmask 15360  }
 0x471   : > { %5796 = vmatpush3.bf16.msra.mxu1 %v5795_v56  ;;  %v1968_v51 = vadd.f32 %v5517_v14, %v1955_v6 }
 0x472   : > { %v5139_v44 = vmax.f32 %v5128_v33, %v5131_v25  ;;  %5716 = vmatprep.subr.mxu1 %v12101_v21  ;;  %v1973_v33 = vmax.f32 %v1966_v30, 0.0  ;;  %v1974_v25 = vmax.f32 %v1967_v5, 0.0 }
 0x473   : > { %v1975_v32 = vmax.f32 %v1968_v51, 0.0 }
 0x4b3   : > { %v5182_v31 = vpop.permute.xlu1 %5181 }
 0x4ba   : > { %v5695_v18 = vpop.f32.mrb[40].mxu1 }
 0x4bb   : > { %v4548_v16 = vmul.f32 %v5695_v18, %v5560_v9  ;;  %v4503_v40 = vpop.f32.mrb[41].mxu1 }
 0x4bc   : > { %v4547_v15 = vmul.f32 %v5560_v9, %v4503_v40  ;;  %v1970_v40 = vadd.f32 %v5517_v14, %v1957_v29 }
 0x4bd   : > { %v4561_v39 = vadd.f32 %v5561_v59, %v4548_v16 }
 0x4be   : > { %v4560_v17 = vadd.f32 %v5561_v59, %v4547_v15 }
 0x4bf   : > { %v4568_v60 = vmax.f32 %v4561_v39, 0.0 }
 0x4c0   : > { %v4567_v1 = vmax.f32 %v4560_v17, 0.0 }
 0x4c1   : > { %5149 = vrot.lane.b32.xlu1 %v4568_v60, %s6552_s16 }
 0x4c2   : > { %5147 = vrot.lane.b32.xlu0 %v4567_v1, %s6552_s16  ;;  %v1977_v1 = vmax.f32 %v1970_v40, 0.0 }
 0x4c5   : > { %5183 = vrot.lane.b32.xlu1 %v5137_v63, %s12049_s27 }
 0x4c6   : > { %v5176_v12 = vpop.permute.xlu0 %5175 }
 0x4c9   : > { %5185 = vrot.lane.b32.xlu1 %v5138_v19, %s12049_s27 }
 0x4cd   : > { %5187 = vrot.lane.b32.xlu1 %v5139_v44, %s12049_s27  ;;  %v1956_v44 = vmul.f32 %v5516_v3, %v10079_v24  ;;  %v1958_v24 = vmul.f32 %v5516_v3, %v10111_v45 }
 0x4cf   : > { %v1969_v16 = vadd.f32 %v5517_v14, %v1956_v44  ;;  %v5393_v44 = vlaneseq }
 0x4d1   : > { %v1976_v60 = vmax.f32 %v1969_v16, 0.0  ;;  %v5394_v29 = vshrl.u32 %v5393_v44, 7 }
 0x4e3   : > { %v5698_v8 = vpop.f32.mrb[42].mxu1 }
 0x4e4   : > { %v4550_v37 = vmul.f32 %v5698_v8, %v5560_v9  ;;  %v4513_v7 = vpop.f32.mrb[43].mxu1 }
 0x4e5   : > { %v4549_v43 = vmul.f32 %v5560_v9, %v4513_v7  ;;  %v1971_v7 = vadd.f32 %v5517_v14, %v1958_v24 }
 0x4e6   : > { %v4563_v11 = vadd.f32 %v5561_v59, %v4550_v37 }
 0x4e7   : > { %v4562_v23 = vadd.f32 %v5561_v59, %v4549_v43 }
 0x4e8   : > { %v4570_v54 = vmax.f32 %v4563_v11, 0.0 }
 0x4e9   : > { %v4569_v50 = vmax.f32 %v4562_v23, 0.0 }
 0x4ea   : > { %5153 = vrot.lane.b32.xlu0 %v4570_v54, %s6552_s16 }
 0x4ee   : > { %5151 = vrot.lane.b32.xlu0 %v4569_v50, %s6552_s16  ;;  %v1959_v50 = vmul.f32 %v5516_v3, %v10147_v42 }
 0x508   : > { %v5701_v52 = vpop.f32.mrb[44].mxu1 }
 0x509   : > { %v4552_v13 = vmul.f32 %v5701_v52, %v5560_v9  ;;  %v4523_v62 = vpop.f32.mrb[45].mxu1 }
 0x50a   : > { %v4551_v63 = vmul.f32 %v5560_v9, %v4523_v62 }
 0x50b   : > { %v4565_v58 = vadd.f32 %v5561_v59, %v4552_v13 }
 0x50c   : > { %v4564_v35 = vadd.f32 %v5561_v59, %v4551_v63  ;;  %v1978_v63 = vmax.f32 %v1971_v7, 0.0 }
 0x50d   : > { %v4572_v49 = vmax.f32 %v4565_v58, 0.0  ;;  %v1972_v58 = vadd.f32 %v5517_v14, %v1959_v50  ;;  %v5309_v14 = vld [vmem:[%s11499_s14] sm:$0x3] }
 0x50e   : > { %v4571_v19 = vmax.f32 %v4564_v35, 0.0 }
 0x50f   : > { %5157 = vrot.lane.b32.xlu0 %v4572_v49, %s6552_s16 }
 0x513   : > { %5155 = vrot.lane.b32.xlu0 %v4571_v19, %s6552_s16 }
 0x525   : > { %v5704_v48 = vpop.f32.mrb[46].mxu1 }
 0x526   : > { %v4533_v2 = vpop.f32.mrb[47].mxu1 }
 0x527   : > { %v4553_v55 = vmul.f32 %v5560_v9, %v4533_v2 }
 0x529   : > { %v4566_v57 = vadd.f32 %v5561_v59, %v4553_v55 }
 0x52b   : > { %v4573_v36 = vmax.f32 %v4566_v57, 0.0 }
 0x52d   : > { %5159 = vrot.lane.b32.xlu0 %v4573_v36, %s6552_s16  ;;  %v1979_v36 = vmax.f32 %v1972_v58, 0.0 }
 0x533   : > { %v5150_v26 = vpop.permute.xlu1 %5149 }
 0x534   : > { %v5148_v20 = vpop.permute.xlu0 %5147  ;;  %v5197_v59 = vsel %vm1764_vm8, %v1974_v25, %v5150_v26 }
 0x535   : > { %v5196_v18 = vsel %vm1764_vm8, %v1973_v33, %v5148_v20  ;;  %v11433_v15 = vsel %vm4361_vm15, %v5197_v59, %v5178_v0 }
 0x536   : > { %v11436_v39 = vsel %vm4361_vm15, %v5196_v18, %v5176_v12  ;;  %v5212_v8 = vsel %vm5210_vm1, %v11433_v15, 0.0 }
 0x537   : > { %v5211_v37 = vsel %vm5210_vm1, %v11436_v39, 0.0  ;;  %v5184_v54 = vpop.permute.xlu1 %5183 }
 0x538   : > { %v5213_v23 = vadd.f32 %v5212_v8, %v5211_v37 }
 0x53b   : > { %v5186_v19 = vpop.permute.xlu1 %5185 }
 0x53f   : > { %v5188_v42 = vpop.permute.xlu1 %5187 }
 0x55c   : > { %v5154_v22 = vpop.permute.xlu0 %5153 }
 0x55d   : > { %v5199_v43 = vsel %vm1764_vm8, %v1976_v60, %v5154_v22 }
 0x55e   : > { %v5206_v52 = vsel %vm4361_vm15, %v5199_v43, %v5182_v31 }
 0x55f   : > { %v5216_v49 = vsel %vm5210_vm1, %v5206_v52, 0.0 }
 0x560   : > { %v5152_v46 = vpop.permute.xlu0 %5151 }
 0x561   : > { %v5198_v53 = vsel %vm1764_vm8, %v1975_v32, %v5152_v46 }
 0x562   : > { %v11440_v38 = vsel %vm4361_vm15, %v5198_v53, %v5180_v28 }
 0x563   : > { %v5214_v11 = vsel %vm5210_vm1, %v11440_v38, 0.0 }
 0x564   : > { %v5215_v13 = vadd.f32 %v5214_v11, %v5213_v23 }
 0x566   : > { %v5217_v2 = vadd.f32 %v5216_v49, %v5215_v13 }
 0x581   : > { %v5158_v9 = vpop.permute.xlu0 %5157 }
 0x582   : > { %v5201_v35 = vsel %vm1764_vm8, %v1978_v63, %v5158_v9  ;;  %v5395_v9 = vsub.s32 0, %v5394_v29 }
 0x583   : > { %v5208_v55 = vsel %vm4361_vm15, %v5201_v35, %v5186_v19 }
 0x584   : > { %v5220_v47 = vsel %vm5210_vm1, %v5208_v55, 0.0 }
 0x585   : > { %v5156_v17 = vpop.permute.xlu0 %5155 }
 0x586   : > { %v5200_v45 = vsel %vm1764_vm8, %v1977_v1, %v5156_v17 }
 0x587   : > { %v5207_v62 = vsel %vm4361_vm15, %v5200_v45, %v5184_v54 }
 0x588   : > { %v5218_v48 = vsel %vm5210_vm1, %v5207_v62, 0.0 }
 0x589   : > { %v5219_v57 = vadd.f32 %v5218_v48, %v5217_v2 }
 0x58b   : > { %v5221_v34 = vadd.f32 %v5220_v47, %v5219_v57 }
 0x59f   : > { %v5160_v4 = vpop.permute.xlu0 %5159 }
 0x5a0   : > { %v5202_v10 = vsel %vm1764_vm8, %v1979_v36, %v5160_v4 }
 0x5a1   : > { %v5209_v41 = vsel %vm4361_vm15, %v5202_v10, %v5188_v42 }
 0x5a2   : > { %v5222_v56 = vsel %vm5210_vm1, %v5209_v41, 0.0 }
 0x5a3   : > { %v5223_v0 = vadd.f32 %v5222_v56, %v5221_v34 }
 0x5a5   : > { %v5224_v12 = vrot.slane %v5223_v0, 4 }
 0x5a7   : > { %v5225_v28 = vadd.f32 %v5224_v12, %v5223_v0 }
 0x5a9   : > { %v5226_v20 = vrot.slane %v5225_v28, 2 }
 0x5ab   : > { %v5227_v3 = vadd.f32 %v5226_v20, %v5225_v28 }
 0x5ad   : > { %v5228_v22 = vrot.slane %v5227_v3, 1 }
 0x5af   : > { %v5229_v27 = vadd.f32 %v5228_v22, %v5227_v3 }
 0x5b1   : > { %v5230_v61 = vmul.f32 0.020408163, %v5229_v27 }
 0x5b3   : > { %5714 = vmatmul.mubr.msk.f32.vlgmr.msra.gmra.mrb[48].mxu1 %vm1773_vm9, %v5230_v61 }
 0x5b4   : > { %5717 = vmatpush3.msk.msra.mxu1 %vm1133_vm2, %v5309_v14  ;;  %5718 = vmatprep.mubr.msk.f32.mxu1 %vm6563_vm0, %v12101_v21 }
 0x686   : > { %v5304_v31 = vpop.f32.mrb[48].mxu1 }
 0x687   : > { %v5308_v6 = vmax.f32 %v5304_v31, 0.0  ;;  %v5715_v30 = vpop.f32.mrb[49].mxu1 }
 0x689   : > { %5719 = vmatmul.mubr.msk.f32.vlgmr.msra.gmra.mrb[50].mxu1 %vm5310_vm3, %v5308_v6 }
 0x75c   : > { %v5383_v5 = vpop.f32.mrb[50].mxu1 }
 0x75d   : > { %v5387_v46 = vsub.f32 0.0, %v5383_v5  ;;  %v5720_v51 = vpop.f32.mrb[51].mxu1 }
 0x75f   : > { %v5388_v26 = vmul.f32 1.442695, %v5387_v46 }
 0x761   : > { %6508 = vpow2.f32 %v5388_v26 }
 0x76b   : > { %v6509_v33 = vpop.eup %6508 }
 0x76c   : > { %v5390_v25 = vadd.f32 1.0, %v6509_v33 }
 0x76e   : > { %6510 = vrcp.f32 %v5390_v25 }
 0x778   : > { %v6511_v32 = vpop.eup %6510 }
 0x779   : > { %v5396_v21 = vrot.slane %v6511_v32, %v5395_v9 }
 0x77b   : > { %v5397_v59 = vmul.f32 %v5396_v21, %v11436_v39  ;;  %v5398_v18 = vmul.f32 %v5396_v21, %v11433_v15  ;;  %v5399_v16 = vmul.f32 %v5396_v21, %v11440_v38  ;;  %v5400_v40 = vmul.f32 %v5396_v21, %v5206_v52 }
 0x77c   : > { %v5401_v53 = vmul.f32 %v5396_v21, %v5207_v62  ;;  %v5402_v24 = vmul.f32 %v5396_v21, %v5208_v55  ;;  %v5403_v17 = vmul.f32 %v5396_v21, %v5209_v41 }
 0x77d   : > { %5404 = vst.msk [vmem:[%s494_s24] sm:$0x7f] %vm5210_vm1, %v5397_v59  ;;  %5405 = vst.msk [vmem:[%s494_s24 + $0x8] sm:$0x7f] %vm5210_vm1, %v5398_v18 }
 0x77e   : > { %5406 = vst.msk [vmem:[%s494_s24 + $0x10] sm:$0x7f] %vm5210_vm1, %v5399_v16  ;;  %5407 = vst.msk [vmem:[%s494_s24 + $0x18] sm:$0x7f] %vm5210_vm1, %v5400_v40 }
 0x77f   : > { %5408 = vst.msk [vmem:[%s494_s24 + $0x20] sm:$0x7f] %vm5210_vm1, %v5401_v53  ;;  %5409 = vst.msk [vmem:[%s494_s24 + $0x28] sm:$0x7f] %vm5210_vm1, %v5402_v24 }
 0x780   : > { %5410 = vst.msk [vmem:[%s494_s24 + $0x30] sm:$0x7f] %vm5210_vm1, %v5403_v17 }
 0x781 PF: > { %s25_s18 = sadd.s32 1, %s6548_s18  }
 0x782   : > { %p22_p4 = scmp.ge.s32.totalorder %s25_s18, 4  }
 0x784   :  { %24 = sbr.rel (!%p22_p4) target bundleno = 1 (0x1), region = 110 }

</bundles_post_ra>
